<compile_context>
chip_gen: v7x
topology: tpu7x:2x2x1
jax: 0.10.0
libtpu: 0.0.40
codegen_flags: <defaults>
</compile_context>

<pallas_src>
import functools

import jax
import jax.numpy as jnp
from jax.experimental import pallas as pl
from jax.experimental.pallas import tpu as pltpu

# Matmul operand dtype (weights + shifted activation taps).  Accumulation is
# always f32 via preferred_element_type.  Set to jnp.float32 for full precision.
_MM_DTYPE = jnp.bfloat16

# Scoped-VMEM budget: above the 16/32 MiB defaults, headroom under v7x's 64 MiB.
_VMEM_LIMIT_BYTES = 48 * 1024 * 1024


# ----------------------------------------------------------------------------
# In-kernel conv helpers ((C, HW) layout: channels on sublanes, pixels on lanes)
# ----------------------------------------------------------------------------
def _shifted_tap(feat, s):
    """out[:, p] = feat[:, p + s], zero-filled where p + s is out of range."""
    if s == 0:
        return feat
    cin = feat.shape[0]
    if s > 0:
        pad = jnp.zeros((cin, s), feat.dtype)
        return jnp.concatenate([feat[:, s:], pad], axis=1)
    pad = jnp.zeros((cin, -s), feat.dtype)
    return jnp.concatenate([pad, feat[:, :s]], axis=1)


def _conv3x3(feat, w_ref, b_ref, W, cm_neg, cm_pos, relu=False):
    """3x3 'same' conv as nine shifted-tap MXU matmuls with f32 accumulation.

    feat:   (Cin, HW) f32 value (pixels on lanes).
    w_ref:  (9, Cout, Cin) ref in _MM_DTYPE, tap index t = kh*3 + kw.
    b_ref:  (Cout, 1) f32 ref.
    cm_neg / cm_pos: (1, HW) f32 border masks (valid for dw = -1 / dw = +1).
    """
    acc = None
    for kh in range(3):
        for kw in range(3):
            dh, dw = kh - 1, kw - 1
            tap = _shifted_tap(feat, dh * W + dw)
            if dw == -1:
                tap = tap * cm_neg            # zero the col == 0 border
            elif dw == 1:
                tap = tap * cm_pos            # zero the col == W-1 border
            part = jnp.dot(w_ref[kh * 3 + kw], tap.astype(_MM_DTYPE),
                           preferred_element_type=jnp.float32)
            acc = part if acc is None else acc + part
    y = acc + b_ref[...]
    return jnp.maximum(y, 0.0) if relu else y


def _conv1x1(feat, w_ref, b_ref):
    return jnp.dot(w_ref[...], feat.astype(_MM_DTYPE),
                   preferred_element_type=jnp.float32) + b_ref[...]


# ----------------------------------------------------------------------------
# Fused trunk kernel: sub_mean -> SFENet1/2 -> D RDBs -> GFF -> residual -> tail
# ----------------------------------------------------------------------------
def _build_trunk_kernel(W, G0, D, C, G, n_param_refs):

    def kernel(*refs):
        x_ref, sc_ref, sh_ref, cmn_ref, cmp_ref = refs[:5]
        w_refs = refs[5:5 + n_param_refs]
        o_ref = refs[5 + n_param_refs]
        catbuf, gffbuf = refs[5 + n_param_refs + 1:]

        cm_neg = cmn_ref[...]                 # (1, HW)
        cm_pos = cmp_ref[...]                 # (1, HW)

        # Unpack parameter refs in the exact order the wrapper packed them.
        it = iter(w_refs)
        sf1_w, sf1_b = next(it), next(it)
        sf2_w, sf2_b = next(it), next(it)
        rdb_p = []
        for _ in range(D):
            convs = [(next(it), next(it)) for _ in range(C)]
            lff = (next(it), next(it))
            rdb_p.append((convs, lff))
        gff1_w, gff1_b = next(it), next(it)
        gff2_w, gff2_b = next(it), next(it)
        tail_w, tail_b = next(it), next(it)

        # sub_mean (per-channel scale + shift, broadcast along the lane axis)
        x = x_ref[0] * sc_ref[...] + sh_ref[...]          # (n_colors, HW) f32

        # shallow feature extraction
        f1 = _conv3x3(x, sf1_w, sf1_b, W, cm_neg, cm_pos)
        x = _conv3x3(f1, sf2_w, sf2_b, W, cm_neg, cm_pos)

        # residual dense blocks; channel concats live in a VMEM slab
        for i in range(D):
            inp = x
            catbuf[0:G0, :] = x
            for c in range(C):
                cin = G0 + c * G
                grown = _conv3x3(catbuf[0:cin, :], rdb_p[i][0][c][0],
                                 rdb_p[i][0][c][1], W, cm_neg, cm_pos,
                                 relu=True)
                catbuf[cin:cin + G, :] = grown
            lff_w, lff_b = rdb_p[i][1]
            x = _conv1x1(catbuf[...], lff_w, lff_b) + inp  # LFF + local residual
            gffbuf[i * G0:(i + 1) * G0, :] = x             # RDBs_out concat

        # global feature fusion + global residual
        x = _conv1x1(gffbuf[...], gff1_w, gff1_b)
        x = _conv3x3(x, gff2_w, gff2_b, W, cm_neg, cm_pos)
        x = x + f1

        # tail SuperConv2d evaluated at exactly out_nc channels
        o_ref[0] = _conv3x3(x, tail_w, tail_b, W, cm_neg, cm_pos)

    return kernel


# ----------------------------------------------------------------------------
# Fused head kernel: out_conv (3x3) + add_mean
# ----------------------------------------------------------------------------
def _build_head_kernel(rW):

    def kernel(x_ref, sc_ref, sh_ref, cmn_ref, cmp_ref, w_ref, b_ref, o_ref):
        y = _conv3x3(x_ref[0], w_ref, b_ref, rW, cmn_ref[...], cmp_ref[...])
        o_ref[0] = y * sc_ref[...] + sh_ref[...]           # add_mean

    return kernel


# ----------------------------------------------------------------------------
# Wrappers
# ----------------------------------------------------------------------------
def _const_spec(shape):
    zeros = (0,) * len(shape)
    return pl.BlockSpec(tuple(shape), lambda n, _z=zeros: _z)


def _prep_conv3(w, b):
    # PyTorch (Cout, Cin, 3, 3) -> per-tap matmul layout (9, Cout, Cin)
    cout, cin, k, _ = w.shape
    wp = jnp.transpose(w, (2, 3, 0, 1)).reshape(k * k, cout, cin)
    return [wp.astype(_MM_DTYPE), b.reshape(cout, 1).astype(jnp.float32)]


def _prep_conv1(w, b):
    cout, cin = w.shape[0], w.shape[1]
    wp = w.reshape(cout, cin)
    return [wp.astype(_MM_DTYPE), b.reshape(cout, 1).astype(jnp.float32)]


def _mean_shift(rgb_range, rgb_mean, rgb_std, sign):
    std = jnp.asarray(rgb_std, jnp.float32).reshape(-1, 1)
    mean = jnp.asarray(rgb_mean, jnp.float32).reshape(-1, 1)
    scale = 1.0 / std
    shift = sign * rgb_range * mean / std
    return scale.astype(jnp.float32), shift.astype(jnp.float32)   # (3,1) each


def _border_masks(W, HW):
    col = jnp.arange(HW, dtype=jnp.int32) % W
    cm_neg = (col >= 1).astype(jnp.float32).reshape(1, HW)        # dw = -1 valid
    cm_pos = (col <= W - 2).astype(jnp.float32).reshape(1, HW)    # dw = +1 valid
    return cm_neg, cm_pos


def _run_trunk(x, sub_scale, sub_shift, cm_neg, cm_pos, flat_params,
               G0, D, C, G, W, out_nc):
    N, n_colors, HW = x.shape
    n_param_refs = len(flat_params)
    kernel = _build_trunk_kernel(W, G0, D, C, G, n_param_refs)

    in_specs = [pl.BlockSpec((1, n_colors, HW), lambda n: (n, 0, 0)),
                _const_spec(sub_scale.shape), _const_spec(sub_shift.shape),
                _const_spec(cm_neg.shape), _const_spec(cm_pos.shape)]
    in_specs += [_const_spec(p.shape) for p in flat_params]

    return pl.pallas_call(
        kernel,
        out_shape=jax.ShapeDtypeStruct((N, out_nc, HW), jnp.float32),
        grid_spec=pltpu.PrefetchScalarGridSpec(
            num_scalar_prefetch=0,
            grid=(N,),
            in_specs=in_specs,
            out_specs=pl.BlockSpec((1, out_nc, HW), lambda n: (n, 0, 0)),
            scratch_shapes=[
                pltpu.VMEM((G0 + C * G, HW), jnp.float32),   # RDB concat slab
                pltpu.VMEM((D * G0, HW), jnp.float32),       # GFF concat slab
            ]),
        compiler_params=pltpu.CompilerParams(
            dimension_semantics=("parallel",),
            vmem_limit_bytes=_VMEM_LIMIT_BYTES),
    )(x, sub_scale, sub_shift, cm_neg, cm_pos, *flat_params)


def _run_head(x, add_scale, add_shift, cm_neg, cm_pos, oc_w, oc_b, rW):
    N, cin, rHW = x.shape
    cout = oc_w.shape[1]
    kernel = _build_head_kernel(rW)
    return pl.pallas_call(
        kernel,
        out_shape=jax.ShapeDtypeStruct((N, cout, rHW), jnp.float32),
        grid_spec=pltpu.PrefetchScalarGridSpec(
            num_scalar_prefetch=0,
            grid=(N,),
            in_specs=[pl.BlockSpec((1, cin, rHW), lambda n: (n, 0, 0)),
                      _const_spec(add_scale.shape), _const_spec(add_shift.shape),
                      _const_spec(cm_neg.shape), _const_spec(cm_pos.shape),
                      _const_spec(oc_w.shape), _const_spec(oc_b.shape)],
            out_specs=pl.BlockSpec((1, cout, rHW), lambda n: (n, 0, 0))),
        compiler_params=pltpu.CompilerParams(
            dimension_semantics=("parallel",),
            vmem_limit_bytes=_VMEM_LIMIT_BYTES),
    )(x, add_scale, add_shift, cm_neg, cm_pos, oc_w, oc_b)


# ----------------------------------------------------------------------------
# Parameter construction (deterministic, synthetic; PyTorch weight layout)
# ----------------------------------------------------------------------------
def init_params(key, *, n_colors=3, G0=8, D=3, C=3, G=8, kSize=3):
    def conv_init(k, cout, cin, ks):
        kw, kb = jax.random.split(k)
        w = jax.random.normal(kw, (cout, cin, ks, ks), jnp.float32) * 0.05
        b = jax.random.normal(kb, (cout,), jnp.float32) * 0.01
        return w, b

    keys = iter(jax.random.split(key, 8 + D * (C + 1)))
    p = {}
    p["SFENet1"] = conv_init(next(keys), G0, n_colors, kSize)
    p["SFENet2"] = conv_init(next(keys), G0, G0, kSize)
    rdbs = []
    for _ in range(D):
        convs = [conv_init(next(keys), G, G0 + c * G, kSize) for c in range(C)]
        lff = conv_init(next(keys), G0, G0 + C * G, 1)
        rdbs.append({"convs": convs, "lff": lff})
    p["RDBs"] = rdbs
    p["GFF1"] = conv_init(next(keys), G0, D * G0, 1)
    p["GFF2"] = conv_init(next(keys), G0, G0, kSize)
    p["tail"] = conv_init(next(keys), G0 * 16, G0, 3)        # SuperConv2d weights
    p["out_conv"] = conv_init(next(keys), 3, G0, kSize)
    return p


# ----------------------------------------------------------------------------
# MultiRDN forward
# ----------------------------------------------------------------------------
@functools.partial(jax.jit, static_argnames=("scale",))
def multi_rdn_forward(params, x_nchw, *, scale, rgb_range=255.0):
    rgb_mean = (0.4488, 0.4371, 0.4040)
    rgb_std = (1.0, 1.0, 1.0)
    sub_scale, sub_shift = _mean_shift(rgb_range, rgb_mean, rgb_std, -1.0)
    add_scale, add_shift = _mean_shift(rgb_range, rgb_mean, rgb_std, 1.0)

    # static config derived from the parameter pytree / input shape
    D = len(params["RDBs"])
    C = len(params["RDBs"][0]["convs"])
    G = params["RDBs"][0]["convs"][0][0].shape[0]
    G0 = params["SFENet2"][0].shape[0]

    N, n_colors, H, W = x_nchw.shape
    HW = H * W
    out_nc = scale * scale * G0

    # flatten + convert weights to (C, HW)-orientation matmul layout
    flat = []
    flat += _prep_conv3(*params["SFENet1"])
    flat += _prep_conv3(*params["SFENet2"])
    for rdb in params["RDBs"]:
        for (w, b) in rdb["convs"]:
            flat += _prep_conv3(w, b)
        flat += _prep_conv1(*rdb["lff"])
    flat += _prep_conv1(*params["GFF1"])
    flat += _prep_conv3(*params["GFF2"])
    # TODO(synk): SuperConv2d source not provided; modeled as the first out_nc
    # output channels of the full G0*16-channel conv (computed at exactly
    # out_nc channels so there is no wasted tail MXU work or post-kernel slice).
    tw, tb = params["tail"]
    flat += _prep_conv3(tw[:out_nc], tb[:out_nc])

    cm_neg, cm_pos = _border_masks(W, HW)
    x = x_nchw.reshape(N, n_colors, HW).astype(jnp.float32)   # channels-first
    feat = _run_trunk(x, sub_scale, sub_shift, cm_neg, cm_pos, flat,
                      G0, D, C, G, W, out_nc)                  # (N, out_nc, HW)

    # nn.PixelShuffle(scale) in NCHW (plain XLA reshape/transpose)
    r = scale
    feat = feat.reshape(N, G0, r, r, H, W)
    feat = jnp.transpose(feat, (0, 1, 4, 2, 5, 3))
    feat = feat.reshape(N, G0, H * r * W * r)                  # (N, G0, rH*rW)

    rW = W * r
    cm_neg_h, cm_pos_h = _border_masks(rW, H * r * rW)
    oc_w, oc_b = _prep_conv3(*params["out_conv"])
    y = _run_head(feat, add_scale, add_shift, cm_neg_h, cm_pos_h,
                  oc_w, oc_b, rW)                              # (N, 3, rH*rW)
    return y.reshape(N, 3, H * r, W * r)                       # NCHW, no transpose


# ----------------------------------------------------------------------------
if __name__ == "__main__":
    key = jax.random.PRNGKey(0)
    kx, kp = jax.random.split(key)

    # small synthetic config (config 'A' would be D=20, C=6, G=32)
    G0, D, C, G = 8, 3, 3, 8
    scale = 2

    x = jax.random.uniform(kx, (2, 3, 16, 16), jnp.float32) * 255.0
    params = init_params(kp, n_colors=3, G0=G0, D=D, C=C, G=G, kSize=3)

    out = multi_rdn_forward(params, x, scale=scale)
    out = jax.block_until_ready(out)
    assert out.shape == (2, 3, 16 * scale, 16 * scale), out.shape
    print("KERNEL_OK")
</pallas_src>

<mosaic_0001>
module attributes {stable_mosaic.version = 11 : i64} {
  func.func @kernel(%arg0: i32, %arg1: memref<1x3x256xf32, #tpu.memory_space<vmem>>, %arg2: memref<3x1xf32, #tpu.memory_space<vmem>>, %arg3: memref<3x1xf32, #tpu.memory_space<vmem>>, %arg4: memref<1x256xf32, #tpu.memory_space<vmem>>, %arg5: memref<1x256xf32, #tpu.memory_space<vmem>>, %arg6: memref<9x8x3xbf16, #tpu.memory_space<vmem>>, %arg7: memref<8x1xf32, #tpu.memory_space<vmem>>, %arg8: memref<9x8x8xbf16, #tpu.memory_space<vmem>>, %arg9: memref<8x1xf32, #tpu.memory_space<vmem>>, %arg10: memref<9x8x8xbf16, #tpu.memory_space<vmem>>, %arg11: memref<8x1xf32, #tpu.memory_space<vmem>>, %arg12: memref<9x8x16xbf16, #tpu.memory_space<vmem>>, %arg13: memref<8x1xf32, #tpu.memory_space<vmem>>, %arg14: memref<9x8x24xbf16, #tpu.memory_space<vmem>>, %arg15: memref<8x1xf32, #tpu.memory_space<vmem>>, %arg16: memref<8x32xbf16, #tpu.memory_space<vmem>>, %arg17: memref<8x1xf32, #tpu.memory_space<vmem>>, %arg18: memref<9x8x8xbf16, #tpu.memory_space<vmem>>, %arg19: memref<8x1xf32, #tpu.memory_space<vmem>>, %arg20: memref<9x8x16xbf16, #tpu.memory_space<vmem>>, %arg21: memref<8x1xf32, #tpu.memory_space<vmem>>, %arg22: memref<9x8x24xbf16, #tpu.memory_space<vmem>>, %arg23: memref<8x1xf32, #tpu.memory_space<vmem>>, %arg24: memref<8x32xbf16, #tpu.memory_space<vmem>>, %arg25: memref<8x1xf32, #tpu.memory_space<vmem>>, %arg26: memref<9x8x8xbf16, #tpu.memory_space<vmem>>, %arg27: memref<8x1xf32, #tpu.memory_space<vmem>>, %arg28: memref<9x8x16xbf16, #tpu.memory_space<vmem>>, %arg29: memref<8x1xf32, #tpu.memory_space<vmem>>, %arg30: memref<9x8x24xbf16, #tpu.memory_space<vmem>>, %arg31: memref<8x1xf32, #tpu.memory_space<vmem>>, %arg32: memref<8x32xbf16, #tpu.memory_space<vmem>>, %arg33: memref<8x1xf32, #tpu.memory_space<vmem>>, %arg34: memref<8x24xbf16, #tpu.memory_space<vmem>>, %arg35: memref<8x1xf32, #tpu.memory_space<vmem>>, %arg36: memref<9x8x8xbf16, #tpu.memory_space<vmem>>, %arg37: memref<8x1xf32, #tpu.memory_space<vmem>>, %arg38: memref<9x32x8xbf16, #tpu.memory_space<vmem>>, %arg39: memref<32x1xf32, #tpu.memory_space<vmem>>, %arg40: memref<1x32x256xf32, #tpu.memory_space<vmem>>, %arg41: memref<32x256xf32, #tpu.memory_space<vmem>>, %arg42: memref<24x256xf32, #tpu.memory_space<vmem>>) attributes {dimension_semantics = [#tpu.dimension_semantics<parallel>], iteration_bounds = array<i64: 2>, scalar_prefetch = 0 : i64, scratch_operands = 2 : i64, tpu.core_type = #tpu.core_type<tc>, window_params = [{transform_indices = @transform_0, window_bounds = array<i64: 1, 3, 256>}, {pipeline_mode = #tpu.pipeline_mode<synchronous>, transform_indices = @transform_1, window_bounds = array<i64: 3, 1>}, {pipeline_mode = #tpu.pipeline_mode<synchronous>, transform_indices = @transform_2, window_bounds = array<i64: 3, 1>}, {pipeline_mode = #tpu.pipeline_mode<synchronous>, transform_indices = @transform_3, window_bounds = array<i64: 1, 256>}, {pipeline_mode = #tpu.pipeline_mode<synchronous>, transform_indices = @transform_4, window_bounds = array<i64: 1, 256>}, {pipeline_mode = #tpu.pipeline_mode<synchronous>, transform_indices = @transform_5, window_bounds = array<i64: 9, 8, 3>}, {pipeline_mode = #tpu.pipeline_mode<synchronous>, transform_indices = @transform_6, window_bounds = array<i64: 8, 1>}, {pipeline_mode = #tpu.pipeline_mode<synchronous>, transform_indices = @transform_7, window_bounds = array<i64: 9, 8, 8>}, {pipeline_mode = #tpu.pipeline_mode<synchronous>, transform_indices = @transform_8, window_bounds = array<i64: 8, 1>}, {pipeline_mode = #tpu.pipeline_mode<synchronous>, transform_indices = @transform_9, window_bounds = array<i64: 9, 8, 8>}, {pipeline_mode = #tpu.pipeline_mode<synchronous>, transform_indices = @transform_10, window_bounds = array<i64: 8, 1>}, {pipeline_mode = #tpu.pipeline_mode<synchronous>, transform_indices = @transform_11, window_bounds = array<i64: 9, 8, 16>}, {pipeline_mode = #tpu.pipeline_mode<synchronous>, transform_indices = @transform_12, window_bounds = array<i64: 8, 1>}, {pipeline_mode = #tpu.pipeline_mode<synchronous>, transform_indices = @transform_13, window_bounds = array<i64: 9, 8, 24>}, {pipeline_mode = #tpu.pipeline_mode<synchronous>, transform_indices = @transform_14, window_bounds = array<i64: 8, 1>}, {pipeline_mode = #tpu.pipeline_mode<synchronous>, transform_indices = @transform_15, window_bounds = array<i64: 8, 32>}, {pipeline_mode = #tpu.pipeline_mode<synchronous>, transform_indices = @transform_16, window_bounds = array<i64: 8, 1>}, {pipeline_mode = #tpu.pipeline_mode<synchronous>, transform_indices = @transform_17, window_bounds = array<i64: 9, 8, 8>}, {pipeline_mode = #tpu.pipeline_mode<synchronous>, transform_indices = @transform_18, window_bounds = array<i64: 8, 1>}, {pipeline_mode = #tpu.pipeline_mode<synchronous>, transform_indices = @transform_19, window_bounds = array<i64: 9, 8, 16>}, {pipeline_mode = #tpu.pipeline_mode<synchronous>, transform_indices = @transform_20, window_bounds = array<i64: 8, 1>}, {pipeline_mode = #tpu.pipeline_mode<synchronous>, transform_indices = @transform_21, window_bounds = array<i64: 9, 8, 24>}, {pipeline_mode = #tpu.pipeline_mode<synchronous>, transform_indices = @transform_22, window_bounds = array<i64: 8, 1>}, {pipeline_mode = #tpu.pipeline_mode<synchronous>, transform_indices = @transform_23, window_bounds = array<i64: 8, 32>}, {pipeline_mode = #tpu.pipeline_mode<synchronous>, transform_indices = @transform_24, window_bounds = array<i64: 8, 1>}, {pipeline_mode = #tpu.pipeline_mode<synchronous>, transform_indices = @transform_25, window_bounds = array<i64: 9, 8, 8>}, {pipeline_mode = #tpu.pipeline_mode<synchronous>, transform_indices = @transform_26, window_bounds = array<i64: 8, 1>}, {pipeline_mode = #tpu.pipeline_mode<synchronous>, transform_indices = @transform_27, window_bounds = array<i64: 9, 8, 16>}, {pipeline_mode = #tpu.pipeline_mode<synchronous>, transform_indices = @transform_28, window_bounds = array<i64: 8, 1>}, {pipeline_mode = #tpu.pipeline_mode<synchronous>, transform_indices = @transform_29, window_bounds = array<i64: 9, 8, 24>}, {pipeline_mode = #tpu.pipeline_mode<synchronous>, transform_indices = @transform_30, window_bounds = array<i64: 8, 1>}, {pipeline_mode = #tpu.pipeline_mode<synchronous>, transform_indices = @transform_31, window_bounds = array<i64: 8, 32>}, {pipeline_mode = #tpu.pipeline_mode<synchronous>, transform_indices = @transform_32, window_bounds = array<i64: 8, 1>}, {pipeline_mode = #tpu.pipeline_mode<synchronous>, transform_indices = @transform_33, window_bounds = array<i64: 8, 24>}, {pipeline_mode = #tpu.pipeline_mode<synchronous>, transform_indices = @transform_34, window_bounds = array<i64: 8, 1>}, {pipeline_mode = #tpu.pipeline_mode<synchronous>, transform_indices = @transform_35, window_bounds = array<i64: 9, 8, 8>}, {pipeline_mode = #tpu.pipeline_mode<synchronous>, transform_indices = @transform_36, window_bounds = array<i64: 8, 1>}, {pipeline_mode = #tpu.pipeline_mode<synchronous>, transform_indices = @transform_37, window_bounds = array<i64: 9, 32, 8>}, {pipeline_mode = #tpu.pipeline_mode<synchronous>, transform_indices = @transform_38, window_bounds = array<i64: 32, 1>}, {transform_indices = @transform_39, window_bounds = array<i64: 1, 32, 256>}]} {
    %c0 = arith.constant 0 : index
    %c0_0 = arith.constant 0 : index
    %0 = vector.load %arg4[%c0, %c0_0] : memref<1x256xf32, #tpu.memory_space<vmem>>, vector<1x256xf32>
    %c0_1 = arith.constant 0 : index
    %c0_2 = arith.constant 0 : index
    %1 = vector.load %arg5[%c0_1, %c0_2] : memref<1x256xf32, #tpu.memory_space<vmem>>, vector<1x256xf32>
    %c0_3 = arith.constant 0 : index
    %c0_4 = arith.constant 0 : index
    %c0_5 = arith.constant 0 : index
    %2 = vector.load %arg1[%c0_3, %c0_4, %c0_5] : memref<1x3x256xf32, #tpu.memory_space<vmem>>, vector<1x3x256xf32>
    %3 = vector.shape_cast %2 : vector<1x3x256xf32> to vector<3x256xf32>
    %c0_6 = arith.constant 0 : index
    %c0_7 = arith.constant 0 : index
    %4 = vector.load %arg2[%c0_6, %c0_7] : memref<3x1xf32, #tpu.memory_space<vmem>>, vector<3x1xf32>
    %5 = vector.broadcast %4 : vector<3x1xf32> to vector<3x256xf32>
    %6 = arith.mulf %3, %5 : vector<3x256xf32>
    %c0_8 = arith.constant 0 : index
    %c0_9 = arith.constant 0 : index
    %7 = vector.load %arg3[%c0_8, %c0_9] : memref<3x1xf32, #tpu.memory_space<vmem>>, vector<3x1xf32>
    %8 = vector.broadcast %7 : vector<3x1xf32> to vector<3x256xf32>
    %9 = arith.addf %6, %8 : vector<3x256xf32>
    %cst = arith.constant 0.000000e+00 : f32
    %10 = vector.broadcast %cst : f32 to vector<3x17xf32>
    %11 = vector.extract_strided_slice %9 {offsets = [0, 0], sizes = [3, 239], strides = [1, 1]} : vector<3x256xf32> to vector<3x239xf32>
    %12 = tpu.concatenate %10, %11 in 1 : vector<3x17xf32>, vector<3x239xf32> -> vector<3x256xf32>
    %13 = vector.broadcast %0 : vector<1x256xf32> to vector<3x256xf32>
    %14 = arith.mulf %12, %13 : vector<3x256xf32>
    %c0_10 = arith.constant 0 : index
    %c0_11 = arith.constant 0 : index
    %c0_12 = arith.constant 0 : index
    %15 = vector.load %arg6[%c0_10, %c0_11, %c0_12] : memref<9x8x3xbf16, #tpu.memory_space<vmem>>, vector<1x8x3xbf16>
    %16 = vector.shape_cast %15 : vector<1x8x3xbf16> to vector<8x3xbf16>
    %17 = arith.truncf %14 : vector<3x256xf32> to vector<3x256xbf16>
    %cst_13 = arith.constant dense<0.000000e+00> : vector<8x256xf32>
    %18 = tpu.matmul %16, %17, %cst_13 {dimension_numbers = #tpu.dot_dimension_numbers<[1], [0], [0], [1], [0, 0, 1, 1], [], []>} : vector<8x3xbf16>, vector<3x256xbf16>, vector<8x256xf32> -> vector<8x256xf32>
    %cst_14 = arith.constant 0.000000e+00 : f32
    %19 = vector.broadcast %cst_14 : f32 to vector<3x16xf32>
    %20 = vector.extract_strided_slice %9 {offsets = [0, 0], sizes = [3, 240], strides = [1, 1]} : vector<3x256xf32> to vector<3x240xf32>
    %21 = tpu.concatenate %19, %20 in 1 : vector<3x16xf32>, vector<3x240xf32> -> vector<3x256xf32>
    %c1 = arith.constant 1 : index
    %c0_15 = arith.constant 0 : index
    %c0_16 = arith.constant 0 : index
    %22 = vector.load %arg6[%c1, %c0_15, %c0_16] : memref<9x8x3xbf16, #tpu.memory_space<vmem>>, vector<1x8x3xbf16>
    %23 = vector.shape_cast %22 : vector<1x8x3xbf16> to vector<8x3xbf16>
    %24 = arith.truncf %21 : vector<3x256xf32> to vector<3x256xbf16>
    %cst_17 = arith.constant dense<0.000000e+00> : vector<8x256xf32>
    %25 = tpu.matmul %23, %24, %cst_17 {dimension_numbers = #tpu.dot_dimension_numbers<[1], [0], [0], [1], [0, 0, 1, 1], [], []>} : vector<8x3xbf16>, vector<3x256xbf16>, vector<8x256xf32> -> vector<8x256xf32>
    %26 = arith.addf %18, %25 : vector<8x256xf32>
    %cst_18 = arith.constant 0.000000e+00 : f32
    %27 = vector.broadcast %cst_18 : f32 to vector<3x15xf32>
    %28 = vector.extract_strided_slice %9 {offsets = [0, 0], sizes = [3, 241], strides = [1, 1]} : vector<3x256xf32> to vector<3x241xf32>
    %29 = tpu.concatenate %27, %28 in 1 : vector<3x15xf32>, vector<3x241xf32> -> vector<3x256xf32>
    %30 = vector.broadcast %1 : vector<1x256xf32> to vector<3x256xf32>
    %31 = arith.mulf %29, %30 : vector<3x256xf32>
    %c2 = arith.constant 2 : index
    %c0_19 = arith.constant 0 : index
    %c0_20 = arith.constant 0 : index
    %32 = vector.load %arg6[%c2, %c0_19, %c0_20] : memref<9x8x3xbf16, #tpu.memory_space<vmem>>, vector<1x8x3xbf16>
    %33 = vector.shape_cast %32 : vector<1x8x3xbf16> to vector<8x3xbf16>
    %34 = arith.truncf %31 : vector<3x256xf32> to vector<3x256xbf16>
    %cst_21 = arith.constant dense<0.000000e+00> : vector<8x256xf32>
    %35 = tpu.matmul %33, %34, %cst_21 {dimension_numbers = #tpu.dot_dimension_numbers<[1], [0], [0], [1], [0, 0, 1, 1], [], []>} : vector<8x3xbf16>, vector<3x256xbf16>, vector<8x256xf32> -> vector<8x256xf32>
    %36 = arith.addf %26, %35 : vector<8x256xf32>
    %cst_22 = arith.constant 0.000000e+00 : f32
    %37 = vector.broadcast %cst_22 : f32 to vector<3x1xf32>
    %38 = vector.extract_strided_slice %9 {offsets = [0, 0], sizes = [3, 255], strides = [1, 1]} : vector<3x256xf32> to vector<3x255xf32>
    %39 = tpu.concatenate %37, %38 in 1 : vector<3x1xf32>, vector<3x255xf32> -> vector<3x256xf32>
    %40 = vector.broadcast %0 : vector<1x256xf32> to vector<3x256xf32>
    %41 = arith.mulf %39, %40 : vector<3x256xf32>
    %c3 = arith.constant 3 : index
    %c0_23 = arith.constant 0 : index
    %c0_24 = arith.constant 0 : index
    %42 = vector.load %arg6[%c3, %c0_23, %c0_24] : memref<9x8x3xbf16, #tpu.memory_space<vmem>>, vector<1x8x3xbf16>
    %43 = vector.shape_cast %42 : vector<1x8x3xbf16> to vector<8x3xbf16>
    %44 = arith.truncf %41 : vector<3x256xf32> to vector<3x256xbf16>
    %cst_25 = arith.constant dense<0.000000e+00> : vector<8x256xf32>
    %45 = tpu.matmul %43, %44, %cst_25 {dimension_numbers = #tpu.dot_dimension_numbers<[1], [0], [0], [1], [0, 0, 1, 1], [], []>} : vector<8x3xbf16>, vector<3x256xbf16>, vector<8x256xf32> -> vector<8x256xf32>
    %46 = arith.addf %36, %45 : vector<8x256xf32>
    %c4 = arith.constant 4 : index
    %c0_26 = arith.constant 0 : index
    %c0_27 = arith.constant 0 : index
    %47 = vector.load %arg6[%c4, %c0_26, %c0_27] : memref<9x8x3xbf16, #tpu.memory_space<vmem>>, vector<1x8x3xbf16>
    %48 = vector.shape_cast %47 : vector<1x8x3xbf16> to vector<8x3xbf16>
    %49 = arith.truncf %9 : vector<3x256xf32> to vector<3x256xbf16>
    %cst_28 = arith.constant dense<0.000000e+00> : vector<8x256xf32>
    %50 = tpu.matmul %48, %49, %cst_28 {dimension_numbers = #tpu.dot_dimension_numbers<[1], [0], [0], [1], [0, 0, 1, 1], [], []>} : vector<8x3xbf16>, vector<3x256xbf16>, vector<8x256xf32> -> vector<8x256xf32>
    %51 = arith.addf %46, %50 : vector<8x256xf32>
    %cst_29 = arith.constant 0.000000e+00 : f32
    %52 = vector.broadcast %cst_29 : f32 to vector<3x1xf32>
    %53 = vector.extract_strided_slice %9 {offsets = [0, 1], sizes = [3, 255], strides = [1, 1]} : vector<3x256xf32> to vector<3x255xf32>
    %54 = tpu.concatenate %53, %52 in 1 : vector<3x255xf32>, vector<3x1xf32> -> vector<3x256xf32>
    %55 = vector.broadcast %1 : vector<1x256xf32> to vector<3x256xf32>
    %56 = arith.mulf %54, %55 : vector<3x256xf32>
    %c5 = arith.constant 5 : index
    %c0_30 = arith.constant 0 : index
    %c0_31 = arith.constant 0 : index
    %57 = vector.load %arg6[%c5, %c0_30, %c0_31] : memref<9x8x3xbf16, #tpu.memory_space<vmem>>, vector<1x8x3xbf16>
    %58 = vector.shape_cast %57 : vector<1x8x3xbf16> to vector<8x3xbf16>
    %59 = arith.truncf %56 : vector<3x256xf32> to vector<3x256xbf16>
    %cst_32 = arith.constant dense<0.000000e+00> : vector<8x256xf32>
    %60 = tpu.matmul %58, %59, %cst_32 {dimension_numbers = #tpu.dot_dimension_numbers<[1], [0], [0], [1], [0, 0, 1, 1], [], []>} : vector<8x3xbf16>, vector<3x256xbf16>, vector<8x256xf32> -> vector<8x256xf32>
    %61 = arith.addf %51, %60 : vector<8x256xf32>
    %cst_33 = arith.constant 0.000000e+00 : f32
    %62 = vector.broadcast %cst_33 : f32 to vector<3x15xf32>
    %63 = vector.extract_strided_slice %9 {offsets = [0, 15], sizes = [3, 241], strides = [1, 1]} : vector<3x256xf32> to vector<3x241xf32>
    %64 = tpu.concatenate %63, %62 in 1 : vector<3x241xf32>, vector<3x15xf32> -> vector<3x256xf32>
    %65 = vector.broadcast %0 : vector<1x256xf32> to vector<3x256xf32>
    %66 = arith.mulf %64, %65 : vector<3x256xf32>
    %c6 = arith.constant 6 : index
    %c0_34 = arith.constant 0 : index
    %c0_35 = arith.constant 0 : index
    %67 = vector.load %arg6[%c6, %c0_34, %c0_35] : memref<9x8x3xbf16, #tpu.memory_space<vmem>>, vector<1x8x3xbf16>
    %68 = vector.shape_cast %67 : vector<1x8x3xbf16> to vector<8x3xbf16>
    %69 = arith.truncf %66 : vector<3x256xf32> to vector<3x256xbf16>
    %cst_36 = arith.constant dense<0.000000e+00> : vector<8x256xf32>
    %70 = tpu.matmul %68, %69, %cst_36 {dimension_numbers = #tpu.dot_dimension_numbers<[1], [0], [0], [1], [0, 0, 1, 1], [], []>} : vector<8x3xbf16>, vector<3x256xbf16>, vector<8x256xf32> -> vector<8x256xf32>
    %71 = arith.addf %61, %70 : vector<8x256xf32>
    %cst_37 = arith.constant 0.000000e+00 : f32
    %72 = vector.broadcast %cst_37 : f32 to vector<3x16xf32>
    %73 = vector.extract_strided_slice %9 {offsets = [0, 16], sizes = [3, 240], strides = [1, 1]} : vector<3x256xf32> to vector<3x240xf32>
    %74 = tpu.concatenate %73, %72 in 1 : vector<3x240xf32>, vector<3x16xf32> -> vector<3x256xf32>
    %c7 = arith.constant 7 : index
    %c0_38 = arith.constant 0 : index
    %c0_39 = arith.constant 0 : index
    %75 = vector.load %arg6[%c7, %c0_38, %c0_39] : memref<9x8x3xbf16, #tpu.memory_space<vmem>>, vector<1x8x3xbf16>
    %76 = vector.shape_cast %75 : vector<1x8x3xbf16> to vector<8x3xbf16>
    %77 = arith.truncf %74 : vector<3x256xf32> to vector<3x256xbf16>
    %cst_40 = arith.constant dense<0.000000e+00> : vector<8x256xf32>
    %78 = tpu.matmul %76, %77, %cst_40 {dimension_numbers = #tpu.dot_dimension_numbers<[1], [0], [0], [1], [0, 0, 1, 1], [], []>} : vector<8x3xbf16>, vector<3x256xbf16>, vector<8x256xf32> -> vector<8x256xf32>
    %79 = arith.addf %71, %78 : vector<8x256xf32>
    %cst_41 = arith.constant 0.000000e+00 : f32
    %80 = vector.broadcast %cst_41 : f32 to vector<3x17xf32>
    %81 = vector.extract_strided_slice %9 {offsets = [0, 17], sizes = [3, 239], strides = [1, 1]} : vector<3x256xf32> to vector<3x239xf32>
    %82 = tpu.concatenate %81, %80 in 1 : vector<3x239xf32>, vector<3x17xf32> -> vector<3x256xf32>
    %83 = vector.broadcast %1 : vector<1x256xf32> to vector<3x256xf32>
    %84 = arith.mulf %82, %83 : vector<3x256xf32>
    %c8 = arith.constant 8 : index
    %c0_42 = arith.constant 0 : index
    %c0_43 = arith.constant 0 : index
    %85 = vector.load %arg6[%c8, %c0_42, %c0_43] : memref<9x8x3xbf16, #tpu.memory_space<vmem>>, vector<1x8x3xbf16>
    %86 = vector.shape_cast %85 : vector<1x8x3xbf16> to vector<8x3xbf16>
    %87 = arith.truncf %84 : vector<3x256xf32> to vector<3x256xbf16>
    %cst_44 = arith.constant dense<0.000000e+00> : vector<8x256xf32>
    %88 = tpu.matmul %86, %87, %cst_44 {dimension_numbers = #tpu.dot_dimension_numbers<[1], [0], [0], [1], [0, 0, 1, 1], [], []>} : vector<8x3xbf16>, vector<3x256xbf16>, vector<8x256xf32> -> vector<8x256xf32>
    %89 = arith.addf %79, %88 : vector<8x256xf32>
    %c0_45 = arith.constant 0 : index
    %c0_46 = arith.constant 0 : index
    %90 = vector.load %arg7[%c0_45, %c0_46] : memref<8x1xf32, #tpu.memory_space<vmem>>, vector<8x1xf32>
    %91 = vector.broadcast %90 : vector<8x1xf32> to vector<8x256xf32>
    %92 = arith.addf %89, %91 : vector<8x256xf32>
    %cst_47 = arith.constant 0.000000e+00 : f32
    %93 = vector.broadcast %cst_47 : f32 to vector<8x17xf32>
    %94 = vector.extract_strided_slice %92 {offsets = [0, 0], sizes = [8, 239], strides = [1, 1]} : vector<8x256xf32> to vector<8x239xf32>
    %95 = tpu.concatenate %93, %94 in 1 : vector<8x17xf32>, vector<8x239xf32> -> vector<8x256xf32>
    %96 = vector.broadcast %0 : vector<1x256xf32> to vector<8x256xf32>
    %97 = arith.mulf %95, %96 : vector<8x256xf32>
    %c0_48 = arith.constant 0 : index
    %c0_49 = arith.constant 0 : index
    %c0_50 = arith.constant 0 : index
    %98 = vector.load %arg8[%c0_48, %c0_49, %c0_50] : memref<9x8x8xbf16, #tpu.memory_space<vmem>>, vector<1x8x8xbf16>
    %99 = vector.shape_cast %98 : vector<1x8x8xbf16> to vector<8x8xbf16>
    %100 = arith.truncf %97 : vector<8x256xf32> to vector<8x256xbf16>
    %cst_51 = arith.constant dense<0.000000e+00> : vector<8x256xf32>
    %101 = tpu.matmul %99, %100, %cst_51 {dimension_numbers = #tpu.dot_dimension_numbers<[1], [0], [0], [1], [0, 0, 1, 1], [], []>} : vector<8x8xbf16>, vector<8x256xbf16>, vector<8x256xf32> -> vector<8x256xf32>
    %cst_52 = arith.constant 0.000000e+00 : f32
    %102 = vector.broadcast %cst_52 : f32 to vector<8x16xf32>
    %103 = vector.extract_strided_slice %92 {offsets = [0, 0], sizes = [8, 240], strides = [1, 1]} : vector<8x256xf32> to vector<8x240xf32>
    %104 = tpu.concatenate %102, %103 in 1 : vector<8x16xf32>, vector<8x240xf32> -> vector<8x256xf32>
    %c1_53 = arith.constant 1 : index
    %c0_54 = arith.constant 0 : index
    %c0_55 = arith.constant 0 : index
    %105 = vector.load %arg8[%c1_53, %c0_54, %c0_55] : memref<9x8x8xbf16, #tpu.memory_space<vmem>>, vector<1x8x8xbf16>
    %106 = vector.shape_cast %105 : vector<1x8x8xbf16> to vector<8x8xbf16>
    %107 = arith.truncf %104 : vector<8x256xf32> to vector<8x256xbf16>
    %cst_56 = arith.constant dense<0.000000e+00> : vector<8x256xf32>
    %108 = tpu.matmul %106, %107, %cst_56 {dimension_numbers = #tpu.dot_dimension_numbers<[1], [0], [0], [1], [0, 0, 1, 1], [], []>} : vector<8x8xbf16>, vector<8x256xbf16>, vector<8x256xf32> -> vector<8x256xf32>
    %109 = arith.addf %101, %108 : vector<8x256xf32>
    %cst_57 = arith.constant 0.000000e+00 : f32
    %110 = vector.broadcast %cst_57 : f32 to vector<8x15xf32>
    %111 = vector.extract_strided_slice %92 {offsets = [0, 0], sizes = [8, 241], strides = [1, 1]} : vector<8x256xf32> to vector<8x241xf32>
    %112 = tpu.concatenate %110, %111 in 1 : vector<8x15xf32>, vector<8x241xf32> -> vector<8x256xf32>
    %113 = vector.broadcast %1 : vector<1x256xf32> to vector<8x256xf32>
    %114 = arith.mulf %112, %113 : vector<8x256xf32>
    %c2_58 = arith.constant 2 : index
    %c0_59 = arith.constant 0 : index
    %c0_60 = arith.constant 0 : index
    %115 = vector.load %arg8[%c2_58, %c0_59, %c0_60] : memref<9x8x8xbf16, #tpu.memory_space<vmem>>, vector<1x8x8xbf16>
    %116 = vector.shape_cast %115 : vector<1x8x8xbf16> to vector<8x8xbf16>
    %117 = arith.truncf %114 : vector<8x256xf32> to vector<8x256xbf16>
    %cst_61 = arith.constant dense<0.000000e+00> : vector<8x256xf32>
    %118 = tpu.matmul %116, %117, %cst_61 {dimension_numbers = #tpu.dot_dimension_numbers<[1], [0], [0], [1], [0, 0, 1, 1], [], []>} : vector<8x8xbf16>, vector<8x256xbf16>, vector<8x256xf32> -> vector<8x256xf32>
    %119 = arith.addf %109, %118 : vector<8x256xf32>
    %cst_62 = arith.constant 0.000000e+00 : f32
    %120 = vector.broadcast %cst_62 : f32 to vector<8x1xf32>
    %121 = vector.extract_strided_slice %92 {offsets = [0, 0], sizes = [8, 255], strides = [1, 1]} : vector<8x256xf32> to vector<8x255xf32>
    %122 = tpu.concatenate %120, %121 in 1 : vector<8x1xf32>, vector<8x255xf32> -> vector<8x256xf32>
    %123 = vector.broadcast %0 : vector<1x256xf32> to vector<8x256xf32>
    %124 = arith.mulf %122, %123 : vector<8x256xf32>
    %c3_63 = arith.constant 3 : index
    %c0_64 = arith.constant 0 : index
    %c0_65 = arith.constant 0 : index
    %125 = vector.load %arg8[%c3_63, %c0_64, %c0_65] : memref<9x8x8xbf16, #tpu.memory_space<vmem>>, vector<1x8x8xbf16>
    %126 = vector.shape_cast %125 : vector<1x8x8xbf16> to vector<8x8xbf16>
    %127 = arith.truncf %124 : vector<8x256xf32> to vector<8x256xbf16>
    %cst_66 = arith.constant dense<0.000000e+00> : vector<8x256xf32>
    %128 = tpu.matmul %126, %127, %cst_66 {dimension_numbers = #tpu.dot_dimension_numbers<[1], [0], [0], [1], [0, 0, 1, 1], [], []>} : vector<8x8xbf16>, vector<8x256xbf16>, vector<8x256xf32> -> vector<8x256xf32>
    %129 = arith.addf %119, %128 : vector<8x256xf32>
    %c4_67 = arith.constant 4 : index
    %c0_68 = arith.constant 0 : index
    %c0_69 = arith.constant 0 : index
    %130 = vector.load %arg8[%c4_67, %c0_68, %c0_69] : memref<9x8x8xbf16, #tpu.memory_space<vmem>>, vector<1x8x8xbf16>
    %131 = vector.shape_cast %130 : vector<1x8x8xbf16> to vector<8x8xbf16>
    %132 = arith.truncf %92 : vector<8x256xf32> to vector<8x256xbf16>
    %cst_70 = arith.constant dense<0.000000e+00> : vector<8x256xf32>
    %133 = tpu.matmul %131, %132, %cst_70 {dimension_numbers = #tpu.dot_dimension_numbers<[1], [0], [0], [1], [0, 0, 1, 1], [], []>} : vector<8x8xbf16>, vector<8x256xbf16>, vector<8x256xf32> -> vector<8x256xf32>
    %134 = arith.addf %129, %133 : vector<8x256xf32>
    %cst_71 = arith.constant 0.000000e+00 : f32
    %135 = vector.broadcast %cst_71 : f32 to vector<8x1xf32>
    %136 = vector.extract_strided_slice %92 {offsets = [0, 1], sizes = [8, 255], strides = [1, 1]} : vector<8x256xf32> to vector<8x255xf32>
    %137 = tpu.concatenate %136, %135 in 1 : vector<8x255xf32>, vector<8x1xf32> -> vector<8x256xf32>
    %138 = vector.broadcast %1 : vector<1x256xf32> to vector<8x256xf32>
    %139 = arith.mulf %137, %138 : vector<8x256xf32>
    %c5_72 = arith.constant 5 : index
    %c0_73 = arith.constant 0 : index
    %c0_74 = arith.constant 0 : index
    %140 = vector.load %arg8[%c5_72, %c0_73, %c0_74] : memref<9x8x8xbf16, #tpu.memory_space<vmem>>, vector<1x8x8xbf16>
    %141 = vector.shape_cast %140 : vector<1x8x8xbf16> to vector<8x8xbf16>
    %142 = arith.truncf %139 : vector<8x256xf32> to vector<8x256xbf16>
    %cst_75 = arith.constant dense<0.000000e+00> : vector<8x256xf32>
    %143 = tpu.matmul %141, %142, %cst_75 {dimension_numbers = #tpu.dot_dimension_numbers<[1], [0], [0], [1], [0, 0, 1, 1], [], []>} : vector<8x8xbf16>, vector<8x256xbf16>, vector<8x256xf32> -> vector<8x256xf32>
    %144 = arith.addf %134, %143 : vector<8x256xf32>
    %cst_76 = arith.constant 0.000000e+00 : f32
    %145 = vector.broadcast %cst_76 : f32 to vector<8x15xf32>
    %146 = vector.extract_strided_slice %92 {offsets = [0, 15], sizes = [8, 241], strides = [1, 1]} : vector<8x256xf32> to vector<8x241xf32>
    %147 = tpu.concatenate %146, %145 in 1 : vector<8x241xf32>, vector<8x15xf32> -> vector<8x256xf32>
    %148 = vector.broadcast %0 : vector<1x256xf32> to vector<8x256xf32>
    %149 = arith.mulf %147, %148 : vector<8x256xf32>
    %c6_77 = arith.constant 6 : index
    %c0_78 = arith.constant 0 : index
    %c0_79 = arith.constant 0 : index
    %150 = vector.load %arg8[%c6_77, %c0_78, %c0_79] : memref<9x8x8xbf16, #tpu.memory_space<vmem>>, vector<1x8x8xbf16>
    %151 = vector.shape_cast %150 : vector<1x8x8xbf16> to vector<8x8xbf16>
    %152 = arith.truncf %149 : vector<8x256xf32> to vector<8x256xbf16>
    %cst_80 = arith.constant dense<0.000000e+00> : vector<8x256xf32>
    %153 = tpu.matmul %151, %152, %cst_80 {dimension_numbers = #tpu.dot_dimension_numbers<[1], [0], [0], [1], [0, 0, 1, 1], [], []>} : vector<8x8xbf16>, vector<8x256xbf16>, vector<8x256xf32> -> vector<8x256xf32>
    %154 = arith.addf %144, %153 : vector<8x256xf32>
    %cst_81 = arith.constant 0.000000e+00 : f32
    %155 = vector.broadcast %cst_81 : f32 to vector<8x16xf32>
    %156 = vector.extract_strided_slice %92 {offsets = [0, 16], sizes = [8, 240], strides = [1, 1]} : vector<8x256xf32> to vector<8x240xf32>
    %157 = tpu.concatenate %156, %155 in 1 : vector<8x240xf32>, vector<8x16xf32> -> vector<8x256xf32>
    %c7_82 = arith.constant 7 : index
    %c0_83 = arith.constant 0 : index
    %c0_84 = arith.constant 0 : index
    %158 = vector.load %arg8[%c7_82, %c0_83, %c0_84] : memref<9x8x8xbf16, #tpu.memory_space<vmem>>, vector<1x8x8xbf16>
    %159 = vector.shape_cast %158 : vector<1x8x8xbf16> to vector<8x8xbf16>
    %160 = arith.truncf %157 : vector<8x256xf32> to vector<8x256xbf16>
    %cst_85 = arith.constant dense<0.000000e+00> : vector<8x256xf32>
    %161 = tpu.matmul %159, %160, %cst_85 {dimension_numbers = #tpu.dot_dimension_numbers<[1], [0], [0], [1], [0, 0, 1, 1], [], []>} : vector<8x8xbf16>, vector<8x256xbf16>, vector<8x256xf32> -> vector<8x256xf32>
    %162 = arith.addf %154, %161 : vector<8x256xf32>
    %cst_86 = arith.constant 0.000000e+00 : f32
    %163 = vector.broadcast %cst_86 : f32 to vector<8x17xf32>
    %164 = vector.extract_strided_slice %92 {offsets = [0, 17], sizes = [8, 239], strides = [1, 1]} : vector<8x256xf32> to vector<8x239xf32>
    %165 = tpu.concatenate %164, %163 in 1 : vector<8x239xf32>, vector<8x17xf32> -> vector<8x256xf32>
    %166 = vector.broadcast %1 : vector<1x256xf32> to vector<8x256xf32>
    %167 = arith.mulf %165, %166 : vector<8x256xf32>
    %c8_87 = arith.constant 8 : index
    %c0_88 = arith.constant 0 : index
    %c0_89 = arith.constant 0 : index
    %168 = vector.load %arg8[%c8_87, %c0_88, %c0_89] : memref<9x8x8xbf16, #tpu.memory_space<vmem>>, vector<1x8x8xbf16>
    %169 = vector.shape_cast %168 : vector<1x8x8xbf16> to vector<8x8xbf16>
    %170 = arith.truncf %167 : vector<8x256xf32> to vector<8x256xbf16>
    %cst_90 = arith.constant dense<0.000000e+00> : vector<8x256xf32>
    %171 = tpu.matmul %169, %170, %cst_90 {dimension_numbers = #tpu.dot_dimension_numbers<[1], [0], [0], [1], [0, 0, 1, 1], [], []>} : vector<8x8xbf16>, vector<8x256xbf16>, vector<8x256xf32> -> vector<8x256xf32>
    %172 = arith.addf %162, %171 : vector<8x256xf32>
    %c0_91 = arith.constant 0 : index
    %c0_92 = arith.constant 0 : index
    %173 = vector.load %arg9[%c0_91, %c0_92] : memref<8x1xf32, #tpu.memory_space<vmem>>, vector<8x1xf32>
    %174 = vector.broadcast %173 : vector<8x1xf32> to vector<8x256xf32>
    %175 = arith.addf %172, %174 : vector<8x256xf32>
    %c0_93 = arith.constant 0 : index
    %c0_94 = arith.constant 0 : index
    %176 = vector.load %arg41[%c0_93, %c0_94] : memref<32x256xf32, #tpu.memory_space<vmem>>, vector<8x256xf32>
    tpu.vector_store %arg41[%c0_93, %c0_94], %175 {strides = array<i32>} : memref<32x256xf32, #tpu.memory_space<vmem>>, vector<8x256xf32>,
    %c0_95 = arith.constant 0 : index
    %c0_96 = arith.constant 0 : index
    %177 = vector.load %arg41[%c0_95, %c0_96] : memref<32x256xf32, #tpu.memory_space<vmem>>, vector<8x256xf32>
    %cst_97 = arith.constant 0.000000e+00 : f32
    %178 = vector.broadcast %cst_97 : f32 to vector<8x17xf32>
    %179 = vector.extract_strided_slice %177 {offsets = [0, 0], sizes = [8, 239], strides = [1, 1]} : vector<8x256xf32> to vector<8x239xf32>
    %180 = tpu.concatenate %178, %179 in 1 : vector<8x17xf32>, vector<8x239xf32> -> vector<8x256xf32>
    %181 = vector.broadcast %0 : vector<1x256xf32> to vector<8x256xf32>
    %182 = arith.mulf %180, %181 : vector<8x256xf32>
    %c0_98 = arith.constant 0 : index
    %c0_99 = arith.constant 0 : index
    %c0_100 = arith.constant 0 : index
    %183 = vector.load %arg10[%c0_98, %c0_99, %c0_100] : memref<9x8x8xbf16, #tpu.memory_space<vmem>>, vector<1x8x8xbf16>
    %184 = vector.shape_cast %183 : vector<1x8x8xbf16> to vector<8x8xbf16>
    %185 = arith.truncf %182 : vector<8x256xf32> to vector<8x256xbf16>
    %cst_101 = arith.constant dense<0.000000e+00> : vector<8x256xf32>
    %186 = tpu.matmul %184, %185, %cst_101 {dimension_numbers = #tpu.dot_dimension_numbers<[1], [0], [0], [1], [0, 0, 1, 1], [], []>} : vector<8x8xbf16>, vector<8x256xbf16>, vector<8x256xf32> -> vector<8x256xf32>
    %cst_102 = arith.constant 0.000000e+00 : f32
    %187 = vector.broadcast %cst_102 : f32 to vector<8x16xf32>
    %188 = vector.extract_strided_slice %177 {offsets = [0, 0], sizes = [8, 240], strides = [1, 1]} : vector<8x256xf32> to vector<8x240xf32>
    %189 = tpu.concatenate %187, %188 in 1 : vector<8x16xf32>, vector<8x240xf32> -> vector<8x256xf32>
    %c1_103 = arith.constant 1 : index
    %c0_104 = arith.constant 0 : index
    %c0_105 = arith.constant 0 : index
    %190 = vector.load %arg10[%c1_103, %c0_104, %c0_105] : memref<9x8x8xbf16, #tpu.memory_space<vmem>>, vector<1x8x8xbf16>
    %191 = vector.shape_cast %190 : vector<1x8x8xbf16> to vector<8x8xbf16>
    %192 = arith.truncf %189 : vector<8x256xf32> to vector<8x256xbf16>
    %cst_106 = arith.constant dense<0.000000e+00> : vector<8x256xf32>
    %193 = tpu.matmul %191, %192, %cst_106 {dimension_numbers = #tpu.dot_dimension_numbers<[1], [0], [0], [1], [0, 0, 1, 1], [], []>} : vector<8x8xbf16>, vector<8x256xbf16>, vector<8x256xf32> -> vector<8x256xf32>
    %194 = arith.addf %186, %193 : vector<8x256xf32>
    %cst_107 = arith.constant 0.000000e+00 : f32
    %195 = vector.broadcast %cst_107 : f32 to vector<8x15xf32>
    %196 = vector.extract_strided_slice %177 {offsets = [0, 0], sizes = [8, 241], strides = [1, 1]} : vector<8x256xf32> to vector<8x241xf32>
    %197 = tpu.concatenate %195, %196 in 1 : vector<8x15xf32>, vector<8x241xf32> -> vector<8x256xf32>
    %198 = vector.broadcast %1 : vector<1x256xf32> to vector<8x256xf32>
    %199 = arith.mulf %197, %198 : vector<8x256xf32>
    %c2_108 = arith.constant 2 : index
    %c0_109 = arith.constant 0 : index
    %c0_110 = arith.constant 0 : index
    %200 = vector.load %arg10[%c2_108, %c0_109, %c0_110] : memref<9x8x8xbf16, #tpu.memory_space<vmem>>, vector<1x8x8xbf16>
    %201 = vector.shape_cast %200 : vector<1x8x8xbf16> to vector<8x8xbf16>
    %202 = arith.truncf %199 : vector<8x256xf32> to vector<8x256xbf16>
    %cst_111 = arith.constant dense<0.000000e+00> : vector<8x256xf32>
    %203 = tpu.matmul %201, %202, %cst_111 {dimension_numbers = #tpu.dot_dimension_numbers<[1], [0], [0], [1], [0, 0, 1, 1], [], []>} : vector<8x8xbf16>, vector<8x256xbf16>, vector<8x256xf32> -> vector<8x256xf32>
    %204 = arith.addf %194, %203 : vector<8x256xf32>
    %cst_112 = arith.constant 0.000000e+00 : f32
    %205 = vector.broadcast %cst_112 : f32 to vector<8x1xf32>
    %206 = vector.extract_strided_slice %177 {offsets = [0, 0], sizes = [8, 255], strides = [1, 1]} : vector<8x256xf32> to vector<8x255xf32>
    %207 = tpu.concatenate %205, %206 in 1 : vector<8x1xf32>, vector<8x255xf32> -> vector<8x256xf32>
    %208 = vector.broadcast %0 : vector<1x256xf32> to vector<8x256xf32>
    %209 = arith.mulf %207, %208 : vector<8x256xf32>
    %c3_113 = arith.constant 3 : index
    %c0_114 = arith.constant 0 : index
    %c0_115 = arith.constant 0 : index
    %210 = vector.load %arg10[%c3_113, %c0_114, %c0_115] : memref<9x8x8xbf16, #tpu.memory_space<vmem>>, vector<1x8x8xbf16>
    %211 = vector.shape_cast %210 : vector<1x8x8xbf16> to vector<8x8xbf16>
    %212 = arith.truncf %209 : vector<8x256xf32> to vector<8x256xbf16>
    %cst_116 = arith.constant dense<0.000000e+00> : vector<8x256xf32>
    %213 = tpu.matmul %211, %212, %cst_116 {dimension_numbers = #tpu.dot_dimension_numbers<[1], [0], [0], [1], [0, 0, 1, 1], [], []>} : vector<8x8xbf16>, vector<8x256xbf16>, vector<8x256xf32> -> vector<8x256xf32>
    %214 = arith.addf %204, %213 : vector<8x256xf32>
    %c4_117 = arith.constant 4 : index
    %c0_118 = arith.constant 0 : index
    %c0_119 = arith.constant 0 : index
    %215 = vector.load %arg10[%c4_117, %c0_118, %c0_119] : memref<9x8x8xbf16, #tpu.memory_space<vmem>>, vector<1x8x8xbf16>
    %216 = vector.shape_cast %215 : vector<1x8x8xbf16> to vector<8x8xbf16>
    %217 = arith.truncf %177 : vector<8x256xf32> to vector<8x256xbf16>
    %cst_120 = arith.constant dense<0.000000e+00> : vector<8x256xf32>
    %218 = tpu.matmul %216, %217, %cst_120 {dimension_numbers = #tpu.dot_dimension_numbers<[1], [0], [0], [1], [0, 0, 1, 1], [], []>} : vector<8x8xbf16>, vector<8x256xbf16>, vector<8x256xf32> -> vector<8x256xf32>
    %219 = arith.addf %214, %218 : vector<8x256xf32>
    %cst_121 = arith.constant 0.000000e+00 : f32
    %220 = vector.broadcast %cst_121 : f32 to vector<8x1xf32>
    %221 = vector.extract_strided_slice %177 {offsets = [0, 1], sizes = [8, 255], strides = [1, 1]} : vector<8x256xf32> to vector<8x255xf32>
    %222 = tpu.concatenate %221, %220 in 1 : vector<8x255xf32>, vector<8x1xf32> -> vector<8x256xf32>
    %223 = vector.broadcast %1 : vector<1x256xf32> to vector<8x256xf32>
    %224 = arith.mulf %222, %223 : vector<8x256xf32>
    %c5_122 = arith.constant 5 : index
    %c0_123 = arith.constant 0 : index
    %c0_124 = arith.constant 0 : index
    %225 = vector.load %arg10[%c5_122, %c0_123, %c0_124] : memref<9x8x8xbf16, #tpu.memory_space<vmem>>, vector<1x8x8xbf16>
    %226 = vector.shape_cast %225 : vector<1x8x8xbf16> to vector<8x8xbf16>
    %227 = arith.truncf %224 : vector<8x256xf32> to vector<8x256xbf16>
    %cst_125 = arith.constant dense<0.000000e+00> : vector<8x256xf32>
    %228 = tpu.matmul %226, %227, %cst_125 {dimension_numbers = #tpu.dot_dimension_numbers<[1], [0], [0], [1], [0, 0, 1, 1], [], []>} : vector<8x8xbf16>, vector<8x256xbf16>, vector<8x256xf32> -> vector<8x256xf32>
    %229 = arith.addf %219, %228 : vector<8x256xf32>
    %cst_126 = arith.constant 0.000000e+00 : f32
    %230 = vector.broadcast %cst_126 : f32 to vector<8x15xf32>
    %231 = vector.extract_strided_slice %177 {offsets = [0, 15], sizes = [8, 241], strides = [1, 1]} : vector<8x256xf32> to vector<8x241xf32>
    %232 = tpu.concatenate %231, %230 in 1 : vector<8x241xf32>, vector<8x15xf32> -> vector<8x256xf32>
    %233 = vector.broadcast %0 : vector<1x256xf32> to vector<8x256xf32>
    %234 = arith.mulf %232, %233 : vector<8x256xf32>
    %c6_127 = arith.constant 6 : index
    %c0_128 = arith.constant 0 : index
    %c0_129 = arith.constant 0 : index
    %235 = vector.load %arg10[%c6_127, %c0_128, %c0_129] : memref<9x8x8xbf16, #tpu.memory_space<vmem>>, vector<1x8x8xbf16>
    %236 = vector.shape_cast %235 : vector<1x8x8xbf16> to vector<8x8xbf16>
    %237 = arith.truncf %234 : vector<8x256xf32> to vector<8x256xbf16>
    %cst_130 = arith.constant dense<0.000000e+00> : vector<8x256xf32>
    %238 = tpu.matmul %236, %237, %cst_130 {dimension_numbers = #tpu.dot_dimension_numbers<[1], [0], [0], [1], [0, 0, 1, 1], [], []>} : vector<8x8xbf16>, vector<8x256xbf16>, vector<8x256xf32> -> vector<8x256xf32>
    %239 = arith.addf %229, %238 : vector<8x256xf32>
    %cst_131 = arith.constant 0.000000e+00 : f32
    %240 = vector.broadcast %cst_131 : f32 to vector<8x16xf32>
    %241 = vector.extract_strided_slice %177 {offsets = [0, 16], sizes = [8, 240], strides = [1, 1]} : vector<8x256xf32> to vector<8x240xf32>
    %242 = tpu.concatenate %241, %240 in 1 : vector<8x240xf32>, vector<8x16xf32> -> vector<8x256xf32>
    %c7_132 = arith.constant 7 : index
    %c0_133 = arith.constant 0 : index
    %c0_134 = arith.constant 0 : index
    %243 = vector.load %arg10[%c7_132, %c0_133, %c0_134] : memref<9x8x8xbf16, #tpu.memory_space<vmem>>, vector<1x8x8xbf16>
    %244 = vector.shape_cast %243 : vector<1x8x8xbf16> to vector<8x8xbf16>
    %245 = arith.truncf %242 : vector<8x256xf32> to vector<8x256xbf16>
    %cst_135 = arith.constant dense<0.000000e+00> : vector<8x256xf32>
    %246 = tpu.matmul %244, %245, %cst_135 {dimension_numbers = #tpu.dot_dimension_numbers<[1], [0], [0], [1], [0, 0, 1, 1], [], []>} : vector<8x8xbf16>, vector<8x256xbf16>, vector<8x256xf32> -> vector<8x256xf32>
    %247 = arith.addf %239, %246 : vector<8x256xf32>
    %cst_136 = arith.constant 0.000000e+00 : f32
    %248 = vector.broadcast %cst_136 : f32 to vector<8x17xf32>
    %249 = vector.extract_strided_slice %177 {offsets = [0, 17], sizes = [8, 239], strides = [1, 1]} : vector<8x256xf32> to vector<8x239xf32>
    %250 = tpu.concatenate %249, %248 in 1 : vector<8x239xf32>, vector<8x17xf32> -> vector<8x256xf32>
    %251 = vector.broadcast %1 : vector<1x256xf32> to vector<8x256xf32>
    %252 = arith.mulf %250, %251 : vector<8x256xf32>
    %c8_137 = arith.constant 8 : index
    %c0_138 = arith.constant 0 : index
    %c0_139 = arith.constant 0 : index
    %253 = vector.load %arg10[%c8_137, %c0_138, %c0_139] : memref<9x8x8xbf16, #tpu.memory_space<vmem>>, vector<1x8x8xbf16>
    %254 = vector.shape_cast %253 : vector<1x8x8xbf16> to vector<8x8xbf16>
    %255 = arith.truncf %252 : vector<8x256xf32> to vector<8x256xbf16>
    %cst_140 = arith.constant dense<0.000000e+00> : vector<8x256xf32>
    %256 = tpu.matmul %254, %255, %cst_140 {dimension_numbers = #tpu.dot_dimension_numbers<[1], [0], [0], [1], [0, 0, 1, 1], [], []>} : vector<8x8xbf16>, vector<8x256xbf16>, vector<8x256xf32> -> vector<8x256xf32>
    %257 = arith.addf %247, %256 : vector<8x256xf32>
    %c0_141 = arith.constant 0 : index
    %c0_142 = arith.constant 0 : index
    %258 = vector.load %arg11[%c0_141, %c0_142] : memref<8x1xf32, #tpu.memory_space<vmem>>, vector<8x1xf32>
    %259 = vector.broadcast %258 : vector<8x1xf32> to vector<8x256xf32>
    %260 = arith.addf %257, %259 : vector<8x256xf32>
    %cst_143 = arith.constant 0.000000e+00 : f32
    %261 = vector.broadcast %cst_143 : f32 to vector<8x256xf32>
    %262 = arith.maximumf %260, %261 : vector<8x256xf32>
    %c8_144 = arith.constant 8 : index
    %c0_145 = arith.constant 0 : index
    %263 = vector.load %arg41[%c8_144, %c0_145] : memref<32x256xf32, #tpu.memory_space<vmem>>, vector<8x256xf32>
    tpu.vector_store %arg41[%c8_144, %c0_145], %262 {strides = array<i32>} : memref<32x256xf32, #tpu.memory_space<vmem>>, vector<8x256xf32>,
    %c0_146 = arith.constant 0 : index
    %c0_147 = arith.constant 0 : index
    %264 = vector.load %arg41[%c0_146, %c0_147] : memref<32x256xf32, #tpu.memory_space<vmem>>, vector<16x256xf32>
    %cst_148 = arith.constant 0.000000e+00 : f32
    %265 = vector.broadcast %cst_148 : f32 to vector<16x17xf32>
    %266 = vector.extract_strided_slice %264 {offsets = [0, 0], sizes = [16, 239], strides = [1, 1]} : vector<16x256xf32> to vector<16x239xf32>
    %267 = tpu.concatenate %265, %266 in 1 : vector<16x17xf32>, vector<16x239xf32> -> vector<16x256xf32>
    %268 = vector.broadcast %0 : vector<1x256xf32> to vector<16x256xf32>
    %269 = arith.mulf %267, %268 : vector<16x256xf32>
    %c0_149 = arith.constant 0 : index
    %c0_150 = arith.constant 0 : index
    %c0_151 = arith.constant 0 : index
    %270 = vector.load %arg12[%c0_149, %c0_150, %c0_151] : memref<9x8x16xbf16, #tpu.memory_space<vmem>>, vector<1x8x16xbf16>
    %271 = vector.shape_cast %270 : vector<1x8x16xbf16> to vector<8x16xbf16>
    %272 = arith.truncf %269 : vector<16x256xf32> to vector<16x256xbf16>
    %cst_152 = arith.constant dense<0.000000e+00> : vector<8x256xf32>
    %273 = tpu.matmul %271, %272, %cst_152 {dimension_numbers = #tpu.dot_dimension_numbers<[1], [0], [0], [1], [0, 0, 1, 1], [], []>} : vector<8x16xbf16>, vector<16x256xbf16>, vector<8x256xf32> -> vector<8x256xf32>
    %cst_153 = arith.constant 0.000000e+00 : f32
    %274 = vector.broadcast %cst_153 : f32 to vector<16x16xf32>
    %275 = vector.extract_strided_slice %264 {offsets = [0, 0], sizes = [16, 240], strides = [1, 1]} : vector<16x256xf32> to vector<16x240xf32>
    %276 = tpu.concatenate %274, %275 in 1 : vector<16x16xf32>, vector<16x240xf32> -> vector<16x256xf32>
    %c1_154 = arith.constant 1 : index
    %c0_155 = arith.constant 0 : index
    %c0_156 = arith.constant 0 : index
    %277 = vector.load %arg12[%c1_154, %c0_155, %c0_156] : memref<9x8x16xbf16, #tpu.memory_space<vmem>>, vector<1x8x16xbf16>
    %278 = vector.shape_cast %277 : vector<1x8x16xbf16> to vector<8x16xbf16>
    %279 = arith.truncf %276 : vector<16x256xf32> to vector<16x256xbf16>
    %cst_157 = arith.constant dense<0.000000e+00> : vector<8x256xf32>
    %280 = tpu.matmul %278, %279, %cst_157 {dimension_numbers = #tpu.dot_dimension_numbers<[1], [0], [0], [1], [0, 0, 1, 1], [], []>} : vector<8x16xbf16>, vector<16x256xbf16>, vector<8x256xf32> -> vector<8x256xf32>
    %281 = arith.addf %273, %280 : vector<8x256xf32>
    %cst_158 = arith.constant 0.000000e+00 : f32
    %282 = vector.broadcast %cst_158 : f32 to vector<16x15xf32>
    %283 = vector.extract_strided_slice %264 {offsets = [0, 0], sizes = [16, 241], strides = [1, 1]} : vector<16x256xf32> to vector<16x241xf32>
    %284 = tpu.concatenate %282, %283 in 1 : vector<16x15xf32>, vector<16x241xf32> -> vector<16x256xf32>
    %285 = vector.broadcast %1 : vector<1x256xf32> to vector<16x256xf32>
    %286 = arith.mulf %284, %285 : vector<16x256xf32>
    %c2_159 = arith.constant 2 : index
    %c0_160 = arith.constant 0 : index
    %c0_161 = arith.constant 0 : index
    %287 = vector.load %arg12[%c2_159, %c0_160, %c0_161] : memref<9x8x16xbf16, #tpu.memory_space<vmem>>, vector<1x8x16xbf16>
    %288 = vector.shape_cast %287 : vector<1x8x16xbf16> to vector<8x16xbf16>
    %289 = arith.truncf %286 : vector<16x256xf32> to vector<16x256xbf16>
    %cst_162 = arith.constant dense<0.000000e+00> : vector<8x256xf32>
    %290 = tpu.matmul %288, %289, %cst_162 {dimension_numbers = #tpu.dot_dimension_numbers<[1], [0], [0], [1], [0, 0, 1, 1], [], []>} : vector<8x16xbf16>, vector<16x256xbf16>, vector<8x256xf32> -> vector<8x256xf32>
    %291 = arith.addf %281, %290 : vector<8x256xf32>
    %cst_163 = arith.constant 0.000000e+00 : f32
    %292 = vector.broadcast %cst_163 : f32 to vector<16x1xf32>
    %293 = vector.extract_strided_slice %264 {offsets = [0, 0], sizes = [16, 255], strides = [1, 1]} : vector<16x256xf32> to vector<16x255xf32>
    %294 = tpu.concatenate %292, %293 in 1 : vector<16x1xf32>, vector<16x255xf32> -> vector<16x256xf32>
    %295 = vector.broadcast %0 : vector<1x256xf32> to vector<16x256xf32>
    %296 = arith.mulf %294, %295 : vector<16x256xf32>
    %c3_164 = arith.constant 3 : index
    %c0_165 = arith.constant 0 : index
    %c0_166 = arith.constant 0 : index
    %297 = vector.load %arg12[%c3_164, %c0_165, %c0_166] : memref<9x8x16xbf16, #tpu.memory_space<vmem>>, vector<1x8x16xbf16>
    %298 = vector.shape_cast %297 : vector<1x8x16xbf16> to vector<8x16xbf16>
    %299 = arith.truncf %296 : vector<16x256xf32> to vector<16x256xbf16>
    %cst_167 = arith.constant dense<0.000000e+00> : vector<8x256xf32>
    %300 = tpu.matmul %298, %299, %cst_167 {dimension_numbers = #tpu.dot_dimension_numbers<[1], [0], [0], [1], [0, 0, 1, 1], [], []>} : vector<8x16xbf16>, vector<16x256xbf16>, vector<8x256xf32> -> vector<8x256xf32>
    %301 = arith.addf %291, %300 : vector<8x256xf32>
    %c4_168 = arith.constant 4 : index
    %c0_169 = arith.constant 0 : index
    %c0_170 = arith.constant 0 : index
    %302 = vector.load %arg12[%c4_168, %c0_169, %c0_170] : memref<9x8x16xbf16, #tpu.memory_space<vmem>>, vector<1x8x16xbf16>
    %303 = vector.shape_cast %302 : vector<1x8x16xbf16> to vector<8x16xbf16>
    %304 = arith.truncf %264 : vector<16x256xf32> to vector<16x256xbf16>
    %cst_171 = arith.constant dense<0.000000e+00> : vector<8x256xf32>
    %305 = tpu.matmul %303, %304, %cst_171 {dimension_numbers = #tpu.dot_dimension_numbers<[1], [0], [0], [1], [0, 0, 1, 1], [], []>} : vector<8x16xbf16>, vector<16x256xbf16>, vector<8x256xf32> -> vector<8x256xf32>
    %306 = arith.addf %301, %305 : vector<8x256xf32>
    %cst_172 = arith.constant 0.000000e+00 : f32
    %307 = vector.broadcast %cst_172 : f32 to vector<16x1xf32>
    %308 = vector.extract_strided_slice %264 {offsets = [0, 1], sizes = [16, 255], strides = [1, 1]} : vector<16x256xf32> to vector<16x255xf32>
    %309 = tpu.concatenate %308, %307 in 1 : vector<16x255xf32>, vector<16x1xf32> -> vector<16x256xf32>
    %310 = vector.broadcast %1 : vector<1x256xf32> to vector<16x256xf32>
    %311 = arith.mulf %309, %310 : vector<16x256xf32>
    %c5_173 = arith.constant 5 : index
    %c0_174 = arith.constant 0 : index
    %c0_175 = arith.constant 0 : index
    %312 = vector.load %arg12[%c5_173, %c0_174, %c0_175] : memref<9x8x16xbf16, #tpu.memory_space<vmem>>, vector<1x8x16xbf16>
    %313 = vector.shape_cast %312 : vector<1x8x16xbf16> to vector<8x16xbf16>
    %314 = arith.truncf %311 : vector<16x256xf32> to vector<16x256xbf16>
    %cst_176 = arith.constant dense<0.000000e+00> : vector<8x256xf32>
    %315 = tpu.matmul %313, %314, %cst_176 {dimension_numbers = #tpu.dot_dimension_numbers<[1], [0], [0], [1], [0, 0, 1, 1], [], []>} : vector<8x16xbf16>, vector<16x256xbf16>, vector<8x256xf32> -> vector<8x256xf32>
    %316 = arith.addf %306, %315 : vector<8x256xf32>
    %cst_177 = arith.constant 0.000000e+00 : f32
    %317 = vector.broadcast %cst_177 : f32 to vector<16x15xf32>
    %318 = vector.extract_strided_slice %264 {offsets = [0, 15], sizes = [16, 241], strides = [1, 1]} : vector<16x256xf32> to vector<16x241xf32>
    %319 = tpu.concatenate %318, %317 in 1 : vector<16x241xf32>, vector<16x15xf32> -> vector<16x256xf32>
    %320 = vector.broadcast %0 : vector<1x256xf32> to vector<16x256xf32>
    %321 = arith.mulf %319, %320 : vector<16x256xf32>
    %c6_178 = arith.constant 6 : index
    %c0_179 = arith.constant 0 : index
    %c0_180 = arith.constant 0 : index
    %322 = vector.load %arg12[%c6_178, %c0_179, %c0_180] : memref<9x8x16xbf16, #tpu.memory_space<vmem>>, vector<1x8x16xbf16>
    %323 = vector.shape_cast %322 : vector<1x8x16xbf16> to vector<8x16xbf16>
    %324 = arith.truncf %321 : vector<16x256xf32> to vector<16x256xbf16>
    %cst_181 = arith.constant dense<0.000000e+00> : vector<8x256xf32>
    %325 = tpu.matmul %323, %324, %cst_181 {dimension_numbers = #tpu.dot_dimension_numbers<[1], [0], [0], [1], [0, 0, 1, 1], [], []>} : vector<8x16xbf16>, vector<16x256xbf16>, vector<8x256xf32> -> vector<8x256xf32>
    %326 = arith.addf %316, %325 : vector<8x256xf32>
    %cst_182 = arith.constant 0.000000e+00 : f32
    %327 = vector.broadcast %cst_182 : f32 to vector<16x16xf32>
    %328 = vector.extract_strided_slice %264 {offsets = [0, 16], sizes = [16, 240], strides = [1, 1]} : vector<16x256xf32> to vector<16x240xf32>
    %329 = tpu.concatenate %328, %327 in 1 : vector<16x240xf32>, vector<16x16xf32> -> vector<16x256xf32>
    %c7_183 = arith.constant 7 : index
    %c0_184 = arith.constant 0 : index
    %c0_185 = arith.constant 0 : index
    %330 = vector.load %arg12[%c7_183, %c0_184, %c0_185] : memref<9x8x16xbf16, #tpu.memory_space<vmem>>, vector<1x8x16xbf16>
    %331 = vector.shape_cast %330 : vector<1x8x16xbf16> to vector<8x16xbf16>
    %332 = arith.truncf %329 : vector<16x256xf32> to vector<16x256xbf16>
    %cst_186 = arith.constant dense<0.000000e+00> : vector<8x256xf32>
    %333 = tpu.matmul %331, %332, %cst_186 {dimension_numbers = #tpu.dot_dimension_numbers<[1], [0], [0], [1], [0, 0, 1, 1], [], []>} : vector<8x16xbf16>, vector<16x256xbf16>, vector<8x256xf32> -> vector<8x256xf32>
    %334 = arith.addf %326, %333 : vector<8x256xf32>
    %cst_187 = arith.constant 0.000000e+00 : f32
    %335 = vector.broadcast %cst_187 : f32 to vector<16x17xf32>
    %336 = vector.extract_strided_slice %264 {offsets = [0, 17], sizes = [16, 239], strides = [1, 1]} : vector<16x256xf32> to vector<16x239xf32>
    %337 = tpu.concatenate %336, %335 in 1 : vector<16x239xf32>, vector<16x17xf32> -> vector<16x256xf32>
    %338 = vector.broadcast %1 : vector<1x256xf32> to vector<16x256xf32>
    %339 = arith.mulf %337, %338 : vector<16x256xf32>
    %c8_188 = arith.constant 8 : index
    %c0_189 = arith.constant 0 : index
    %c0_190 = arith.constant 0 : index
    %340 = vector.load %arg12[%c8_188, %c0_189, %c0_190] : memref<9x8x16xbf16, #tpu.memory_space<vmem>>, vector<1x8x16xbf16>
    %341 = vector.shape_cast %340 : vector<1x8x16xbf16> to vector<8x16xbf16>
    %342 = arith.truncf %339 : vector<16x256xf32> to vector<16x256xbf16>
    %cst_191 = arith.constant dense<0.000000e+00> : vector<8x256xf32>
    %343 = tpu.matmul %341, %342, %cst_191 {dimension_numbers = #tpu.dot_dimension_numbers<[1], [0], [0], [1], [0, 0, 1, 1], [], []>} : vector<8x16xbf16>, vector<16x256xbf16>, vector<8x256xf32> -> vector<8x256xf32>
    %344 = arith.addf %334, %343 : vector<8x256xf32>
    %c0_192 = arith.constant 0 : index
    %c0_193 = arith.constant 0 : index
    %345 = vector.load %arg13[%c0_192, %c0_193] : memref<8x1xf32, #tpu.memory_space<vmem>>, vector<8x1xf32>
    %346 = vector.broadcast %345 : vector<8x1xf32> to vector<8x256xf32>
    %347 = arith.addf %344, %346 : vector<8x256xf32>
    %cst_194 = arith.constant 0.000000e+00 : f32
    %348 = vector.broadcast %cst_194 : f32 to vector<8x256xf32>
    %349 = arith.maximumf %347, %348 : vector<8x256xf32>
    %c16 = arith.constant 16 : index
    %c0_195 = arith.constant 0 : index
    %350 = vector.load %arg41[%c16, %c0_195] : memref<32x256xf32, #tpu.memory_space<vmem>>, vector<8x256xf32>
    tpu.vector_store %arg41[%c16, %c0_195], %349 {strides = array<i32>} : memref<32x256xf32, #tpu.memory_space<vmem>>, vector<8x256xf32>,
    %c0_196 = arith.constant 0 : index
    %c0_197 = arith.constant 0 : index
    %351 = vector.load %arg41[%c0_196, %c0_197] : memref<32x256xf32, #tpu.memory_space<vmem>>, vector<24x256xf32>
    %cst_198 = arith.constant 0.000000e+00 : f32
    %352 = vector.broadcast %cst_198 : f32 to vector<24x17xf32>
    %353 = vector.extract_strided_slice %351 {offsets = [0, 0], sizes = [24, 239], strides = [1, 1]} : vector<24x256xf32> to vector<24x239xf32>
    %354 = tpu.concatenate %352, %353 in 1 : vector<24x17xf32>, vector<24x239xf32> -> vector<24x256xf32>
    %355 = vector.broadcast %0 : vector<1x256xf32> to vector<24x256xf32>
    %356 = arith.mulf %354, %355 : vector<24x256xf32>
    %c0_199 = arith.constant 0 : index
    %c0_200 = arith.constant 0 : index
    %c0_201 = arith.constant 0 : index
    %357 = vector.load %arg14[%c0_199, %c0_200, %c0_201] : memref<9x8x24xbf16, #tpu.memory_space<vmem>>, vector<1x8x24xbf16>
    %358 = vector.shape_cast %357 : vector<1x8x24xbf16> to vector<8x24xbf16>
    %359 = arith.truncf %356 : vector<24x256xf32> to vector<24x256xbf16>
    %cst_202 = arith.constant dense<0.000000e+00> : vector<8x256xf32>
    %360 = tpu.matmul %358, %359, %cst_202 {dimension_numbers = #tpu.dot_dimension_numbers<[1], [0], [0], [1], [0, 0, 1, 1], [], []>} : vector<8x24xbf16>, vector<24x256xbf16>, vector<8x256xf32> -> vector<8x256xf32>
    %cst_203 = arith.constant 0.000000e+00 : f32
    %361 = vector.broadcast %cst_203 : f32 to vector<24x16xf32>
    %362 = vector.extract_strided_slice %351 {offsets = [0, 0], sizes = [24, 240], strides = [1, 1]} : vector<24x256xf32> to vector<24x240xf32>
    %363 = tpu.concatenate %361, %362 in 1 : vector<24x16xf32>, vector<24x240xf32> -> vector<24x256xf32>
    %c1_204 = arith.constant 1 : index
    %c0_205 = arith.constant 0 : index
    %c0_206 = arith.constant 0 : index
    %364 = vector.load %arg14[%c1_204, %c0_205, %c0_206] : memref<9x8x24xbf16, #tpu.memory_space<vmem>>, vector<1x8x24xbf16>
    %365 = vector.shape_cast %364 : vector<1x8x24xbf16> to vector<8x24xbf16>
    %366 = arith.truncf %363 : vector<24x256xf32> to vector<24x256xbf16>
    %cst_207 = arith.constant dense<0.000000e+00> : vector<8x256xf32>
    %367 = tpu.matmul %365, %366, %cst_207 {dimension_numbers = #tpu.dot_dimension_numbers<[1], [0], [0], [1], [0, 0, 1, 1], [], []>} : vector<8x24xbf16>, vector<24x256xbf16>, vector<8x256xf32> -> vector<8x256xf32>
    %368 = arith.addf %360, %367 : vector<8x256xf32>
    %cst_208 = arith.constant 0.000000e+00 : f32
    %369 = vector.broadcast %cst_208 : f32 to vector<24x15xf32>
    %370 = vector.extract_strided_slice %351 {offsets = [0, 0], sizes = [24, 241], strides = [1, 1]} : vector<24x256xf32> to vector<24x241xf32>
    %371 = tpu.concatenate %369, %370 in 1 : vector<24x15xf32>, vector<24x241xf32> -> vector<24x256xf32>
    %372 = vector.broadcast %1 : vector<1x256xf32> to vector<24x256xf32>
    %373 = arith.mulf %371, %372 : vector<24x256xf32>
    %c2_209 = arith.constant 2 : index
    %c0_210 = arith.constant 0 : index
    %c0_211 = arith.constant 0 : index
    %374 = vector.load %arg14[%c2_209, %c0_210, %c0_211] : memref<9x8x24xbf16, #tpu.memory_space<vmem>>, vector<1x8x24xbf16>
    %375 = vector.shape_cast %374 : vector<1x8x24xbf16> to vector<8x24xbf16>
    %376 = arith.truncf %373 : vector<24x256xf32> to vector<24x256xbf16>
    %cst_212 = arith.constant dense<0.000000e+00> : vector<8x256xf32>
    %377 = tpu.matmul %375, %376, %cst_212 {dimension_numbers = #tpu.dot_dimension_numbers<[1], [0], [0], [1], [0, 0, 1, 1], [], []>} : vector<8x24xbf16>, vector<24x256xbf16>, vector<8x256xf32> -> vector<8x256xf32>
    %378 = arith.addf %368, %377 : vector<8x256xf32>
    %cst_213 = arith.constant 0.000000e+00 : f32
    %379 = vector.broadcast %cst_213 : f32 to vector<24x1xf32>
    %380 = vector.extract_strided_slice %351 {offsets = [0, 0], sizes = [24, 255], strides = [1, 1]} : vector<24x256xf32> to vector<24x255xf32>
    %381 = tpu.concatenate %379, %380 in 1 : vector<24x1xf32>, vector<24x255xf32> -> vector<24x256xf32>
    %382 = vector.broadcast %0 : vector<1x256xf32> to vector<24x256xf32>
    %383 = arith.mulf %381, %382 : vector<24x256xf32>
    %c3_214 = arith.constant 3 : index
    %c0_215 = arith.constant 0 : index
    %c0_216 = arith.constant 0 : index
    %384 = vector.load %arg14[%c3_214, %c0_215, %c0_216] : memref<9x8x24xbf16, #tpu.memory_space<vmem>>, vector<1x8x24xbf16>
    %385 = vector.shape_cast %384 : vector<1x8x24xbf16> to vector<8x24xbf16>
    %386 = arith.truncf %383 : vector<24x256xf32> to vector<24x256xbf16>
    %cst_217 = arith.constant dense<0.000000e+00> : vector<8x256xf32>
    %387 = tpu.matmul %385, %386, %cst_217 {dimension_numbers = #tpu.dot_dimension_numbers<[1], [0], [0], [1], [0, 0, 1, 1], [], []>} : vector<8x24xbf16>, vector<24x256xbf16>, vector<8x256xf32> -> vector<8x256xf32>
    %388 = arith.addf %378, %387 : vector<8x256xf32>
    %c4_218 = arith.constant 4 : index
    %c0_219 = arith.constant 0 : index
    %c0_220 = arith.constant 0 : index
    %389 = vector.load %arg14[%c4_218, %c0_219, %c0_220] : memref<9x8x24xbf16, #tpu.memory_space<vmem>>, vector<1x8x24xbf16>
    %390 = vector.shape_cast %389 : vector<1x8x24xbf16> to vector<8x24xbf16>
    %391 = arith.truncf %351 : vector<24x256xf32> to vector<24x256xbf16>
    %cst_221 = arith.constant dense<0.000000e+00> : vector<8x256xf32>
    %392 = tpu.matmul %390, %391, %cst_221 {dimension_numbers = #tpu.dot_dimension_numbers<[1], [0], [0], [1], [0, 0, 1, 1], [], []>} : vector<8x24xbf16>, vector<24x256xbf16>, vector<8x256xf32> -> vector<8x256xf32>
    %393 = arith.addf %388, %392 : vector<8x256xf32>
    %cst_222 = arith.constant 0.000000e+00 : f32
    %394 = vector.broadcast %cst_222 : f32 to vector<24x1xf32>
    %395 = vector.extract_strided_slice %351 {offsets = [0, 1], sizes = [24, 255], strides = [1, 1]} : vector<24x256xf32> to vector<24x255xf32>
    %396 = tpu.concatenate %395, %394 in 1 : vector<24x255xf32>, vector<24x1xf32> -> vector<24x256xf32>
    %397 = vector.broadcast %1 : vector<1x256xf32> to vector<24x256xf32>
    %398 = arith.mulf %396, %397 : vector<24x256xf32>
    %c5_223 = arith.constant 5 : index
    %c0_224 = arith.constant 0 : index
    %c0_225 = arith.constant 0 : index
    %399 = vector.load %arg14[%c5_223, %c0_224, %c0_225] : memref<9x8x24xbf16, #tpu.memory_space<vmem>>, vector<1x8x24xbf16>
    %400 = vector.shape_cast %399 : vector<1x8x24xbf16> to vector<8x24xbf16>
    %401 = arith.truncf %398 : vector<24x256xf32> to vector<24x256xbf16>
    %cst_226 = arith.constant dense<0.000000e+00> : vector<8x256xf32>
    %402 = tpu.matmul %400, %401, %cst_226 {dimension_numbers = #tpu.dot_dimension_numbers<[1], [0], [0], [1], [0, 0, 1, 1], [], []>} : vector<8x24xbf16>, vector<24x256xbf16>, vector<8x256xf32> -> vector<8x256xf32>
    %403 = arith.addf %393, %402 : vector<8x256xf32>
    %cst_227 = arith.constant 0.000000e+00 : f32
    %404 = vector.broadcast %cst_227 : f32 to vector<24x15xf32>
    %405 = vector.extract_strided_slice %351 {offsets = [0, 15], sizes = [24, 241], strides = [1, 1]} : vector<24x256xf32> to vector<24x241xf32>
    %406 = tpu.concatenate %405, %404 in 1 : vector<24x241xf32>, vector<24x15xf32> -> vector<24x256xf32>
    %407 = vector.broadcast %0 : vector<1x256xf32> to vector<24x256xf32>
    %408 = arith.mulf %406, %407 : vector<24x256xf32>
    %c6_228 = arith.constant 6 : index
    %c0_229 = arith.constant 0 : index
    %c0_230 = arith.constant 0 : index
    %409 = vector.load %arg14[%c6_228, %c0_229, %c0_230] : memref<9x8x24xbf16, #tpu.memory_space<vmem>>, vector<1x8x24xbf16>
    %410 = vector.shape_cast %409 : vector<1x8x24xbf16> to vector<8x24xbf16>
    %411 = arith.truncf %408 : vector<24x256xf32> to vector<24x256xbf16>
    %cst_231 = arith.constant dense<0.000000e+00> : vector<8x256xf32>
    %412 = tpu.matmul %410, %411, %cst_231 {dimension_numbers = #tpu.dot_dimension_numbers<[1], [0], [0], [1], [0, 0, 1, 1], [], []>} : vector<8x24xbf16>, vector<24x256xbf16>, vector<8x256xf32> -> vector<8x256xf32>
    %413 = arith.addf %403, %412 : vector<8x256xf32>
    %cst_232 = arith.constant 0.000000e+00 : f32
    %414 = vector.broadcast %cst_232 : f32 to vector<24x16xf32>
    %415 = vector.extract_strided_slice %351 {offsets = [0, 16], sizes = [24, 240], strides = [1, 1]} : vector<24x256xf32> to vector<24x240xf32>
    %416 = tpu.concatenate %415, %414 in 1 : vector<24x240xf32>, vector<24x16xf32> -> vector<24x256xf32>
    %c7_233 = arith.constant 7 : index
    %c0_234 = arith.constant 0 : index
    %c0_235 = arith.constant 0 : index
    %417 = vector.load %arg14[%c7_233, %c0_234, %c0_235] : memref<9x8x24xbf16, #tpu.memory_space<vmem>>, vector<1x8x24xbf16>
    %418 = vector.shape_cast %417 : vector<1x8x24xbf16> to vector<8x24xbf16>
    %419 = arith.truncf %416 : vector<24x256xf32> to vector<24x256xbf16>
    %cst_236 = arith.constant dense<0.000000e+00> : vector<8x256xf32>
    %420 = tpu.matmul %418, %419, %cst_236 {dimension_numbers = #tpu.dot_dimension_numbers<[1], [0], [0], [1], [0, 0, 1, 1], [], []>} : vector<8x24xbf16>, vector<24x256xbf16>, vector<8x256xf32> -> vector<8x256xf32>
    %421 = arith.addf %413, %420 : vector<8x256xf32>
    %cst_237 = arith.constant 0.000000e+00 : f32
    %422 = vector.broadcast %cst_237 : f32 to vector<24x17xf32>
    %423 = vector.extract_strided_slice %351 {offsets = [0, 17], sizes = [24, 239], strides = [1, 1]} : vector<24x256xf32> to vector<24x239xf32>
    %424 = tpu.concatenate %423, %422 in 1 : vector<24x239xf32>, vector<24x17xf32> -> vector<24x256xf32>
    %425 = vector.broadcast %1 : vector<1x256xf32> to vector<24x256xf32>
    %426 = arith.mulf %424, %425 : vector<24x256xf32>
    %c8_238 = arith.constant 8 : index
    %c0_239 = arith.constant 0 : index
    %c0_240 = arith.constant 0 : index
    %427 = vector.load %arg14[%c8_238, %c0_239, %c0_240] : memref<9x8x24xbf16, #tpu.memory_space<vmem>>, vector<1x8x24xbf16>
    %428 = vector.shape_cast %427 : vector<1x8x24xbf16> to vector<8x24xbf16>
    %429 = arith.truncf %426 : vector<24x256xf32> to vector<24x256xbf16>
    %cst_241 = arith.constant dense<0.000000e+00> : vector<8x256xf32>
    %430 = tpu.matmul %428, %429, %cst_241 {dimension_numbers = #tpu.dot_dimension_numbers<[1], [0], [0], [1], [0, 0, 1, 1], [], []>} : vector<8x24xbf16>, vector<24x256xbf16>, vector<8x256xf32> -> vector<8x256xf32>
    %431 = arith.addf %421, %430 : vector<8x256xf32>
    %c0_242 = arith.constant 0 : index
    %c0_243 = arith.constant 0 : index
    %432 = vector.load %arg15[%c0_242, %c0_243] : memref<8x1xf32, #tpu.memory_space<vmem>>, vector<8x1xf32>
    %433 = vector.broadcast %432 : vector<8x1xf32> to vector<8x256xf32>
    %434 = arith.addf %431, %433 : vector<8x256xf32>
    %cst_244 = arith.constant 0.000000e+00 : f32
    %435 = vector.broadcast %cst_244 : f32 to vector<8x256xf32>
    %436 = arith.maximumf %434, %435 : vector<8x256xf32>
    %c24 = arith.constant 24 : index
    %c0_245 = arith.constant 0 : index
    %437 = vector.load %arg41[%c24, %c0_245] : memref<32x256xf32, #tpu.memory_space<vmem>>, vector<8x256xf32>
    tpu.vector_store %arg41[%c24, %c0_245], %436 {strides = array<i32>} : memref<32x256xf32, #tpu.memory_space<vmem>>, vector<8x256xf32>,
    %c0_246 = arith.constant 0 : index
    %c0_247 = arith.constant 0 : index
    %438 = vector.load %arg41[%c0_246, %c0_247] : memref<32x256xf32, #tpu.memory_space<vmem>>, vector<32x256xf32>
    %c0_248 = arith.constant 0 : index
    %c0_249 = arith.constant 0 : index
    %439 = vector.load %arg16[%c0_248, %c0_249] : memref<8x32xbf16, #tpu.memory_space<vmem>>, vector<8x32xbf16>
    %440 = arith.truncf %438 : vector<32x256xf32> to vector<32x256xbf16>
    %cst_250 = arith.constant dense<0.000000e+00> : vector<8x256xf32>
    %441 = tpu.matmul %439, %440, %cst_250 {dimension_numbers = #tpu.dot_dimension_numbers<[1], [0], [0], [1], [0, 0, 1, 1], [], []>} : vector<8x32xbf16>, vector<32x256xbf16>, vector<8x256xf32> -> vector<8x256xf32>
    %c0_251 = arith.constant 0 : index
    %c0_252 = arith.constant 0 : index
    %442 = vector.load %arg17[%c0_251, %c0_252] : memref<8x1xf32, #tpu.memory_space<vmem>>, vector<8x1xf32>
    %443 = vector.broadcast %442 : vector<8x1xf32> to vector<8x256xf32>
    %444 = arith.addf %441, %443 : vector<8x256xf32>
    %445 = arith.addf %444, %175 : vector<8x256xf32>
    %c0_253 = arith.constant 0 : index
    %c0_254 = arith.constant 0 : index
    %446 = vector.load %arg42[%c0_253, %c0_254] : memref<24x256xf32, #tpu.memory_space<vmem>>, vector<8x256xf32>
    tpu.vector_store %arg42[%c0_253, %c0_254], %445 {strides = array<i32>} : memref<24x256xf32, #tpu.memory_space<vmem>>, vector<8x256xf32>,
    %c0_255 = arith.constant 0 : index
    %c0_256 = arith.constant 0 : index
    %447 = vector.load %arg41[%c0_255, %c0_256] : memref<32x256xf32, #tpu.memory_space<vmem>>, vector<8x256xf32>
    tpu.vector_store %arg41[%c0_255, %c0_256], %445 {strides = array<i32>} : memref<32x256xf32, #tpu.memory_space<vmem>>, vector<8x256xf32>,
    %c0_257 = arith.constant 0 : index
    %c0_258 = arith.constant 0 : index
    %448 = vector.load %arg41[%c0_257, %c0_258] : memref<32x256xf32, #tpu.memory_space<vmem>>, vector<8x256xf32>
    %cst_259 = arith.constant 0.000000e+00 : f32
    %449 = vector.broadcast %cst_259 : f32 to vector<8x17xf32>
    %450 = vector.extract_strided_slice %448 {offsets = [0, 0], sizes = [8, 239], strides = [1, 1]} : vector<8x256xf32> to vector<8x239xf32>
    %451 = tpu.concatenate %449, %450 in 1 : vector<8x17xf32>, vector<8x239xf32> -> vector<8x256xf32>
    %452 = vector.broadcast %0 : vector<1x256xf32> to vector<8x256xf32>
    %453 = arith.mulf %451, %452 : vector<8x256xf32>
    %c0_260 = arith.constant 0 : index
    %c0_261 = arith.constant 0 : index
    %c0_262 = arith.constant 0 : index
    %454 = vector.load %arg18[%c0_260, %c0_261, %c0_262] : memref<9x8x8xbf16, #tpu.memory_space<vmem>>, vector<1x8x8xbf16>
    %455 = vector.shape_cast %454 : vector<1x8x8xbf16> to vector<8x8xbf16>
    %456 = arith.truncf %453 : vector<8x256xf32> to vector<8x256xbf16>
    %cst_263 = arith.constant dense<0.000000e+00> : vector<8x256xf32>
    %457 = tpu.matmul %455, %456, %cst_263 {dimension_numbers = #tpu.dot_dimension_numbers<[1], [0], [0], [1], [0, 0, 1, 1], [], []>} : vector<8x8xbf16>, vector<8x256xbf16>, vector<8x256xf32> -> vector<8x256xf32>
    %cst_264 = arith.constant 0.000000e+00 : f32
    %458 = vector.broadcast %cst_264 : f32 to vector<8x16xf32>
    %459 = vector.extract_strided_slice %448 {offsets = [0, 0], sizes = [8, 240], strides = [1, 1]} : vector<8x256xf32> to vector<8x240xf32>
    %460 = tpu.concatenate %458, %459 in 1 : vector<8x16xf32>, vector<8x240xf32> -> vector<8x256xf32>
    %c1_265 = arith.constant 1 : index
    %c0_266 = arith.constant 0 : index
    %c0_267 = arith.constant 0 : index
    %461 = vector.load %arg18[%c1_265, %c0_266, %c0_267] : memref<9x8x8xbf16, #tpu.memory_space<vmem>>, vector<1x8x8xbf16>
    %462 = vector.shape_cast %461 : vector<1x8x8xbf16> to vector<8x8xbf16>
    %463 = arith.truncf %460 : vector<8x256xf32> to vector<8x256xbf16>
    %cst_268 = arith.constant dense<0.000000e+00> : vector<8x256xf32>
    %464 = tpu.matmul %462, %463, %cst_268 {dimension_numbers = #tpu.dot_dimension_numbers<[1], [0], [0], [1], [0, 0, 1, 1], [], []>} : vector<8x8xbf16>, vector<8x256xbf16>, vector<8x256xf32> -> vector<8x256xf32>
    %465 = arith.addf %457, %464 : vector<8x256xf32>
    %cst_269 = arith.constant 0.000000e+00 : f32
    %466 = vector.broadcast %cst_269 : f32 to vector<8x15xf32>
    %467 = vector.extract_strided_slice %448 {offsets = [0, 0], sizes = [8, 241], strides = [1, 1]} : vector<8x256xf32> to vector<8x241xf32>
    %468 = tpu.concatenate %466, %467 in 1 : vector<8x15xf32>, vector<8x241xf32> -> vector<8x256xf32>
    %469 = vector.broadcast %1 : vector<1x256xf32> to vector<8x256xf32>
    %470 = arith.mulf %468, %469 : vector<8x256xf32>
    %c2_270 = arith.constant 2 : index
    %c0_271 = arith.constant 0 : index
    %c0_272 = arith.constant 0 : index
    %471 = vector.load %arg18[%c2_270, %c0_271, %c0_272] : memref<9x8x8xbf16, #tpu.memory_space<vmem>>, vector<1x8x8xbf16>
    %472 = vector.shape_cast %471 : vector<1x8x8xbf16> to vector<8x8xbf16>
    %473 = arith.truncf %470 : vector<8x256xf32> to vector<8x256xbf16>
    %cst_273 = arith.constant dense<0.000000e+00> : vector<8x256xf32>
    %474 = tpu.matmul %472, %473, %cst_273 {dimension_numbers = #tpu.dot_dimension_numbers<[1], [0], [0], [1], [0, 0, 1, 1], [], []>} : vector<8x8xbf16>, vector<8x256xbf16>, vector<8x256xf32> -> vector<8x256xf32>
    %475 = arith.addf %465, %474 : vector<8x256xf32>
    %cst_274 = arith.constant 0.000000e+00 : f32
    %476 = vector.broadcast %cst_274 : f32 to vector<8x1xf32>
    %477 = vector.extract_strided_slice %448 {offsets = [0, 0], sizes = [8, 255], strides = [1, 1]} : vector<8x256xf32> to vector<8x255xf32>
    %478 = tpu.concatenate %476, %477 in 1 : vector<8x1xf32>, vector<8x255xf32> -> vector<8x256xf32>
    %479 = vector.broadcast %0 : vector<1x256xf32> to vector<8x256xf32>
    %480 = arith.mulf %478, %479 : vector<8x256xf32>
    %c3_275 = arith.constant 3 : index
    %c0_276 = arith.constant 0 : index
    %c0_277 = arith.constant 0 : index
    %481 = vector.load %arg18[%c3_275, %c0_276, %c0_277] : memref<9x8x8xbf16, #tpu.memory_space<vmem>>, vector<1x8x8xbf16>
    %482 = vector.shape_cast %481 : vector<1x8x8xbf16> to vector<8x8xbf16>
    %483 = arith.truncf %480 : vector<8x256xf32> to vector<8x256xbf16>
    %cst_278 = arith.constant dense<0.000000e+00> : vector<8x256xf32>
    %484 = tpu.matmul %482, %483, %cst_278 {dimension_numbers = #tpu.dot_dimension_numbers<[1], [0], [0], [1], [0, 0, 1, 1], [], []>} : vector<8x8xbf16>, vector<8x256xbf16>, vector<8x256xf32> -> vector<8x256xf32>
    %485 = arith.addf %475, %484 : vector<8x256xf32>
    %c4_279 = arith.constant 4 : index
    %c0_280 = arith.constant 0 : index
    %c0_281 = arith.constant 0 : index
    %486 = vector.load %arg18[%c4_279, %c0_280, %c0_281] : memref<9x8x8xbf16, #tpu.memory_space<vmem>>, vector<1x8x8xbf16>
    %487 = vector.shape_cast %486 : vector<1x8x8xbf16> to vector<8x8xbf16>
    %488 = arith.truncf %448 : vector<8x256xf32> to vector<8x256xbf16>
    %cst_282 = arith.constant dense<0.000000e+00> : vector<8x256xf32>
    %489 = tpu.matmul %487, %488, %cst_282 {dimension_numbers = #tpu.dot_dimension_numbers<[1], [0], [0], [1], [0, 0, 1, 1], [], []>} : vector<8x8xbf16>, vector<8x256xbf16>, vector<8x256xf32> -> vector<8x256xf32>
    %490 = arith.addf %485, %489 : vector<8x256xf32>
    %cst_283 = arith.constant 0.000000e+00 : f32
    %491 = vector.broadcast %cst_283 : f32 to vector<8x1xf32>
    %492 = vector.extract_strided_slice %448 {offsets = [0, 1], sizes = [8, 255], strides = [1, 1]} : vector<8x256xf32> to vector<8x255xf32>
    %493 = tpu.concatenate %492, %491 in 1 : vector<8x255xf32>, vector<8x1xf32> -> vector<8x256xf32>
    %494 = vector.broadcast %1 : vector<1x256xf32> to vector<8x256xf32>
    %495 = arith.mulf %493, %494 : vector<8x256xf32>
    %c5_284 = arith.constant 5 : index
    %c0_285 = arith.constant 0 : index
    %c0_286 = arith.constant 0 : index
    %496 = vector.load %arg18[%c5_284, %c0_285, %c0_286] : memref<9x8x8xbf16, #tpu.memory_space<vmem>>, vector<1x8x8xbf16>
    %497 = vector.shape_cast %496 : vector<1x8x8xbf16> to vector<8x8xbf16>
    %498 = arith.truncf %495 : vector<8x256xf32> to vector<8x256xbf16>
    %cst_287 = arith.constant dense<0.000000e+00> : vector<8x256xf32>
    %499 = tpu.matmul %497, %498, %cst_287 {dimension_numbers = #tpu.dot_dimension_numbers<[1], [0], [0], [1], [0, 0, 1, 1], [], []>} : vector<8x8xbf16>, vector<8x256xbf16>, vector<8x256xf32> -> vector<8x256xf32>
    %500 = arith.addf %490, %499 : vector<8x256xf32>
    %cst_288 = arith.constant 0.000000e+00 : f32
    %501 = vector.broadcast %cst_288 : f32 to vector<8x15xf32>
    %502 = vector.extract_strided_slice %448 {offsets = [0, 15], sizes = [8, 241], strides = [1, 1]} : vector<8x256xf32> to vector<8x241xf32>
    %503 = tpu.concatenate %502, %501 in 1 : vector<8x241xf32>, vector<8x15xf32> -> vector<8x256xf32>
    %504 = vector.broadcast %0 : vector<1x256xf32> to vector<8x256xf32>
    %505 = arith.mulf %503, %504 : vector<8x256xf32>
    %c6_289 = arith.constant 6 : index
    %c0_290 = arith.constant 0 : index
    %c0_291 = arith.constant 0 : index
    %506 = vector.load %arg18[%c6_289, %c0_290, %c0_291] : memref<9x8x8xbf16, #tpu.memory_space<vmem>>, vector<1x8x8xbf16>
    %507 = vector.shape_cast %506 : vector<1x8x8xbf16> to vector<8x8xbf16>
    %508 = arith.truncf %505 : vector<8x256xf32> to vector<8x256xbf16>
    %cst_292 = arith.constant dense<0.000000e+00> : vector<8x256xf32>
    %509 = tpu.matmul %507, %508, %cst_292 {dimension_numbers = #tpu.dot_dimension_numbers<[1], [0], [0], [1], [0, 0, 1, 1], [], []>} : vector<8x8xbf16>, vector<8x256xbf16>, vector<8x256xf32> -> vector<8x256xf32>
    %510 = arith.addf %500, %509 : vector<8x256xf32>
    %cst_293 = arith.constant 0.000000e+00 : f32
    %511 = vector.broadcast %cst_293 : f32 to vector<8x16xf32>
    %512 = vector.extract_strided_slice %448 {offsets = [0, 16], sizes = [8, 240], strides = [1, 1]} : vector<8x256xf32> to vector<8x240xf32>
    %513 = tpu.concatenate %512, %511 in 1 : vector<8x240xf32>, vector<8x16xf32> -> vector<8x256xf32>
    %c7_294 = arith.constant 7 : index
    %c0_295 = arith.constant 0 : index
    %c0_296 = arith.constant 0 : index
    %514 = vector.load %arg18[%c7_294, %c0_295, %c0_296] : memref<9x8x8xbf16, #tpu.memory_space<vmem>>, vector<1x8x8xbf16>
    %515 = vector.shape_cast %514 : vector<1x8x8xbf16> to vector<8x8xbf16>
    %516 = arith.truncf %513 : vector<8x256xf32> to vector<8x256xbf16>
    %cst_297 = arith.constant dense<0.000000e+00> : vector<8x256xf32>
    %517 = tpu.matmul %515, %516, %cst_297 {dimension_numbers = #tpu.dot_dimension_numbers<[1], [0], [0], [1], [0, 0, 1, 1], [], []>} : vector<8x8xbf16>, vector<8x256xbf16>, vector<8x256xf32> -> vector<8x256xf32>
    %518 = arith.addf %510, %517 : vector<8x256xf32>
    %cst_298 = arith.constant 0.000000e+00 : f32
    %519 = vector.broadcast %cst_298 : f32 to vector<8x17xf32>
    %520 = vector.extract_strided_slice %448 {offsets = [0, 17], sizes = [8, 239], strides = [1, 1]} : vector<8x256xf32> to vector<8x239xf32>
    %521 = tpu.concatenate %520, %519 in 1 : vector<8x239xf32>, vector<8x17xf32> -> vector<8x256xf32>
    %522 = vector.broadcast %1 : vector<1x256xf32> to vector<8x256xf32>
    %523 = arith.mulf %521, %522 : vector<8x256xf32>
    %c8_299 = arith.constant 8 : index
    %c0_300 = arith.constant 0 : index
    %c0_301 = arith.constant 0 : index
    %524 = vector.load %arg18[%c8_299, %c0_300, %c0_301] : memref<9x8x8xbf16, #tpu.memory_space<vmem>>, vector<1x8x8xbf16>
    %525 = vector.shape_cast %524 : vector<1x8x8xbf16> to vector<8x8xbf16>
    %526 = arith.truncf %523 : vector<8x256xf32> to vector<8x256xbf16>
    %cst_302 = arith.constant dense<0.000000e+00> : vector<8x256xf32>
    %527 = tpu.matmul %525, %526, %cst_302 {dimension_numbers = #tpu.dot_dimension_numbers<[1], [0], [0], [1], [0, 0, 1, 1], [], []>} : vector<8x8xbf16>, vector<8x256xbf16>, vector<8x256xf32> -> vector<8x256xf32>
    %528 = arith.addf %518, %527 : vector<8x256xf32>
    %c0_303 = arith.constant 0 : index
    %c0_304 = arith.constant 0 : index
    %529 = vector.load %arg19[%c0_303, %c0_304] : memref<8x1xf32, #tpu.memory_space<vmem>>, vector<8x1xf32>
    %530 = vector.broadcast %529 : vector<8x1xf32> to vector<8x256xf32>
    %531 = arith.addf %528, %530 : vector<8x256xf32>
    %cst_305 = arith.constant 0.000000e+00 : f32
    %532 = vector.broadcast %cst_305 : f32 to vector<8x256xf32>
    %533 = arith.maximumf %531, %532 : vector<8x256xf32>
    %c8_306 = arith.constant 8 : index
    %c0_307 = arith.constant 0 : index
    %534 = vector.load %arg41[%c8_306, %c0_307] : memref<32x256xf32, #tpu.memory_space<vmem>>, vector<8x256xf32>
    tpu.vector_store %arg41[%c8_306, %c0_307], %533 {strides = array<i32>} : memref<32x256xf32, #tpu.memory_space<vmem>>, vector<8x256xf32>,
    %c0_308 = arith.constant 0 : index
    %c0_309 = arith.constant 0 : index
    %535 = vector.load %arg41[%c0_308, %c0_309] : memref<32x256xf32, #tpu.memory_space<vmem>>, vector<16x256xf32>
    %cst_310 = arith.constant 0.000000e+00 : f32
    %536 = vector.broadcast %cst_310 : f32 to vector<16x17xf32>
    %537 = vector.extract_strided_slice %535 {offsets = [0, 0], sizes = [16, 239], strides = [1, 1]} : vector<16x256xf32> to vector<16x239xf32>
    %538 = tpu.concatenate %536, %537 in 1 : vector<16x17xf32>, vector<16x239xf32> -> vector<16x256xf32>
    %539 = vector.broadcast %0 : vector<1x256xf32> to vector<16x256xf32>
    %540 = arith.mulf %538, %539 : vector<16x256xf32>
    %c0_311 = arith.constant 0 : index
    %c0_312 = arith.constant 0 : index
    %c0_313 = arith.constant 0 : index
    %541 = vector.load %arg20[%c0_311, %c0_312, %c0_313] : memref<9x8x16xbf16, #tpu.memory_space<vmem>>, vector<1x8x16xbf16>
    %542 = vector.shape_cast %541 : vector<1x8x16xbf16> to vector<8x16xbf16>
    %543 = arith.truncf %540 : vector<16x256xf32> to vector<16x256xbf16>
    %cst_314 = arith.constant dense<0.000000e+00> : vector<8x256xf32>
    %544 = tpu.matmul %542, %543, %cst_314 {dimension_numbers = #tpu.dot_dimension_numbers<[1], [0], [0], [1], [0, 0, 1, 1], [], []>} : vector<8x16xbf16>, vector<16x256xbf16>, vector<8x256xf32> -> vector<8x256xf32>
    %cst_315 = arith.constant 0.000000e+00 : f32
    %545 = vector.broadcast %cst_315 : f32 to vector<16x16xf32>
    %546 = vector.extract_strided_slice %535 {offsets = [0, 0], sizes = [16, 240], strides = [1, 1]} : vector<16x256xf32> to vector<16x240xf32>
    %547 = tpu.concatenate %545, %546 in 1 : vector<16x16xf32>, vector<16x240xf32> -> vector<16x256xf32>
    %c1_316 = arith.constant 1 : index
    %c0_317 = arith.constant 0 : index
    %c0_318 = arith.constant 0 : index
    %548 = vector.load %arg20[%c1_316, %c0_317, %c0_318] : memref<9x8x16xbf16, #tpu.memory_space<vmem>>, vector<1x8x16xbf16>
    %549 = vector.shape_cast %548 : vector<1x8x16xbf16> to vector<8x16xbf16>
    %550 = arith.truncf %547 : vector<16x256xf32> to vector<16x256xbf16>
    %cst_319 = arith.constant dense<0.000000e+00> : vector<8x256xf32>
    %551 = tpu.matmul %549, %550, %cst_319 {dimension_numbers = #tpu.dot_dimension_numbers<[1], [0], [0], [1], [0, 0, 1, 1], [], []>} : vector<8x16xbf16>, vector<16x256xbf16>, vector<8x256xf32> -> vector<8x256xf32>
    %552 = arith.addf %544, %551 : vector<8x256xf32>
    %cst_320 = arith.constant 0.000000e+00 : f32
    %553 = vector.broadcast %cst_320 : f32 to vector<16x15xf32>
    %554 = vector.extract_strided_slice %535 {offsets = [0, 0], sizes = [16, 241], strides = [1, 1]} : vector<16x256xf32> to vector<16x241xf32>
    %555 = tpu.concatenate %553, %554 in 1 : vector<16x15xf32>, vector<16x241xf32> -> vector<16x256xf32>
    %556 = vector.broadcast %1 : vector<1x256xf32> to vector<16x256xf32>
    %557 = arith.mulf %555, %556 : vector<16x256xf32>
    %c2_321 = arith.constant 2 : index
    %c0_322 = arith.constant 0 : index
    %c0_323 = arith.constant 0 : index
    %558 = vector.load %arg20[%c2_321, %c0_322, %c0_323] : memref<9x8x16xbf16, #tpu.memory_space<vmem>>, vector<1x8x16xbf16>
    %559 = vector.shape_cast %558 : vector<1x8x16xbf16> to vector<8x16xbf16>
    %560 = arith.truncf %557 : vector<16x256xf32> to vector<16x256xbf16>
    %cst_324 = arith.constant dense<0.000000e+00> : vector<8x256xf32>
    %561 = tpu.matmul %559, %560, %cst_324 {dimension_numbers = #tpu.dot_dimension_numbers<[1], [0], [0], [1], [0, 0, 1, 1], [], []>} : vector<8x16xbf16>, vector<16x256xbf16>, vector<8x256xf32> -> vector<8x256xf32>
    %562 = arith.addf %552, %561 : vector<8x256xf32>
    %cst_325 = arith.constant 0.000000e+00 : f32
    %563 = vector.broadcast %cst_325 : f32 to vector<16x1xf32>
    %564 = vector.extract_strided_slice %535 {offsets = [0, 0], sizes = [16, 255], strides = [1, 1]} : vector<16x256xf32> to vector<16x255xf32>
    %565 = tpu.concatenate %563, %564 in 1 : vector<16x1xf32>, vector<16x255xf32> -> vector<16x256xf32>
    %566 = vector.broadcast %0 : vector<1x256xf32> to vector<16x256xf32>
    %567 = arith.mulf %565, %566 : vector<16x256xf32>
    %c3_326 = arith.constant 3 : index
    %c0_327 = arith.constant 0 : index
    %c0_328 = arith.constant 0 : index
    %568 = vector.load %arg20[%c3_326, %c0_327, %c0_328] : memref<9x8x16xbf16, #tpu.memory_space<vmem>>, vector<1x8x16xbf16>
    %569 = vector.shape_cast %568 : vector<1x8x16xbf16> to vector<8x16xbf16>
    %570 = arith.truncf %567 : vector<16x256xf32> to vector<16x256xbf16>
    %cst_329 = arith.constant dense<0.000000e+00> : vector<8x256xf32>
    %571 = tpu.matmul %569, %570, %cst_329 {dimension_numbers = #tpu.dot_dimension_numbers<[1], [0], [0], [1], [0, 0, 1, 1], [], []>} : vector<8x16xbf16>, vector<16x256xbf16>, vector<8x256xf32> -> vector<8x256xf32>
    %572 = arith.addf %562, %571 : vector<8x256xf32>
    %c4_330 = arith.constant 4 : index
    %c0_331 = arith.constant 0 : index
    %c0_332 = arith.constant 0 : index
    %573 = vector.load %arg20[%c4_330, %c0_331, %c0_332] : memref<9x8x16xbf16, #tpu.memory_space<vmem>>, vector<1x8x16xbf16>
    %574 = vector.shape_cast %573 : vector<1x8x16xbf16> to vector<8x16xbf16>
    %575 = arith.truncf %535 : vector<16x256xf32> to vector<16x256xbf16>
    %cst_333 = arith.constant dense<0.000000e+00> : vector<8x256xf32>
    %576 = tpu.matmul %574, %575, %cst_333 {dimension_numbers = #tpu.dot_dimension_numbers<[1], [0], [0], [1], [0, 0, 1, 1], [], []>} : vector<8x16xbf16>, vector<16x256xbf16>, vector<8x256xf32> -> vector<8x256xf32>
    %577 = arith.addf %572, %576 : vector<8x256xf32>
    %cst_334 = arith.constant 0.000000e+00 : f32
    %578 = vector.broadcast %cst_334 : f32 to vector<16x1xf32>
    %579 = vector.extract_strided_slice %535 {offsets = [0, 1], sizes = [16, 255], strides = [1, 1]} : vector<16x256xf32> to vector<16x255xf32>
    %580 = tpu.concatenate %579, %578 in 1 : vector<16x255xf32>, vector<16x1xf32> -> vector<16x256xf32>
    %581 = vector.broadcast %1 : vector<1x256xf32> to vector<16x256xf32>
    %582 = arith.mulf %580, %581 : vector<16x256xf32>
    %c5_335 = arith.constant 5 : index
    %c0_336 = arith.constant 0 : index
    %c0_337 = arith.constant 0 : index
    %583 = vector.load %arg20[%c5_335, %c0_336, %c0_337] : memref<9x8x16xbf16, #tpu.memory_space<vmem>>, vector<1x8x16xbf16>
    %584 = vector.shape_cast %583 : vector<1x8x16xbf16> to vector<8x16xbf16>
    %585 = arith.truncf %582 : vector<16x256xf32> to vector<16x256xbf16>
    %cst_338 = arith.constant dense<0.000000e+00> : vector<8x256xf32>
    %586 = tpu.matmul %584, %585, %cst_338 {dimension_numbers = #tpu.dot_dimension_numbers<[1], [0], [0], [1], [0, 0, 1, 1], [], []>} : vector<8x16xbf16>, vector<16x256xbf16>, vector<8x256xf32> -> vector<8x256xf32>
    %587 = arith.addf %577, %586 : vector<8x256xf32>
    %cst_339 = arith.constant 0.000000e+00 : f32
    %588 = vector.broadcast %cst_339 : f32 to vector<16x15xf32>
    %589 = vector.extract_strided_slice %535 {offsets = [0, 15], sizes = [16, 241], strides = [1, 1]} : vector<16x256xf32> to vector<16x241xf32>
    %590 = tpu.concatenate %589, %588 in 1 : vector<16x241xf32>, vector<16x15xf32> -> vector<16x256xf32>
    %591 = vector.broadcast %0 : vector<1x256xf32> to vector<16x256xf32>
    %592 = arith.mulf %590, %591 : vector<16x256xf32>
    %c6_340 = arith.constant 6 : index
    %c0_341 = arith.constant 0 : index
    %c0_342 = arith.constant 0 : index
    %593 = vector.load %arg20[%c6_340, %c0_341, %c0_342] : memref<9x8x16xbf16, #tpu.memory_space<vmem>>, vector<1x8x16xbf16>
    %594 = vector.shape_cast %593 : vector<1x8x16xbf16> to vector<8x16xbf16>
    %595 = arith.truncf %592 : vector<16x256xf32> to vector<16x256xbf16>
    %cst_343 = arith.constant dense<0.000000e+00> : vector<8x256xf32>
    %596 = tpu.matmul %594, %595, %cst_343 {dimension_numbers = #tpu.dot_dimension_numbers<[1], [0], [0], [1], [0, 0, 1, 1], [], []>} : vector<8x16xbf16>, vector<16x256xbf16>, vector<8x256xf32> -> vector<8x256xf32>
    %597 = arith.addf %587, %596 : vector<8x256xf32>
    %cst_344 = arith.constant 0.000000e+00 : f32
    %598 = vector.broadcast %cst_344 : f32 to vector<16x16xf32>
    %599 = vector.extract_strided_slice %535 {offsets = [0, 16], sizes = [16, 240], strides = [1, 1]} : vector<16x256xf32> to vector<16x240xf32>
    %600 = tpu.concatenate %599, %598 in 1 : vector<16x240xf32>, vector<16x16xf32> -> vector<16x256xf32>
    %c7_345 = arith.constant 7 : index
    %c0_346 = arith.constant 0 : index
    %c0_347 = arith.constant 0 : index
    %601 = vector.load %arg20[%c7_345, %c0_346, %c0_347] : memref<9x8x16xbf16, #tpu.memory_space<vmem>>, vector<1x8x16xbf16>
    %602 = vector.shape_cast %601 : vector<1x8x16xbf16> to vector<8x16xbf16>
    %603 = arith.truncf %600 : vector<16x256xf32> to vector<16x256xbf16>
    %cst_348 = arith.constant dense<0.000000e+00> : vector<8x256xf32>
    %604 = tpu.matmul %602, %603, %cst_348 {dimension_numbers = #tpu.dot_dimension_numbers<[1], [0], [0], [1], [0, 0, 1, 1], [], []>} : vector<8x16xbf16>, vector<16x256xbf16>, vector<8x256xf32> -> vector<8x256xf32>
    %605 = arith.addf %597, %604 : vector<8x256xf32>
    %cst_349 = arith.constant 0.000000e+00 : f32
    %606 = vector.broadcast %cst_349 : f32 to vector<16x17xf32>
    %607 = vector.extract_strided_slice %535 {offsets = [0, 17], sizes = [16, 239], strides = [1, 1]} : vector<16x256xf32> to vector<16x239xf32>
    %608 = tpu.concatenate %607, %606 in 1 : vector<16x239xf32>, vector<16x17xf32> -> vector<16x256xf32>
    %609 = vector.broadcast %1 : vector<1x256xf32> to vector<16x256xf32>
    %610 = arith.mulf %608, %609 : vector<16x256xf32>
    %c8_350 = arith.constant 8 : index
    %c0_351 = arith.constant 0 : index
    %c0_352 = arith.constant 0 : index
    %611 = vector.load %arg20[%c8_350, %c0_351, %c0_352] : memref<9x8x16xbf16, #tpu.memory_space<vmem>>, vector<1x8x16xbf16>
    %612 = vector.shape_cast %611 : vector<1x8x16xbf16> to vector<8x16xbf16>
    %613 = arith.truncf %610 : vector<16x256xf32> to vector<16x256xbf16>
    %cst_353 = arith.constant dense<0.000000e+00> : vector<8x256xf32>
    %614 = tpu.matmul %612, %613, %cst_353 {dimension_numbers = #tpu.dot_dimension_numbers<[1], [0], [0], [1], [0, 0, 1, 1], [], []>} : vector<8x16xbf16>, vector<16x256xbf16>, vector<8x256xf32> -> vector<8x256xf32>
    %615 = arith.addf %605, %614 : vector<8x256xf32>
    %c0_354 = arith.constant 0 : index
    %c0_355 = arith.constant 0 : index
    %616 = vector.load %arg21[%c0_354, %c0_355] : memref<8x1xf32, #tpu.memory_space<vmem>>, vector<8x1xf32>
    %617 = vector.broadcast %616 : vector<8x1xf32> to vector<8x256xf32>
    %618 = arith.addf %615, %617 : vector<8x256xf32>
    %cst_356 = arith.constant 0.000000e+00 : f32
    %619 = vector.broadcast %cst_356 : f32 to vector<8x256xf32>
    %620 = arith.maximumf %618, %619 : vector<8x256xf32>
    %c16_357 = arith.constant 16 : index
    %c0_358 = arith.constant 0 : index
    %621 = vector.load %arg41[%c16_357, %c0_358] : memref<32x256xf32, #tpu.memory_space<vmem>>, vector<8x256xf32>
    tpu.vector_store %arg41[%c16_357, %c0_358], %620 {strides = array<i32>} : memref<32x256xf32, #tpu.memory_space<vmem>>, vector<8x256xf32>,
    %c0_359 = arith.constant 0 : index
    %c0_360 = arith.constant 0 : index
    %622 = vector.load %arg41[%c0_359, %c0_360] : memref<32x256xf32, #tpu.memory_space<vmem>>, vector<24x256xf32>
    %cst_361 = arith.constant 0.000000e+00 : f32
    %623 = vector.broadcast %cst_361 : f32 to vector<24x17xf32>
    %624 = vector.extract_strided_slice %622 {offsets = [0, 0], sizes = [24, 239], strides = [1, 1]} : vector<24x256xf32> to vector<24x239xf32>
    %625 = tpu.concatenate %623, %624 in 1 : vector<24x17xf32>, vector<24x239xf32> -> vector<24x256xf32>
    %626 = vector.broadcast %0 : vector<1x256xf32> to vector<24x256xf32>
    %627 = arith.mulf %625, %626 : vector<24x256xf32>
    %c0_362 = arith.constant 0 : index
    %c0_363 = arith.constant 0 : index
    %c0_364 = arith.constant 0 : index
    %628 = vector.load %arg22[%c0_362, %c0_363, %c0_364] : memref<9x8x24xbf16, #tpu.memory_space<vmem>>, vector<1x8x24xbf16>
    %629 = vector.shape_cast %628 : vector<1x8x24xbf16> to vector<8x24xbf16>
    %630 = arith.truncf %627 : vector<24x256xf32> to vector<24x256xbf16>
    %cst_365 = arith.constant dense<0.000000e+00> : vector<8x256xf32>
    %631 = tpu.matmul %629, %630, %cst_365 {dimension_numbers = #tpu.dot_dimension_numbers<[1], [0], [0], [1], [0, 0, 1, 1], [], []>} : vector<8x24xbf16>, vector<24x256xbf16>, vector<8x256xf32> -> vector<8x256xf32>
    %cst_366 = arith.constant 0.000000e+00 : f32
    %632 = vector.broadcast %cst_366 : f32 to vector<24x16xf32>
    %633 = vector.extract_strided_slice %622 {offsets = [0, 0], sizes = [24, 240], strides = [1, 1]} : vector<24x256xf32> to vector<24x240xf32>
    %634 = tpu.concatenate %632, %633 in 1 : vector<24x16xf32>, vector<24x240xf32> -> vector<24x256xf32>
    %c1_367 = arith.constant 1 : index
    %c0_368 = arith.constant 0 : index
    %c0_369 = arith.constant 0 : index
    %635 = vector.load %arg22[%c1_367, %c0_368, %c0_369] : memref<9x8x24xbf16, #tpu.memory_space<vmem>>, vector<1x8x24xbf16>
    %636 = vector.shape_cast %635 : vector<1x8x24xbf16> to vector<8x24xbf16>
    %637 = arith.truncf %634 : vector<24x256xf32> to vector<24x256xbf16>
    %cst_370 = arith.constant dense<0.000000e+00> : vector<8x256xf32>
    %638 = tpu.matmul %636, %637, %cst_370 {dimension_numbers = #tpu.dot_dimension_numbers<[1], [0], [0], [1], [0, 0, 1, 1], [], []>} : vector<8x24xbf16>, vector<24x256xbf16>, vector<8x256xf32> -> vector<8x256xf32>
    %639 = arith.addf %631, %638 : vector<8x256xf32>
    %cst_371 = arith.constant 0.000000e+00 : f32
    %640 = vector.broadcast %cst_371 : f32 to vector<24x15xf32>
    %641 = vector.extract_strided_slice %622 {offsets = [0, 0], sizes = [24, 241], strides = [1, 1]} : vector<24x256xf32> to vector<24x241xf32>
    %642 = tpu.concatenate %640, %641 in 1 : vector<24x15xf32>, vector<24x241xf32> -> vector<24x256xf32>
    %643 = vector.broadcast %1 : vector<1x256xf32> to vector<24x256xf32>
    %644 = arith.mulf %642, %643 : vector<24x256xf32>
    %c2_372 = arith.constant 2 : index
    %c0_373 = arith.constant 0 : index
    %c0_374 = arith.constant 0 : index
    %645 = vector.load %arg22[%c2_372, %c0_373, %c0_374] : memref<9x8x24xbf16, #tpu.memory_space<vmem>>, vector<1x8x24xbf16>
    %646 = vector.shape_cast %645 : vector<1x8x24xbf16> to vector<8x24xbf16>
    %647 = arith.truncf %644 : vector<24x256xf32> to vector<24x256xbf16>
    %cst_375 = arith.constant dense<0.000000e+00> : vector<8x256xf32>
    %648 = tpu.matmul %646, %647, %cst_375 {dimension_numbers = #tpu.dot_dimension_numbers<[1], [0], [0], [1], [0, 0, 1, 1], [], []>} : vector<8x24xbf16>, vector<24x256xbf16>, vector<8x256xf32> -> vector<8x256xf32>
    %649 = arith.addf %639, %648 : vector<8x256xf32>
    %cst_376 = arith.constant 0.000000e+00 : f32
    %650 = vector.broadcast %cst_376 : f32 to vector<24x1xf32>
    %651 = vector.extract_strided_slice %622 {offsets = [0, 0], sizes = [24, 255], strides = [1, 1]} : vector<24x256xf32> to vector<24x255xf32>
    %652 = tpu.concatenate %650, %651 in 1 : vector<24x1xf32>, vector<24x255xf32> -> vector<24x256xf32>
    %653 = vector.broadcast %0 : vector<1x256xf32> to vector<24x256xf32>
    %654 = arith.mulf %652, %653 : vector<24x256xf32>
    %c3_377 = arith.constant 3 : index
    %c0_378 = arith.constant 0 : index
    %c0_379 = arith.constant 0 : index
    %655 = vector.load %arg22[%c3_377, %c0_378, %c0_379] : memref<9x8x24xbf16, #tpu.memory_space<vmem>>, vector<1x8x24xbf16>
    %656 = vector.shape_cast %655 : vector<1x8x24xbf16> to vector<8x24xbf16>
    %657 = arith.truncf %654 : vector<24x256xf32> to vector<24x256xbf16>
    %cst_380 = arith.constant dense<0.000000e+00> : vector<8x256xf32>
    %658 = tpu.matmul %656, %657, %cst_380 {dimension_numbers = #tpu.dot_dimension_numbers<[1], [0], [0], [1], [0, 0, 1, 1], [], []>} : vector<8x24xbf16>, vector<24x256xbf16>, vector<8x256xf32> -> vector<8x256xf32>
    %659 = arith.addf %649, %658 : vector<8x256xf32>
    %c4_381 = arith.constant 4 : index
    %c0_382 = arith.constant 0 : index
    %c0_383 = arith.constant 0 : index
    %660 = vector.load %arg22[%c4_381, %c0_382, %c0_383] : memref<9x8x24xbf16, #tpu.memory_space<vmem>>, vector<1x8x24xbf16>
    %661 = vector.shape_cast %660 : vector<1x8x24xbf16> to vector<8x24xbf16>
    %662 = arith.truncf %622 : vector<24x256xf32> to vector<24x256xbf16>
    %cst_384 = arith.constant dense<0.000000e+00> : vector<8x256xf32>
    %663 = tpu.matmul %661, %662, %cst_384 {dimension_numbers = #tpu.dot_dimension_numbers<[1], [0], [0], [1], [0, 0, 1, 1], [], []>} : vector<8x24xbf16>, vector<24x256xbf16>, vector<8x256xf32> -> vector<8x256xf32>
    %664 = arith.addf %659, %663 : vector<8x256xf32>
    %cst_385 = arith.constant 0.000000e+00 : f32
    %665 = vector.broadcast %cst_385 : f32 to vector<24x1xf32>
    %666 = vector.extract_strided_slice %622 {offsets = [0, 1], sizes = [24, 255], strides = [1, 1]} : vector<24x256xf32> to vector<24x255xf32>
    %667 = tpu.concatenate %666, %665 in 1 : vector<24x255xf32>, vector<24x1xf32> -> vector<24x256xf32>
    %668 = vector.broadcast %1 : vector<1x256xf32> to vector<24x256xf32>
    %669 = arith.mulf %667, %668 : vector<24x256xf32>
    %c5_386 = arith.constant 5 : index
    %c0_387 = arith.constant 0 : index
    %c0_388 = arith.constant 0 : index
    %670 = vector.load %arg22[%c5_386, %c0_387, %c0_388] : memref<9x8x24xbf16, #tpu.memory_space<vmem>>, vector<1x8x24xbf16>
    %671 = vector.shape_cast %670 : vector<1x8x24xbf16> to vector<8x24xbf16>
    %672 = arith.truncf %669 : vector<24x256xf32> to vector<24x256xbf16>
    %cst_389 = arith.constant dense<0.000000e+00> : vector<8x256xf32>
    %673 = tpu.matmul %671, %672, %cst_389 {dimension_numbers = #tpu.dot_dimension_numbers<[1], [0], [0], [1], [0, 0, 1, 1], [], []>} : vector<8x24xbf16>, vector<24x256xbf16>, vector<8x256xf32> -> vector<8x256xf32>
    %674 = arith.addf %664, %673 : vector<8x256xf32>
    %cst_390 = arith.constant 0.000000e+00 : f32
    %675 = vector.broadcast %cst_390 : f32 to vector<24x15xf32>
    %676 = vector.extract_strided_slice %622 {offsets = [0, 15], sizes = [24, 241], strides = [1, 1]} : vector<24x256xf32> to vector<24x241xf32>
    %677 = tpu.concatenate %676, %675 in 1 : vector<24x241xf32>, vector<24x15xf32> -> vector<24x256xf32>
    %678 = vector.broadcast %0 : vector<1x256xf32> to vector<24x256xf32>
    %679 = arith.mulf %677, %678 : vector<24x256xf32>
    %c6_391 = arith.constant 6 : index
    %c0_392 = arith.constant 0 : index
    %c0_393 = arith.constant 0 : index
    %680 = vector.load %arg22[%c6_391, %c0_392, %c0_393] : memref<9x8x24xbf16, #tpu.memory_space<vmem>>, vector<1x8x24xbf16>
    %681 = vector.shape_cast %680 : vector<1x8x24xbf16> to vector<8x24xbf16>
    %682 = arith.truncf %679 : vector<24x256xf32> to vector<24x256xbf16>
    %cst_394 = arith.constant dense<0.000000e+00> : vector<8x256xf32>
    %683 = tpu.matmul %681, %682, %cst_394 {dimension_numbers = #tpu.dot_dimension_numbers<[1], [0], [0], [1], [0, 0, 1, 1], [], []>} : vector<8x24xbf16>, vector<24x256xbf16>, vector<8x256xf32> -> vector<8x256xf32>
    %684 = arith.addf %674, %683 : vector<8x256xf32>
    %cst_395 = arith.constant 0.000000e+00 : f32
    %685 = vector.broadcast %cst_395 : f32 to vector<24x16xf32>
    %686 = vector.extract_strided_slice %622 {offsets = [0, 16], sizes = [24, 240], strides = [1, 1]} : vector<24x256xf32> to vector<24x240xf32>
    %687 = tpu.concatenate %686, %685 in 1 : vector<24x240xf32>, vector<24x16xf32> -> vector<24x256xf32>
    %c7_396 = arith.constant 7 : index
    %c0_397 = arith.constant 0 : index
    %c0_398 = arith.constant 0 : index
    %688 = vector.load %arg22[%c7_396, %c0_397, %c0_398] : memref<9x8x24xbf16, #tpu.memory_space<vmem>>, vector<1x8x24xbf16>
    %689 = vector.shape_cast %688 : vector<1x8x24xbf16> to vector<8x24xbf16>
    %690 = arith.truncf %687 : vector<24x256xf32> to vector<24x256xbf16>
    %cst_399 = arith.constant dense<0.000000e+00> : vector<8x256xf32>
    %691 = tpu.matmul %689, %690, %cst_399 {dimension_numbers = #tpu.dot_dimension_numbers<[1], [0], [0], [1], [0, 0, 1, 1], [], []>} : vector<8x24xbf16>, vector<24x256xbf16>, vector<8x256xf32> -> vector<8x256xf32>
    %692 = arith.addf %684, %691 : vector<8x256xf32>
    %cst_400 = arith.constant 0.000000e+00 : f32
    %693 = vector.broadcast %cst_400 : f32 to vector<24x17xf32>
    %694 = vector.extract_strided_slice %622 {offsets = [0, 17], sizes = [24, 239], strides = [1, 1]} : vector<24x256xf32> to vector<24x239xf32>
    %695 = tpu.concatenate %694, %693 in 1 : vector<24x239xf32>, vector<24x17xf32> -> vector<24x256xf32>
    %696 = vector.broadcast %1 : vector<1x256xf32> to vector<24x256xf32>
    %697 = arith.mulf %695, %696 : vector<24x256xf32>
    %c8_401 = arith.constant 8 : index
    %c0_402 = arith.constant 0 : index
    %c0_403 = arith.constant 0 : index
    %698 = vector.load %arg22[%c8_401, %c0_402, %c0_403] : memref<9x8x24xbf16, #tpu.memory_space<vmem>>, vector<1x8x24xbf16>
    %699 = vector.shape_cast %698 : vector<1x8x24xbf16> to vector<8x24xbf16>
    %700 = arith.truncf %697 : vector<24x256xf32> to vector<24x256xbf16>
    %cst_404 = arith.constant dense<0.000000e+00> : vector<8x256xf32>
    %701 = tpu.matmul %699, %700, %cst_404 {dimension_numbers = #tpu.dot_dimension_numbers<[1], [0], [0], [1], [0, 0, 1, 1], [], []>} : vector<8x24xbf16>, vector<24x256xbf16>, vector<8x256xf32> -> vector<8x256xf32>
    %702 = arith.addf %692, %701 : vector<8x256xf32>
    %c0_405 = arith.constant 0 : index
    %c0_406 = arith.constant 0 : index
    %703 = vector.load %arg23[%c0_405, %c0_406] : memref<8x1xf32, #tpu.memory_space<vmem>>, vector<8x1xf32>
    %704 = vector.broadcast %703 : vector<8x1xf32> to vector<8x256xf32>
    %705 = arith.addf %702, %704 : vector<8x256xf32>
    %cst_407 = arith.constant 0.000000e+00 : f32
    %706 = vector.broadcast %cst_407 : f32 to vector<8x256xf32>
    %707 = arith.maximumf %705, %706 : vector<8x256xf32>
    %c24_408 = arith.constant 24 : index
    %c0_409 = arith.constant 0 : index
    %708 = vector.load %arg41[%c24_408, %c0_409] : memref<32x256xf32, #tpu.memory_space<vmem>>, vector<8x256xf32>
    tpu.vector_store %arg41[%c24_408, %c0_409], %707 {strides = array<i32>} : memref<32x256xf32, #tpu.memory_space<vmem>>, vector<8x256xf32>,
    %c0_410 = arith.constant 0 : index
    %c0_411 = arith.constant 0 : index
    %709 = vector.load %arg41[%c0_410, %c0_411] : memref<32x256xf32, #tpu.memory_space<vmem>>, vector<32x256xf32>
    %c0_412 = arith.constant 0 : index
    %c0_413 = arith.constant 0 : index
    %710 = vector.load %arg24[%c0_412, %c0_413] : memref<8x32xbf16, #tpu.memory_space<vmem>>, vector<8x32xbf16>
    %711 = arith.truncf %709 : vector<32x256xf32> to vector<32x256xbf16>
    %cst_414 = arith.constant dense<0.000000e+00> : vector<8x256xf32>
    %712 = tpu.matmul %710, %711, %cst_414 {dimension_numbers = #tpu.dot_dimension_numbers<[1], [0], [0], [1], [0, 0, 1, 1], [], []>} : vector<8x32xbf16>, vector<32x256xbf16>, vector<8x256xf32> -> vector<8x256xf32>
    %c0_415 = arith.constant 0 : index
    %c0_416 = arith.constant 0 : index
    %713 = vector.load %arg25[%c0_415, %c0_416] : memref<8x1xf32, #tpu.memory_space<vmem>>, vector<8x1xf32>
    %714 = vector.broadcast %713 : vector<8x1xf32> to vector<8x256xf32>
    %715 = arith.addf %712, %714 : vector<8x256xf32>
    %716 = arith.addf %715, %445 : vector<8x256xf32>
    %c8_417 = arith.constant 8 : index
    %c0_418 = arith.constant 0 : index
    %717 = vector.load %arg42[%c8_417, %c0_418] : memref<24x256xf32, #tpu.memory_space<vmem>>, vector<8x256xf32>
    tpu.vector_store %arg42[%c8_417, %c0_418], %716 {strides = array<i32>} : memref<24x256xf32, #tpu.memory_space<vmem>>, vector<8x256xf32>,
    %c0_419 = arith.constant 0 : index
    %c0_420 = arith.constant 0 : index
    %718 = vector.load %arg41[%c0_419, %c0_420] : memref<32x256xf32, #tpu.memory_space<vmem>>, vector<8x256xf32>
    tpu.vector_store %arg41[%c0_419, %c0_420], %716 {strides = array<i32>} : memref<32x256xf32, #tpu.memory_space<vmem>>, vector<8x256xf32>,
    %c0_421 = arith.constant 0 : index
    %c0_422 = arith.constant 0 : index
    %719 = vector.load %arg41[%c0_421, %c0_422] : memref<32x256xf32, #tpu.memory_space<vmem>>, vector<8x256xf32>
    %cst_423 = arith.constant 0.000000e+00 : f32
    %720 = vector.broadcast %cst_423 : f32 to vector<8x17xf32>
    %721 = vector.extract_strided_slice %719 {offsets = [0, 0], sizes = [8, 239], strides = [1, 1]} : vector<8x256xf32> to vector<8x239xf32>
    %722 = tpu.concatenate %720, %721 in 1 : vector<8x17xf32>, vector<8x239xf32> -> vector<8x256xf32>
    %723 = vector.broadcast %0 : vector<1x256xf32> to vector<8x256xf32>
    %724 = arith.mulf %722, %723 : vector<8x256xf32>
    %c0_424 = arith.constant 0 : index
    %c0_425 = arith.constant 0 : index
    %c0_426 = arith.constant 0 : index
    %725 = vector.load %arg26[%c0_424, %c0_425, %c0_426] : memref<9x8x8xbf16, #tpu.memory_space<vmem>>, vector<1x8x8xbf16>
    %726 = vector.shape_cast %725 : vector<1x8x8xbf16> to vector<8x8xbf16>
    %727 = arith.truncf %724 : vector<8x256xf32> to vector<8x256xbf16>
    %cst_427 = arith.constant dense<0.000000e+00> : vector<8x256xf32>
    %728 = tpu.matmul %726, %727, %cst_427 {dimension_numbers = #tpu.dot_dimension_numbers<[1], [0], [0], [1], [0, 0, 1, 1], [], []>} : vector<8x8xbf16>, vector<8x256xbf16>, vector<8x256xf32> -> vector<8x256xf32>
    %cst_428 = arith.constant 0.000000e+00 : f32
    %729 = vector.broadcast %cst_428 : f32 to vector<8x16xf32>
    %730 = vector.extract_strided_slice %719 {offsets = [0, 0], sizes = [8, 240], strides = [1, 1]} : vector<8x256xf32> to vector<8x240xf32>
    %731 = tpu.concatenate %729, %730 in 1 : vector<8x16xf32>, vector<8x240xf32> -> vector<8x256xf32>
    %c1_429 = arith.constant 1 : index
    %c0_430 = arith.constant 0 : index
    %c0_431 = arith.constant 0 : index
    %732 = vector.load %arg26[%c1_429, %c0_430, %c0_431] : memref<9x8x8xbf16, #tpu.memory_space<vmem>>, vector<1x8x8xbf16>
    %733 = vector.shape_cast %732 : vector<1x8x8xbf16> to vector<8x8xbf16>
    %734 = arith.truncf %731 : vector<8x256xf32> to vector<8x256xbf16>
    %cst_432 = arith.constant dense<0.000000e+00> : vector<8x256xf32>
    %735 = tpu.matmul %733, %734, %cst_432 {dimension_numbers = #tpu.dot_dimension_numbers<[1], [0], [0], [1], [0, 0, 1, 1], [], []>} : vector<8x8xbf16>, vector<8x256xbf16>, vector<8x256xf32> -> vector<8x256xf32>
    %736 = arith.addf %728, %735 : vector<8x256xf32>
    %cst_433 = arith.constant 0.000000e+00 : f32
    %737 = vector.broadcast %cst_433 : f32 to vector<8x15xf32>
    %738 = vector.extract_strided_slice %719 {offsets = [0, 0], sizes = [8, 241], strides = [1, 1]} : vector<8x256xf32> to vector<8x241xf32>
    %739 = tpu.concatenate %737, %738 in 1 : vector<8x15xf32>, vector<8x241xf32> -> vector<8x256xf32>
    %740 = vector.broadcast %1 : vector<1x256xf32> to vector<8x256xf32>
    %741 = arith.mulf %739, %740 : vector<8x256xf32>
    %c2_434 = arith.constant 2 : index
    %c0_435 = arith.constant 0 : index
    %c0_436 = arith.constant 0 : index
    %742 = vector.load %arg26[%c2_434, %c0_435, %c0_436] : memref<9x8x8xbf16, #tpu.memory_space<vmem>>, vector<1x8x8xbf16>
    %743 = vector.shape_cast %742 : vector<1x8x8xbf16> to vector<8x8xbf16>
    %744 = arith.truncf %741 : vector<8x256xf32> to vector<8x256xbf16>
    %cst_437 = arith.constant dense<0.000000e+00> : vector<8x256xf32>
    %745 = tpu.matmul %743, %744, %cst_437 {dimension_numbers = #tpu.dot_dimension_numbers<[1], [0], [0], [1], [0, 0, 1, 1], [], []>} : vector<8x8xbf16>, vector<8x256xbf16>, vector<8x256xf32> -> vector<8x256xf32>
    %746 = arith.addf %736, %745 : vector<8x256xf32>
    %cst_438 = arith.constant 0.000000e+00 : f32
    %747 = vector.broadcast %cst_438 : f32 to vector<8x1xf32>
    %748 = vector.extract_strided_slice %719 {offsets = [0, 0], sizes = [8, 255], strides = [1, 1]} : vector<8x256xf32> to vector<8x255xf32>
    %749 = tpu.concatenate %747, %748 in 1 : vector<8x1xf32>, vector<8x255xf32> -> vector<8x256xf32>
    %750 = vector.broadcast %0 : vector<1x256xf32> to vector<8x256xf32>
    %751 = arith.mulf %749, %750 : vector<8x256xf32>
    %c3_439 = arith.constant 3 : index
    %c0_440 = arith.constant 0 : index
    %c0_441 = arith.constant 0 : index
    %752 = vector.load %arg26[%c3_439, %c0_440, %c0_441] : memref<9x8x8xbf16, #tpu.memory_space<vmem>>, vector<1x8x8xbf16>
    %753 = vector.shape_cast %752 : vector<1x8x8xbf16> to vector<8x8xbf16>
    %754 = arith.truncf %751 : vector<8x256xf32> to vector<8x256xbf16>
    %cst_442 = arith.constant dense<0.000000e+00> : vector<8x256xf32>
    %755 = tpu.matmul %753, %754, %cst_442 {dimension_numbers = #tpu.dot_dimension_numbers<[1], [0], [0], [1], [0, 0, 1, 1], [], []>} : vector<8x8xbf16>, vector<8x256xbf16>, vector<8x256xf32> -> vector<8x256xf32>
    %756 = arith.addf %746, %755 : vector<8x256xf32>
    %c4_443 = arith.constant 4 : index
    %c0_444 = arith.constant 0 : index
    %c0_445 = arith.constant 0 : index
    %757 = vector.load %arg26[%c4_443, %c0_444, %c0_445] : memref<9x8x8xbf16, #tpu.memory_space<vmem>>, vector<1x8x8xbf16>
    %758 = vector.shape_cast %757 : vector<1x8x8xbf16> to vector<8x8xbf16>
    %759 = arith.truncf %719 : vector<8x256xf32> to vector<8x256xbf16>
    %cst_446 = arith.constant dense<0.000000e+00> : vector<8x256xf32>
    %760 = tpu.matmul %758, %759, %cst_446 {dimension_numbers = #tpu.dot_dimension_numbers<[1], [0], [0], [1], [0, 0, 1, 1], [], []>} : vector<8x8xbf16>, vector<8x256xbf16>, vector<8x256xf32> -> vector<8x256xf32>
    %761 = arith.addf %756, %760 : vector<8x256xf32>
    %cst_447 = arith.constant 0.000000e+00 : f32
    %762 = vector.broadcast %cst_447 : f32 to vector<8x1xf32>
    %763 = vector.extract_strided_slice %719 {offsets = [0, 1], sizes = [8, 255], strides = [1, 1]} : vector<8x256xf32> to vector<8x255xf32>
    %764 = tpu.concatenate %763, %762 in 1 : vector<8x255xf32>, vector<8x1xf32> -> vector<8x256xf32>
    %765 = vector.broadcast %1 : vector<1x256xf32> to vector<8x256xf32>
    %766 = arith.mulf %764, %765 : vector<8x256xf32>
    %c5_448 = arith.constant 5 : index
    %c0_449 = arith.constant 0 : index
    %c0_450 = arith.constant 0 : index
    %767 = vector.load %arg26[%c5_448, %c0_449, %c0_450] : memref<9x8x8xbf16, #tpu.memory_space<vmem>>, vector<1x8x8xbf16>
    %768 = vector.shape_cast %767 : vector<1x8x8xbf16> to vector<8x8xbf16>
    %769 = arith.truncf %766 : vector<8x256xf32> to vector<8x256xbf16>
    %cst_451 = arith.constant dense<0.000000e+00> : vector<8x256xf32>
    %770 = tpu.matmul %768, %769, %cst_451 {dimension_numbers = #tpu.dot_dimension_numbers<[1], [0], [0], [1], [0, 0, 1, 1], [], []>} : vector<8x8xbf16>, vector<8x256xbf16>, vector<8x256xf32> -> vector<8x256xf32>
    %771 = arith.addf %761, %770 : vector<8x256xf32>
    %cst_452 = arith.constant 0.000000e+00 : f32
    %772 = vector.broadcast %cst_452 : f32 to vector<8x15xf32>
    %773 = vector.extract_strided_slice %719 {offsets = [0, 15], sizes = [8, 241], strides = [1, 1]} : vector<8x256xf32> to vector<8x241xf32>
    %774 = tpu.concatenate %773, %772 in 1 : vector<8x241xf32>, vector<8x15xf32> -> vector<8x256xf32>
    %775 = vector.broadcast %0 : vector<1x256xf32> to vector<8x256xf32>
    %776 = arith.mulf %774, %775 : vector<8x256xf32>
    %c6_453 = arith.constant 6 : index
    %c0_454 = arith.constant 0 : index
    %c0_455 = arith.constant 0 : index
    %777 = vector.load %arg26[%c6_453, %c0_454, %c0_455] : memref<9x8x8xbf16, #tpu.memory_space<vmem>>, vector<1x8x8xbf16>
    %778 = vector.shape_cast %777 : vector<1x8x8xbf16> to vector<8x8xbf16>
    %779 = arith.truncf %776 : vector<8x256xf32> to vector<8x256xbf16>
    %cst_456 = arith.constant dense<0.000000e+00> : vector<8x256xf32>
    %780 = tpu.matmul %778, %779, %cst_456 {dimension_numbers = #tpu.dot_dimension_numbers<[1], [0], [0], [1], [0, 0, 1, 1], [], []>} : vector<8x8xbf16>, vector<8x256xbf16>, vector<8x256xf32> -> vector<8x256xf32>
    %781 = arith.addf %771, %780 : vector<8x256xf32>
    %cst_457 = arith.constant 0.000000e+00 : f32
    %782 = vector.broadcast %cst_457 : f32 to vector<8x16xf32>
    %783 = vector.extract_strided_slice %719 {offsets = [0, 16], sizes = [8, 240], strides = [1, 1]} : vector<8x256xf32> to vector<8x240xf32>
    %784 = tpu.concatenate %783, %782 in 1 : vector<8x240xf32>, vector<8x16xf32> -> vector<8x256xf32>
    %c7_458 = arith.constant 7 : index
    %c0_459 = arith.constant 0 : index
    %c0_460 = arith.constant 0 : index
    %785 = vector.load %arg26[%c7_458, %c0_459, %c0_460] : memref<9x8x8xbf16, #tpu.memory_space<vmem>>, vector<1x8x8xbf16>
    %786 = vector.shape_cast %785 : vector<1x8x8xbf16> to vector<8x8xbf16>
    %787 = arith.truncf %784 : vector<8x256xf32> to vector<8x256xbf16>
    %cst_461 = arith.constant dense<0.000000e+00> : vector<8x256xf32>
    %788 = tpu.matmul %786, %787, %cst_461 {dimension_numbers = #tpu.dot_dimension_numbers<[1], [0], [0], [1], [0, 0, 1, 1], [], []>} : vector<8x8xbf16>, vector<8x256xbf16>, vector<8x256xf32> -> vector<8x256xf32>
    %789 = arith.addf %781, %788 : vector<8x256xf32>
    %cst_462 = arith.constant 0.000000e+00 : f32
    %790 = vector.broadcast %cst_462 : f32 to vector<8x17xf32>
    %791 = vector.extract_strided_slice %719 {offsets = [0, 17], sizes = [8, 239], strides = [1, 1]} : vector<8x256xf32> to vector<8x239xf32>
    %792 = tpu.concatenate %791, %790 in 1 : vector<8x239xf32>, vector<8x17xf32> -> vector<8x256xf32>
    %793 = vector.broadcast %1 : vector<1x256xf32> to vector<8x256xf32>
    %794 = arith.mulf %792, %793 : vector<8x256xf32>
    %c8_463 = arith.constant 8 : index
    %c0_464 = arith.constant 0 : index
    %c0_465 = arith.constant 0 : index
    %795 = vector.load %arg26[%c8_463, %c0_464, %c0_465] : memref<9x8x8xbf16, #tpu.memory_space<vmem>>, vector<1x8x8xbf16>
    %796 = vector.shape_cast %795 : vector<1x8x8xbf16> to vector<8x8xbf16>
    %797 = arith.truncf %794 : vector<8x256xf32> to vector<8x256xbf16>
    %cst_466 = arith.constant dense<0.000000e+00> : vector<8x256xf32>
    %798 = tpu.matmul %796, %797, %cst_466 {dimension_numbers = #tpu.dot_dimension_numbers<[1], [0], [0], [1], [0, 0, 1, 1], [], []>} : vector<8x8xbf16>, vector<8x256xbf16>, vector<8x256xf32> -> vector<8x256xf32>
    %799 = arith.addf %789, %798 : vector<8x256xf32>
    %c0_467 = arith.constant 0 : index
    %c0_468 = arith.constant 0 : index
    %800 = vector.load %arg27[%c0_467, %c0_468] : memref<8x1xf32, #tpu.memory_space<vmem>>, vector<8x1xf32>
    %801 = vector.broadcast %800 : vector<8x1xf32> to vector<8x256xf32>
    %802 = arith.addf %799, %801 : vector<8x256xf32>
    %cst_469 = arith.constant 0.000000e+00 : f32
    %803 = vector.broadcast %cst_469 : f32 to vector<8x256xf32>
    %804 = arith.maximumf %802, %803 : vector<8x256xf32>
    %c8_470 = arith.constant 8 : index
    %c0_471 = arith.constant 0 : index
    %805 = vector.load %arg41[%c8_470, %c0_471] : memref<32x256xf32, #tpu.memory_space<vmem>>, vector<8x256xf32>
    tpu.vector_store %arg41[%c8_470, %c0_471], %804 {strides = array<i32>} : memref<32x256xf32, #tpu.memory_space<vmem>>, vector<8x256xf32>,
    %c0_472 = arith.constant 0 : index
    %c0_473 = arith.constant 0 : index
    %806 = vector.load %arg41[%c0_472, %c0_473] : memref<32x256xf32, #tpu.memory_space<vmem>>, vector<16x256xf32>
    %cst_474 = arith.constant 0.000000e+00 : f32
    %807 = vector.broadcast %cst_474 : f32 to vector<16x17xf32>
    %808 = vector.extract_strided_slice %806 {offsets = [0, 0], sizes = [16, 239], strides = [1, 1]} : vector<16x256xf32> to vector<16x239xf32>
    %809 = tpu.concatenate %807, %808 in 1 : vector<16x17xf32>, vector<16x239xf32> -> vector<16x256xf32>
    %810 = vector.broadcast %0 : vector<1x256xf32> to vector<16x256xf32>
    %811 = arith.mulf %809, %810 : vector<16x256xf32>
    %c0_475 = arith.constant 0 : index
    %c0_476 = arith.constant 0 : index
    %c0_477 = arith.constant 0 : index
    %812 = vector.load %arg28[%c0_475, %c0_476, %c0_477] : memref<9x8x16xbf16, #tpu.memory_space<vmem>>, vector<1x8x16xbf16>
    %813 = vector.shape_cast %812 : vector<1x8x16xbf16> to vector<8x16xbf16>
    %814 = arith.truncf %811 : vector<16x256xf32> to vector<16x256xbf16>
    %cst_478 = arith.constant dense<0.000000e+00> : vector<8x256xf32>
    %815 = tpu.matmul %813, %814, %cst_478 {dimension_numbers = #tpu.dot_dimension_numbers<[1], [0], [0], [1], [0, 0, 1, 1], [], []>} : vector<8x16xbf16>, vector<16x256xbf16>, vector<8x256xf32> -> vector<8x256xf32>
    %cst_479 = arith.constant 0.000000e+00 : f32
    %816 = vector.broadcast %cst_479 : f32 to vector<16x16xf32>
    %817 = vector.extract_strided_slice %806 {offsets = [0, 0], sizes = [16, 240], strides = [1, 1]} : vector<16x256xf32> to vector<16x240xf32>
    %818 = tpu.concatenate %816, %817 in 1 : vector<16x16xf32>, vector<16x240xf32> -> vector<16x256xf32>
    %c1_480 = arith.constant 1 : index
    %c0_481 = arith.constant 0 : index
    %c0_482 = arith.constant 0 : index
    %819 = vector.load %arg28[%c1_480, %c0_481, %c0_482] : memref<9x8x16xbf16, #tpu.memory_space<vmem>>, vector<1x8x16xbf16>
    %820 = vector.shape_cast %819 : vector<1x8x16xbf16> to vector<8x16xbf16>
    %821 = arith.truncf %818 : vector<16x256xf32> to vector<16x256xbf16>
    %cst_483 = arith.constant dense<0.000000e+00> : vector<8x256xf32>
    %822 = tpu.matmul %820, %821, %cst_483 {dimension_numbers = #tpu.dot_dimension_numbers<[1], [0], [0], [1], [0, 0, 1, 1], [], []>} : vector<8x16xbf16>, vector<16x256xbf16>, vector<8x256xf32> -> vector<8x256xf32>
    %823 = arith.addf %815, %822 : vector<8x256xf32>
    %cst_484 = arith.constant 0.000000e+00 : f32
    %824 = vector.broadcast %cst_484 : f32 to vector<16x15xf32>
    %825 = vector.extract_strided_slice %806 {offsets = [0, 0], sizes = [16, 241], strides = [1, 1]} : vector<16x256xf32> to vector<16x241xf32>
    %826 = tpu.concatenate %824, %825 in 1 : vector<16x15xf32>, vector<16x241xf32> -> vector<16x256xf32>
    %827 = vector.broadcast %1 : vector<1x256xf32> to vector<16x256xf32>
    %828 = arith.mulf %826, %827 : vector<16x256xf32>
    %c2_485 = arith.constant 2 : index
    %c0_486 = arith.constant 0 : index
    %c0_487 = arith.constant 0 : index
    %829 = vector.load %arg28[%c2_485, %c0_486, %c0_487] : memref<9x8x16xbf16, #tpu.memory_space<vmem>>, vector<1x8x16xbf16>
    %830 = vector.shape_cast %829 : vector<1x8x16xbf16> to vector<8x16xbf16>
    %831 = arith.truncf %828 : vector<16x256xf32> to vector<16x256xbf16>
    %cst_488 = arith.constant dense<0.000000e+00> : vector<8x256xf32>
    %832 = tpu.matmul %830, %831, %cst_488 {dimension_numbers = #tpu.dot_dimension_numbers<[1], [0], [0], [1], [0, 0, 1, 1], [], []>} : vector<8x16xbf16>, vector<16x256xbf16>, vector<8x256xf32> -> vector<8x256xf32>
    %833 = arith.addf %823, %832 : vector<8x256xf32>
    %cst_489 = arith.constant 0.000000e+00 : f32
    %834 = vector.broadcast %cst_489 : f32 to vector<16x1xf32>
    %835 = vector.extract_strided_slice %806 {offsets = [0, 0], sizes = [16, 255], strides = [1, 1]} : vector<16x256xf32> to vector<16x255xf32>
    %836 = tpu.concatenate %834, %835 in 1 : vector<16x1xf32>, vector<16x255xf32> -> vector<16x256xf32>
    %837 = vector.broadcast %0 : vector<1x256xf32> to vector<16x256xf32>
    %838 = arith.mulf %836, %837 : vector<16x256xf32>
    %c3_490 = arith.constant 3 : index
    %c0_491 = arith.constant 0 : index
    %c0_492 = arith.constant 0 : index
    %839 = vector.load %arg28[%c3_490, %c0_491, %c0_492] : memref<9x8x16xbf16, #tpu.memory_space<vmem>>, vector<1x8x16xbf16>
    %840 = vector.shape_cast %839 : vector<1x8x16xbf16> to vector<8x16xbf16>
    %841 = arith.truncf %838 : vector<16x256xf32> to vector<16x256xbf16>
    %cst_493 = arith.constant dense<0.000000e+00> : vector<8x256xf32>
    %842 = tpu.matmul %840, %841, %cst_493 {dimension_numbers = #tpu.dot_dimension_numbers<[1], [0], [0], [1], [0, 0, 1, 1], [], []>} : vector<8x16xbf16>, vector<16x256xbf16>, vector<8x256xf32> -> vector<8x256xf32>
    %843 = arith.addf %833, %842 : vector<8x256xf32>
    %c4_494 = arith.constant 4 : index
    %c0_495 = arith.constant 0 : index
    %c0_496 = arith.constant 0 : index
    %844 = vector.load %arg28[%c4_494, %c0_495, %c0_496] : memref<9x8x16xbf16, #tpu.memory_space<vmem>>, vector<1x8x16xbf16>
    %845 = vector.shape_cast %844 : vector<1x8x16xbf16> to vector<8x16xbf16>
    %846 = arith.truncf %806 : vector<16x256xf32> to vector<16x256xbf16>
    %cst_497 = arith.constant dense<0.000000e+00> : vector<8x256xf32>
    %847 = tpu.matmul %845, %846, %cst_497 {dimension_numbers = #tpu.dot_dimension_numbers<[1], [0], [0], [1], [0, 0, 1, 1], [], []>} : vector<8x16xbf16>, vector<16x256xbf16>, vector<8x256xf32> -> vector<8x256xf32>
    %848 = arith.addf %843, %847 : vector<8x256xf32>
    %cst_498 = arith.constant 0.000000e+00 : f32
    %849 = vector.broadcast %cst_498 : f32 to vector<16x1xf32>
    %850 = vector.extract_strided_slice %806 {offsets = [0, 1], sizes = [16, 255], strides = [1, 1]} : vector<16x256xf32> to vector<16x255xf32>
    %851 = tpu.concatenate %850, %849 in 1 : vector<16x255xf32>, vector<16x1xf32> -> vector<16x256xf32>
    %852 = vector.broadcast %1 : vector<1x256xf32> to vector<16x256xf32>
    %853 = arith.mulf %851, %852 : vector<16x256xf32>
    %c5_499 = arith.constant 5 : index
    %c0_500 = arith.constant 0 : index
    %c0_501 = arith.constant 0 : index
    %854 = vector.load %arg28[%c5_499, %c0_500, %c0_501] : memref<9x8x16xbf16, #tpu.memory_space<vmem>>, vector<1x8x16xbf16>
    %855 = vector.shape_cast %854 : vector<1x8x16xbf16> to vector<8x16xbf16>
    %856 = arith.truncf %853 : vector<16x256xf32> to vector<16x256xbf16>
    %cst_502 = arith.constant dense<0.000000e+00> : vector<8x256xf32>
    %857 = tpu.matmul %855, %856, %cst_502 {dimension_numbers = #tpu.dot_dimension_numbers<[1], [0], [0], [1], [0, 0, 1, 1], [], []>} : vector<8x16xbf16>, vector<16x256xbf16>, vector<8x256xf32> -> vector<8x256xf32>
    %858 = arith.addf %848, %857 : vector<8x256xf32>
    %cst_503 = arith.constant 0.000000e+00 : f32
    %859 = vector.broadcast %cst_503 : f32 to vector<16x15xf32>
    %860 = vector.extract_strided_slice %806 {offsets = [0, 15], sizes = [16, 241], strides = [1, 1]} : vector<16x256xf32> to vector<16x241xf32>
    %861 = tpu.concatenate %860, %859 in 1 : vector<16x241xf32>, vector<16x15xf32> -> vector<16x256xf32>
    %862 = vector.broadcast %0 : vector<1x256xf32> to vector<16x256xf32>
    %863 = arith.mulf %861, %862 : vector<16x256xf32>
    %c6_504 = arith.constant 6 : index
    %c0_505 = arith.constant 0 : index
    %c0_506 = arith.constant 0 : index
    %864 = vector.load %arg28[%c6_504, %c0_505, %c0_506] : memref<9x8x16xbf16, #tpu.memory_space<vmem>>, vector<1x8x16xbf16>
    %865 = vector.shape_cast %864 : vector<1x8x16xbf16> to vector<8x16xbf16>
    %866 = arith.truncf %863 : vector<16x256xf32> to vector<16x256xbf16>
    %cst_507 = arith.constant dense<0.000000e+00> : vector<8x256xf32>
    %867 = tpu.matmul %865, %866, %cst_507 {dimension_numbers = #tpu.dot_dimension_numbers<[1], [0], [0], [1], [0, 0, 1, 1], [], []>} : vector<8x16xbf16>, vector<16x256xbf16>, vector<8x256xf32> -> vector<8x256xf32>
    %868 = arith.addf %858, %867 : vector<8x256xf32>
    %cst_508 = arith.constant 0.000000e+00 : f32
    %869 = vector.broadcast %cst_508 : f32 to vector<16x16xf32>
    %870 = vector.extract_strided_slice %806 {offsets = [0, 16], sizes = [16, 240], strides = [1, 1]} : vector<16x256xf32> to vector<16x240xf32>
    %871 = tpu.concatenate %870, %869 in 1 : vector<16x240xf32>, vector<16x16xf32> -> vector<16x256xf32>
    %c7_509 = arith.constant 7 : index
    %c0_510 = arith.constant 0 : index
    %c0_511 = arith.constant 0 : index
    %872 = vector.load %arg28[%c7_509, %c0_510, %c0_511] : memref<9x8x16xbf16, #tpu.memory_space<vmem>>, vector<1x8x16xbf16>
    %873 = vector.shape_cast %872 : vector<1x8x16xbf16> to vector<8x16xbf16>
    %874 = arith.truncf %871 : vector<16x256xf32> to vector<16x256xbf16>
    %cst_512 = arith.constant dense<0.000000e+00> : vector<8x256xf32>
    %875 = tpu.matmul %873, %874, %cst_512 {dimension_numbers = #tpu.dot_dimension_numbers<[1], [0], [0], [1], [0, 0, 1, 1], [], []>} : vector<8x16xbf16>, vector<16x256xbf16>, vector<8x256xf32> -> vector<8x256xf32>
    %876 = arith.addf %868, %875 : vector<8x256xf32>
    %cst_513 = arith.constant 0.000000e+00 : f32
    %877 = vector.broadcast %cst_513 : f32 to vector<16x17xf32>
    %878 = vector.extract_strided_slice %806 {offsets = [0, 17], sizes = [16, 239], strides = [1, 1]} : vector<16x256xf32> to vector<16x239xf32>
    %879 = tpu.concatenate %878, %877 in 1 : vector<16x239xf32>, vector<16x17xf32> -> vector<16x256xf32>
    %880 = vector.broadcast %1 : vector<1x256xf32> to vector<16x256xf32>
    %881 = arith.mulf %879, %880 : vector<16x256xf32>
    %c8_514 = arith.constant 8 : index
    %c0_515 = arith.constant 0 : index
    %c0_516 = arith.constant 0 : index
    %882 = vector.load %arg28[%c8_514, %c0_515, %c0_516] : memref<9x8x16xbf16, #tpu.memory_space<vmem>>, vector<1x8x16xbf16>
    %883 = vector.shape_cast %882 : vector<1x8x16xbf16> to vector<8x16xbf16>
    %884 = arith.truncf %881 : vector<16x256xf32> to vector<16x256xbf16>
    %cst_517 = arith.constant dense<0.000000e+00> : vector<8x256xf32>
    %885 = tpu.matmul %883, %884, %cst_517 {dimension_numbers = #tpu.dot_dimension_numbers<[1], [0], [0], [1], [0, 0, 1, 1], [], []>} : vector<8x16xbf16>, vector<16x256xbf16>, vector<8x256xf32> -> vector<8x256xf32>
    %886 = arith.addf %876, %885 : vector<8x256xf32>
    %c0_518 = arith.constant 0 : index
    %c0_519 = arith.constant 0 : index
    %887 = vector.load %arg29[%c0_518, %c0_519] : memref<8x1xf32, #tpu.memory_space<vmem>>, vector<8x1xf32>
    %888 = vector.broadcast %887 : vector<8x1xf32> to vector<8x256xf32>
    %889 = arith.addf %886, %888 : vector<8x256xf32>
    %cst_520 = arith.constant 0.000000e+00 : f32
    %890 = vector.broadcast %cst_520 : f32 to vector<8x256xf32>
    %891 = arith.maximumf %889, %890 : vector<8x256xf32>
    %c16_521 = arith.constant 16 : index
    %c0_522 = arith.constant 0 : index
    %892 = vector.load %arg41[%c16_521, %c0_522] : memref<32x256xf32, #tpu.memory_space<vmem>>, vector<8x256xf32>
    tpu.vector_store %arg41[%c16_521, %c0_522], %891 {strides = array<i32>} : memref<32x256xf32, #tpu.memory_space<vmem>>, vector<8x256xf32>,
    %c0_523 = arith.constant 0 : index
    %c0_524 = arith.constant 0 : index
    %893 = vector.load %arg41[%c0_523, %c0_524] : memref<32x256xf32, #tpu.memory_space<vmem>>, vector<24x256xf32>
    %cst_525 = arith.constant 0.000000e+00 : f32
    %894 = vector.broadcast %cst_525 : f32 to vector<24x17xf32>
    %895 = vector.extract_strided_slice %893 {offsets = [0, 0], sizes = [24, 239], strides = [1, 1]} : vector<24x256xf32> to vector<24x239xf32>
    %896 = tpu.concatenate %894, %895 in 1 : vector<24x17xf32>, vector<24x239xf32> -> vector<24x256xf32>
    %897 = vector.broadcast %0 : vector<1x256xf32> to vector<24x256xf32>
    %898 = arith.mulf %896, %897 : vector<24x256xf32>
    %c0_526 = arith.constant 0 : index
    %c0_527 = arith.constant 0 : index
    %c0_528 = arith.constant 0 : index
    %899 = vector.load %arg30[%c0_526, %c0_527, %c0_528] : memref<9x8x24xbf16, #tpu.memory_space<vmem>>, vector<1x8x24xbf16>
    %900 = vector.shape_cast %899 : vector<1x8x24xbf16> to vector<8x24xbf16>
    %901 = arith.truncf %898 : vector<24x256xf32> to vector<24x256xbf16>
    %cst_529 = arith.constant dense<0.000000e+00> : vector<8x256xf32>
    %902 = tpu.matmul %900, %901, %cst_529 {dimension_numbers = #tpu.dot_dimension_numbers<[1], [0], [0], [1], [0, 0, 1, 1], [], []>} : vector<8x24xbf16>, vector<24x256xbf16>, vector<8x256xf32> -> vector<8x256xf32>
    %cst_530 = arith.constant 0.000000e+00 : f32
    %903 = vector.broadcast %cst_530 : f32 to vector<24x16xf32>
    %904 = vector.extract_strided_slice %893 {offsets = [0, 0], sizes = [24, 240], strides = [1, 1]} : vector<24x256xf32> to vector<24x240xf32>
    %905 = tpu.concatenate %903, %904 in 1 : vector<24x16xf32>, vector<24x240xf32> -> vector<24x256xf32>
    %c1_531 = arith.constant 1 : index
    %c0_532 = arith.constant 0 : index
    %c0_533 = arith.constant 0 : index
    %906 = vector.load %arg30[%c1_531, %c0_532, %c0_533] : memref<9x8x24xbf16, #tpu.memory_space<vmem>>, vector<1x8x24xbf16>
    %907 = vector.shape_cast %906 : vector<1x8x24xbf16> to vector<8x24xbf16>
    %908 = arith.truncf %905 : vector<24x256xf32> to vector<24x256xbf16>
    %cst_534 = arith.constant dense<0.000000e+00> : vector<8x256xf32>
    %909 = tpu.matmul %907, %908, %cst_534 {dimension_numbers = #tpu.dot_dimension_numbers<[1], [0], [0], [1], [0, 0, 1, 1], [], []>} : vector<8x24xbf16>, vector<24x256xbf16>, vector<8x256xf32> -> vector<8x256xf32>
    %910 = arith.addf %902, %909 : vector<8x256xf32>
    %cst_535 = arith.constant 0.000000e+00 : f32
    %911 = vector.broadcast %cst_535 : f32 to vector<24x15xf32>
    %912 = vector.extract_strided_slice %893 {offsets = [0, 0], sizes = [24, 241], strides = [1, 1]} : vector<24x256xf32> to vector<24x241xf32>
    %913 = tpu.concatenate %911, %912 in 1 : vector<24x15xf32>, vector<24x241xf32> -> vector<24x256xf32>
    %914 = vector.broadcast %1 : vector<1x256xf32> to vector<24x256xf32>
    %915 = arith.mulf %913, %914 : vector<24x256xf32>
    %c2_536 = arith.constant 2 : index
    %c0_537 = arith.constant 0 : index
    %c0_538 = arith.constant 0 : index
    %916 = vector.load %arg30[%c2_536, %c0_537, %c0_538] : memref<9x8x24xbf16, #tpu.memory_space<vmem>>, vector<1x8x24xbf16>
    %917 = vector.shape_cast %916 : vector<1x8x24xbf16> to vector<8x24xbf16>
    %918 = arith.truncf %915 : vector<24x256xf32> to vector<24x256xbf16>
    %cst_539 = arith.constant dense<0.000000e+00> : vector<8x256xf32>
    %919 = tpu.matmul %917, %918, %cst_539 {dimension_numbers = #tpu.dot_dimension_numbers<[1], [0], [0], [1], [0, 0, 1, 1], [], []>} : vector<8x24xbf16>, vector<24x256xbf16>, vector<8x256xf32> -> vector<8x256xf32>
    %920 = arith.addf %910, %919 : vector<8x256xf32>
    %cst_540 = arith.constant 0.000000e+00 : f32
    %921 = vector.broadcast %cst_540 : f32 to vector<24x1xf32>
    %922 = vector.extract_strided_slice %893 {offsets = [0, 0], sizes = [24, 255], strides = [1, 1]} : vector<24x256xf32> to vector<24x255xf32>
    %923 = tpu.concatenate %921, %922 in 1 : vector<24x1xf32>, vector<24x255xf32> -> vector<24x256xf32>
    %924 = vector.broadcast %0 : vector<1x256xf32> to vector<24x256xf32>
    %925 = arith.mulf %923, %924 : vector<24x256xf32>
    %c3_541 = arith.constant 3 : index
    %c0_542 = arith.constant 0 : index
    %c0_543 = arith.constant 0 : index
    %926 = vector.load %arg30[%c3_541, %c0_542, %c0_543] : memref<9x8x24xbf16, #tpu.memory_space<vmem>>, vector<1x8x24xbf16>
    %927 = vector.shape_cast %926 : vector<1x8x24xbf16> to vector<8x24xbf16>
    %928 = arith.truncf %925 : vector<24x256xf32> to vector<24x256xbf16>
    %cst_544 = arith.constant dense<0.000000e+00> : vector<8x256xf32>
    %929 = tpu.matmul %927, %928, %cst_544 {dimension_numbers = #tpu.dot_dimension_numbers<[1], [0], [0], [1], [0, 0, 1, 1], [], []>} : vector<8x24xbf16>, vector<24x256xbf16>, vector<8x256xf32> -> vector<8x256xf32>
    %930 = arith.addf %920, %929 : vector<8x256xf32>
    %c4_545 = arith.constant 4 : index
    %c0_546 = arith.constant 0 : index
    %c0_547 = arith.constant 0 : index
    %931 = vector.load %arg30[%c4_545, %c0_546, %c0_547] : memref<9x8x24xbf16, #tpu.memory_space<vmem>>, vector<1x8x24xbf16>
    %932 = vector.shape_cast %931 : vector<1x8x24xbf16> to vector<8x24xbf16>
    %933 = arith.truncf %893 : vector<24x256xf32> to vector<24x256xbf16>
    %cst_548 = arith.constant dense<0.000000e+00> : vector<8x256xf32>
    %934 = tpu.matmul %932, %933, %cst_548 {dimension_numbers = #tpu.dot_dimension_numbers<[1], [0], [0], [1], [0, 0, 1, 1], [], []>} : vector<8x24xbf16>, vector<24x256xbf16>, vector<8x256xf32> -> vector<8x256xf32>
    %935 = arith.addf %930, %934 : vector<8x256xf32>
    %cst_549 = arith.constant 0.000000e+00 : f32
    %936 = vector.broadcast %cst_549 : f32 to vector<24x1xf32>
    %937 = vector.extract_strided_slice %893 {offsets = [0, 1], sizes = [24, 255], strides = [1, 1]} : vector<24x256xf32> to vector<24x255xf32>
    %938 = tpu.concatenate %937, %936 in 1 : vector<24x255xf32>, vector<24x1xf32> -> vector<24x256xf32>
    %939 = vector.broadcast %1 : vector<1x256xf32> to vector<24x256xf32>
    %940 = arith.mulf %938, %939 : vector<24x256xf32>
    %c5_550 = arith.constant 5 : index
    %c0_551 = arith.constant 0 : index
    %c0_552 = arith.constant 0 : index
    %941 = vector.load %arg30[%c5_550, %c0_551, %c0_552] : memref<9x8x24xbf16, #tpu.memory_space<vmem>>, vector<1x8x24xbf16>
    %942 = vector.shape_cast %941 : vector<1x8x24xbf16> to vector<8x24xbf16>
    %943 = arith.truncf %940 : vector<24x256xf32> to vector<24x256xbf16>
    %cst_553 = arith.constant dense<0.000000e+00> : vector<8x256xf32>
    %944 = tpu.matmul %942, %943, %cst_553 {dimension_numbers = #tpu.dot_dimension_numbers<[1], [0], [0], [1], [0, 0, 1, 1], [], []>} : vector<8x24xbf16>, vector<24x256xbf16>, vector<8x256xf32> -> vector<8x256xf32>
    %945 = arith.addf %935, %944 : vector<8x256xf32>
    %cst_554 = arith.constant 0.000000e+00 : f32
    %946 = vector.broadcast %cst_554 : f32 to vector<24x15xf32>
    %947 = vector.extract_strided_slice %893 {offsets = [0, 15], sizes = [24, 241], strides = [1, 1]} : vector<24x256xf32> to vector<24x241xf32>
    %948 = tpu.concatenate %947, %946 in 1 : vector<24x241xf32>, vector<24x15xf32> -> vector<24x256xf32>
    %949 = vector.broadcast %0 : vector<1x256xf32> to vector<24x256xf32>
    %950 = arith.mulf %948, %949 : vector<24x256xf32>
    %c6_555 = arith.constant 6 : index
    %c0_556 = arith.constant 0 : index
    %c0_557 = arith.constant 0 : index
    %951 = vector.load %arg30[%c6_555, %c0_556, %c0_557] : memref<9x8x24xbf16, #tpu.memory_space<vmem>>, vector<1x8x24xbf16>
    %952 = vector.shape_cast %951 : vector<1x8x24xbf16> to vector<8x24xbf16>
    %953 = arith.truncf %950 : vector<24x256xf32> to vector<24x256xbf16>
    %cst_558 = arith.constant dense<0.000000e+00> : vector<8x256xf32>
    %954 = tpu.matmul %952, %953, %cst_558 {dimension_numbers = #tpu.dot_dimension_numbers<[1], [0], [0], [1], [0, 0, 1, 1], [], []>} : vector<8x24xbf16>, vector<24x256xbf16>, vector<8x256xf32> -> vector<8x256xf32>
    %955 = arith.addf %945, %954 : vector<8x256xf32>
    %cst_559 = arith.constant 0.000000e+00 : f32
    %956 = vector.broadcast %cst_559 : f32 to vector<24x16xf32>
    %957 = vector.extract_strided_slice %893 {offsets = [0, 16], sizes = [24, 240], strides = [1, 1]} : vector<24x256xf32> to vector<24x240xf32>
    %958 = tpu.concatenate %957, %956 in 1 : vector<24x240xf32>, vector<24x16xf32> -> vector<24x256xf32>
    %c7_560 = arith.constant 7 : index
    %c0_561 = arith.constant 0 : index
    %c0_562 = arith.constant 0 : index
    %959 = vector.load %arg30[%c7_560, %c0_561, %c0_562] : memref<9x8x24xbf16, #tpu.memory_space<vmem>>, vector<1x8x24xbf16>
    %960 = vector.shape_cast %959 : vector<1x8x24xbf16> to vector<8x24xbf16>
    %961 = arith.truncf %958 : vector<24x256xf32> to vector<24x256xbf16>
    %cst_563 = arith.constant dense<0.000000e+00> : vector<8x256xf32>
    %962 = tpu.matmul %960, %961, %cst_563 {dimension_numbers = #tpu.dot_dimension_numbers<[1], [0], [0], [1], [0, 0, 1, 1], [], []>} : vector<8x24xbf16>, vector<24x256xbf16>, vector<8x256xf32> -> vector<8x256xf32>
    %963 = arith.addf %955, %962 : vector<8x256xf32>
    %cst_564 = arith.constant 0.000000e+00 : f32
    %964 = vector.broadcast %cst_564 : f32 to vector<24x17xf32>
    %965 = vector.extract_strided_slice %893 {offsets = [0, 17], sizes = [24, 239], strides = [1, 1]} : vector<24x256xf32> to vector<24x239xf32>
    %966 = tpu.concatenate %965, %964 in 1 : vector<24x239xf32>, vector<24x17xf32> -> vector<24x256xf32>
    %967 = vector.broadcast %1 : vector<1x256xf32> to vector<24x256xf32>
    %968 = arith.mulf %966, %967 : vector<24x256xf32>
    %c8_565 = arith.constant 8 : index
    %c0_566 = arith.constant 0 : index
    %c0_567 = arith.constant 0 : index
    %969 = vector.load %arg30[%c8_565, %c0_566, %c0_567] : memref<9x8x24xbf16, #tpu.memory_space<vmem>>, vector<1x8x24xbf16>
    %970 = vector.shape_cast %969 : vector<1x8x24xbf16> to vector<8x24xbf16>
    %971 = arith.truncf %968 : vector<24x256xf32> to vector<24x256xbf16>
    %cst_568 = arith.constant dense<0.000000e+00> : vector<8x256xf32>
    %972 = tpu.matmul %970, %971, %cst_568 {dimension_numbers = #tpu.dot_dimension_numbers<[1], [0], [0], [1], [0, 0, 1, 1], [], []>} : vector<8x24xbf16>, vector<24x256xbf16>, vector<8x256xf32> -> vector<8x256xf32>
    %973 = arith.addf %963, %972 : vector<8x256xf32>
    %c0_569 = arith.constant 0 : index
    %c0_570 = arith.constant 0 : index
    %974 = vector.load %arg31[%c0_569, %c0_570] : memref<8x1xf32, #tpu.memory_space<vmem>>, vector<8x1xf32>
    %975 = vector.broadcast %974 : vector<8x1xf32> to vector<8x256xf32>
    %976 = arith.addf %973, %975 : vector<8x256xf32>
    %cst_571 = arith.constant 0.000000e+00 : f32
    %977 = vector.broadcast %cst_571 : f32 to vector<8x256xf32>
    %978 = arith.maximumf %976, %977 : vector<8x256xf32>
    %c24_572 = arith.constant 24 : index
    %c0_573 = arith.constant 0 : index
    %979 = vector.load %arg41[%c24_572, %c0_573] : memref<32x256xf32, #tpu.memory_space<vmem>>, vector<8x256xf32>
    tpu.vector_store %arg41[%c24_572, %c0_573], %978 {strides = array<i32>} : memref<32x256xf32, #tpu.memory_space<vmem>>, vector<8x256xf32>,
    %c0_574 = arith.constant 0 : index
    %c0_575 = arith.constant 0 : index
    %980 = vector.load %arg41[%c0_574, %c0_575] : memref<32x256xf32, #tpu.memory_space<vmem>>, vector<32x256xf32>
    %c0_576 = arith.constant 0 : index
    %c0_577 = arith.constant 0 : index
    %981 = vector.load %arg32[%c0_576, %c0_577] : memref<8x32xbf16, #tpu.memory_space<vmem>>, vector<8x32xbf16>
    %982 = arith.truncf %980 : vector<32x256xf32> to vector<32x256xbf16>
    %cst_578 = arith.constant dense<0.000000e+00> : vector<8x256xf32>
    %983 = tpu.matmul %981, %982, %cst_578 {dimension_numbers = #tpu.dot_dimension_numbers<[1], [0], [0], [1], [0, 0, 1, 1], [], []>} : vector<8x32xbf16>, vector<32x256xbf16>, vector<8x256xf32> -> vector<8x256xf32>
    %c0_579 = arith.constant 0 : index
    %c0_580 = arith.constant 0 : index
    %984 = vector.load %arg33[%c0_579, %c0_580] : memref<8x1xf32, #tpu.memory_space<vmem>>, vector<8x1xf32>
    %985 = vector.broadcast %984 : vector<8x1xf32> to vector<8x256xf32>
    %986 = arith.addf %983, %985 : vector<8x256xf32>
    %987 = arith.addf %986, %716 : vector<8x256xf32>
    %c16_581 = arith.constant 16 : index
    %c0_582 = arith.constant 0 : index
    %988 = vector.load %arg42[%c16_581, %c0_582] : memref<24x256xf32, #tpu.memory_space<vmem>>, vector<8x256xf32>
    tpu.vector_store %arg42[%c16_581, %c0_582], %987 {strides = array<i32>} : memref<24x256xf32, #tpu.memory_space<vmem>>, vector<8x256xf32>,
    %c0_583 = arith.constant 0 : index
    %c0_584 = arith.constant 0 : index
    %989 = vector.load %arg42[%c0_583, %c0_584] : memref<24x256xf32, #tpu.memory_space<vmem>>, vector<24x256xf32>
    %c0_585 = arith.constant 0 : index
    %c0_586 = arith.constant 0 : index
    %990 = vector.load %arg34[%c0_585, %c0_586] : memref<8x24xbf16, #tpu.memory_space<vmem>>, vector<8x24xbf16>
    %991 = arith.truncf %989 : vector<24x256xf32> to vector<24x256xbf16>
    %cst_587 = arith.constant dense<0.000000e+00> : vector<8x256xf32>
    %992 = tpu.matmul %990, %991, %cst_587 {dimension_numbers = #tpu.dot_dimension_numbers<[1], [0], [0], [1], [0, 0, 1, 1], [], []>} : vector<8x24xbf16>, vector<24x256xbf16>, vector<8x256xf32> -> vector<8x256xf32>
    %c0_588 = arith.constant 0 : index
    %c0_589 = arith.constant 0 : index
    %993 = vector.load %arg35[%c0_588, %c0_589] : memref<8x1xf32, #tpu.memory_space<vmem>>, vector<8x1xf32>
    %994 = vector.broadcast %993 : vector<8x1xf32> to vector<8x256xf32>
    %995 = arith.addf %992, %994 : vector<8x256xf32>
    %cst_590 = arith.constant 0.000000e+00 : f32
    %996 = vector.broadcast %cst_590 : f32 to vector<8x17xf32>
    %997 = vector.extract_strided_slice %995 {offsets = [0, 0], sizes = [8, 239], strides = [1, 1]} : vector<8x256xf32> to vector<8x239xf32>
    %998 = tpu.concatenate %996, %997 in 1 : vector<8x17xf32>, vector<8x239xf32> -> vector<8x256xf32>
    %999 = vector.broadcast %0 : vector<1x256xf32> to vector<8x256xf32>
    %1000 = arith.mulf %998, %999 : vector<8x256xf32>
    %c0_591 = arith.constant 0 : index
    %c0_592 = arith.constant 0 : index
    %c0_593 = arith.constant 0 : index
    %1001 = vector.load %arg36[%c0_591, %c0_592, %c0_593] : memref<9x8x8xbf16, #tpu.memory_space<vmem>>, vector<1x8x8xbf16>
    %1002 = vector.shape_cast %1001 : vector<1x8x8xbf16> to vector<8x8xbf16>
    %1003 = arith.truncf %1000 : vector<8x256xf32> to vector<8x256xbf16>
    %cst_594 = arith.constant dense<0.000000e+00> : vector<8x256xf32>
    %1004 = tpu.matmul %1002, %1003, %cst_594 {dimension_numbers = #tpu.dot_dimension_numbers<[1], [0], [0], [1], [0, 0, 1, 1], [], []>} : vector<8x8xbf16>, vector<8x256xbf16>, vector<8x256xf32> -> vector<8x256xf32>
    %cst_595 = arith.constant 0.000000e+00 : f32
    %1005 = vector.broadcast %cst_595 : f32 to vector<8x16xf32>
    %1006 = vector.extract_strided_slice %995 {offsets = [0, 0], sizes = [8, 240], strides = [1, 1]} : vector<8x256xf32> to vector<8x240xf32>
    %1007 = tpu.concatenate %1005, %1006 in 1 : vector<8x16xf32>, vector<8x240xf32> -> vector<8x256xf32>
    %c1_596 = arith.constant 1 : index
    %c0_597 = arith.constant 0 : index
    %c0_598 = arith.constant 0 : index
    %1008 = vector.load %arg36[%c1_596, %c0_597, %c0_598] : memref<9x8x8xbf16, #tpu.memory_space<vmem>>, vector<1x8x8xbf16>
    %1009 = vector.shape_cast %1008 : vector<1x8x8xbf16> to vector<8x8xbf16>
    %1010 = arith.truncf %1007 : vector<8x256xf32> to vector<8x256xbf16>
    %cst_599 = arith.constant dense<0.000000e+00> : vector<8x256xf32>
    %1011 = tpu.matmul %1009, %1010, %cst_599 {dimension_numbers = #tpu.dot_dimension_numbers<[1], [0], [0], [1], [0, 0, 1, 1], [], []>} : vector<8x8xbf16>, vector<8x256xbf16>, vector<8x256xf32> -> vector<8x256xf32>
    %1012 = arith.addf %1004, %1011 : vector<8x256xf32>
    %cst_600 = arith.constant 0.000000e+00 : f32
    %1013 = vector.broadcast %cst_600 : f32 to vector<8x15xf32>
    %1014 = vector.extract_strided_slice %995 {offsets = [0, 0], sizes = [8, 241], strides = [1, 1]} : vector<8x256xf32> to vector<8x241xf32>
    %1015 = tpu.concatenate %1013, %1014 in 1 : vector<8x15xf32>, vector<8x241xf32> -> vector<8x256xf32>
    %1016 = vector.broadcast %1 : vector<1x256xf32> to vector<8x256xf32>
    %1017 = arith.mulf %1015, %1016 : vector<8x256xf32>
    %c2_601 = arith.constant 2 : index
    %c0_602 = arith.constant 0 : index
    %c0_603 = arith.constant 0 : index
    %1018 = vector.load %arg36[%c2_601, %c0_602, %c0_603] : memref<9x8x8xbf16, #tpu.memory_space<vmem>>, vector<1x8x8xbf16>
    %1019 = vector.shape_cast %1018 : vector<1x8x8xbf16> to vector<8x8xbf16>
    %1020 = arith.truncf %1017 : vector<8x256xf32> to vector<8x256xbf16>
    %cst_604 = arith.constant dense<0.000000e+00> : vector<8x256xf32>
    %1021 = tpu.matmul %1019, %1020, %cst_604 {dimension_numbers = #tpu.dot_dimension_numbers<[1], [0], [0], [1], [0, 0, 1, 1], [], []>} : vector<8x8xbf16>, vector<8x256xbf16>, vector<8x256xf32> -> vector<8x256xf32>
    %1022 = arith.addf %1012, %1021 : vector<8x256xf32>
    %cst_605 = arith.constant 0.000000e+00 : f32
    %1023 = vector.broadcast %cst_605 : f32 to vector<8x1xf32>
    %1024 = vector.extract_strided_slice %995 {offsets = [0, 0], sizes = [8, 255], strides = [1, 1]} : vector<8x256xf32> to vector<8x255xf32>
    %1025 = tpu.concatenate %1023, %1024 in 1 : vector<8x1xf32>, vector<8x255xf32> -> vector<8x256xf32>
    %1026 = vector.broadcast %0 : vector<1x256xf32> to vector<8x256xf32>
    %1027 = arith.mulf %1025, %1026 : vector<8x256xf32>
    %c3_606 = arith.constant 3 : index
    %c0_607 = arith.constant 0 : index
    %c0_608 = arith.constant 0 : index
    %1028 = vector.load %arg36[%c3_606, %c0_607, %c0_608] : memref<9x8x8xbf16, #tpu.memory_space<vmem>>, vector<1x8x8xbf16>
    %1029 = vector.shape_cast %1028 : vector<1x8x8xbf16> to vector<8x8xbf16>
    %1030 = arith.truncf %1027 : vector<8x256xf32> to vector<8x256xbf16>
    %cst_609 = arith.constant dense<0.000000e+00> : vector<8x256xf32>
    %1031 = tpu.matmul %1029, %1030, %cst_609 {dimension_numbers = #tpu.dot_dimension_numbers<[1], [0], [0], [1], [0, 0, 1, 1], [], []>} : vector<8x8xbf16>, vector<8x256xbf16>, vector<8x256xf32> -> vector<8x256xf32>
    %1032 = arith.addf %1022, %1031 : vector<8x256xf32>
    %c4_610 = arith.constant 4 : index
    %c0_611 = arith.constant 0 : index
    %c0_612 = arith.constant 0 : index
    %1033 = vector.load %arg36[%c4_610, %c0_611, %c0_612] : memref<9x8x8xbf16, #tpu.memory_space<vmem>>, vector<1x8x8xbf16>
    %1034 = vector.shape_cast %1033 : vector<1x8x8xbf16> to vector<8x8xbf16>
    %1035 = arith.truncf %995 : vector<8x256xf32> to vector<8x256xbf16>
    %cst_613 = arith.constant dense<0.000000e+00> : vector<8x256xf32>
    %1036 = tpu.matmul %1034, %1035, %cst_613 {dimension_numbers = #tpu.dot_dimension_numbers<[1], [0], [0], [1], [0, 0, 1, 1], [], []>} : vector<8x8xbf16>, vector<8x256xbf16>, vector<8x256xf32> -> vector<8x256xf32>
    %1037 = arith.addf %1032, %1036 : vector<8x256xf32>
    %cst_614 = arith.constant 0.000000e+00 : f32
    %1038 = vector.broadcast %cst_614 : f32 to vector<8x1xf32>
    %1039 = vector.extract_strided_slice %995 {offsets = [0, 1], sizes = [8, 255], strides = [1, 1]} : vector<8x256xf32> to vector<8x255xf32>
    %1040 = tpu.concatenate %1039, %1038 in 1 : vector<8x255xf32>, vector<8x1xf32> -> vector<8x256xf32>
    %1041 = vector.broadcast %1 : vector<1x256xf32> to vector<8x256xf32>
    %1042 = arith.mulf %1040, %1041 : vector<8x256xf32>
    %c5_615 = arith.constant 5 : index
    %c0_616 = arith.constant 0 : index
    %c0_617 = arith.constant 0 : index
    %1043 = vector.load %arg36[%c5_615, %c0_616, %c0_617] : memref<9x8x8xbf16, #tpu.memory_space<vmem>>, vector<1x8x8xbf16>
    %1044 = vector.shape_cast %1043 : vector<1x8x8xbf16> to vector<8x8xbf16>
    %1045 = arith.truncf %1042 : vector<8x256xf32> to vector<8x256xbf16>
    %cst_618 = arith.constant dense<0.000000e+00> : vector<8x256xf32>
    %1046 = tpu.matmul %1044, %1045, %cst_618 {dimension_numbers = #tpu.dot_dimension_numbers<[1], [0], [0], [1], [0, 0, 1, 1], [], []>} : vector<8x8xbf16>, vector<8x256xbf16>, vector<8x256xf32> -> vector<8x256xf32>
    %1047 = arith.addf %1037, %1046 : vector<8x256xf32>
    %cst_619 = arith.constant 0.000000e+00 : f32
    %1048 = vector.broadcast %cst_619 : f32 to vector<8x15xf32>
    %1049 = vector.extract_strided_slice %995 {offsets = [0, 15], sizes = [8, 241], strides = [1, 1]} : vector<8x256xf32> to vector<8x241xf32>
    %1050 = tpu.concatenate %1049, %1048 in 1 : vector<8x241xf32>, vector<8x15xf32> -> vector<8x256xf32>
    %1051 = vector.broadcast %0 : vector<1x256xf32> to vector<8x256xf32>
    %1052 = arith.mulf %1050, %1051 : vector<8x256xf32>
    %c6_620 = arith.constant 6 : index
    %c0_621 = arith.constant 0 : index
    %c0_622 = arith.constant 0 : index
    %1053 = vector.load %arg36[%c6_620, %c0_621, %c0_622] : memref<9x8x8xbf16, #tpu.memory_space<vmem>>, vector<1x8x8xbf16>
    %1054 = vector.shape_cast %1053 : vector<1x8x8xbf16> to vector<8x8xbf16>
    %1055 = arith.truncf %1052 : vector<8x256xf32> to vector<8x256xbf16>
    %cst_623 = arith.constant dense<0.000000e+00> : vector<8x256xf32>
    %1056 = tpu.matmul %1054, %1055, %cst_623 {dimension_numbers = #tpu.dot_dimension_numbers<[1], [0], [0], [1], [0, 0, 1, 1], [], []>} : vector<8x8xbf16>, vector<8x256xbf16>, vector<8x256xf32> -> vector<8x256xf32>
    %1057 = arith.addf %1047, %1056 : vector<8x256xf32>
    %cst_624 = arith.constant 0.000000e+00 : f32
    %1058 = vector.broadcast %cst_624 : f32 to vector<8x16xf32>
    %1059 = vector.extract_strided_slice %995 {offsets = [0, 16], sizes = [8, 240], strides = [1, 1]} : vector<8x256xf32> to vector<8x240xf32>
    %1060 = tpu.concatenate %1059, %1058 in 1 : vector<8x240xf32>, vector<8x16xf32> -> vector<8x256xf32>
    %c7_625 = arith.constant 7 : index
    %c0_626 = arith.constant 0 : index
    %c0_627 = arith.constant 0 : index
    %1061 = vector.load %arg36[%c7_625, %c0_626, %c0_627] : memref<9x8x8xbf16, #tpu.memory_space<vmem>>, vector<1x8x8xbf16>
    %1062 = vector.shape_cast %1061 : vector<1x8x8xbf16> to vector<8x8xbf16>
    %1063 = arith.truncf %1060 : vector<8x256xf32> to vector<8x256xbf16>
    %cst_628 = arith.constant dense<0.000000e+00> : vector<8x256xf32>
    %1064 = tpu.matmul %1062, %1063, %cst_628 {dimension_numbers = #tpu.dot_dimension_numbers<[1], [0], [0], [1], [0, 0, 1, 1], [], []>} : vector<8x8xbf16>, vector<8x256xbf16>, vector<8x256xf32> -> vector<8x256xf32>
    %1065 = arith.addf %1057, %1064 : vector<8x256xf32>
    %cst_629 = arith.constant 0.000000e+00 : f32
    %1066 = vector.broadcast %cst_629 : f32 to vector<8x17xf32>
    %1067 = vector.extract_strided_slice %995 {offsets = [0, 17], sizes = [8, 239], strides = [1, 1]} : vector<8x256xf32> to vector<8x239xf32>
    %1068 = tpu.concatenate %1067, %1066 in 1 : vector<8x239xf32>, vector<8x17xf32> -> vector<8x256xf32>
    %1069 = vector.broadcast %1 : vector<1x256xf32> to vector<8x256xf32>
    %1070 = arith.mulf %1068, %1069 : vector<8x256xf32>
    %c8_630 = arith.constant 8 : index
    %c0_631 = arith.constant 0 : index
    %c0_632 = arith.constant 0 : index
    %1071 = vector.load %arg36[%c8_630, %c0_631, %c0_632] : memref<9x8x8xbf16, #tpu.memory_space<vmem>>, vector<1x8x8xbf16>
    %1072 = vector.shape_cast %1071 : vector<1x8x8xbf16> to vector<8x8xbf16>
    %1073 = arith.truncf %1070 : vector<8x256xf32> to vector<8x256xbf16>
    %cst_633 = arith.constant dense<0.000000e+00> : vector<8x256xf32>
    %1074 = tpu.matmul %1072, %1073, %cst_633 {dimension_numbers = #tpu.dot_dimension_numbers<[1], [0], [0], [1], [0, 0, 1, 1], [], []>} : vector<8x8xbf16>, vector<8x256xbf16>, vector<8x256xf32> -> vector<8x256xf32>
    %1075 = arith.addf %1065, %1074 : vector<8x256xf32>
    %c0_634 = arith.constant 0 : index
    %c0_635 = arith.constant 0 : index
    %1076 = vector.load %arg37[%c0_634, %c0_635] : memref<8x1xf32, #tpu.memory_space<vmem>>, vector<8x1xf32>
    %1077 = vector.broadcast %1076 : vector<8x1xf32> to vector<8x256xf32>
    %1078 = arith.addf %1075, %1077 : vector<8x256xf32>
    %1079 = arith.addf %1078, %92 : vector<8x256xf32>
    %cst_636 = arith.constant 0.000000e+00 : f32
    %1080 = vector.broadcast %cst_636 : f32 to vector<8x17xf32>
    %1081 = vector.extract_strided_slice %1079 {offsets = [0, 0], sizes = [8, 239], strides = [1, 1]} : vector<8x256xf32> to vector<8x239xf32>
    %1082 = tpu.concatenate %1080, %1081 in 1 : vector<8x17xf32>, vector<8x239xf32> -> vector<8x256xf32>
    %1083 = vector.broadcast %0 : vector<1x256xf32> to vector<8x256xf32>
    %1084 = arith.mulf %1082, %1083 : vector<8x256xf32>
    %c0_637 = arith.constant 0 : index
    %c0_638 = arith.constant 0 : index
    %c0_639 = arith.constant 0 : index
    %1085 = vector.load %arg38[%c0_637, %c0_638, %c0_639] : memref<9x32x8xbf16, #tpu.memory_space<vmem>>, vector<1x32x8xbf16>
    %1086 = vector.shape_cast %1085 : vector<1x32x8xbf16> to vector<32x8xbf16>
    %1087 = arith.truncf %1084 : vector<8x256xf32> to vector<8x256xbf16>
    %cst_640 = arith.constant dense<0.000000e+00> : vector<32x256xf32>
    %1088 = tpu.matmul %1086, %1087, %cst_640 {dimension_numbers = #tpu.dot_dimension_numbers<[1], [0], [0], [1], [0, 0, 1, 1], [], []>} : vector<32x8xbf16>, vector<8x256xbf16>, vector<32x256xf32> -> vector<32x256xf32>
    %cst_641 = arith.constant 0.000000e+00 : f32
    %1089 = vector.broadcast %cst_641 : f32 to vector<8x16xf32>
    %1090 = vector.extract_strided_slice %1079 {offsets = [0, 0], sizes = [8, 240], strides = [1, 1]} : vector<8x256xf32> to vector<8x240xf32>
    %1091 = tpu.concatenate %1089, %1090 in 1 : vector<8x16xf32>, vector<8x240xf32> -> vector<8x256xf32>
    %c1_642 = arith.constant 1 : index
    %c0_643 = arith.constant 0 : index
    %c0_644 = arith.constant 0 : index
    %1092 = vector.load %arg38[%c1_642, %c0_643, %c0_644] : memref<9x32x8xbf16, #tpu.memory_space<vmem>>, vector<1x32x8xbf16>
    %1093 = vector.shape_cast %1092 : vector<1x32x8xbf16> to vector<32x8xbf16>
    %1094 = arith.truncf %1091 : vector<8x256xf32> to vector<8x256xbf16>
    %cst_645 = arith.constant dense<0.000000e+00> : vector<32x256xf32>
    %1095 = tpu.matmul %1093, %1094, %cst_645 {dimension_numbers = #tpu.dot_dimension_numbers<[1], [0], [0], [1], [0, 0, 1, 1], [], []>} : vector<32x8xbf16>, vector<8x256xbf16>, vector<32x256xf32> -> vector<32x256xf32>
    %1096 = arith.addf %1088, %1095 : vector<32x256xf32>
    %cst_646 = arith.constant 0.000000e+00 : f32
    %1097 = vector.broadcast %cst_646 : f32 to vector<8x15xf32>
    %1098 = vector.extract_strided_slice %1079 {offsets = [0, 0], sizes = [8, 241], strides = [1, 1]} : vector<8x256xf32> to vector<8x241xf32>
    %1099 = tpu.concatenate %1097, %1098 in 1 : vector<8x15xf32>, vector<8x241xf32> -> vector<8x256xf32>
    %1100 = vector.broadcast %1 : vector<1x256xf32> to vector<8x256xf32>
    %1101 = arith.mulf %1099, %1100 : vector<8x256xf32>
    %c2_647 = arith.constant 2 : index
    %c0_648 = arith.constant 0 : index
    %c0_649 = arith.constant 0 : index
    %1102 = vector.load %arg38[%c2_647, %c0_648, %c0_649] : memref<9x32x8xbf16, #tpu.memory_space<vmem>>, vector<1x32x8xbf16>
    %1103 = vector.shape_cast %1102 : vector<1x32x8xbf16> to vector<32x8xbf16>
    %1104 = arith.truncf %1101 : vector<8x256xf32> to vector<8x256xbf16>
    %cst_650 = arith.constant dense<0.000000e+00> : vector<32x256xf32>
    %1105 = tpu.matmul %1103, %1104, %cst_650 {dimension_numbers = #tpu.dot_dimension_numbers<[1], [0], [0], [1], [0, 0, 1, 1], [], []>} : vector<32x8xbf16>, vector<8x256xbf16>, vector<32x256xf32> -> vector<32x256xf32>
    %1106 = arith.addf %1096, %1105 : vector<32x256xf32>
    %cst_651 = arith.constant 0.000000e+00 : f32
    %1107 = vector.broadcast %cst_651 : f32 to vector<8x1xf32>
    %1108 = vector.extract_strided_slice %1079 {offsets = [0, 0], sizes = [8, 255], strides = [1, 1]} : vector<8x256xf32> to vector<8x255xf32>
    %1109 = tpu.concatenate %1107, %1108 in 1 : vector<8x1xf32>, vector<8x255xf32> -> vector<8x256xf32>
    %1110 = vector.broadcast %0 : vector<1x256xf32> to vector<8x256xf32>
    %1111 = arith.mulf %1109, %1110 : vector<8x256xf32>
    %c3_652 = arith.constant 3 : index
    %c0_653 = arith.constant 0 : index
    %c0_654 = arith.constant 0 : index
    %1112 = vector.load %arg38[%c3_652, %c0_653, %c0_654] : memref<9x32x8xbf16, #tpu.memory_space<vmem>>, vector<1x32x8xbf16>
    %1113 = vector.shape_cast %1112 : vector<1x32x8xbf16> to vector<32x8xbf16>
    %1114 = arith.truncf %1111 : vector<8x256xf32> to vector<8x256xbf16>
    %cst_655 = arith.constant dense<0.000000e+00> : vector<32x256xf32>
    %1115 = tpu.matmul %1113, %1114, %cst_655 {dimension_numbers = #tpu.dot_dimension_numbers<[1], [0], [0], [1], [0, 0, 1, 1], [], []>} : vector<32x8xbf16>, vector<8x256xbf16>, vector<32x256xf32> -> vector<32x256xf32>
    %1116 = arith.addf %1106, %1115 : vector<32x256xf32>
    %c4_656 = arith.constant 4 : index
    %c0_657 = arith.constant 0 : index
    %c0_658 = arith.constant 0 : index
    %1117 = vector.load %arg38[%c4_656, %c0_657, %c0_658] : memref<9x32x8xbf16, #tpu.memory_space<vmem>>, vector<1x32x8xbf16>
    %1118 = vector.shape_cast %1117 : vector<1x32x8xbf16> to vector<32x8xbf16>
    %1119 = arith.truncf %1079 : vector<8x256xf32> to vector<8x256xbf16>
    %cst_659 = arith.constant dense<0.000000e+00> : vector<32x256xf32>
    %1120 = tpu.matmul %1118, %1119, %cst_659 {dimension_numbers = #tpu.dot_dimension_numbers<[1], [0], [0], [1], [0, 0, 1, 1], [], []>} : vector<32x8xbf16>, vector<8x256xbf16>, vector<32x256xf32> -> vector<32x256xf32>
    %1121 = arith.addf %1116, %1120 : vector<32x256xf32>
    %cst_660 = arith.constant 0.000000e+00 : f32
    %1122 = vector.broadcast %cst_660 : f32 to vector<8x1xf32>
    %1123 = vector.extract_strided_slice %1079 {offsets = [0, 1], sizes = [8, 255], strides = [1, 1]} : vector<8x256xf32> to vector<8x255xf32>
    %1124 = tpu.concatenate %1123, %1122 in 1 : vector<8x255xf32>, vector<8x1xf32> -> vector<8x256xf32>
    %1125 = vector.broadcast %1 : vector<1x256xf32> to vector<8x256xf32>
    %1126 = arith.mulf %1124, %1125 : vector<8x256xf32>
    %c5_661 = arith.constant 5 : index
    %c0_662 = arith.constant 0 : index
    %c0_663 = arith.constant 0 : index
    %1127 = vector.load %arg38[%c5_661, %c0_662, %c0_663] : memref<9x32x8xbf16, #tpu.memory_space<vmem>>, vector<1x32x8xbf16>
    %1128 = vector.shape_cast %1127 : vector<1x32x8xbf16> to vector<32x8xbf16>
    %1129 = arith.truncf %1126 : vector<8x256xf32> to vector<8x256xbf16>
    %cst_664 = arith.constant dense<0.000000e+00> : vector<32x256xf32>
    %1130 = tpu.matmul %1128, %1129, %cst_664 {dimension_numbers = #tpu.dot_dimension_numbers<[1], [0], [0], [1], [0, 0, 1, 1], [], []>} : vector<32x8xbf16>, vector<8x256xbf16>, vector<32x256xf32> -> vector<32x256xf32>
    %1131 = arith.addf %1121, %1130 : vector<32x256xf32>
    %cst_665 = arith.constant 0.000000e+00 : f32
    %1132 = vector.broadcast %cst_665 : f32 to vector<8x15xf32>
    %1133 = vector.extract_strided_slice %1079 {offsets = [0, 15], sizes = [8, 241], strides = [1, 1]} : vector<8x256xf32> to vector<8x241xf32>
    %1134 = tpu.concatenate %1133, %1132 in 1 : vector<8x241xf32>, vector<8x15xf32> -> vector<8x256xf32>
    %1135 = vector.broadcast %0 : vector<1x256xf32> to vector<8x256xf32>
    %1136 = arith.mulf %1134, %1135 : vector<8x256xf32>
    %c6_666 = arith.constant 6 : index
    %c0_667 = arith.constant 0 : index
    %c0_668 = arith.constant 0 : index
    %1137 = vector.load %arg38[%c6_666, %c0_667, %c0_668] : memref<9x32x8xbf16, #tpu.memory_space<vmem>>, vector<1x32x8xbf16>
    %1138 = vector.shape_cast %1137 : vector<1x32x8xbf16> to vector<32x8xbf16>
    %1139 = arith.truncf %1136 : vector<8x256xf32> to vector<8x256xbf16>
    %cst_669 = arith.constant dense<0.000000e+00> : vector<32x256xf32>
    %1140 = tpu.matmul %1138, %1139, %cst_669 {dimension_numbers = #tpu.dot_dimension_numbers<[1], [0], [0], [1], [0, 0, 1, 1], [], []>} : vector<32x8xbf16>, vector<8x256xbf16>, vector<32x256xf32> -> vector<32x256xf32>
    %1141 = arith.addf %1131, %1140 : vector<32x256xf32>
    %cst_670 = arith.constant 0.000000e+00 : f32
    %1142 = vector.broadcast %cst_670 : f32 to vector<8x16xf32>
    %1143 = vector.extract_strided_slice %1079 {offsets = [0, 16], sizes = [8, 240], strides = [1, 1]} : vector<8x256xf32> to vector<8x240xf32>
    %1144 = tpu.concatenate %1143, %1142 in 1 : vector<8x240xf32>, vector<8x16xf32> -> vector<8x256xf32>
    %c7_671 = arith.constant 7 : index
    %c0_672 = arith.constant 0 : index
    %c0_673 = arith.constant 0 : index
    %1145 = vector.load %arg38[%c7_671, %c0_672, %c0_673] : memref<9x32x8xbf16, #tpu.memory_space<vmem>>, vector<1x32x8xbf16>
    %1146 = vector.shape_cast %1145 : vector<1x32x8xbf16> to vector<32x8xbf16>
    %1147 = arith.truncf %1144 : vector<8x256xf32> to vector<8x256xbf16>
    %cst_674 = arith.constant dense<0.000000e+00> : vector<32x256xf32>
    %1148 = tpu.matmul %1146, %1147, %cst_674 {dimension_numbers = #tpu.dot_dimension_numbers<[1], [0], [0], [1], [0, 0, 1, 1], [], []>} : vector<32x8xbf16>, vector<8x256xbf16>, vector<32x256xf32> -> vector<32x256xf32>
    %1149 = arith.addf %1141, %1148 : vector<32x256xf32>
    %cst_675 = arith.constant 0.000000e+00 : f32
    %1150 = vector.broadcast %cst_675 : f32 to vector<8x17xf32>
    %1151 = vector.extract_strided_slice %1079 {offsets = [0, 17], sizes = [8, 239], strides = [1, 1]} : vector<8x256xf32> to vector<8x239xf32>
    %1152 = tpu.concatenate %1151, %1150 in 1 : vector<8x239xf32>, vector<8x17xf32> -> vector<8x256xf32>
    %1153 = vector.broadcast %1 : vector<1x256xf32> to vector<8x256xf32>
    %1154 = arith.mulf %1152, %1153 : vector<8x256xf32>
    %c8_676 = arith.constant 8 : index
    %c0_677 = arith.constant 0 : index
    %c0_678 = arith.constant 0 : index
    %1155 = vector.load %arg38[%c8_676, %c0_677, %c0_678] : memref<9x32x8xbf16, #tpu.memory_space<vmem>>, vector<1x32x8xbf16>
    %1156 = vector.shape_cast %1155 : vector<1x32x8xbf16> to vector<32x8xbf16>
    %1157 = arith.truncf %1154 : vector<8x256xf32> to vector<8x256xbf16>
    %cst_679 = arith.constant dense<0.000000e+00> : vector<32x256xf32>
    %1158 = tpu.matmul %1156, %1157, %cst_679 {dimension_numbers = #tpu.dot_dimension_numbers<[1], [0], [0], [1], [0, 0, 1, 1], [], []>} : vector<32x8xbf16>, vector<8x256xbf16>, vector<32x256xf32> -> vector<32x256xf32>
    %1159 = arith.addf %1149, %1158 : vector<32x256xf32>
    %c0_680 = arith.constant 0 : index
    %c0_681 = arith.constant 0 : index
    %1160 = vector.load %arg39[%c0_680, %c0_681] : memref<32x1xf32, #tpu.memory_space<vmem>>, vector<32x1xf32>
    %1161 = vector.broadcast %1160 : vector<32x1xf32> to vector<32x256xf32>
    %1162 = arith.addf %1159, %1161 : vector<32x256xf32>
    %c0_682 = arith.constant 0 : index
    %c0_683 = arith.constant 0 : index
    %c0_684 = arith.constant 0 : index
    %1163 = vector.load %arg40[%c0_682, %c0_683, %c0_684] : memref<1x32x256xf32, #tpu.memory_space<vmem>>, vector<1x32x256xf32>
    %1164 = vector.shape_cast %1163 : vector<1x32x256xf32> to vector<32x256xf32>
    %1165 = vector.shape_cast %1162 : vector<32x256xf32> to vector<1x32x256xf32>
    tpu.vector_store %arg40[%c0_682, %c0_683, %c0_684], %1165 {strides = array<i32>} : memref<1x32x256xf32, #tpu.memory_space<vmem>>, vector<1x32x256xf32>,
    return
  }
  func.func @transform_0(%arg0: i32) -> (i32, i32, i32) {
    %c0_i32 = arith.constant 0 : i32
    %c0_i32_0 = arith.constant 0 : i32
    %c0_i32_1 = arith.constant 0 : i32
    return %arg0, %c0_i32, %c0_i32_0 : i32, i32, i32
  }
  func.func @transform_1(%arg0: i32) -> (i32, i32) {
    %c0_i32 = arith.constant 0 : i32
    %c0_i32_0 = arith.constant 0 : i32
    %c0_i32_1 = arith.constant 0 : i32
    return %c0_i32, %c0_i32_0 : i32, i32
  }
  func.func @transform_2(%arg0: i32) -> (i32, i32) {
    %c0_i32 = arith.constant 0 : i32
    %c0_i32_0 = arith.constant 0 : i32
    %c0_i32_1 = arith.constant 0 : i32
    return %c0_i32, %c0_i32_0 : i32, i32
  }
  func.func @transform_3(%arg0: i32) -> (i32, i32) {
    %c0_i32 = arith.constant 0 : i32
    %c0_i32_0 = arith.constant 0 : i32
    %c0_i32_1 = arith.constant 0 : i32
    return %c0_i32, %c0_i32_0 : i32, i32
  }
  func.func @transform_4(%arg0: i32) -> (i32, i32) {
    %c0_i32 = arith.constant 0 : i32
    %c0_i32_0 = arith.constant 0 : i32
    %c0_i32_1 = arith.constant 0 : i32
    return %c0_i32, %c0_i32_0 : i32, i32
  }
  func.func @transform_5(%arg0: i32) -> (i32, i32, i32) {
    %c0_i32 = arith.constant 0 : i32
    %c0_i32_0 = arith.constant 0 : i32
    %c0_i32_1 = arith.constant 0 : i32
    %c0_i32_2 = arith.constant 0 : i32
    return %c0_i32, %c0_i32_0, %c0_i32_1 : i32, i32, i32
  }
  func.func @transform_6(%arg0: i32) -> (i32, i32) {
    %c0_i32 = arith.constant 0 : i32
    %c0_i32_0 = arith.constant 0 : i32
    %c0_i32_1 = arith.constant 0 : i32
    return %c0_i32, %c0_i32_0 : i32, i32
  }
  func.func @transform_7(%arg0: i32) -> (i32, i32, i32) {
    %c0_i32 = arith.constant 0 : i32
    %c0_i32_0 = arith.constant 0 : i32
    %c0_i32_1 = arith.constant 0 : i32
    %c0_i32_2 = arith.constant 0 : i32
    return %c0_i32, %c0_i32_0, %c0_i32_1 : i32, i32, i32
  }
  func.func @transform_8(%arg0: i32) -> (i32, i32) {
    %c0_i32 = arith.constant 0 : i32
    %c0_i32_0 = arith.constant 0 : i32
    %c0_i32_1 = arith.constant 0 : i32
    return %c0_i32, %c0_i32_0 : i32, i32
  }
  func.func @transform_9(%arg0: i32) -> (i32, i32, i32) {
    %c0_i32 = arith.constant 0 : i32
    %c0_i32_0 = arith.constant 0 : i32
    %c0_i32_1 = arith.constant 0 : i32
    %c0_i32_2 = arith.constant 0 : i32
    return %c0_i32, %c0_i32_0, %c0_i32_1 : i32, i32, i32
  }
  func.func @transform_10(%arg0: i32) -> (i32, i32) {
    %c0_i32 = arith.constant 0 : i32
    %c0_i32_0 = arith.constant 0 : i32
    %c0_i32_1 = arith.constant 0 : i32
    return %c0_i32, %c0_i32_0 : i32, i32
  }
  func.func @transform_11(%arg0: i32) -> (i32, i32, i32) {
    %c0_i32 = arith.constant 0 : i32
    %c0_i32_0 = arith.constant 0 : i32
    %c0_i32_1 = arith.constant 0 : i32
    %c0_i32_2 = arith.constant 0 : i32
    return %c0_i32, %c0_i32_0, %c0_i32_1 : i32, i32, i32
  }
  func.func @transform_12(%arg0: i32) -> (i32, i32) {
    %c0_i32 = arith.constant 0 : i32
    %c0_i32_0 = arith.constant 0 : i32
    %c0_i32_1 = arith.constant 0 : i32
    return %c0_i32, %c0_i32_0 : i32, i32
  }
  func.func @transform_13(%arg0: i32) -> (i32, i32, i32) {
    %c0_i32 = arith.constant 0 : i32
    %c0_i32_0 = arith.constant 0 : i32
    %c0_i32_1 = arith.constant 0 : i32
    %c0_i32_2 = arith.constant 0 : i32
    return %c0_i32, %c0_i32_0, %c0_i32_1 : i32, i32, i32
  }
  func.func @transform_14(%arg0: i32) -> (i32, i32) {
    %c0_i32 = arith.constant 0 : i32
    %c0_i32_0 = arith.constant 0 : i32
    %c0_i32_1 = arith.constant 0 : i32
    return %c0_i32, %c0_i32_0 : i32, i32
  }
  func.func @transform_15(%arg0: i32) -> (i32, i32) {
    %c0_i32 = arith.constant 0 : i32
    %c0_i32_0 = arith.constant 0 : i32
    %c0_i32_1 = arith.constant 0 : i32
    return %c0_i32, %c0_i32_0 : i32, i32
  }
  func.func @transform_16(%arg0: i32) -> (i32, i32) {
    %c0_i32 = arith.constant 0 : i32
    %c0_i32_0 = arith.constant 0 : i32
    %c0_i32_1 = arith.constant 0 : i32
    return %c0_i32, %c0_i32_0 : i32, i32
  }
  func.func @transform_17(%arg0: i32) -> (i32, i32, i32) {
    %c0_i32 = arith.constant 0 : i32
    %c0_i32_0 = arith.constant 0 : i32
    %c0_i32_1 = arith.constant 0 : i32
    %c0_i32_2 = arith.constant 0 : i32
    return %c0_i32, %c0_i32_0, %c0_i32_1 : i32, i32, i32
  }
  func.func @transform_18(%arg0: i32) -> (i32, i32) {
    %c0_i32 = arith.constant 0 : i32
    %c0_i32_0 = arith.constant 0 : i32
    %c0_i32_1 = arith.constant 0 : i32
    return %c0_i32, %c0_i32_0 : i32, i32
  }
  func.func @transform_19(%arg0: i32) -> (i32, i32, i32) {
    %c0_i32 = arith.constant 0 : i32
    %c0_i32_0 = arith.constant 0 : i32
    %c0_i32_1 = arith.constant 0 : i32
    %c0_i32_2 = arith.constant 0 : i32
    return %c0_i32, %c0_i32_0, %c0_i32_1 : i32, i32, i32
  }
  func.func @transform_20(%arg0: i32) -> (i32, i32) {
    %c0_i32 = arith.constant 0 : i32
    %c0_i32_0 = arith.constant 0 : i32
    %c0_i32_1 = arith.constant 0 : i32
    return %c0_i32, %c0_i32_0 : i32, i32
  }
  func.func @transform_21(%arg0: i32) -> (i32, i32, i32) {
    %c0_i32 = arith.constant 0 : i32
    %c0_i32_0 = arith.constant 0 : i32
    %c0_i32_1 = arith.constant 0 : i32
    %c0_i32_2 = arith.constant 0 : i32
    return %c0_i32, %c0_i32_0, %c0_i32_1 : i32, i32, i32
  }
  func.func @transform_22(%arg0: i32) -> (i32, i32) {
    %c0_i32 = arith.constant 0 : i32
    %c0_i32_0 = arith.constant 0 : i32
    %c0_i32_1 = arith.constant 0 : i32
    return %c0_i32, %c0_i32_0 : i32, i32
  }
  func.func @transform_23(%arg0: i32) -> (i32, i32) {
    %c0_i32 = arith.constant 0 : i32
    %c0_i32_0 = arith.constant 0 : i32
    %c0_i32_1 = arith.constant 0 : i32
    return %c0_i32, %c0_i32_0 : i32, i32
  }
  func.func @transform_24(%arg0: i32) -> (i32, i32) {
    %c0_i32 = arith.constant 0 : i32
    %c0_i32_0 = arith.constant 0 : i32
    %c0_i32_1 = arith.constant 0 : i32
    return %c0_i32, %c0_i32_0 : i32, i32
  }
  func.func @transform_25(%arg0: i32) -> (i32, i32, i32) {
    %c0_i32 = arith.constant 0 : i32
    %c0_i32_0 = arith.constant 0 : i32
    %c0_i32_1 = arith.constant 0 : i32
    %c0_i32_2 = arith.constant 0 : i32
    return %c0_i32, %c0_i32_0, %c0_i32_1 : i32, i32, i32
  }
  func.func @transform_26(%arg0: i32) -> (i32, i32) {
    %c0_i32 = arith.constant 0 : i32
    %c0_i32_0 = arith.constant 0 : i32
    %c0_i32_1 = arith.constant 0 : i32
    return %c0_i32, %c0_i32_0 : i32, i32
  }
  func.func @transform_27(%arg0: i32) -> (i32, i32, i32) {
    %c0_i32 = arith.constant 0 : i32
    %c0_i32_0 = arith.constant 0 : i32
    %c0_i32_1 = arith.constant 0 : i32
    %c0_i32_2 = arith.constant 0 : i32
    return %c0_i32, %c0_i32_0, %c0_i32_1 : i32, i32, i32
  }
  func.func @transform_28(%arg0: i32) -> (i32, i32) {
    %c0_i32 = arith.constant 0 : i32
    %c0_i32_0 = arith.constant 0 : i32
    %c0_i32_1 = arith.constant 0 : i32
    return %c0_i32, %c0_i32_0 : i32, i32
  }
  func.func @transform_29(%arg0: i32) -> (i32, i32, i32) {
    %c0_i32 = arith.constant 0 : i32
    %c0_i32_0 = arith.constant 0 : i32
    %c0_i32_1 = arith.constant 0 : i32
    %c0_i32_2 = arith.constant 0 : i32
    return %c0_i32, %c0_i32_0, %c0_i32_1 : i32, i32, i32
  }
  func.func @transform_30(%arg0: i32) -> (i32, i32) {
    %c0_i32 = arith.constant 0 : i32
    %c0_i32_0 = arith.constant 0 : i32
    %c0_i32_1 = arith.constant 0 : i32
    return %c0_i32, %c0_i32_0 : i32, i32
  }
  func.func @transform_31(%arg0: i32) -> (i32, i32) {
    %c0_i32 = arith.constant 0 : i32
    %c0_i32_0 = arith.constant 0 : i32
    %c0_i32_1 = arith.constant 0 : i32
    return %c0_i32, %c0_i32_0 : i32, i32
  }
  func.func @transform_32(%arg0: i32) -> (i32, i32) {
    %c0_i32 = arith.constant 0 : i32
    %c0_i32_0 = arith.constant 0 : i32
    %c0_i32_1 = arith.constant 0 : i32
    return %c0_i32, %c0_i32_0 : i32, i32
  }
  func.func @transform_33(%arg0: i32) -> (i32, i32) {
    %c0_i32 = arith.constant 0 : i32
    %c0_i32_0 = arith.constant 0 : i32
    %c0_i32_1 = arith.constant 0 : i32
    return %c0_i32, %c0_i32_0 : i32, i32
  }
  func.func @transform_34(%arg0: i32) -> (i32, i32) {
    %c0_i32 = arith.constant 0 : i32
    %c0_i32_0 = arith.constant 0 : i32
    %c0_i32_1 = arith.constant 0 : i32
    return %c0_i32, %c0_i32_0 : i32, i32
  }
  func.func @transform_35(%arg0: i32) -> (i32, i32, i32) {
    %c0_i32 = arith.constant 0 : i32
    %c0_i32_0 = arith.constant 0 : i32
    %c0_i32_1 = arith.constant 0 : i32
    %c0_i32_2 = arith.constant 0 : i32
    return %c0_i32, %c0_i32_0, %c0_i32_1 : i32, i32, i32
  }
  func.func @transform_36(%arg0: i32) -> (i32, i32) {
    %c0_i32 = arith.constant 0 : i32
    %c0_i32_0 = arith.constant 0 : i32
    %c0_i32_1 = arith.constant 0 : i32
    return %c0_i32, %c0_i32_0 : i32, i32
  }
  func.func @transform_37(%arg0: i32) -> (i32, i32, i32) {
    %c0_i32 = arith.constant 0 : i32
    %c0_i32_0 = arith.constant 0 : i32
    %c0_i32_1 = arith.constant 0 : i32
    %c0_i32_2 = arith.constant 0 : i32
    return %c0_i32, %c0_i32_0, %c0_i32_1 : i32, i32, i32
  }
  func.func @transform_38(%arg0: i32) -> (i32, i32) {
    %c0_i32 = arith.constant 0 : i32
    %c0_i32_0 = arith.constant 0 : i32
    %c0_i32_1 = arith.constant 0 : i32
    return %c0_i32, %c0_i32_0 : i32, i32
  }
  func.func @transform_39(%arg0: i32) -> (i32, i32, i32) {
    %c0_i32 = arith.constant 0 : i32
    %c0_i32_0 = arith.constant 0 : i32
    %c0_i32_1 = arith.constant 0 : i32
    return %arg0, %c0_i32, %c0_i32_0 : i32, i32, i32
  }
}

module attributes {stable_mosaic.version = 11 : i64} {
  func.func @kernel(%arg0: i32, %arg1: memref<1x8x1024xf32, #tpu.memory_space<vmem>>, %arg2: memref<3x1xf32, #tpu.memory_space<vmem>>, %arg3: memref<3x1xf32, #tpu.memory_space<vmem>>, %arg4: memref<1x1024xf32, #tpu.memory_space<vmem>>, %arg5: memref<1x1024xf32, #tpu.memory_space<vmem>>, %arg6: memref<9x3x8xbf16, #tpu.memory_space<vmem>>, %arg7: memref<3x1xf32, #tpu.memory_space<vmem>>, %arg8: memref<1x3x1024xf32, #tpu.memory_space<vmem>>) attributes {dimension_semantics = [#tpu.dimension_semantics<parallel>], iteration_bounds = array<i64: 2>, scalar_prefetch = 0 : i64, scratch_operands = 0 : i64, tpu.core_type = #tpu.core_type<tc>, window_params = [{transform_indices = @transform_0, window_bounds = array<i64: 1, 8, 1024>}, {pipeline_mode = #tpu.pipeline_mode<synchronous>, transform_indices = @transform_1, window_bounds = array<i64: 3, 1>}, {pipeline_mode = #tpu.pipeline_mode<synchronous>, transform_indices = @transform_2, window_bounds = array<i64: 3, 1>}, {pipeline_mode = #tpu.pipeline_mode<synchronous>, transform_indices = @transform_3, window_bounds = array<i64: 1, 1024>}, {pipeline_mode = #tpu.pipeline_mode<synchronous>, transform_indices = @transform_4, window_bounds = array<i64: 1, 1024>}, {pipeline_mode = #tpu.pipeline_mode<synchronous>, transform_indices = @transform_5, window_bounds = array<i64: 9, 3, 8>}, {pipeline_mode = #tpu.pipeline_mode<synchronous>, transform_indices = @transform_6, window_bounds = array<i64: 3, 1>}, {transform_indices = @transform_7, window_bounds = array<i64: 1, 3, 1024>}]} {
    %c0 = arith.constant 0 : index
    %c0_0 = arith.constant 0 : index
    %c0_1 = arith.constant 0 : index
    %0 = vector.load %arg1[%c0, %c0_0, %c0_1] : memref<1x8x1024xf32, #tpu.memory_space<vmem>>, vector<1x8x1024xf32>
    %1 = vector.shape_cast %0 : vector<1x8x1024xf32> to vector<8x1024xf32>
    %c0_2 = arith.constant 0 : index
    %c0_3 = arith.constant 0 : index
    %2 = vector.load %arg4[%c0_2, %c0_3] : memref<1x1024xf32, #tpu.memory_space<vmem>>, vector<1x1024xf32>
    %c0_4 = arith.constant 0 : index
    %c0_5 = arith.constant 0 : index
    %3 = vector.load %arg5[%c0_4, %c0_5] : memref<1x1024xf32, #tpu.memory_space<vmem>>, vector<1x1024xf32>
    %cst = arith.constant 0.000000e+00 : f32
    %4 = vector.broadcast %cst : f32 to vector<8x33xf32>
    %5 = vector.extract_strided_slice %1 {offsets = [0, 0], sizes = [8, 991], strides = [1, 1]} : vector<8x1024xf32> to vector<8x991xf32>
    %6 = tpu.concatenate %4, %5 in 1 : vector<8x33xf32>, vector<8x991xf32> -> vector<8x1024xf32>
    %7 = vector.broadcast %2 : vector<1x1024xf32> to vector<8x1024xf32>
    %8 = arith.mulf %6, %7 : vector<8x1024xf32>
    %c0_6 = arith.constant 0 : index
    %c0_7 = arith.constant 0 : index
    %c0_8 = arith.constant 0 : index
    %9 = vector.load %arg6[%c0_6, %c0_7, %c0_8] : memref<9x3x8xbf16, #tpu.memory_space<vmem>>, vector<1x3x8xbf16>
    %10 = vector.shape_cast %9 : vector<1x3x8xbf16> to vector<3x8xbf16>
    %11 = arith.truncf %8 : vector<8x1024xf32> to vector<8x1024xbf16>
    %cst_9 = arith.constant dense<0.000000e+00> : vector<3x1024xf32>
    %12 = tpu.matmul %10, %11, %cst_9 {dimension_numbers = #tpu.dot_dimension_numbers<[1], [0], [0], [1], [0, 0, 1, 1], [], []>} : vector<3x8xbf16>, vector<8x1024xbf16>, vector<3x1024xf32> -> vector<3x1024xf32>
    %cst_10 = arith.constant 0.000000e+00 : f32
    %13 = vector.broadcast %cst_10 : f32 to vector<8x32xf32>
    %14 = vector.extract_strided_slice %1 {offsets = [0, 0], sizes = [8, 992], strides = [1, 1]} : vector<8x1024xf32> to vector<8x992xf32>
    %15 = tpu.concatenate %13, %14 in 1 : vector<8x32xf32>, vector<8x992xf32> -> vector<8x1024xf32>
    %c1 = arith.constant 1 : index
    %c0_11 = arith.constant 0 : index
    %c0_12 = arith.constant 0 : index
    %16 = vector.load %arg6[%c1, %c0_11, %c0_12] : memref<9x3x8xbf16, #tpu.memory_space<vmem>>, vector<1x3x8xbf16>
    %17 = vector.shape_cast %16 : vector<1x3x8xbf16> to vector<3x8xbf16>
    %18 = arith.truncf %15 : vector<8x1024xf32> to vector<8x1024xbf16>
    %cst_13 = arith.constant dense<0.000000e+00> : vector<3x1024xf32>
    %19 = tpu.matmul %17, %18, %cst_13 {dimension_numbers = #tpu.dot_dimension_numbers<[1], [0], [0], [1], [0, 0, 1, 1], [], []>} : vector<3x8xbf16>, vector<8x1024xbf16>, vector<3x1024xf32> -> vector<3x1024xf32>
    %20 = arith.addf %12, %19 : vector<3x1024xf32>
    %cst_14 = arith.constant 0.000000e+00 : f32
    %21 = vector.broadcast %cst_14 : f32 to vector<8x31xf32>
    %22 = vector.extract_strided_slice %1 {offsets = [0, 0], sizes = [8, 993], strides = [1, 1]} : vector<8x1024xf32> to vector<8x993xf32>
    %23 = tpu.concatenate %21, %22 in 1 : vector<8x31xf32>, vector<8x993xf32> -> vector<8x1024xf32>
    %24 = vector.broadcast %3 : vector<1x1024xf32> to vector<8x1024xf32>
    %25 = arith.mulf %23, %24 : vector<8x1024xf32>
    %c2 = arith.constant 2 : index
    %c0_15 = arith.constant 0 : index
    %c0_16 = arith.constant 0 : index
    %26 = vector.load %arg6[%c2, %c0_15, %c0_16] : memref<9x3x8xbf16, #tpu.memory_space<vmem>>, vector<1x3x8xbf16>
    %27 = vector.shape_cast %26 : vector<1x3x8xbf16> to vector<3x8xbf16>
    %28 = arith.truncf %25 : vector<8x1024xf32> to vector<8x1024xbf16>
    %cst_17 = arith.constant dense<0.000000e+00> : vector<3x1024xf32>
    %29 = tpu.matmul %27, %28, %cst_17 {dimension_numbers = #tpu.dot_dimension_numbers<[1], [0], [0], [1], [0, 0, 1, 1], [], []>} : vector<3x8xbf16>, vector<8x1024xbf16>, vector<3x1024xf32> -> vector<3x1024xf32>
    %30 = arith.addf %20, %29 : vector<3x1024xf32>
    %cst_18 = arith.constant 0.000000e+00 : f32
    %31 = vector.broadcast %cst_18 : f32 to vector<8x1xf32>
    %32 = vector.extract_strided_slice %1 {offsets = [0, 0], sizes = [8, 1023], strides = [1, 1]} : vector<8x1024xf32> to vector<8x1023xf32>
    %33 = tpu.concatenate %31, %32 in 1 : vector<8x1xf32>, vector<8x1023xf32> -> vector<8x1024xf32>
    %34 = vector.broadcast %2 : vector<1x1024xf32> to vector<8x1024xf32>
    %35 = arith.mulf %33, %34 : vector<8x1024xf32>
    %c3 = arith.constant 3 : index
    %c0_19 = arith.constant 0 : index
    %c0_20 = arith.constant 0 : index
    %36 = vector.load %arg6[%c3, %c0_19, %c0_20] : memref<9x3x8xbf16, #tpu.memory_space<vmem>>, vector<1x3x8xbf16>
    %37 = vector.shape_cast %36 : vector<1x3x8xbf16> to vector<3x8xbf16>
    %38 = arith.truncf %35 : vector<8x1024xf32> to vector<8x1024xbf16>
    %cst_21 = arith.constant dense<0.000000e+00> : vector<3x1024xf32>
    %39 = tpu.matmul %37, %38, %cst_21 {dimension_numbers = #tpu.dot_dimension_numbers<[1], [0], [0], [1], [0, 0, 1, 1], [], []>} : vector<3x8xbf16>, vector<8x1024xbf16>, vector<3x1024xf32> -> vector<3x1024xf32>
    %40 = arith.addf %30, %39 : vector<3x1024xf32>
    %c4 = arith.constant 4 : index
    %c0_22 = arith.constant 0 : index
    %c0_23 = arith.constant 0 : index
    %41 = vector.load %arg6[%c4, %c0_22, %c0_23] : memref<9x3x8xbf16, #tpu.memory_space<vmem>>, vector<1x3x8xbf16>
    %42 = vector.shape_cast %41 : vector<1x3x8xbf16> to vector<3x8xbf16>
    %43 = arith.truncf %1 : vector<8x1024xf32> to vector<8x1024xbf16>
    %cst_24 = arith.constant dense<0.000000e+00> : vector<3x1024xf32>
    %44 = tpu.matmul %42, %43, %cst_24 {dimension_numbers = #tpu.dot_dimension_numbers<[1], [0], [0], [1], [0, 0, 1, 1], [], []>} : vector<3x8xbf16>, vector<8x1024xbf16>, vector<3x1024xf32> -> vector<3x1024xf32>
    %45 = arith.addf %40, %44 : vector<3x1024xf32>
    %cst_25 = arith.constant 0.000000e+00 : f32
    %46 = vector.broadcast %cst_25 : f32 to vector<8x1xf32>
    %47 = vector.extract_strided_slice %1 {offsets = [0, 1], sizes = [8, 1023], strides = [1, 1]} : vector<8x1024xf32> to vector<8x1023xf32>
    %48 = tpu.concatenate %47, %46 in 1 : vector<8x1023xf32>, vector<8x1xf32> -> vector<8x1024xf32>
    %49 = vector.broadcast %3 : vector<1x1024xf32> to vector<8x1024xf32>
    %50 = arith.mulf %48, %49 : vector<8x1024xf32>
    %c5 = arith.constant 5 : index
    %c0_26 = arith.constant 0 : index
    %c0_27 = arith.constant 0 : index
    %51 = vector.load %arg6[%c5, %c0_26, %c0_27] : memref<9x3x8xbf16, #tpu.memory_space<vmem>>, vector<1x3x8xbf16>
    %52 = vector.shape_cast %51 : vector<1x3x8xbf16> to vector<3x8xbf16>
    %53 = arith.truncf %50 : vector<8x1024xf32> to vector<8x1024xbf16>
    %cst_28 = arith.constant dense<0.000000e+00> : vector<3x1024xf32>
    %54 = tpu.matmul %52, %53, %cst_28 {dimension_numbers = #tpu.dot_dimension_numbers<[1], [0], [0], [1], [0, 0, 1, 1], [], []>} : vector<3x8xbf16>, vector<8x1024xbf16>, vector<3x1024xf32> -> vector<3x1024xf32>
    %55 = arith.addf %45, %54 : vector<3x1024xf32>
    %cst_29 = arith.constant 0.000000e+00 : f32
    %56 = vector.broadcast %cst_29 : f32 to vector<8x31xf32>
    %57 = vector.extract_strided_slice %1 {offsets = [0, 31], sizes = [8, 993], strides = [1, 1]} : vector<8x1024xf32> to vector<8x993xf32>
    %58 = tpu.concatenate %57, %56 in 1 : vector<8x993xf32>, vector<8x31xf32> -> vector<8x1024xf32>
    %59 = vector.broadcast %2 : vector<1x1024xf32> to vector<8x1024xf32>
    %60 = arith.mulf %58, %59 : vector<8x1024xf32>
    %c6 = arith.constant 6 : index
    %c0_30 = arith.constant 0 : index
    %c0_31 = arith.constant 0 : index
    %61 = vector.load %arg6[%c6, %c0_30, %c0_31] : memref<9x3x8xbf16, #tpu.memory_space<vmem>>, vector<1x3x8xbf16>
    %62 = vector.shape_cast %61 : vector<1x3x8xbf16> to vector<3x8xbf16>
    %63 = arith.truncf %60 : vector<8x1024xf32> to vector<8x1024xbf16>
    %cst_32 = arith.constant dense<0.000000e+00> : vector<3x1024xf32>
    %64 = tpu.matmul %62, %63, %cst_32 {dimension_numbers = #tpu.dot_dimension_numbers<[1], [0], [0], [1], [0, 0, 1, 1], [], []>} : vector<3x8xbf16>, vector<8x1024xbf16>, vector<3x1024xf32> -> vector<3x1024xf32>
    %65 = arith.addf %55, %64 : vector<3x1024xf32>
    %cst_33 = arith.constant 0.000000e+00 : f32
    %66 = vector.broadcast %cst_33 : f32 to vector<8x32xf32>
    %67 = vector.extract_strided_slice %1 {offsets = [0, 32], sizes = [8, 992], strides = [1, 1]} : vector<8x1024xf32> to vector<8x992xf32>
    %68 = tpu.concatenate %67, %66 in 1 : vector<8x992xf32>, vector<8x32xf32> -> vector<8x1024xf32>
    %c7 = arith.constant 7 : index
    %c0_34 = arith.constant 0 : index
    %c0_35 = arith.constant 0 : index
    %69 = vector.load %arg6[%c7, %c0_34, %c0_35] : memref<9x3x8xbf16, #tpu.memory_space<vmem>>, vector<1x3x8xbf16>
    %70 = vector.shape_cast %69 : vector<1x3x8xbf16> to vector<3x8xbf16>
    %71 = arith.truncf %68 : vector<8x1024xf32> to vector<8x1024xbf16>
    %cst_36 = arith.constant dense<0.000000e+00> : vector<3x1024xf32>
    %72 = tpu.matmul %70, %71, %cst_36 {dimension_numbers = #tpu.dot_dimension_numbers<[1], [0], [0], [1], [0, 0, 1, 1], [], []>} : vector<3x8xbf16>, vector<8x1024xbf16>, vector<3x1024xf32> -> vector<3x1024xf32>
    %73 = arith.addf %65, %72 : vector<3x1024xf32>
    %cst_37 = arith.constant 0.000000e+00 : f32
    %74 = vector.broadcast %cst_37 : f32 to vector<8x33xf32>
    %75 = vector.extract_strided_slice %1 {offsets = [0, 33], sizes = [8, 991], strides = [1, 1]} : vector<8x1024xf32> to vector<8x991xf32>
    %76 = tpu.concatenate %75, %74 in 1 : vector<8x991xf32>, vector<8x33xf32> -> vector<8x1024xf32>
    %77 = vector.broadcast %3 : vector<1x1024xf32> to vector<8x1024xf32>
    %78 = arith.mulf %76, %77 : vector<8x1024xf32>
    %c8 = arith.constant 8 : index
    %c0_38 = arith.constant 0 : index
    %c0_39 = arith.constant 0 : index
    %79 = vector.load %arg6[%c8, %c0_38, %c0_39] : memref<9x3x8xbf16, #tpu.memory_space<vmem>>, vector<1x3x8xbf16>
    %80 = vector.shape_cast %79 : vector<1x3x8xbf16> to vector<3x8xbf16>
    %81 = arith.truncf %78 : vector<8x1024xf32> to vector<8x1024xbf16>
    %cst_40 = arith.constant dense<0.000000e+00> : vector<3x1024xf32>
    %82 = tpu.matmul %80, %81, %cst_40 {dimension_numbers = #tpu.dot_dimension_numbers<[1], [0], [0], [1], [0, 0, 1, 1], [], []>} : vector<3x8xbf16>, vector<8x1024xbf16>, vector<3x1024xf32> -> vector<3x1024xf32>
    %83 = arith.addf %73, %82 : vector<3x1024xf32>
    %c0_41 = arith.constant 0 : index
    %c0_42 = arith.constant 0 : index
    %84 = vector.load %arg7[%c0_41, %c0_42] : memref<3x1xf32, #tpu.memory_space<vmem>>, vector<3x1xf32>
    %85 = vector.broadcast %84 : vector<3x1xf32> to vector<3x1024xf32>
    %86 = arith.addf %83, %85 : vector<3x1024xf32>
    %c0_43 = arith.constant 0 : index
    %c0_44 = arith.constant 0 : index
    %87 = vector.load %arg2[%c0_43, %c0_44] : memref<3x1xf32, #tpu.memory_space<vmem>>, vector<3x1xf32>
    %88 = vector.broadcast %87 : vector<3x1xf32> to vector<3x1024xf32>
    %89 = arith.mulf %86, %88 : vector<3x1024xf32>
    %c0_45 = arith.constant 0 : index
    %c0_46 = arith.constant 0 : index
    %90 = vector.load %arg3[%c0_45, %c0_46] : memref<3x1xf32, #tpu.memory_space<vmem>>, vector<3x1xf32>
    %91 = vector.broadcast %90 : vector<3x1xf32> to vector<3x1024xf32>
    %92 = arith.addf %89, %91 : vector<3x1024xf32>
    %c0_47 = arith.constant 0 : index
    %c0_48 = arith.constant 0 : index
    %c0_49 = arith.constant 0 : index
    %93 = vector.load %arg8[%c0_47, %c0_48, %c0_49] : memref<1x3x1024xf32, #tpu.memory_space<vmem>>, vector<1x3x1024xf32>
    %94 = vector.shape_cast %93 : vector<1x3x1024xf32> to vector<3x1024xf32>
    %95 = vector.shape_cast %92 : vector<3x1024xf32> to vector<1x3x1024xf32>
    tpu.vector_store %arg8[%c0_47, %c0_48, %c0_49], %95 {strides = array<i32>} : memref<1x3x1024xf32, #tpu.memory_space<vmem>>, vector<1x3x1024xf32>,
    return
  }
  func.func @transform_0(%arg0: i32) -> (i32, i32, i32) {
    %c0_i32 = arith.constant 0 : i32
    %c0_i32_0 = arith.constant 0 : i32
    %c0_i32_1 = arith.constant 0 : i32
    return %arg0, %c0_i32, %c0_i32_0 : i32, i32, i32
  }
  func.func @transform_1(%arg0: i32) -> (i32, i32) {
    %c0_i32 = arith.constant 0 : i32
    %c0_i32_0 = arith.constant 0 : i32
    %c0_i32_1 = arith.constant 0 : i32
    return %c0_i32, %c0_i32_0 : i32, i32
  }
  func.func @transform_2(%arg0: i32) -> (i32, i32) {
    %c0_i32 = arith.constant 0 : i32
    %c0_i32_0 = arith.constant 0 : i32
    %c0_i32_1 = arith.constant 0 : i32
    return %c0_i32, %c0_i32_0 : i32, i32
  }
  func.func @transform_3(%arg0: i32) -> (i32, i32) {
    %c0_i32 = arith.constant 0 : i32
    %c0_i32_0 = arith.constant 0 : i32
    %c0_i32_1 = arith.constant 0 : i32
    return %c0_i32, %c0_i32_0 : i32, i32
  }
  func.func @transform_4(%arg0: i32) -> (i32, i32) {
    %c0_i32 = arith.constant 0 : i32
    %c0_i32_0 = arith.constant 0 : i32
    %c0_i32_1 = arith.constant 0 : i32
    return %c0_i32, %c0_i32_0 : i32, i32
  }
  func.func @transform_5(%arg0: i32) -> (i32, i32, i32) {
    %c0_i32 = arith.constant 0 : i32
    %c0_i32_0 = arith.constant 0 : i32
    %c0_i32_1 = arith.constant 0 : i32
    %c0_i32_2 = arith.constant 0 : i32
    return %c0_i32, %c0_i32_0, %c0_i32_1 : i32, i32, i32
  }
  func.func @transform_6(%arg0: i32) -> (i32, i32) {
    %c0_i32 = arith.constant 0 : i32
    %c0_i32_0 = arith.constant 0 : i32
    %c0_i32_1 = arith.constant 0 : i32
    return %c0_i32, %c0_i32_0 : i32, i32
  }
  func.func @transform_7(%arg0: i32) -> (i32, i32, i32) {
    %c0_i32 = arith.constant 0 : i32
    %c0_i32_0 = arith.constant 0 : i32
    %c0_i32_1 = arith.constant 0 : i32
    return %arg0, %c0_i32, %c0_i32_0 : i32, i32, i32
  }
}

</mosaic_0001>

<bundles_post_ra>
// kernel: multi_rdn_forward.3
= control target key start
LH: loop header
LB: loop body
LE: loop exit
PB: predicated region body
PF: predicated region fallthrough
CT: control target
= control target key end

     0   :  { %s2884_s24 = smov 0   ;;  %s3393_s0 = inlined_call_operand.vmem [shape: f32[2,8,1024], index: 0, kind: input, shape index: {}]   ;;  %s3394_s1 = inlined_call_operand.vmem [shape: f32[3,1], index: 1, kind: input, shape index: {}]   ;;  %s3395_s2 = inlined_call_operand.vmem [shape: f32[3,1], index: 2, kind: input, shape index: {}]   ;;  %s3396_s3 = inlined_call_operand.vmem [shape: f32[1,1024], index: 3, kind: input, shape index: {}]   ;;  %s3397_s4 = inlined_call_operand.vmem [shape: f32[1,1024], index: 4, kind: input, shape index: {}]   ;;  %s3398_s5 = inlined_call_operand.vmem [shape: bf16[9,3,8], index: 5, kind: input, shape index: {}]   ;;  %s3399_s6 = inlined_call_operand.vmem [shape: f32[3,1], index: 6, kind: input, shape index: {}]   ;;  %s3400_s7 = inlined_call_operand.vmem [shape: f32[2,3,1024], index: 7, kind: output, shape index: {}]  }
   0x1 LB: > { %s2675_s25 = sadd.s32 4294967295, %s2833_s24   ;;  %p2679_p0 = scmp.ge.s32.totalorder %s2833_s24, 1  ;;  %s2833_s24 = sphi %s2884_s24, %s17_s24  }
   0x2   : > { %p237_p1 = scmp.lt.s32.totalorder %s2833_s24, 3 }
   0x4   : > { %p238_p2 = pnand %p2679_p0, %p237_p1 }
   0x5   : > { %p269_p3 = scmp.lt.s32.totalorder (!%p238_p2), %s2675_s25, 1  ;;  %v2835_v0 = vmov (!%p238_p2), 0   ;;  %s2836_s30 = smov (!%p238_p2), 32   ;;  %v332_v13 = vlaneseq (!%p238_p2)  ;;  %vm405_vm0 = vcmask (!%p238_p2), 261120   ;;  %vm436_vm1 = vcmask (!%p238_p2), 1043456   ;;  %v2980_v20 = vld [vmem:[%s3396_s3] sm:$0xff] (!%p238_p2) }
   0x6   : > { %241 = sbr.rel (%p238_p2) target bundleno = 508 (0x1fc), region = 48  ;;  %493 = vmatprep.mubr.bf16.mxu0 (!%p238_p2), %v2835_v0  ;;  %534 = vmatprep.mubr.bf16.mxu1 (!%p238_p2), %v2835_v0  ;;  %s2837_s8 = smov (!%p238_p2), 33   ;;  %vm314_vm2 = vcmask (!%p238_p2), 269312   ;;  %vm432_vm3 = vcmask (!%p238_p2), 64512   ;;  %v3015_v46 = vld [vmem:[%s3398_s5 + $0x2] sm:$0x3] (!%p238_p2) }
   0x7   : > { %2826 = vset.pattern.permute.xlu1 (!%p238_p2), %v2835_v0  ;;  %2825 = vset.pattern.permute.xlu0 (!%p238_p2), %v2835_v0  ;;  %s2838_s9 = smov (!%p238_p2), 31   ;;  %s2839_s10 = smov (!%p238_p2), 1   ;;  %v2974_v14 = vshrl.u32 (!%p238_p2), %v332_v13, 7  ;;  %vm832_vm4 = vcmask (!%p238_p2), 252928   ;;  %vm1123_vm5 = vcmask (!%p238_p2), 7168   ;;  %vm1582_vm6 = vcmask (!%p238_p2), 1039360  }
   0x8   : > { %s2840_s11 = smov (!%p238_p2), 127   ;;  %s2841_s12 = smov (!%p238_p2), 97   ;;  %vm1832_vm7 = vcmask (!%p238_p2), 793600   ;;  %vm2082_vm8 = vcmask (!%p238_p2), 785408   ;;  %vm2324_vm9 = vcmask (!%p238_p2), 777216  }
   0x9   : > { %s2842_s13 = smov (!%p238_p2), 96   ;;  %s2843_s14 = smov (!%p238_p2), 95   ;;  %v334_v16 = vsub.s32 (!%p238_p2), 0, %v2974_v14  ;;  %v338_v23 = vsub.s32 (!%p238_p2), 1, %v2974_v14  ;;  %v342_v24 = vsub.s32 (!%p238_p2), 2, %v2974_v14  ;;  %v346_v26 = vsub.s32 (!%p238_p2), 3, %v2974_v14 }
   0xa   : > { %v350_v58 = vsub.s32 (!%p238_p2), 4, %v2974_v14  ;;  %v354_v59 = vsub.s32 (!%p238_p2), 5, %v2974_v14 }
   0xb   : > { %v2991_v31 = vrot.slane (!%p238_p2), %v2980_v20, %v334_v16  ;;  %v2996_v39 = vrot.slane (!%p238_p2), %v2980_v20, %v338_v23  ;;  %v3001_v40 = vrot.slane (!%p238_p2), %v2980_v20, %v342_v24  ;;  %v3009_v43 = vrot.slane (!%p238_p2), %v2980_v20, %v346_v26 }
   0xd   : > { %s3402_s25 = smov (!%p269_p3, %s2675_s25), 1 }
   0xe   : > { %s2766_s26 = sshll.u32 %s3402_s25, 6  ;;  %s2767_s22 = sshll.u32 %s3402_s25, 5 }
   0xf   : > { %s273_s29 = scalar_lea.vmem %s3393_s0, %s2766_s26  ;;  %s3384_s27 = scalar_lea.vmem %s3400_s7, %s2767_s22 }
  0x10   : > { %v2900_v1 = vld [vmem:[%s273_s29 + $0x20] sm:$0xff]  ;;  %v2902_v2 = vld [vmem:[%s273_s29 + $0x28] sm:$0xff]  ;;  %v2912_v6 = vld [vmem:[%s273_s29 + $0x30] sm:$0xff] }
  0x11   : > { %v2904_v3 = vld [vmem:[%s273_s29] sm:$0xff]  ;;  %v2795_v4 = vpack.i.bf16 %v2902_v2, %v2900_v1  ;;  %v2910_v5 = vld [vmem:[%s273_s29 + $0x8] sm:$0xff]  ;;  %v2914_v7 = vld [vmem:[%s273_s29 + $0x38] sm:$0xff] }
  0x12   : > { %v2785_v8 = vpack.i.bf16 %v2910_v5, %v2904_v3  ;;  %v2918_v9 = vld [vmem:[%s273_s29 + $0x10] sm:$0xff]  ;;  %v2920_v10 = vld [vmem:[%s273_s29 + $0x18] sm:$0xff]  ;;  %v2800_v11 = vpack.i.bf16 %v2914_v7, %v2912_v6 }
  0x13   : > { %2796 = vrot.lane.b32.xlu1 %v2795_v4, %s2836_s30  ;;  %v2790_v12 = vpack.i.bf16 %v2920_v10, %v2918_v9 }
  0x14   : > { %2786 = vrot.lane.b32.xlu0 %v2785_v8, %s2836_s30 }
  0x17   : > { %2801 = vrot.lane.b32.xlu1 %v2800_v11, %s2836_s30 }
  0x18   : > { %2791 = vrot.lane.b32.xlu0 %v2790_v12, %s2836_s30 }
  0x1b   : > { %300 = vrot.lane.b32.xlu1 %v2910_v5, %s2837_s8 }
  0x1c   : > { %298 = vrot.lane.b32.xlu0 %v2904_v3, %s2837_s8 }
  0x1f   : > { %304 = vrot.lane.b32.xlu1 %v2920_v10, %s2837_s8 }
  0x20   : > { %302 = vrot.lane.b32.xlu0 %v2918_v9, %s2837_s8 }
  0x23   : > { %308 = vrot.lane.b32.xlu1 %v2902_v2, %s2837_s8 }
  0x24   : > { %306 = vrot.lane.b32.xlu0 %v2900_v1, %s2837_s8 }
  0x27   : > { %312 = vrot.lane.b32.xlu1 %v2914_v7, %s2837_s8 }
  0x28   : > { %310 = vrot.lane.b32.xlu0 %v2912_v6, %s2837_s8 }
  0x2b   : > { %818 = vrot.lane.b32.xlu1 %v2910_v5, %s2838_s9 }
  0x2c   : > { %816 = vrot.lane.b32.xlu0 %v2904_v3, %s2838_s9 }
  0x2f   : > { %822 = vrot.lane.b32.xlu1 %v2920_v10, %s2838_s9 }
  0x30   : > { %820 = vrot.lane.b32.xlu0 %v2918_v9, %s2838_s9 }
  0x33   : > { %826 = vrot.lane.b32.xlu1 %v2902_v2, %s2838_s9 }
  0x34   : > { %824 = vrot.lane.b32.xlu0 %v2900_v1, %s2838_s9 }
  0x37   : > { %830 = vrot.lane.b32.xlu1 %v2914_v7, %s2838_s9 }
  0x38   : > { %828 = vrot.lane.b32.xlu0 %v2912_v6, %s2838_s9 }
  0x3b   : > { %1109 = vrot.lane.b32.xlu1 %v2910_v5, %s2839_s10 }
  0x3c   : > { %1107 = vrot.lane.b32.xlu0 %v2904_v3, %s2839_s10 }
  0x3f   : > { %1113 = vrot.lane.b32.xlu1 %v2920_v10, %s2839_s10 }
  0x40   : > { %1111 = vrot.lane.b32.xlu0 %v2918_v9, %s2839_s10 }
  0x43   : > { %1117 = vrot.lane.b32.xlu1 %v2902_v2, %s2839_s10 }
  0x44   : > { %1115 = vrot.lane.b32.xlu0 %v2900_v1, %s2839_s10 }
  0x47   : > { %1121 = vrot.lane.b32.xlu1 %v2914_v7, %s2839_s10 }
  0x48   : > { %1119 = vrot.lane.b32.xlu0 %v2912_v6, %s2839_s10 }
  0x4b   : > { %1568 = vrot.lane.b32.xlu1 %v2910_v5, %s2840_s11 }
  0x4c   : > { %1566 = vrot.lane.b32.xlu0 %v2904_v3, %s2840_s11 }
  0x4f   : > { %1572 = vrot.lane.b32.xlu1 %v2920_v10, %s2840_s11 }
  0x50   : > { %1570 = vrot.lane.b32.xlu0 %v2918_v9, %s2840_s11 }
  0x53   : > { %1576 = vrot.lane.b32.xlu1 %v2902_v2, %s2840_s11 }
  0x54   : > { %1574 = vrot.lane.b32.xlu0 %v2900_v1, %s2840_s11 }
  0x57   : > { %1580 = vrot.lane.b32.xlu1 %v2914_v7, %s2840_s11 }
  0x58   : > { %1578 = vrot.lane.b32.xlu0 %v2912_v6, %s2840_s11 }
  0x5b   : > { %1818 = vrot.lane.b32.xlu1 %v2910_v5, %s2841_s12 }
  0x5c   : > { %1816 = vrot.lane.b32.xlu0 %v2904_v3, %s2841_s12 }
  0x5f   : > { %1822 = vrot.lane.b32.xlu1 %v2920_v10, %s2841_s12 }
  0x60   : > { %1820 = vrot.lane.b32.xlu0 %v2918_v9, %s2841_s12 }
  0x63   : > { %1826 = vrot.lane.b32.xlu1 %v2902_v2, %s2841_s12 }
  0x64   : > { %1824 = vrot.lane.b32.xlu0 %v2900_v1, %s2841_s12 }
  0x67   : > { %1830 = vrot.lane.b32.xlu1 %v2914_v7, %s2841_s12 }
  0x68   : > { %1828 = vrot.lane.b32.xlu0 %v2912_v6, %s2841_s12 }
  0x6b   : > { %2811 = vrot.lane.b32.xlu1 %v2790_v12, %s2842_s13 }
  0x6c   : > { %2806 = vrot.lane.b32.xlu0 %v2785_v8, %s2842_s13 }
  0x6f   : > { %2821 = vrot.lane.b32.xlu1 %v2800_v11, %s2842_s13 }
  0x70   : > { %2816 = vrot.lane.b32.xlu0 %v2795_v4, %s2842_s13 }
  0x73   : > { %2310 = vrot.lane.b32.xlu1 %v2910_v5, %s2843_s14 }
  0x74   : > { %2308 = vrot.lane.b32.xlu0 %v2904_v3, %s2843_s14 }
  0x77   : > { %2314 = vrot.lane.b32.xlu1 %v2920_v10, %s2843_s14 }
  0x78   : > { %2312 = vrot.lane.b32.xlu0 %v2918_v9, %s2843_s14 }
  0x7b   : > { %2318 = vrot.lane.b32.xlu1 %v2902_v2, %s2843_s14 }
  0x7c   : > { %2316 = vrot.lane.b32.xlu0 %v2900_v1, %s2843_s14 }
  0x7f   : > { %2322 = vrot.lane.b32.xlu1 %v2914_v7, %s2843_s14 }
  0x80   : > { %2320 = vrot.lane.b32.xlu0 %v2912_v6, %s2843_s14 }
  0x85   : > { %v2797_v15 = vpop.permute.xlu1 %2796 }
  0x86   : > { %v2799_v17 = vunpack.i.h.bf16 %v2797_v15  ;;  %v2798_v18 = vunpack.i.l.bf16 %v2797_v15  ;;  %v2787_v19 = vpop.permute.xlu0 %2786 }
  0x87   : > { %v2789_v21 = vunpack.i.h.bf16 %v2787_v19  ;;  %v2788_v22 = vunpack.i.l.bf16 %v2787_v19  ;;  %v358_v19 = vsub.s32 6, %v2974_v14 }
  0x88   : > { %v410_v25 = vsel %vm405_vm0, %v2798_v18, %v2799_v17 }
  0x89   : > { %v429_v27 = vpack.c.bf16 %v410_v25, %v410_v25  ;;  %v2802_v28 = vpop.permute.xlu1 %2801  ;;  %v406_v29 = vsel %vm405_vm0, %v2788_v22, %v2789_v21  ;;  %v421_v30 = vsel %vm405_vm0, 0.0, %v2788_v22  ;;  %v3051_v25 = vrot.slane %v2980_v20, %v354_v59 }
  0x8a   : > { %v2804_v32 = vunpack.i.h.bf16 %v2802_v28  ;;  %v2803_v33 = vunpack.i.l.bf16 %v2802_v28  ;;  %v2792_v34 = vpop.permute.xlu0 %2791  ;;  %v425_v35 = vpack.c.bf16 %v406_v29, %v406_v29  ;;  %v424_v36 = vpack.c.bf16 %v421_v30, %v421_v30 }
  0x8b   : > { %v2794_v37 = vunpack.i.h.bf16 %v2792_v34  ;;  %v2793_v38 = vunpack.i.l.bf16 %v2792_v34 }
  0x8c   : > { %v412_v41 = vsel %vm405_vm0, %v2803_v33, %v2804_v32  ;;  %2685 = vmatprep.subr.msk.bf16.mxu0 %vm436_vm1, %v425_v35  ;;  %v438_v42 = vsel %vm436_vm1, %v424_v36, 0  ;;  %v411_v44 = vsel %vm405_vm0, %v2799_v17, %v2803_v33  ;;  %v3061_v36 = vrot.slane %v2980_v20, %v358_v19 }
  0x8d   : > { %v431_v45 = vpack.c.bf16 %v412_v41, %v412_v41  ;;  %462 = vmatpush1.bf16.msra.mxu0 %v438_v42  ;;  %v408_v47 = vsel %vm405_vm0, %v2793_v38, %v2794_v37  ;;  %v301_v48 = vpop.permute.xlu1 %300  ;;  %v407_v49 = vsel %vm405_vm0, %v2789_v21, %v2793_v38  ;;  %v409_v50 = vsel %vm405_vm0, %v2794_v37, %v2798_v18  ;;  %v289_v42 = vld [vmem:[%s3397_s4] sm:$0xff] }
  0x8e   : > { %v299_v51 = vpop.permute.xlu0 %298  ;;  %v427_v52 = vpack.c.bf16 %v408_v47, %v408_v47  ;;  %2689 = vmatprep.subr.msk.bf16.mxu0 %vm436_vm1, %v429_v27  ;;  %v426_v53 = vpack.c.bf16 %v407_v49, %v407_v49  ;;  %v428_v54 = vpack.c.bf16 %v409_v50, %v409_v50  ;;  %v430_v55 = vpack.c.bf16 %v411_v44, %v411_v44 }
  0x8f   : > { %v330_v56 = vsel %vm314_vm2, 0.0, %v299_v51  ;;  %v315_v57 = vsel %vm314_vm2, %v299_v51, %v301_v48  ;;  %v3040_v18 = vrot.slane %v2980_v20, %v350_v58  ;;  %v362_v27 = vsub.s32 7, %v2974_v14 }
  0x90   : > { %v372_v60 = vmul.f32 %v2991_v31, %v330_v56  ;;  %2686 = vmatmul.mubr.msk.bf16.vlgmr.msra.gmra.mrb[0].mxu0 %vm432_vm3, %v3015_v46  ;;  %2687 = vmatprep.subr.msk.bf16.mxu1 %vm436_vm1, %v427_v52  ;;  %v373_v61 = vmul.f32 %v2996_v39, %v315_v57  ;;  %v444_v62 = vsel %vm436_vm1, %v426_v53, 0  ;;  %v450_v63 = vsel %vm436_vm1, %v428_v54, 0 }
  0x91   : > { %503 = vmatpush1.bf16.msra.mxu1 %v444_v62  ;;  %544 = vmatpush1.bf16.msra.mxu0 %v450_v63  ;;  %v305_v4 = vpop.permute.xlu1 %304  ;;  %v456_v13 = vsel %vm436_vm1, %v430_v55, 0  ;;  %v3071_v41 = vrot.slane %v2980_v20, %v362_v27  ;;  %v3082_v20 = vrot.slane %v289_v42, %v334_v16  ;;  %v3091_v54 = vrot.slane %v289_v42, %v338_v23  ;;  %v380_v16 = vld [vmem:[%s3398_s5] sm:$0x3] }
  0x92   : > { %v381_v8 = vpack.c.bf16 %v372_v60, %v372_v60  ;;  %v382_v11 = vpack.c.bf16 %v373_v61, %v373_v61  ;;  %v303_v12 = vpop.permute.xlu0 %302  ;;  %2691 = vmatprep.subr.msk.bf16.mxu1 %vm436_vm1, %v431_v45  ;;  %575 = vmatprep.mubr.bf16.mxu0 %v2835_v0  ;;  %v3102_v23 = vrot.slane %v289_v42, %v342_v24 }
  0x93   : > { %v316_v15 = vsel %vm314_vm2, %v301_v48, %v303_v12  ;;  %v317_v17 = vsel %vm314_vm2, %v303_v12, %v305_v4 }
  0x94   : > { %v374_v21 = vmul.f32 %v3001_v40, %v316_v15  ;;  %2688 = vmatmul.mubr.msk.bf16.vlgmr.msra.gmra.mrb[0].mxu1 %vm432_vm3, %v3015_v46  ;;  %v375_v22 = vmul.f32 %v3009_v43, %v317_v17  ;;  %2693 = vmatprep.subr.msk.bf16.mxu0 %vm436_vm1, %v382_v11  ;;  %v629_v33 = vsel %vm436_vm1, %v381_v8, 0  ;;  %v3110_v8 = vrot.slane %v289_v42, %v346_v26 }
  0x95   : > { %585 = vmatpush1.bf16.msra.mxu1 %v456_v13  ;;  %v309_v28 = vpop.permute.xlu1 %308  ;;  %616 = vmatprep.mubr.bf16.mxu1 %v2835_v0 }
  0x96   : > { %v383_v29 = vpack.c.bf16 %v374_v21, %v374_v21  ;;  %v384_v30 = vpack.c.bf16 %v375_v22, %v375_v22  ;;  %v307_v32 = vpop.permute.xlu0 %306  ;;  %v3118_v22 = vrot.slane %v289_v42, %v350_v58 }
  0x97   : > { %v318_v34 = vsel %vm314_vm2, %v305_v4, %v307_v32  ;;  %v319_v35 = vsel %vm314_vm2, %v307_v32, %v309_v28 }
  0x98   : > { %v376_v37 = vmul.f32 %v3040_v18, %v318_v34  ;;  %2690 = vmatmul.mubr.msk.bf16.vlgmr.msra.gmra.mrb[4].mxu0 %vm432_vm3, %v3015_v46  ;;  %v377_v38 = vmul.f32 %v3051_v25, %v319_v35  ;;  %2695 = vmatprep.subr.msk.bf16.mxu1 %vm436_vm1, %v384_v30  ;;  %v635_v49 = vsel %vm436_vm1, %v383_v29, 0  ;;  %v3126_v29 = vrot.slane %v289_v42, %v354_v59 }
  0x99   : > { %653 = vmatpush1.bf16.msra.mxu0 %v629_v33  ;;  %v313_v44 = vpop.permute.xlu1 %312  ;;  %684 = vmatprep.mubr.bf16.mxu0 %v2835_v0 }
  0x9a   : > { %v385_v45 = vpack.c.bf16 %v376_v37, %v376_v37  ;;  %v386_v47 = vpack.c.bf16 %v377_v38, %v377_v38  ;;  %v311_v48 = vpop.permute.xlu0 %310  ;;  %v3134_v38 = vrot.slane %v289_v42, %v358_v19 }
  0x9b   : > { %v320_v50 = vsel %vm314_vm2, %v309_v28, %v311_v48  ;;  %v321_v51 = vsel %vm314_vm2, %v311_v48, %v313_v44 }
  0x9c   : > { %v378_v52 = vmul.f32 %v3061_v36, %v320_v50  ;;  %2692 = vmatmul.mubr.msk.bf16.vlgmr.msra.gmra.mrb[4].mxu1 %vm432_vm3, %v3015_v46  ;;  %v379_v53 = vmul.f32 %v3071_v41, %v321_v51  ;;  %2697 = vmatprep.subr.msk.bf16.mxu0 %vm436_vm1, %v386_v47  ;;  %v641_v60 = vsel %vm436_vm1, %v385_v45, 0  ;;  %v3142_v45 = vrot.slane %v289_v42, %v362_v27  ;;  %v2701_v27 = vld [vmem:[%s3398_s5 + $0x4] sm:$0x3] }
  0x9d   : > { %694 = vmatpush1.bf16.msra.mxu1 %v635_v49  ;;  %v819_v55 = vpop.permute.xlu1 %818  ;;  %725 = vmatprep.mubr.bf16.mxu1 %v2835_v0 }
  0x9e   : > { %v387_v56 = vpack.c.bf16 %v378_v52, %v378_v52  ;;  %v388_v57 = vpack.c.bf16 %v379_v53, %v379_v53  ;;  %v817_v46 = vpop.permute.xlu0 %816 }
  0x9f   : > { %v848_v61 = vsel %vm832_vm4, 0.0, %v817_v46  ;;  %v833_v62 = vsel %vm832_vm4, %v817_v46, %v819_v55 }
  0xa0   : > { %v890_v63 = vmul.f32 %v3082_v20, %v848_v61  ;;  %2694 = vmatmul.mubr.msk.bf16.vlgmr.msra.gmra.mrb[8].mxu0 %vm432_vm3, %v380_v16  ;;  %v891_v4 = vmul.f32 %v3091_v54, %v833_v62  ;;  %2699 = vmatprep.subr.msk.bf16.mxu1 %vm436_vm1, %v388_v57  ;;  %v647_v15 = vsel %vm436_vm1, %v387_v56, 0 }
  0xa1   : > { %735 = vmatpush1.bf16.msra.mxu0 %v641_v60  ;;  %v823_v11 = vpop.permute.xlu1 %822  ;;  %766 = vmatprep.mubr.bf16.mxu0 %v2835_v0 }
  0xa2   : > { %v900_v12 = vpack.c.bf16 %v890_v63, %v890_v63  ;;  %v901_v13 = vpack.c.bf16 %v891_v4, %v891_v4  ;;  %v821_v24 = vpop.permute.xlu0 %820 }
  0xa3   : > { %v834_v17 = vsel %vm832_vm4, %v819_v55, %v821_v24  ;;  %v835_v21 = vsel %vm832_vm4, %v821_v24, %v823_v11 }
  0xa4   : > { %v892_v26 = vmul.f32 %v3102_v23, %v834_v17  ;;  %2696 = vmatmul.mubr.msk.bf16.vlgmr.msra.gmra.mrb[8].mxu1 %vm432_vm3, %v380_v16  ;;  %v893_v28 = vmul.f32 %v3110_v8, %v835_v21  ;;  %2702 = vmatprep.subr.msk.bf16.mxu0 %vm436_vm1, %v901_v13  ;;  %v912_v34 = vsel %vm436_vm1, %v900_v12, 0 }
  0xa5   : > { %776 = vmatpush1.bf16.msra.mxu1 %v647_v15  ;;  %v827_v30 = vpop.permute.xlu1 %826  ;;  %807 = vmatprep.mubr.bf16.mxu1 %v2835_v0 }
  0xa6   : > { %v902_v32 = vpack.c.bf16 %v892_v26, %v892_v26  ;;  %v903_v33 = vpack.c.bf16 %v893_v28, %v893_v28  ;;  %v825_v58 = vpop.permute.xlu0 %824 }
  0xa7   : > { %v836_v35 = vsel %vm832_vm4, %v823_v11, %v825_v58  ;;  %v837_v37 = vsel %vm832_vm4, %v825_v58, %v827_v30 }
  0xa8   : > { %v894_v59 = vmul.f32 %v3118_v22, %v836_v35  ;;  %2698 = vmatmul.mubr.msk.bf16.vlgmr.msra.gmra.mrb[12].mxu0 %vm432_vm3, %v380_v16  ;;  %v895_v44 = vmul.f32 %v3126_v29, %v837_v37  ;;  %2704 = vmatprep.subr.msk.bf16.mxu1 %vm436_vm1, %v903_v33  ;;  %v918_v50 = vsel %vm436_vm1, %v902_v32, 0 }
  0xa9   : > { %936 = vmatpush1.bf16.msra.mxu0 %v912_v34  ;;  %v831_v47 = vpop.permute.xlu1 %830  ;;  %967 = vmatprep.mubr.bf16.mxu0 %v2835_v0 }
  0xaa   : > { %v904_v48 = vpack.c.bf16 %v894_v59, %v894_v59  ;;  %v905_v49 = vpack.c.bf16 %v895_v44, %v895_v44  ;;  %v829_v19 = vpop.permute.xlu0 %828 }
  0xab   : > { %v838_v51 = vsel %vm832_vm4, %v827_v30, %v829_v19  ;;  %v839_v52 = vsel %vm832_vm4, %v829_v19, %v831_v47 }
  0xac   : > { %v896_v53 = vmul.f32 %v3134_v38, %v838_v51  ;;  %2700 = vmatmul.mubr.msk.bf16.vlgmr.msra.gmra.mrb[12].mxu1 %vm432_vm3, %v380_v16  ;;  %v897_v14 = vmul.f32 %v3142_v45, %v839_v52  ;;  %2706 = vmatprep.subr.msk.bf16.mxu0 %vm436_vm1, %v905_v49  ;;  %v924_v46 = vsel %vm436_vm1, %v904_v48, 0 }
  0xad   : > { %977 = vmatpush1.bf16.msra.mxu1 %v918_v50  ;;  %v1110_v42 = vpop.permute.xlu1 %1109  ;;  %1008 = vmatprep.mubr.bf16.mxu1 %v2835_v0 }
  0xae   : > { %v906_v55 = vpack.c.bf16 %v896_v53, %v896_v53  ;;  %v907_v56 = vpack.c.bf16 %v897_v14, %v897_v14  ;;  %v1108_v57 = vpop.permute.xlu0 %1107  ;;  %v2710_v53 = vld [vmem:[%s3398_s5 + $0x6] sm:$0x3] }
  0xaf   : > { %v1139_v16 = vsel %vm1123_vm5, 0.0, %v1108_v57  ;;  %v1124_v60 = vsel %vm1123_vm5, %v1108_v57, %v1110_v42  ;;  %v1360_v57 = vpack.c.bf16 %v2910_v5, %v2910_v5 }
  0xb0   : > { %v1140_v61 = vmul.f32 %v1139_v16, %v2991_v31  ;;  %2703 = vmatmul.mubr.msk.bf16.vlgmr.msra.gmra.mrb[16].mxu0 %vm432_vm3, %v2701_v27  ;;  %v1141_v62 = vmul.f32 %v1124_v60, %v2996_v39  ;;  %2708 = vmatprep.subr.msk.bf16.mxu1 %vm436_vm1, %v907_v56  ;;  %v930_v13 = vsel %vm436_vm1, %v906_v55, 0  ;;  %v1362_v60 = vpack.c.bf16 %v2920_v10, %v2920_v10 }
  0xb1   : > { %1018 = vmatpush1.bf16.msra.mxu0 %v924_v46  ;;  %v1114_v63 = vpop.permute.xlu1 %1113  ;;  %1049 = vmatprep.mubr.bf16.mxu0 %v2835_v0  ;;  %v1364_v10 = vpack.c.bf16 %v2902_v2, %v2902_v2  ;;  %v1366_v2 = vpack.c.bf16 %v2914_v7, %v2914_v7 }
  0xb2   : > { %v1150_v4 = vpack.c.bf16 %v1140_v61, %v1140_v61  ;;  %v1151_v11 = vpack.c.bf16 %v1141_v62, %v1141_v62  ;;  %v1112_v12 = vpop.permute.xlu0 %1111  ;;  %v1359_v61 = vpack.c.bf16 %v2904_v3, %v2904_v3 }
  0xb3   : > { %v1125_v24 = vsel %vm1123_vm5, %v1110_v42, %v1112_v12  ;;  %v1126_v15 = vsel %vm1123_vm5, %v1112_v12, %v1114_v63  ;;  %v1363_v12 = vpack.c.bf16 %v2900_v1, %v2900_v1  ;;  %v2719_v1 = vld [vmem:[%s3398_s5 + $0x8] sm:$0x3] }
  0xb4   : > { %v1142_v17 = vmul.f32 %v1125_v24, %v3001_v40  ;;  %2705 = vmatmul.mubr.msk.bf16.vlgmr.msra.gmra.mrb[16].mxu1 %vm432_vm3, %v2701_v27  ;;  %v1143_v21 = vmul.f32 %v1126_v15, %v3009_v43  ;;  %2711 = vmatprep.subr.msk.bf16.mxu0 %vm436_vm1, %v1151_v11  ;;  %v1162_v33 = vsel %vm436_vm1, %v1150_v4, 0  ;;  %v1361_v4 = vpack.c.bf16 %v2918_v9, %v2918_v9 }
  0xb5   : > { %1059 = vmatpush1.bf16.msra.mxu1 %v930_v13  ;;  %v1118_v26 = vpop.permute.xlu1 %1117  ;;  %1090 = vmatprep.mubr.bf16.mxu1 %v2835_v0 }
  0xb6   : > { %v1152_v28 = vpack.c.bf16 %v1142_v17, %v1142_v17  ;;  %v1153_v30 = vpack.c.bf16 %v1143_v21, %v1143_v21  ;;  %v1116_v32 = vpop.permute.xlu0 %1115  ;;  %v1377_v24 = vsel %vm436_vm1, %v1361_v4, 0 }
  0xb7   : > { %v1127_v58 = vsel %vm1123_vm5, %v1114_v63, %v1116_v32  ;;  %v1128_v34 = vsel %vm1123_vm5, %v1116_v32, %v1118_v26  ;;  %v1371_v63 = vsel %vm436_vm1, %v1359_v61, 0 }
  0xb8   : > { %v1144_v35 = vmul.f32 %v1127_v58, %v3040_v18  ;;  %2707 = vmatmul.mubr.msk.bf16.vlgmr.msra.gmra.mrb[20].mxu0 %vm432_vm3, %v2701_v27  ;;  %v1145_v37 = vmul.f32 %v1128_v34, %v3051_v25  ;;  %2713 = vmatprep.subr.msk.bf16.mxu1 %vm436_vm1, %v1153_v30  ;;  %v1168_v49 = vsel %vm436_vm1, %v1152_v28, 0  ;;  %v1365_v28 = vpack.c.bf16 %v2912_v6, %v2912_v6 }
  0xb9   : > { %1186 = vmatpush1.bf16.msra.mxu0 %v1162_v33  ;;  %v1122_v59 = vpop.permute.xlu1 %1121  ;;  %1217 = vmatprep.mubr.bf16.mxu0 %v2835_v0 }
  0xba   : > { %v1154_v44 = vpack.c.bf16 %v1144_v35, %v1144_v35  ;;  %v1155_v47 = vpack.c.bf16 %v1145_v37, %v1145_v37  ;;  %v1120_v48 = vpop.permute.xlu0 %1119  ;;  %v1389_v6 = vsel %vm436_vm1, %v1365_v28, 0 }
  0xbb   : > { %v1129_v19 = vsel %vm1123_vm5, %v1118_v26, %v1120_v48  ;;  %v1130_v50 = vsel %vm1123_vm5, %v1120_v48, %v1122_v59  ;;  %v1383_v26 = vsel %vm436_vm1, %v1363_v12, 0 }
  0xbc   : > { %v1146_v51 = vmul.f32 %v1129_v19, %v3061_v36  ;;  %2709 = vmatmul.mubr.msk.bf16.vlgmr.msra.gmra.mrb[20].mxu1 %vm432_vm3, %v2701_v27  ;;  %v1147_v52 = vmul.f32 %v1130_v50, %v3071_v41  ;;  %2715 = vmatprep.subr.msk.bf16.mxu0 %vm436_vm1, %v1155_v47  ;;  %v1174_v56 = vsel %vm436_vm1, %v1154_v44, 0 }
  0xbd   : > { %1227 = vmatpush1.bf16.msra.mxu1 %v1168_v49  ;;  %1258 = vmatprep.mubr.bf16.mxu1 %v2835_v0  ;;  %v1569_v14 = vpop.permute.xlu1 %1568 }
  0xbe   : > { %v1156_v42 = vpack.c.bf16 %v1146_v51, %v1146_v51  ;;  %v1157_v55 = vpack.c.bf16 %v1147_v52, %v1147_v52  ;;  %v1567_v27 = vpop.permute.xlu0 %1566 }
  0xbf   : > { %v1583_v17 = vsel %vm1582_vm6, %v1567_v27, %v1569_v14 }
  0xc0   : > { %2712 = vmatmul.mubr.msk.bf16.vlgmr.msra.gmra.mrb[24].mxu0 %vm432_vm3, %v2710_v53  ;;  %2717 = vmatprep.subr.msk.bf16.mxu1 %vm436_vm1, %v1157_v55  ;;  %v1180_v16 = vsel %vm436_vm1, %v1156_v42, 0  ;;  %v1599_v7 = vmul.f32 %v1583_v17, %v3082_v20 }
  0xc1   : > { %1268 = vmatpush1.bf16.msra.mxu0 %v1174_v56  ;;  %1299 = vmatprep.mubr.bf16.mxu0 %v2835_v0  ;;  %v1573_v46 = vpop.permute.xlu1 %1572 }
  0xc2   : > { %2720 = vmatprep.subr.msk.bf16.mxu0 %vm436_vm1, %v1360_v57  ;;  %v1571_v5 = vpop.permute.xlu0 %1570  ;;  %v1609_v59 = vpack.c.bf16 %v1599_v7, %v1599_v7  ;;  %v2572_v7 = vld [vmem:[%s3394_s1] sm:$0x7] }
  0xc3   : > { %v1584_v3 = vsel %vm1582_vm6, %v1569_v14, %v1571_v5  ;;  %v1585_v32 = vsel %vm1582_vm6, %v1571_v5, %v1573_v46  ;;  %2575 = vperm.xlu1 %2826, %v2572_v7  }
  0xc4   : > { %2714 = vmatmul.mubr.msk.bf16.vlgmr.msra.gmra.mrb[24].mxu1 %vm432_vm3, %v2710_v53  ;;  %v1600_v15 = vmul.f32 %v1584_v3, %v3091_v54  ;;  %v1601_v37 = vmul.f32 %v1585_v32, %v3102_v23 }
  0xc5   : > { %1309 = vmatpush1.bf16.msra.mxu1 %v1180_v16  ;;  %1340 = vmatprep.mubr.bf16.mxu1 %v2835_v0  ;;  %v1577_v62 = vpop.permute.xlu1 %1576 }
  0xc6   : > { %2722 = vmatprep.subr.msk.bf16.mxu1 %vm436_vm1, %v1362_v60  ;;  %v1575_v11 = vpop.permute.xlu0 %1574  ;;  %v1610_v30 = vpack.c.bf16 %v1600_v15, %v1600_v15  ;;  %v1611_v51 = vpack.c.bf16 %v1601_v37, %v1601_v37 }
  0xc7   : > { %v1586_v21 = vsel %vm1582_vm6, %v1573_v46, %v1575_v11  ;;  %v1587_v47 = vsel %vm1582_vm6, %v1575_v11, %v1577_v62  ;;  %v2728_v11 = vld [vmem:[%s3398_s5 + $0xa] sm:$0x3] }
  0xc8   : > { %2716 = vmatmul.mubr.msk.bf16.vlgmr.msra.gmra.mrb[28].mxu0 %vm432_vm3, %v2710_v53  ;;  %v1602_v33 = vmul.f32 %v1586_v21, %v3110_v8  ;;  %v1603_v52 = vmul.f32 %v1587_v47, %v3118_v22  ;;  %v1627_v46 = vsel %vm436_vm1, %v1611_v51, 0 }
  0xc9   : > { %1395 = vmatpush1.bf16.msra.mxu0 %v1371_v63  ;;  %1426 = vmatprep.mubr.bf16.mxu0 %v2835_v0  ;;  %v1581_v13 = vpop.permute.xlu1 %1580 }
  0xca   : > { %2724 = vmatprep.subr.msk.bf16.mxu0 %vm436_vm1, %v1364_v10  ;;  %v1579_v9 = vpop.permute.xlu0 %1578  ;;  %v1612_v44 = vpack.c.bf16 %v1602_v33, %v1602_v33  ;;  %v1598_v19 = vsel %vm1582_vm6, %v1581_v13, 0.0  ;;  %v1613_v27 = vpack.c.bf16 %v1603_v52, %v1603_v52 }
  0xcb   : > { %v1588_v35 = vsel %vm1582_vm6, %v1577_v62, %v1579_v9  ;;  %v1606_v42 = vmul.f32 %v1598_v19, %v3142_v45  ;;  %v1589_v56 = vsel %vm1582_vm6, %v1579_v9, %v1581_v13 }
  0xcc   : > { %2718 = vmatmul.mubr.msk.bf16.vlgmr.msra.gmra.mrb[28].mxu1 %vm432_vm3, %v2710_v53  ;;  %v1604_v48 = vmul.f32 %v1588_v35, %v3126_v29  ;;  %v1621_v53 = vsel %vm436_vm1, %v1609_v59, 0  ;;  %v1605_v16 = vmul.f32 %v1589_v56, %v3134_v38  ;;  %v1633_v12 = vsel %vm436_vm1, %v1613_v27, 0 }
  0xcd   : > { %1436 = vmatpush1.bf16.msra.mxu1 %v1377_v24  ;;  %1467 = vmatprep.mubr.bf16.mxu1 %v2835_v0  ;;  %v1819_v34 = vpop.permute.xlu1 %1818  ;;  %v1616_v60 = vpack.c.bf16 %v1606_v42, %v1606_v42 }
  0xce   : > { %2726 = vmatprep.subr.msk.bf16.mxu1 %vm436_vm1, %v1366_v2  ;;  %v1817_v58 = vpop.permute.xlu0 %1816  ;;  %v1614_v14 = vpack.c.bf16 %v1604_v48, %v1604_v48  ;;  %v1615_v3 = vpack.c.bf16 %v1605_v16, %v1605_v16 }
  0xcf   : > { %v1833_v61 = vsel %vm1832_vm7, %v1817_v58, %v1819_v34 }
  0xd0   : > { %2721 = vmatmul.mubr.msk.bf16.vlgmr.msra.gmra.mrb[32].mxu0 %vm432_vm3, %v2719_v1  ;;  %v1849_v10 = vmul.f32 %v1833_v61, %v2991_v31  ;;  %v1639_v21 = vsel %vm436_vm1, %v1615_v3, 0 }
  0xd1   : > { %1477 = vmatpush1.bf16.msra.mxu0 %v1383_v26  ;;  %1508 = vmatprep.mubr.bf16.mxu0 %v2835_v0  ;;  %v1823_v50 = vpop.permute.xlu1 %1822 }
  0xd2   : > { %2729 = vmatprep.subr.msk.bf16.mxu0 %vm436_vm1, %v1610_v30  ;;  %v1821_v49 = vpop.permute.xlu0 %1820  ;;  %v1859_v9 = vpack.c.bf16 %v1849_v10, %v1849_v10 }
  0xd3   : > { %v1834_v57 = vsel %vm1832_vm7, %v1819_v34, %v1821_v49  ;;  %v1835_v2 = vsel %vm1832_vm7, %v1821_v49, %v1823_v50 }
  0xd4   : > { %2723 = vmatmul.mubr.msk.bf16.vlgmr.msra.gmra.mrb[32].mxu1 %vm432_vm3, %v2719_v1  ;;  %v1850_v5 = vmul.f32 %v1834_v57, %v2996_v39  ;;  %v1851_v17 = vmul.f32 %v1835_v2, %v3001_v40  ;;  %v2558_v40 = vld [vmem:[%s3399_s6] sm:$0x7] }
  0xd5   : > { %1518 = vmatpush1.bf16.msra.mxu1 %v1389_v6  ;;  %1549 = vmatprep.mubr.bf16.mxu1 %v2835_v0  ;;  %v1827_v62 = vpop.permute.xlu1 %1826 }
  0xd6   : > { %2731 = vmatprep.subr.msk.bf16.mxu1 %vm436_vm1, %v1612_v44  ;;  %v1825_v55 = vpop.permute.xlu0 %1824  ;;  %v1860_v13 = vpack.c.bf16 %v1850_v5, %v1850_v5  ;;  %v1861_v33 = vpack.c.bf16 %v1851_v17, %v1851_v17  ;;  %2561 = vperm.xlu0 %2825, %v2558_v40  }
  0xd7   : > { %v1836_v4 = vsel %vm1832_vm7, %v1823_v50, %v1825_v55  ;;  %v1837_v26 = vsel %vm1832_vm7, %v1825_v55, %v1827_v62 }
  0xd8   : > { %2725 = vmatmul.mubr.msk.bf16.vlgmr.msra.gmra.mrb[36].mxu0 %vm432_vm3, %v2719_v1  ;;  %v1852_v39 = vmul.f32 %v1836_v4, %v3009_v43  ;;  %v1853_v58 = vmul.f32 %v1837_v26, %v3040_v18  ;;  %v2586_v18 = vld [vmem:[%s3395_s2] sm:$0x7]  ;;  %v1877_v47 = vsel %vm436_vm1, %v1861_v33, 0 }
  0xd9   : > { %1645 = vmatpush1.bf16.msra.mxu0 %v1621_v53  ;;  %1676 = vmatprep.mubr.bf16.mxu0 %v2835_v0  ;;  %v1831_v24 = vpop.permute.xlu1 %1830 }
  0xda   : > { %2733 = vmatprep.subr.msk.bf16.mxu0 %vm436_vm1, %v1614_v14  ;;  %v1829_v63 = vpop.permute.xlu0 %1828  ;;  %v1848_v28 = vsel %vm1832_vm7, %v1831_v24, 0.0  ;;  %v1863_v44 = vpack.c.bf16 %v1853_v58, %v1853_v58  ;;  %2589 = vperm.xlu1 %2826, %v2586_v18   ;;  %v2737_v14 = vld [vmem:[%s3398_s5 + $0xc] sm:$0x3] }
  0xdb   : > { %v1838_v31 = vsel %vm1832_vm7, %v1827_v62, %v1829_v63  ;;  %v1856_v35 = vmul.f32 %v1848_v28, %v3071_v41  ;;  %v1839_v37 = vsel %vm1832_vm7, %v1829_v63, %v1831_v24 }
  0xdc   : > { %2727 = vmatmul.mubr.msk.bf16.vlgmr.msra.gmra.mrb[36].mxu1 %vm432_vm3, %v2719_v1  ;;  %v1862_v1 = vpack.c.bf16 %v1852_v39, %v1852_v39  ;;  %v1854_v43 = vmul.f32 %v1838_v31, %v3051_v25  ;;  %v1871_v25 = vsel %vm436_vm1, %v1859_v9, 0  ;;  %v1855_v41 = vmul.f32 %v1839_v37, %v3061_v36 }
  0xdd   : > { %1686 = vmatpush1.bf16.msra.mxu1 %v1627_v46  ;;  %1717 = vmatprep.mubr.bf16.mxu1 %v2835_v0  ;;  %v2812_v30 = vpop.permute.xlu1 %2811  ;;  %v1866_v48 = vpack.c.bf16 %v1856_v35, %v1856_v35  ;;  %v1883_v42 = vsel %vm436_vm1, %v1863_v44, 0 }
  0xde   : > { %2735 = vmatprep.subr.msk.bf16.mxu1 %vm436_vm1, %v1616_v60  ;;  %v2807_v15 = vpop.permute.xlu0 %2806  ;;  %v1864_v34 = vpack.c.bf16 %v1854_v43, %v1854_v43  ;;  %v2813_v6 = vunpack.i.l.bf16 %v2812_v30  ;;  %v2814_v19 = vunpack.i.h.bf16 %v2812_v30  ;;  %v1865_v36 = vpack.c.bf16 %v1855_v41, %v1855_v41 }
  0xdf   : > { %v2809_v59 = vunpack.i.h.bf16 %v2807_v15  ;;  %v2808_v51 = vunpack.i.l.bf16 %v2807_v15 }
  0xe0   : > { %2730 = vmatmul.mubr.msk.bf16.vlgmr.msra.gmra.mrb[40].mxu0 %vm432_vm3, %v2728_v11  ;;  %v1889_v61 = vsel %vm436_vm1, %v1865_v36, 0  ;;  %v2085_v63 = vsel %vm2082_vm8, %v2813_v6, %v2814_v19 }
  0xe1   : > { %1727 = vmatpush1.bf16.msra.mxu0 %v1633_v12  ;;  %1758 = vmatprep.mubr.bf16.mxu0 %v2835_v0  ;;  %v2084_v50 = vsel %vm2082_vm8, %v2809_v59, %v2813_v6  ;;  %v2822_v53 = vpop.permute.xlu1 %2821  ;;  %v2083_v46 = vsel %vm2082_vm8, %v2808_v51, %v2809_v59 }
  0xe2   : > { %2738 = vmatprep.subr.msk.bf16.mxu0 %vm436_vm1, %v1860_v13  ;;  %v3283_v32 = vpop.permute.xlu0 %2816  ;;  %v2102_v55 = vpack.c.bf16 %v2084_v50, %v2084_v50  ;;  %v2823_v56 = vunpack.i.l.bf16 %v2822_v53  ;;  %v2101_v62 = vpack.c.bf16 %v2083_v46, %v2083_v46  ;;  %v2824_v4 = vunpack.i.h.bf16 %v2822_v53 }
  0xe3   : > { %v2818_v52 = vunpack.i.l.bf16 %v3283_v32  ;;  %v2819_v57 = vunpack.i.h.bf16 %v3283_v32  ;;  %v2746_v32 = vld [vmem:[%s3398_s5 + $0xe] sm:$0x3] }
  0xe4   : > { %2732 = vmatmul.mubr.msk.bf16.vlgmr.msra.gmra.mrb[40].mxu1 %vm432_vm3, %v2728_v11  ;;  %v2113_v12 = vsel %vm436_vm1, %v2101_v62, 0  ;;  %v2098_v24 = vsel %vm2082_vm8, %v2824_v4, 0.0  ;;  %v2089_v26 = vsel %vm2082_vm8, %v2823_v56, %v2824_v4 }
  0xe5   : > { %1768 = vmatpush1.bf16.msra.mxu1 %v1639_v21  ;;  %1799 = vmatprep.mubr.bf16.mxu1 %v2835_v0  ;;  %v2086_v27 = vsel %vm2082_vm8, %v2814_v19, %v2818_v52  ;;  %v2311_v16 = vpop.permute.xlu1 %2310  ;;  %v2088_v10 = vsel %vm2082_vm8, %v2819_v57, %v2823_v56  ;;  %v2087_v15 = vsel %vm2082_vm8, %v2818_v52, %v2819_v57 }
  0xe6   : > { %2740 = vmatprep.subr.msk.bf16.mxu1 %vm436_vm1, %v1862_v1  ;;  %v2309_v49 = vpop.permute.xlu0 %2308  ;;  %v2104_v5 = vpack.c.bf16 %v2086_v27, %v2086_v27  ;;  %v2106_v3 = vpack.c.bf16 %v2088_v10, %v2088_v10  ;;  %v2108_v9 = vpack.c.bf16 %v2098_v24, %v2098_v24  ;;  %v2105_v21 = vpack.c.bf16 %v2087_v15, %v2087_v15 }
  0xe7   : > { %v2325_v17 = vsel %vm2324_vm9, %v2309_v49, %v2311_v16  ;;  %v2107_v33 = vpack.c.bf16 %v2089_v26, %v2089_v26 }
  0xe8   : > { %2734 = vmatmul.mubr.msk.bf16.vlgmr.msra.gmra.mrb[44].mxu0 %vm432_vm3, %v2728_v11  ;;  %v2341_v30 = vmul.f32 %v2325_v17, %v3082_v20  ;;  %v2125_v40 = vsel %vm436_vm1, %v2105_v21, 0 }
  0xe9   : > { %1895 = vmatpush1.bf16.msra.mxu0 %v1871_v25  ;;  %1926 = vmatprep.mubr.bf16.mxu0 %v2835_v0  ;;  %v2315_v13 = vpop.permute.xlu1 %2314  ;;  %v2131_v59 = vsel %vm436_vm1, %v2107_v33, 0 }
  0xea   : > { %2742 = vmatprep.subr.msk.bf16.mxu0 %vm436_vm1, %v1864_v34  ;;  %v2313_v60 = vpop.permute.xlu0 %2312  ;;  %v2351_v35 = vpack.c.bf16 %v2341_v30, %v2341_v30 }
  0xeb   : > { %v2326_v2 = vsel %vm2324_vm9, %v2311_v16, %v2313_v60  ;;  %v2327_v58 = vsel %vm2324_vm9, %v2313_v60, %v2315_v13 }
  0xec   : > { %2736 = vmatmul.mubr.msk.bf16.vlgmr.msra.gmra.mrb[44].mxu1 %vm432_vm3, %v2728_v11  ;;  %v2103_v11 = vpack.c.bf16 %v2085_v63, %v2085_v63  ;;  %v2342_v1 = vmul.f32 %v2326_v2, %v3091_v54  ;;  %v2343_v37 = vmul.f32 %v2327_v58, %v3102_v23 }
  0xed   : > { %1936 = vmatpush1.bf16.msra.mxu1 %v1877_v47  ;;  %1967 = vmatprep.mubr.bf16.mxu1 %v2835_v0  ;;  %v2319_v28 = vpop.permute.xlu1 %2318  ;;  %v2363_v47 = vsel %vm436_vm1, %v2351_v35, 0 }
  0xee   : > { %2744 = vmatprep.subr.msk.bf16.mxu1 %vm436_vm1, %v1866_v48  ;;  %v2317_v39 = vpop.permute.xlu0 %2316  ;;  %v2119_v31 = vsel %vm436_vm1, %v2103_v11, 0  ;;  %v2352_v54 = vpack.c.bf16 %v2342_v1, %v2342_v1  ;;  %v2353_v41 = vpack.c.bf16 %v2343_v37, %v2343_v37 }
  0xef   : > { %v2328_v43 = vsel %vm2324_vm9, %v2315_v13, %v2317_v39  ;;  %v2329_v18 = vsel %vm2324_vm9, %v2317_v39, %v2319_v28 }
  0xf0   : > { %2739 = vmatmul.mubr.msk.bf16.vlgmr.msra.gmra.mrb[48].mxu0 %vm432_vm3, %v2737_v14  ;;  %v2344_v25 = vmul.f32 %v2328_v43, %v3110_v8  ;;  %v2345_v23 = vmul.f32 %v2329_v18, %v3118_v22  ;;  %v2369_v50 = vsel %vm436_vm1, %v2353_v41, 0  ;;  %v2755_v22 = vld [vmem:[%s3398_s5 + $0x10] sm:$0x3] }
  0xf1   : > { %1977 = vmatpush1.bf16.msra.mxu0 %v1883_v42  ;;  %2008 = vmatprep.mubr.bf16.mxu0 %v2835_v0  ;;  %v2323_v20 = vpop.permute.xlu1 %2322 }
  0xf2   : > { %2747 = vmatprep.subr.msk.bf16.mxu0 %vm436_vm1, %v2102_v55  ;;  %v2321_v7 = vpop.permute.xlu0 %2320  ;;  %v2354_v6 = vpack.c.bf16 %v2344_v25, %v2344_v25  ;;  %v2340_v44 = vsel %vm2324_vm9, %v2323_v20, 0.0  ;;  %v2355_v19 = vpack.c.bf16 %v2345_v23, %v2345_v23 }
  0xf3   : > { %v2330_v34 = vsel %vm2324_vm9, %v2319_v28, %v2321_v7  ;;  %v2348_v49 = vmul.f32 %v2340_v44, %v3142_v45 }
  0xf4   : > { %2741 = vmatmul.mubr.msk.bf16.vlgmr.msra.gmra.mrb[48].mxu1 %vm432_vm3, %v2737_v14  ;;  %v2346_v8 = vmul.f32 %v2330_v34, %v3126_v29  ;;  %v2331_v29 = vsel %vm2324_vm9, %v2321_v7, %v2323_v20  ;;  %v2375_v53 = vsel %vm436_vm1, %v2355_v19, 0 }
  0xf5   : > { %2018 = vmatpush1.bf16.msra.mxu1 %v1889_v61  ;;  %2049 = vmatprep.mubr.bf16.mxu1 %v2835_v0  ;;  %v2347_v51 = vmul.f32 %v2331_v29, %v3134_v38  ;;  %v2358_v52 = vpack.c.bf16 %v2348_v49, %v2348_v49 }
  0xf6   : > { %2749 = vmatprep.subr.msk.bf16.mxu1 %vm436_vm1, %v2104_v5  ;;  %v2356_v48 = vpack.c.bf16 %v2346_v8, %v2346_v8 }
  0xf7   : > { %v2357_v45 = vpack.c.bf16 %v2347_v51, %v2347_v51 }
  0xf8   : > { %2743 = vmatmul.mubr.msk.bf16.vlgmr.msra.gmra.mrb[52].mxu0 %vm432_vm3, %v2737_v14 }
  0xf9   : > { %2137 = vmatpush1.bf16.msra.mxu0 %v2113_v12  ;;  %2168 = vmatprep.mubr.bf16.mxu0 %v2835_v0  ;;  %v2381_v38 = vsel %vm436_vm1, %v2357_v45, 0 }
  0xfa   : > { %2751 = vmatprep.subr.msk.bf16.mxu0 %vm436_vm1, %v2106_v3 }
  0xfc   : > { %2745 = vmatmul.mubr.msk.bf16.vlgmr.msra.gmra.mrb[52].mxu1 %vm432_vm3, %v2737_v14 }
  0xfd   : > { %2178 = vmatpush1.bf16.msra.mxu1 %v2119_v31  ;;  %2209 = vmatprep.mubr.bf16.mxu1 %v2835_v0 }
  0xfe   : > { %2753 = vmatprep.subr.msk.bf16.mxu1 %vm436_vm1, %v2108_v9 }
 0x100   : > { %2748 = vmatmul.mubr.msk.bf16.vlgmr.msra.gmra.mrb[56].mxu0 %vm432_vm3, %v2746_v32 }
 0x101   : > { %2219 = vmatpush1.bf16.msra.mxu0 %v2125_v40  ;;  %2250 = vmatprep.mubr.bf16.mxu0 %v2835_v0 }
 0x102   : > { %2756 = vmatprep.subr.msk.bf16.mxu0 %vm436_vm1, %v2352_v54 }
 0x104   : > { %2750 = vmatmul.mubr.msk.bf16.vlgmr.msra.gmra.mrb[56].mxu1 %vm432_vm3, %v2746_v32 }
 0x105   : > { %2260 = vmatpush1.bf16.msra.mxu1 %v2131_v59  ;;  %2291 = vmatprep.mubr.bf16.mxu1 %v2835_v0 }
 0x106   : > { %2758 = vmatprep.subr.msk.bf16.mxu1 %vm436_vm1, %v2354_v6 }
 0x108   : > { %2752 = vmatmul.mubr.msk.bf16.vlgmr.msra.gmra.mrb[60].mxu0 %vm432_vm3, %v2746_v32 }
 0x109   : > { %2387 = vmatpush1.bf16.msra.mxu0 %v2363_v47  ;;  %2418 = vmatprep.mubr.bf16.mxu0 %v2835_v0 }
 0x10a   : > { %2760 = vmatprep.subr.msk.bf16.mxu0 %vm436_vm1, %v2356_v48 }
 0x10c   : > { %2754 = vmatmul.mubr.msk.bf16.vlgmr.msra.gmra.mrb[60].mxu1 %vm432_vm3, %v2746_v32 }
 0x10d   : > { %2428 = vmatpush1.bf16.msra.mxu1 %v2369_v50  ;;  %2459 = vmatprep.mubr.bf16.mxu1 %v2835_v0 }
 0x10e   : > { %2762 = vmatprep.subr.msk.bf16.mxu1 %vm436_vm1, %v2358_v52 }
 0x110   : > { %2757 = vmatmul.mubr.msk.bf16.vlgmr.msra.gmra.mrb[64].mxu0 %vm432_vm3, %v2755_v22 }
 0x111   : > { %2469 = vmatpush1.bf16.msra.mxu0 %v2375_v53  ;;  %2500 = vmatprep.mubr.bf16.mxu0 %v2835_v0 }
 0x114   : > { %2759 = vmatmul.mubr.msk.bf16.vlgmr.msra.gmra.mrb[64].mxu1 %vm432_vm3, %v2755_v22 }
 0x115   : > { %2510 = vmatpush1.bf16.msra.mxu1 %v2381_v38  ;;  %2541 = vmatprep.mubr.bf16.mxu1 %v2835_v0 }
 0x118   : > { %2761 = vmatmul.mubr.msk.bf16.vlgmr.msra.gmra.mrb[68].mxu0 %vm432_vm3, %v2755_v22 }
 0x11c   : > { %2763 = vmatmul.mubr.msk.bf16.vlgmr.msra.gmra.mrb[68].mxu1 %vm432_vm3, %v2755_v22 }
 0x163   : > { %v495_v14 = vpop.f32.mrb[0].mxu0 }
 0x164   : > { %v497_v36 = vpop.f32.mrb[1].mxu0 }
 0x165   : > { %v499_v42 = vpop.f32.mrb[2].mxu0 }
 0x166   : > { %v500_v55 = vpop.f32.mrb[3].mxu0 }
 0x167   : > { %v536_v56 = vpop.f32.mrb[0].mxu1 }
 0x168   : > { %v538_v57 = vpop.f32.mrb[1].mxu1 }
 0x169   : > { %v540_v27 = vpop.f32.mrb[2].mxu1 }
 0x16a   : > { %v541_v46 = vpop.f32.mrb[3].mxu1 }
 0x16b   : > { %v577_v16 = vpop.f32.mrb[4].mxu0 }
 0x16c   : > { %v579_v60 = vpop.f32.mrb[5].mxu0 }
 0x16d   : > { %v581_v61 = vpop.f32.mrb[6].mxu0 }
 0x16e   : > { %v582_v5 = vpop.f32.mrb[7].mxu0 }
 0x16f   : > { %v618_v62 = vpop.f32.mrb[4].mxu1 }
 0x170   : > { %v620_v63 = vpop.f32.mrb[5].mxu1 }
 0x171   : > { %v622_v4 = vpop.f32.mrb[6].mxu1 }
 0x172   : > { %v623_v0 = vpop.f32.mrb[7].mxu1 }
 0x173   : > { %v686_v10 = vpop.f32.mrb[8].mxu0 }
 0x174   : > { %v687_v11 = vadd.f32 %v686_v10, %v495_v14  ;;  %v688_v3 = vpop.f32.mrb[9].mxu0 }
 0x175   : > { %v689_v12 = vadd.f32 %v688_v3, %v497_v36  ;;  %v690_v13 = vpop.f32.mrb[10].mxu0 }
 0x176   : > { %v691_v39 = vpop.f32.mrb[11].mxu0 }
 0x177   : > { %v727_v24 = vpop.f32.mrb[8].mxu1 }
 0x178   : > { %v728_v15 = vadd.f32 %v727_v24, %v536_v56  ;;  %v729_v2 = vpop.f32.mrb[9].mxu1 }
 0x179   : > { %v730_v31 = vadd.f32 %v729_v2, %v538_v57  ;;  %v731_v9 = vpop.f32.mrb[10].mxu1 }
 0x17a   : > { %v732_v17 = vpop.f32.mrb[11].mxu1 }
 0x17b   : > { %v768_v21 = vpop.f32.mrb[12].mxu0 }
 0x17c   : > { %v769_v1 = vadd.f32 %v768_v21, %v577_v16  ;;  %v770_v43 = vpop.f32.mrb[13].mxu0 }
 0x17d   : > { %v771_v26 = vadd.f32 %v770_v43, %v579_v60  ;;  %v772_v28 = vpop.f32.mrb[14].mxu0 }
 0x17e   : > { %v773_v7 = vpop.f32.mrb[15].mxu0 }
 0x17f   : > { %v809_v30 = vpop.f32.mrb[12].mxu1 }
 0x180   : > { %v810_v32 = vadd.f32 %v809_v30, %v618_v62  ;;  %v811_v40 = vpop.f32.mrb[13].mxu1 }
 0x181   : > { %v812_v54 = vadd.f32 %v811_v40, %v620_v63  ;;  %v813_v25 = vpop.f32.mrb[14].mxu1 }
 0x182   : > { %v814_v33 = vpop.f32.mrb[15].mxu1 }
 0x183   : > { %v969_v58 = vpop.f32.mrb[16].mxu0 }
 0x184   : > { %v1099_v34 = vadd.f32 %v969_v58, %v687_v11  ;;  %v971_v20 = vpop.f32.mrb[17].mxu0 }
 0x185   : > { %v1100_v35 = vadd.f32 %v971_v20, %v689_v12  ;;  %v973_v37 = vpop.f32.mrb[18].mxu0 }
 0x186   : > { %v974_v6 = vpop.f32.mrb[19].mxu0 }
 0x187   : > { %v1010_v59 = vpop.f32.mrb[16].mxu1 }
 0x188   : > { %v1101_v8 = vadd.f32 %v1010_v59, %v728_v15  ;;  %v1012_v18 = vpop.f32.mrb[17].mxu1 }
 0x189   : > { %v1102_v44 = vadd.f32 %v1012_v18, %v730_v31  ;;  %v1014_v47 = vpop.f32.mrb[18].mxu1 }
 0x18a   : > { %v1015_v41 = vpop.f32.mrb[19].mxu1 }
 0x18b   : > { %v1051_v23 = vpop.f32.mrb[20].mxu0 }
 0x18c   : > { %v1103_v48 = vadd.f32 %v1051_v23, %v769_v1  ;;  %v1053_v49 = vpop.f32.mrb[21].mxu0 }
 0x18d   : > { %v1104_v29 = vadd.f32 %v1053_v49, %v771_v26  ;;  %v1055_v19 = vpop.f32.mrb[22].mxu0 }
 0x18e   : > { %v1056_v50 = vpop.f32.mrb[23].mxu0 }
 0x18f   : > { %v1092_v51 = vpop.f32.mrb[20].mxu1 }
 0x190   : > { %v1105_v52 = vadd.f32 %v1092_v51, %v810_v32  ;;  %v1094_v22 = vpop.f32.mrb[21].mxu1 }
 0x191   : > { %v1106_v45 = vadd.f32 %v1094_v22, %v812_v54  ;;  %v1096_v53 = vpop.f32.mrb[22].mxu1 }
 0x192   : > { %v1097_v38 = vpop.f32.mrb[23].mxu1 }
 0x193   : > { %v1219_v14 = vpop.f32.mrb[24].mxu0 }
 0x194   : > { %v1349_v36 = vadd.f32 %v1219_v14, %v1099_v34  ;;  %v1221_v42 = vpop.f32.mrb[25].mxu0 }
 0x195   : > { %v1350_v55 = vadd.f32 %v1221_v42, %v1100_v35  ;;  %v1223_v56 = vpop.f32.mrb[26].mxu0 }
 0x196   : > { %v1224_v57 = vpop.f32.mrb[27].mxu0 }
 0x197   : > { %v1260_v27 = vpop.f32.mrb[24].mxu1 }
 0x198   : > { %v1351_v46 = vadd.f32 %v1260_v27, %v1101_v8  ;;  %v1262_v16 = vpop.f32.mrb[25].mxu1 }
 0x199   : > { %v1352_v60 = vadd.f32 %v1262_v16, %v1102_v44  ;;  %v1264_v61 = vpop.f32.mrb[26].mxu1 }
 0x19a   : > { %v1265_v5 = vpop.f32.mrb[27].mxu1 }
 0x19b   : > { %v1301_v62 = vpop.f32.mrb[28].mxu0 }
 0x19c   : > { %v1353_v63 = vadd.f32 %v1301_v62, %v1103_v48  ;;  %v1303_v4 = vpop.f32.mrb[29].mxu0 }
 0x19d   : > { %v1354_v0 = vadd.f32 %v1303_v4, %v1104_v29  ;;  %v1305_v10 = vpop.f32.mrb[30].mxu0 }
 0x19e   : > { %v1306_v11 = vpop.f32.mrb[31].mxu0 }
 0x19f   : > { %v1342_v3 = vpop.f32.mrb[28].mxu1 }
 0x1a0   : > { %v1355_v12 = vadd.f32 %v1342_v3, %v1105_v52  ;;  %v1344_v13 = vpop.f32.mrb[29].mxu1 }
 0x1a1   : > { %v1356_v39 = vadd.f32 %v1344_v13, %v1106_v45  ;;  %v1346_v24 = vpop.f32.mrb[30].mxu1 }
 0x1a2   : > { %v1347_v15 = vpop.f32.mrb[31].mxu1 }
 0x1a3   : > { %v1428_v2 = vpop.f32.mrb[32].mxu0 }
 0x1a4   : > { %v1558_v31 = vadd.f32 %v1428_v2, %v1349_v36  ;;  %v1430_v9 = vpop.f32.mrb[33].mxu0 }
 0x1a5   : > { %v1559_v17 = vadd.f32 %v1430_v9, %v1350_v55  ;;  %v1432_v21 = vpop.f32.mrb[34].mxu0 }
 0x1a6   : > { %v1433_v1 = vpop.f32.mrb[35].mxu0 }
 0x1a7   : > { %v1469_v43 = vpop.f32.mrb[32].mxu1 }
 0x1a8   : > { %v1560_v26 = vadd.f32 %v1469_v43, %v1351_v46  ;;  %v1471_v28 = vpop.f32.mrb[33].mxu1 }
 0x1a9   : > { %v1561_v7 = vadd.f32 %v1471_v28, %v1352_v60  ;;  %v1473_v30 = vpop.f32.mrb[34].mxu1 }
 0x1aa   : > { %v1474_v32 = vpop.f32.mrb[35].mxu1 }
 0x1ab   : > { %v1510_v40 = vpop.f32.mrb[36].mxu0 }
 0x1ac   : > { %v1562_v54 = vadd.f32 %v1510_v40, %v1353_v63  ;;  %v1512_v25 = vpop.f32.mrb[37].mxu0 }
 0x1ad   : > { %v1563_v33 = vadd.f32 %v1512_v25, %v1354_v0  ;;  %v1514_v58 = vpop.f32.mrb[38].mxu0 }
 0x1ae   : > { %v1515_v34 = vpop.f32.mrb[39].mxu0 }
 0x1af   : > { %v1551_v20 = vpop.f32.mrb[36].mxu1 }
 0x1b0   : > { %v1564_v35 = vadd.f32 %v1551_v20, %v1355_v12  ;;  %v1553_v37 = vpop.f32.mrb[37].mxu1 }
 0x1b1   : > { %v1565_v6 = vadd.f32 %v1553_v37, %v1356_v39  ;;  %v1555_v59 = vpop.f32.mrb[38].mxu1 }
 0x1b2   : > { %v1556_v8 = vpop.f32.mrb[39].mxu1 }
 0x1b3   : > { %v1678_v18 = vpop.f32.mrb[40].mxu0 }
 0x1b4   : > { %v1808_v44 = vadd.f32 %v1678_v18, %v1558_v31  ;;  %v1680_v47 = vpop.f32.mrb[41].mxu0 }
 0x1b5   : > { %v1809_v41 = vadd.f32 %v1680_v47, %v1559_v17  ;;  %v1682_v23 = vpop.f32.mrb[42].mxu0 }
 0x1b6   : > { %v1683_v48 = vpop.f32.mrb[43].mxu0 }
 0x1b7   : > { %v1719_v49 = vpop.f32.mrb[40].mxu1 }
 0x1b8   : > { %v1810_v29 = vadd.f32 %v1719_v49, %v1560_v26  ;;  %v1721_v19 = vpop.f32.mrb[41].mxu1 }
 0x1b9   : > { %v1811_v50 = vadd.f32 %v1721_v19, %v1561_v7  ;;  %v1723_v51 = vpop.f32.mrb[42].mxu1 }
 0x1ba   : > { %v1724_v52 = vpop.f32.mrb[43].mxu1  ;;  %v2562_v51 = vpop.permute.xlu0 %2561 }
 0x1bb   : > { %v1760_v22 = vpop.f32.mrb[44].mxu0 }
 0x1bc   : > { %v1812_v45 = vadd.f32 %v1760_v22, %v1562_v54  ;;  %v1762_v53 = vpop.f32.mrb[45].mxu0 }
 0x1bd   : > { %v1813_v38 = vadd.f32 %v1762_v53, %v1563_v33  ;;  %v1764_v14 = vpop.f32.mrb[46].mxu0 }
 0x1be   : > { %v1765_v36 = vpop.f32.mrb[47].mxu0 }
 0x1bf   : > { %v1801_v42 = vpop.f32.mrb[44].mxu1 }
 0x1c0   : > { %v1814_v55 = vadd.f32 %v1801_v42, %v1564_v35  ;;  %v1803_v56 = vpop.f32.mrb[45].mxu1 }
 0x1c1   : > { %v1815_v57 = vadd.f32 %v1803_v56, %v1565_v6  ;;  %v1805_v27 = vpop.f32.mrb[46].mxu1 }
 0x1c2   : > { %v1806_v46 = vpop.f32.mrb[47].mxu1 }
 0x1c3   : > { %v1928_v16 = vpop.f32.mrb[48].mxu0 }
 0x1c4   : > { %v2058_v60 = vadd.f32 %v1928_v16, %v1808_v44  ;;  %v1930_v61 = vpop.f32.mrb[49].mxu0 }
 0x1c5   : > { %v2059_v5 = vadd.f32 %v1930_v61, %v1809_v41  ;;  %v1932_v62 = vpop.f32.mrb[50].mxu0 }
 0x1c6   : > { %v1933_v63 = vpop.f32.mrb[51].mxu0 }
 0x1c7   : > { %v1969_v4 = vpop.f32.mrb[48].mxu1 }
 0x1c8   : > { %v2060_v0 = vadd.f32 %v1969_v4, %v1810_v29  ;;  %v1971_v10 = vpop.f32.mrb[49].mxu1  ;;  %v2576_v29 = vpop.permute.xlu1 %2575 }
 0x1c9   : > { %v2061_v11 = vadd.f32 %v1971_v10, %v1811_v50  ;;  %v1973_v3 = vpop.f32.mrb[50].mxu1 }
 0x1ca   : > { %v1974_v12 = vpop.f32.mrb[51].mxu1 }
 0x1cb   : > { %v2010_v13 = vpop.f32.mrb[52].mxu0 }
 0x1cc   : > { %v2062_v39 = vadd.f32 %v2010_v13, %v1812_v45  ;;  %v2012_v24 = vpop.f32.mrb[53].mxu0 }
 0x1cd   : > { %v2063_v15 = vadd.f32 %v2012_v24, %v1813_v38  ;;  %v2014_v2 = vpop.f32.mrb[54].mxu0 }
 0x1ce   : > { %v2015_v31 = vpop.f32.mrb[55].mxu0 }
 0x1cf   : > { %v2051_v9 = vpop.f32.mrb[52].mxu1 }
 0x1d0   : > { %v2064_v17 = vadd.f32 %v2051_v9, %v1814_v55  ;;  %v2053_v21 = vpop.f32.mrb[53].mxu1  ;;  %v2590_v55 = vpop.permute.xlu1 %2589 }
 0x1d1   : > { %v2065_v1 = vadd.f32 %v2053_v21, %v1815_v57  ;;  %v2055_v43 = vpop.f32.mrb[54].mxu1 }
 0x1d2   : > { %v2056_v26 = vpop.f32.mrb[55].mxu1 }
 0x1d3   : > { %v2170_v28 = vpop.f32.mrb[56].mxu0 }
 0x1d4   : > { %v2300_v7 = vadd.f32 %v2170_v28, %v2058_v60  ;;  %v2172_v30 = vpop.f32.mrb[57].mxu0 }
 0x1d5   : > { %v2301_v32 = vadd.f32 %v2172_v30, %v2059_v5  ;;  %v2174_v40 = vpop.f32.mrb[58].mxu0 }
 0x1d6   : > { %v2175_v54 = vpop.f32.mrb[59].mxu0 }
 0x1d7   : > { %v2211_v25 = vpop.f32.mrb[56].mxu1 }
 0x1d8   : > { %v2302_v33 = vadd.f32 %v2211_v25, %v2060_v0  ;;  %v2213_v58 = vpop.f32.mrb[57].mxu1 }
 0x1d9   : > { %v2303_v34 = vadd.f32 %v2213_v58, %v2061_v11  ;;  %v2215_v20 = vpop.f32.mrb[58].mxu1 }
 0x1da   : > { %v2216_v35 = vpop.f32.mrb[59].mxu1 }
 0x1db   : > { %v2252_v37 = vpop.f32.mrb[60].mxu0 }
 0x1dc   : > { %v2304_v6 = vadd.f32 %v2252_v37, %v2062_v39  ;;  %v2254_v59 = vpop.f32.mrb[61].mxu0 }
 0x1dd   : > { %v2305_v8 = vadd.f32 %v2254_v59, %v2063_v15  ;;  %v2256_v18 = vpop.f32.mrb[62].mxu0 }
 0x1de   : > { %v2257_v44 = vpop.f32.mrb[63].mxu0 }
 0x1df   : > { %v2293_v47 = vpop.f32.mrb[60].mxu1 }
 0x1e0   : > { %v2306_v41 = vadd.f32 %v2293_v47, %v2064_v17  ;;  %v2295_v23 = vpop.f32.mrb[61].mxu1 }
 0x1e1   : > { %v2307_v48 = vadd.f32 %v2295_v23, %v2065_v1  ;;  %v2297_v49 = vpop.f32.mrb[62].mxu1 }
 0x1e2   : > { %v2298_v19 = vpop.f32.mrb[63].mxu1 }
 0x1e3   : > { %v2420_v50 = vpop.f32.mrb[64].mxu0 }
 0x1e4   : > { %v2550_v52 = vadd.f32 %v2420_v50, %v2300_v7  ;;  %v2422_v22 = vpop.f32.mrb[65].mxu0 }
 0x1e5   : > { %v2551_v45 = vadd.f32 %v2422_v22, %v2301_v32  ;;  %v2424_v53 = vpop.f32.mrb[66].mxu0 }
 0x1e6   : > { %v2564_v38 = vadd.f32 %v2562_v51, %v2550_v52  ;;  %v2425_v14 = vpop.f32.mrb[67].mxu0 }
 0x1e7   : > { %v2565_v36 = vadd.f32 %v2562_v51, %v2551_v45  ;;  %v2461_v42 = vpop.f32.mrb[64].mxu1 }
 0x1e8   : > { %v2552_v56 = vadd.f32 %v2461_v42, %v2302_v33  ;;  %v2463_v57 = vpop.f32.mrb[65].mxu1  ;;  %v2578_v27 = vmul.f32 %v2576_v29, %v2564_v38 }
 0x1e9   : > { %v2553_v46 = vadd.f32 %v2463_v57, %v2303_v34  ;;  %v2579_v16 = vmul.f32 %v2576_v29, %v2565_v36  ;;  %v2465_v60 = vpop.f32.mrb[66].mxu1 }
 0x1ea   : > { %v2566_v61 = vadd.f32 %v2562_v51, %v2552_v56  ;;  %v2592_v5 = vadd.f32 %v2590_v55, %v2578_v27  ;;  %v2466_v62 = vpop.f32.mrb[67].mxu1 }
 0x1eb   : > { %v2567_v63 = vadd.f32 %v2562_v51, %v2553_v46  ;;  %v2593_v4 = vadd.f32 %v2590_v55, %v2579_v16  ;;  %v2502_v0 = vpop.f32.mrb[68].mxu0 }
 0x1ec   : > { %v2580_v10 = vmul.f32 %v2576_v29, %v2566_v61  ;;  %v2554_v11 = vadd.f32 %v2502_v0, %v2304_v6  ;;  %v2504_v3 = vpop.f32.mrb[69].mxu0 }
 0x1ed   : > { %v2581_v12 = vmul.f32 %v2576_v29, %v2567_v63  ;;  %v2608_v13 = vcombine.low %v2592_v5, %v2593_v4  ;;  %v2555_v39 = vadd.f32 %v2504_v3, %v2305_v8  ;;  %v2506_v24 = vpop.f32.mrb[70].mxu0 }
 0x1ee   : > { %v2594_v15 = vadd.f32 %v2590_v55, %v2580_v10  ;;  %v2568_v2 = vadd.f32 %v2562_v51, %v2554_v11  ;;  %v2507_v31 = vpop.f32.mrb[71].mxu0 }
 0x1ef   : > { %v2595_v9 = vadd.f32 %v2590_v55, %v2581_v12  ;;  %v2569_v17 = vadd.f32 %v2562_v51, %v2555_v39  ;;  %2616 = vst [vmem:[%s3384_s27] sm:$0x77] %v2608_v13  ;;  %v2543_v21 = vpop.f32.mrb[68].mxu1 }
 0x1f0   : > { %v2582_v1 = vmul.f32 %v2576_v29, %v2568_v2  ;;  %v2556_v43 = vadd.f32 %v2543_v21, %v2306_v41  ;;  %v2545_v26 = vpop.f32.mrb[69].mxu1 }
 0x1f1   : > { %v2609_v28 = vcombine.low %v2594_v15, %v2595_v9  ;;  %v2583_v7 = vmul.f32 %v2576_v29, %v2569_v17  ;;  %v2557_v30 = vadd.f32 %v2545_v26, %v2307_v48  ;;  %v2547_v32 = vpop.f32.mrb[70].mxu1 }
 0x1f2   : > { %v2596_v40 = vadd.f32 %v2590_v55, %v2582_v1  ;;  %v2570_v54 = vadd.f32 %v2562_v51, %v2556_v43  ;;  %v2548_v25 = vpop.f32.mrb[71].mxu1 }
 0x1f3   : > { %v2597_v33 = vadd.f32 %v2590_v55, %v2583_v7  ;;  %2617 = vst [vmem:[%s3384_s27 + $0x8] sm:$0x77] %v2609_v28  ;;  %v2571_v58 = vadd.f32 %v2562_v51, %v2557_v30 }
 0x1f4   : > { %v2584_v34 = vmul.f32 %v2576_v29, %v2570_v54 }
 0x1f5   : > { %v2610_v20 = vcombine.low %v2596_v40, %v2597_v33  ;;  %v2585_v35 = vmul.f32 %v2576_v29, %v2571_v58 }
 0x1f6   : > { %v2598_v37 = vadd.f32 %v2590_v55, %v2584_v34 }
 0x1f7   : > { %2618 = vst [vmem:[%s3384_s27 + $0x10] sm:$0x77] %v2610_v20  ;;  %v2599_v6 = vadd.f32 %v2590_v55, %v2585_v35 }
 0x1f9   : > { %v2611_v59 = vcombine.low %v2598_v37, %v2599_v6 }
 0x1fb   : > { %2619 = vst [vmem:[%s3384_s27 + $0x18] sm:$0x77] %v2611_v59 }
 0x1fc PF: > { %s17_s24 = sadd.s32 1, %s2833_s24  }
 0x1fd   : > { %p14_p4 = scmp.ge.s32.totalorder %s17_s24, 4  }
 0x1ff   :  { %16 = sbr.rel (!%p14_p4) target bundleno = 1 (0x1), region = 86 }

// kernel: multi_rdn_forward.2
= control target key start
LH: loop header
LB: loop body
LE: loop exit
PB: predicated region body
PF: predicated region fallthrough
CT: control target
= control target key end

     0   :  { %s11011_s6 = smov 1   ;;  %s11012_s10 = smov 2   ;;  %s13552_s0 = inlined_call_operand.smem [shape: u32[40], index: -1, kind: input, shape index: {}] }
   0x1   :  { %s11069_s5 = sld [smem:[%s13552_s0]]   ;;  %s11013_s14 = smov 3  }
   0x2   :  { %s11074_s9 = sld [smem:[%s13552_s0 + %s11011_s6]]   ;;  %s11014_s18 = smov 4  }
   0x3   :  { %s11079_s13 = sld [smem:[%s13552_s0 + %s11012_s10]]   ;;  %s11015_s22 = smov 5  }
   0x4   :  { %s11084_s17 = sld [smem:[%s13552_s0 + %s11013_s14]]   ;;  %s11016_s26 = smov 6  }
   0x5   :  { %s11089_s21 = sld [smem:[%s13552_s0 + %s11014_s18]]   ;;  %s11017_s30 = smov 7  }
   0x6   :  { %s11094_s25 = sld [smem:[%s13552_s0 + %s11015_s22]]   ;;  %s11018_s4 = smov 8  }
   0x7   :  { %13580 = sst [smem:[#allocation4_spill]] %s11069_s5  ;;  %s11019_s10 = smov 9  }
   0x8   :  { %13581 = sst [smem:[#allocation5_spill]] %s11074_s9  ;;  %s11020_s15 = smov 10  }
   0x9   :  { %s11099_s29 = sld [smem:[%s13552_s0 + %s11016_s26]]   ;;  %s11021_s20 = smov 11  }
   0xa   :  { %s11104_s3 = sld [smem:[%s13552_s0 + %s11017_s30]]   ;;  %s11022_s26 = smov 12  }
   0xb   :  { %s11109_s8 = sld [smem:[%s13552_s0 + %s11018_s4]]   ;;  %s11023_s1 = smov 13  }
   0xc   :  { %s11114_s14 = sld [smem:[%s13552_s0 + %s11019_s10]]   ;;  %s11024_s7 = smov 14  }
   0xd   :  { %s11119_s19 = sld [smem:[%s13552_s0 + %s11020_s15]]   ;;  %s11025_s15 = smov 15  }
   0xe   :  { %s11124_s24 = sld [smem:[%s13552_s0 + %s11021_s20]]   ;;  %s11026_s22 = smov 16  }
   0xf   :  { %s11129_s30 = sld [smem:[%s13552_s0 + %s11022_s26]]   ;;  %s11027_s28 = smov 17  }
  0x10   :  { %13582 = sst [smem:[#allocation6_spill]] %s11104_s3 }
  0x11   :  { %13583 = sst [smem:[#allocation7_spill]] %s11109_s8 }
  0x12   :  { %s11134_s6 = sld [smem:[%s13552_s0 + %s11023_s1]]  }
  0x13   :  { %s11139_s12 = sld [smem:[%s13552_s0 + %s11024_s7]]   ;;  %s11028_s7 = smov 18  }
  0x14   :  { %s11144_s20 = sld [smem:[%s13552_s0 + %s11025_s15]]   ;;  %s11029_s15 = smov 19  }
  0x15   :  { %s11149_s27 = sld [smem:[%s13552_s0 + %s11026_s22]]   ;;  %s11030_s22 = smov 20  }
  0x16   :  { %s11154_s4 = sld [smem:[%s13552_s0 + %s11027_s28]]   ;;  %s11031_s28 = smov 21  }
  0x18   :  { %13584 = sst [smem:[#allocation8_spill]] %s11134_s6 }
  0x19   :  { %13585 = sst [smem:[#allocation9_spill]] %s11139_s12 }
  0x1a   :  { %13586 = sst [smem:[#allocation10_spill]] %s11144_s20 }
  0x1b   :  { %s11159_s6 = sld [smem:[%s13552_s0 + %s11028_s7]]   ;;  %s11032_s7 = smov 22  }
  0x1c   :  { %13587 = sst [smem:[#allocation11_spill]] %s11154_s4 }
  0x1d   :  { %s11164_s20 = sld [smem:[%s13552_s0 + %s11029_s15]]   ;;  %s11033_s15 = smov 23  }
  0x1e   :  { %s11169_s12 = sld [smem:[%s13552_s0 + %s11030_s22]]   ;;  %s11034_s22 = smov 24  }
  0x1f   :  { %s11174_s4 = sld [smem:[%s13552_s0 + %s11031_s28]]   ;;  %s11035_s28 = smov 25  }
  0x21   :  { %13588 = sst [smem:[#allocation12_spill]] %s11159_s6 }
  0x22   :  { %s11179_s6 = sld [smem:[%s13552_s0 + %s11032_s7]]   ;;  %s11036_s7 = smov 26  }
  0x23   :  { %13589 = sst [smem:[#allocation13_spill]] %s11164_s20 }
  0x24   :  { %13590 = sst [smem:[#allocation14_spill]] %s11169_s12 }
  0x25   :  { %13591 = sst [smem:[#allocation15_spill]] %s11174_s4 }
  0x26   :  { %s11184_s20 = sld [smem:[%s13552_s0 + %s11033_s15]]   ;;  %s11037_s15 = smov 27  }
  0x27   :  { %s11189_s12 = sld [smem:[%s13552_s0 + %s11034_s22]]   ;;  %s11038_s22 = smov 28  }
  0x28   :  { %13592 = sst [smem:[#allocation16_spill]] %s11179_s6 }
  0x29   :  { %s11194_s4 = sld [smem:[%s13552_s0 + %s11035_s28]]   ;;  %s11039_s28 = smov 29  }
  0x2a   :  { %s11199_s6 = sld [smem:[%s13552_s0 + %s11036_s7]]   ;;  %s11040_s7 = smov 30  }
  0x2c   :  { %13593 = sst [smem:[#allocation17_spill]] %s11184_s20 }
  0x2d   :  { %13594 = sst [smem:[#allocation18_spill]] %s11189_s12 }
  0x2e   :  { %s11204_s20 = sld [smem:[%s13552_s0 + %s11037_s15]]   ;;  %s11041_s15 = smov 31  }
  0x2f   :  { %13595 = sst [smem:[#allocation19_spill]] %s11194_s4 }
  0x30   :  { %13596 = sst [smem:[#allocation20_spill]] %s11199_s6 }
  0x31   :  { %s11209_s12 = sld [smem:[%s13552_s0 + %s11038_s22]]   ;;  %s11042_s22 = smov 32  }
  0x32   :  { %s11214_s4 = sld [smem:[%s13552_s0 + %s11039_s28]]   ;;  %s11043_s28 = smov 33  }
  0x33   :  { %s11219_s6 = sld [smem:[%s13552_s0 + %s11040_s7]]   ;;  %s11044_s7 = smov 34  }
  0x34   :  { %13597 = sst [smem:[#allocation21_spill]] %s11204_s20 }
  0x35   :  { %s11224_s20 = sld [smem:[%s13552_s0 + %s11041_s15]]   ;;  %s11045_s15 = smov 35  }
  0x37   :  { %13598 = sst [smem:[#allocation22_spill]] %s11209_s12 }
  0x38   :  { %13599 = sst [smem:[#allocation23_spill]] %s11214_s4 }
  0x39   :  { %13600 = sst [smem:[#allocation24_spill]] %s11219_s6 }
  0x3a   :  { %s11229_s12 = sld [smem:[%s13552_s0 + %s11042_s22]]   ;;  %s11046_s22 = smov 36  }
  0x3b   :  { %13601 = sst [smem:[#allocation25_spill]] %s11224_s20 }
  0x3c   :  { %s11234_s4 = sld [smem:[%s13552_s0 + %s11043_s28]]   ;;  %s11047_s28 = smov 37  }
  0x3d   :  { %s11239_s6 = sld [smem:[%s13552_s0 + %s11044_s7]]   ;;  %s11048_s7 = smov 38  }
  0x3e   :  { %s11244_s20 = sld [smem:[%s13552_s0 + %s11045_s15]]   ;;  %s11049_s15 = smov 39  }
  0x40   :  { %13602 = sst [smem:[#allocation26_spill]] %s11229_s12 }
  0x41   :  { %s11249_s12 = sld [smem:[%s13552_s0 + %s11046_s22]]   ;;  %s11266_s22 = smov 0  }
  0x42   :  { %13603 = sst [smem:[#allocation27_spill]] %s11234_s4 }
  0x43   :  { %13604 = sst [smem:[#allocation28_spill]] %s11239_s6 }
  0x44   :  { %13605 = sst [smem:[#allocation29_spill]] %s11244_s20 }
  0x45   :  { %s11254_s4 = sld [smem:[%s13552_s0 + %s11047_s28]]  }
  0x46   :  { %s11259_s6 = sld [smem:[%s13552_s0 + %s11048_s7]]  }
  0x47   :  { %s11264_s20 = sld [smem:[%s13552_s0 + %s11049_s15]]  }
  0x48 LB: > { %s13606_s3 = sld [smem:[#allocation6_spill]]  ;;  %s10222_s23 = sadd.s32 4294967295, %s11009_s22   ;;  %s11009_s22 = sphi %s11266_s22, %s89_s22  }
  0x49   : > { %p10226_p0 = scmp.ge.s32.totalorder %s11009_s22, 1  ;;  %p1077_p1 = scmp.lt.s32.totalorder %s11009_s22, 3 }
  0x4b   : > { %p1078_p2 = pnand %p10226_p0, %p1077_p1 }
  0x4c   : > { %s13607_s9 = sld [smem:[#allocation5_spill]] (!%p1078_p2)  ;;  %v11050_v1 = vmov (!%p1078_p2), 0   ;;  %s13608_s5 = sld [smem:[#allocation4_spill]] (!%p1078_p2)  ;;  %v1201_v2 = vld [vmem:[%s11079_s13] sm:$0x7] (!%p1078_p2)  ;;  %v1195_v5 = vlaneseq (!%p1078_p2)  ;;  %vm1259_vm0 = vcmask (!%p1078_p2), 1040384  }
  0x4d   : > { %1081 = sbr.rel (%p1078_p2) target bundleno = 6050 (0x17a2), region = 176  ;;  %10763 = vset.pattern.permute.xlu0 (!%p1078_p2), %v11050_v1  ;;  %1301 = vmatprep.mubr.bf16.mxu1 (!%p1078_p2), %v11050_v1  ;;  %p1173_p3 = scmp.lt.s32.totalorder (!%p1078_p2), %s10222_s23, 1  ;;  %v11051_v3 = vmov (!%p1078_p2), 839922192   ;;  %v1828_v18 = vld [vmem:[%s11099_s29] sm:$0xff] (!%p1078_p2)  ;;  %vm1246_vm1 = vcmask (!%p1078_p2), 130048  }
  0x4e   : > { %1427 = vmatprep.mubr.bf16.mxu0 (!%p1078_p2), %v11050_v1  ;;  %10784 = vset.pattern.permute.xlu1 (!%p1078_p2), %v11050_v1  ;;  %v1193_v4 = vunpack.c.l.s4 (!%p1078_p2), %v11051_v3  ;;  %v1196_v7 = vshrl.u32 (!%p1078_p2), %v1195_v5, 7  ;;  %s13567_s28 = smov (!%p1078_p2), 17   ;;  %s13565_s1 = smov (!%p1078_p2), 16   ;;  %v1184_v22 = vld [vmem:[%s11084_s17] sm:$0x3] (!%p1078_p2)  ;;  %vm1221_vm2 = vcmask (!%p1078_p2), 138240   ;;  %vm10301_vm13 = vmneg (!%p1078_p2), %vm1246_vm1 }
  0x4f   : > { %s13577_s2 = smov (!%p1078_p2), 15   ;;  %s13575_s7 = smov (!%p1078_p2), 1   ;;  %v1185_v25 = vld [vmem:[%s11089_s21] sm:$0x3] (!%p1078_p2)  ;;  %vm1260_vm3 = vcmask (!%p1078_p2), 1041408   ;;  %v11060_v31 = vmov (!%p1078_p2), 65535   ;;  %vm11759_vm14 = vmpackc.low (!%p1078_p2), %vm10301_vm13, %vm10301_vm13 }
  0x50   : > { %v1194_v6 = vunpack.c.0.s8 (!%p1078_p2), %v1193_v4  ;;  %s13571_s10 = smov (!%p1078_p2), 127   ;;  %s13569_s11 = smov (!%p1078_p2), 113   ;;  %v1229_v20 = vsub.s32 (!%p1078_p2), 0, %v1196_v7  ;;  %v1233_v21 = vsub.s32 (!%p1078_p2), 1, %v1196_v7  ;;  %v1261_v32 = vsel (!%p1078_p2), %vm1259_vm0, 4294967295, %v11060_v31 }
  0x51   : > { %s13561_s15 = smov (!%p1078_p2), 111   ;;  %s13563_s16 = smov (!%p1078_p2), 112   ;;  %v11333_v40 = vsel (!%p1078_p2), %vm1260_vm3, %v1261_v32, 0  ;;  %vm1364_vm4 = vcmask (!%p1078_p2), 121856   ;;  %vm1442_vm5 = vcmask (!%p1078_p2), 7168   ;;  %vm1255_vm6 = vcmask (!%p1078_p2), 23552  }
  0x52   : > { %v1187_v0 = vld [vmem:[%s13607_s9] sm:$0x7] (!%p1078_p2)  ;;  %v1197_v8 = vsub.s32 (!%p1078_p2), %v1194_v6, %v1196_v7  ;;  %v11323_v26 = vrot.slane (!%p1078_p2), %v1184_v22, %v1229_v20  ;;  %v11325_v29 = vrot.slane (!%p1078_p2), %v1184_v22, %v1233_v21  ;;  %v11329_v35 = vrot.slane (!%p1078_p2), %v1185_v25, %v1229_v20  ;;  %v10231_v52 = vld [vmem:[%s11094_s25 + $0x4] sm:$0xf] (!%p1078_p2)  ;;  %s13609_s8 = sld [smem:[#allocation7_spill]] (!%p1078_p2)  ;;  %s13614_s18 = sld [smem:[#allocation9_spill]] (!%p1078_p2) }
  0x53   : > { %1190 = vperm.xlu0 (!%p1078_p2), %10763, %v1187_v0   ;;  %v11331_v36 = vrot.slane (!%p1078_p2), %v1185_v25, %v1233_v21  ;;  %vm1566_vm7 = vcmask (!%p1078_p2), 1039360   ;;  %vm1765_vm8 = vcmask (!%p1078_p2), 908288   ;;  %vm1633_vm9 = vcmask (!%p1078_p2), 924672   ;;  %s13639_s9 = sld [smem:[#allocation28_spill]] (!%p1078_p2) }
  0x54   : > { %s13645_s23 = smov (!%p1173_p3, %s10222_s23), 1  ;;  %vm1700_vm10 = vcmask 916480   ;;  %vm1867_vm11 = vcmask 1043456   ;;  %vm1863_vm12 = vcmask 64512   ;;  %vm3710_vm0 = vcmask 195584  }
  0x55   : > { %s10639_s0 = sshll.u32 %s13645_s23, 3  ;;  %vm11841_vm15 = vmpackc.low %vm1700_vm10, %vm1700_vm10  ;;  %vm4422_vm3 = vcmask 261120  }
  0x56   : > { %s1177_s26 = scalar_lea.vmem %s13608_s5, %s10639_s0  ;;  %s13615_s0 = sld [smem:[#allocation8_spill]] }
  0x57   : > { %1204 = vperm.xlu0 %10763, %v1201_v2   ;;  %v1186_v11 = vld [vmem:[%s1177_s26] sm:$0x77]  ;;  %s13616_s26 = sld [smem:[#allocation10_spill]]  ;;  %s13634_s5 = smov 1  }
  0xd2   : > { %v1191_v9 = vpop.permute.xlu0 %1190 }
  0xd3   : > { %v1198_v10 = vrot.slane %v1191_v9, %v1197_v8 }
  0xd5   : > { %v1200_v13 = vmul.f32 %v1198_v10, %v1186_v11 }
  0xd6   : > { %v1205_v12 = vpop.permute.xlu0 %1204 }
  0xd7   : > { %v1212_v14 = vrot.slane %v1205_v12, %v1197_v8 }
  0xd9   : > { %v11284_v15 = vadd.f32 %v1212_v14, %v1200_v13  ;;  %v10234_v14 = vld [vmem:[%s11094_s25 + $0x8] sm:$0xf] }
  0xdb   : > { %v11288_v16 = vcombine.high %v11284_v15, %v11284_v15  ;;  %v1508_v7 = vpack.c.bf16 %v11284_v15, %v11284_v15 }
  0xdd   : > { %1219 = vrot.lane.b32.xlu0 %v11288_v16, %s13567_s28  ;;  %v10764_v17 = vpack.i.bf16 %v11288_v16, %v11284_v15  ;;  %v10769_v19 = vpack.i.bf16 %v11284_v15, %v11288_v16  ;;  %v1509_v62 = vpack.c.bf16 %v11288_v16, %v11288_v16  ;;  %v1514_v22 = vand.u32 %v1508_v7, %v11333_v40 }
  0xdf   : > { %10765 = vrot.lane.b32.xlu1 %v10764_v17, %s13565_s1  ;;  %v1517_v11 = vand.u32 %v1509_v62, %v11333_v40  ;;  %v10244_v62 = vld [vmem:[%s11094_s25 + $0x1c] sm:$0xf] }
  0xe1   : > { %1362 = vrot.lane.b32.xlu0 %v11288_v16, %s13577_s2 }
  0xe3   : > { %1217 = vrot.lane.b32.xlu1 %v11284_v15, %s13567_s28 }
  0xe5   : > { %1440 = vrot.lane.b32.xlu0 %v11288_v16, %s13575_s7 }
  0xe7   : > { %1360 = vrot.lane.b32.xlu1 %v11284_v15, %s13577_s2 }
  0xe9   : > { %1562 = vrot.lane.b32.xlu0 %v11284_v15, %s13571_s10 }
  0xeb   : > { %1438 = vrot.lane.b32.xlu1 %v11284_v15, %s13575_s7 }
  0xed   : > { %1629 = vrot.lane.b32.xlu0 %v11284_v15, %s13569_s11 }
  0xef   : > { %1564 = vrot.lane.b32.xlu1 %v11288_v16, %s13571_s10 }
  0xf1   : > { %1763 = vrot.lane.b32.xlu0 %v11288_v16, %s13561_s15 }
  0xf3   : > { %1631 = vrot.lane.b32.xlu1 %v11288_v16, %s13569_s11  ;;  %v1239_v16 = vld [vmem:[%s11094_s25] sm:$0xf] }
  0xf5   : > { %1831 = vperm.xlu0 %10763, %v1828_v18  }
  0xf7   : > { %10770 = vrot.lane.b32.xlu1 %v10769_v19, %s13563_s16 }
  0xfb   : > { %1761 = vrot.lane.b32.xlu1 %v11284_v15, %s13561_s15 }
 0x14f   : > { %v1220_v23 = vpop.permute.xlu0 %1219 }
 0x151   : > { %v10766_v24 = vpop.permute.xlu1 %10765 }
 0x152   : > { %v10768_v27 = vunpack.i.h.bf16 %v10766_v24  ;;  %v10767_v28 = vunpack.i.l.bf16 %v10766_v24 }
 0x153   : > { %v1363_v30 = vpop.permute.xlu0 %1362 }
 0x154   : > { %v1247_v33 = vsel %vm1246_vm1, %v10767_v28, %v10768_v27  ;;  %v1250_v34 = vsel %vm1246_vm1, 0.0, %v10767_v28 }
 0x155   : > { %v1218_v37 = vpop.permute.xlu1 %1217  ;;  %v1254_v38 = vpack.c.bf16 %v1247_v33, %v1247_v33  ;;  %v1253_v39 = vpack.c.bf16 %v1250_v34, %v1250_v34 }
 0x156   : > { %v1222_v41 = vsel %vm1221_vm2, %v1218_v37, %v1220_v23  ;;  %v1225_v42 = vsel %vm1221_vm2, 0.0, %v1218_v37 }
 0x157   : > { %v1237_v43 = vmul.f32 %v11323_v26, %v1225_v42  ;;  %v1238_v44 = vmul.f32 %v11325_v29, %v1222_v41  ;;  %v1441_v45 = vpop.permute.xlu0 %1440  ;;  %v1267_v46 = vand.u32 %v11333_v40, %v1254_v38  ;;  %v1264_v47 = vand.u32 %v11333_v40, %v1253_v39 }
 0x159   : > { %v1240_v48 = vpack.c.bf16 %v1237_v43, %v1237_v43  ;;  %v1241_v49 = vpack.c.bf16 %v1238_v44, %v1238_v44  ;;  %v1361_v50 = vpop.permute.xlu1 %1360  ;;  %1269 = vmatprep.subr.bf16.mxu1 %v1267_v46  ;;  %v10236_v43 = vld [vmem:[%s11094_s25 + $0xc] sm:$0xf]  ;;  %v10238_v44 = vld [vmem:[%s11094_s25 + $0x10] sm:$0xf] }
 0x15a   : > { %v1368_v51 = vsel %vm1364_vm4, 0.0, %v1361_v50  ;;  %1270 = vmatpush1.bf16.msra.mxu1 %v1264_v47  ;;  %v1365_v53 = vsel %vm1364_vm4, %v1361_v50, %v1363_v30 }
 0x15b   : > { %v1314_v54 = vand.u32 %v11333_v40, %v1240_v48  ;;  %v1563_v55 = vpop.permute.xlu0 %1562  ;;  %v1317_v56 = vand.u32 %v11333_v40, %v1241_v49  ;;  %v1381_v57 = vmul.f32 %v11331_v36, %v1365_v53  ;;  %v1380_v58 = vmul.f32 %v11329_v35, %v1368_v51 }
 0x15d   : > { %v1439_v59 = vpop.permute.xlu1 %1438  ;;  %10232 = vmatmul.mubr.msk.bf16.vlgmr.msra.gmra.mrb[0].mxu1 %vm1255_vm6, %v10231_v52  ;;  %1319 = vmatprep.subr.bf16.mxu1 %v1317_v56  ;;  %v1385_v60 = vpack.c.bf16 %v1381_v57, %v1381_v57  ;;  %v1384_v61 = vpack.c.bf16 %v1380_v58, %v1380_v58  ;;  %v10240_v58 = vld [vmem:[%s11094_s25 + $0x14] sm:$0xf] }
 0x15e   : > { %v1443_v63 = vsel %vm1442_vm5, %v1439_v59, %v1441_v45  ;;  %v1446_v0 = vsel %vm1442_vm5, 0.0, %v1439_v59  ;;  %1320 = vmatpush1.bf16.msra.mxu1 %v1314_v54  ;;  %1351 = vmatprep.mubr.bf16.mxu1 %v11050_v1  ;;  %v10242_v59 = vld [vmem:[%s11094_s25 + $0x18] sm:$0xf] }
 0x15f   : > { %v1447_v2 = vmul.f32 %v1446_v0, %v11323_v26  ;;  %v1448_v3 = vmul.f32 %v1443_v63, %v11325_v29  ;;  %v1630_v4 = vpop.permute.xlu0 %1629  ;;  %v1393_v5 = vand.u32 %v1385_v60, %v11333_v40  ;;  %v1390_v6 = vand.u32 %v1384_v61, %v11333_v40  ;;  %v10246_v63 = vld [vmem:[%s11094_s25 + $0x20] sm:$0xf] }
 0x161   : > { %v1451_v8 = vpack.c.bf16 %v1447_v2, %v1447_v2  ;;  %v1452_v9 = vpack.c.bf16 %v1448_v3, %v1448_v3  ;;  %1395 = vmatprep.subr.bf16.mxu0 %v1393_v5  ;;  %v1565_v10 = vpop.permute.xlu1 %1564 }
 0x162   : > { %v1567_v12 = vsel %vm1566_vm7, %v1563_v55, %v1565_v10  ;;  %v1570_v13 = vsel %vm1566_vm7, %v1565_v10, 0.0  ;;  %1396 = vmatpush1.bf16.msra.mxu0 %v1390_v6 }
 0x163   : > { %v1457_v17 = vand.u32 %v1451_v8, %v11333_v40  ;;  %v1572_v18 = vmul.f32 %v1570_v13, %v11331_v36  ;;  %v1764_v19 = vpop.permute.xlu0 %1763  ;;  %1519 = vmatprep.subr.bf16.mxu0 %v1517_v11  ;;  %v1460_v15 = vand.u32 %v1452_v9, %v11333_v40  ;;  %v1571_v20 = vmul.f32 %v1567_v12, %v11329_v35 }
 0x164   : > { %v1769_v21 = vsel %vm1765_vm8, %v1764_v19, 0.0 }
 0x165   : > { %v1576_v23 = vpack.c.bf16 %v1572_v18, %v1572_v18  ;;  %10235 = vmatmul.mubr.msk.bf16.vlgmr.msra.gmra.mrb[0].mxu0 %vm1255_vm6, %v10234_v14  ;;  %v1632_v24 = vpop.permute.xlu1 %1631  ;;  %10233 = vmatmul.mubr.msk.bf16.vlgmr.msra.gmra.mrb[4].mxu1 %vm1255_vm6, %v1239_v16  ;;  %v1771_v25 = vmul.f32 %v1769_v21, %v11331_v36  ;;  %v1575_v32 = vpack.c.bf16 %v1571_v20, %v1571_v20 }
 0x166   : > { %v1634_v27 = vsel %vm1633_vm9, %v1630_v4, %v1632_v24  ;;  %v1637_v28 = vsel %vm1633_vm9, %v1632_v24, 0.0  ;;  %1462 = vmatprep.subr.bf16.mxu1 %v1460_v15  ;;  %1520 = vmatpush1.bf16.msra.mxu0 %v1514_v22 }
 0x167   : > { %v1638_v30 = vmul.f32 %v1634_v27, %v11323_v26  ;;  %v1639_v31 = vmul.f32 %v1637_v28, %v11325_v29  ;;  %1463 = vmatpush1.bf16.msra.mxu1 %v1457_v17  ;;  %v1584_v33 = vand.u32 %v1576_v23, %v11333_v40  ;;  %1494 = vmatprep.mubr.bf16.mxu1 %v11050_v1 }
 0x168   : > { %1551 = vmatprep.mubr.bf16.mxu0 %v11050_v1  ;;  %v1775_v39 = vpack.c.bf16 %v1771_v25, %v1771_v25  ;;  %v1581_v47 = vand.u32 %v1575_v32, %v11333_v40 }
 0x169   : > { %v1642_v34 = vpack.c.bf16 %v1638_v30, %v1638_v30  ;;  %v1643_v37 = vpack.c.bf16 %v1639_v31, %v1639_v31  ;;  %v10771_v38 = vpop.permute.xlu1 %10770  ;;  %1586 = vmatprep.subr.bf16.mxu1 %v1584_v33 }
 0x16a   : > { %v10773_v41 = vunpack.i.h.bf16 %v10771_v38  ;;  %v10772_v42 = vunpack.i.l.bf16 %v10771_v38  ;;  %v1783_v53 = vand.u32 %v1775_v39, %v11333_v40 }
 0x16b   : > { %v1648_v45 = vand.u32 %v1642_v34, %v11333_v40  ;;  %v1651_v46 = vand.u32 %v1643_v37, %v11333_v40 }
 0x16c   : > { %v1704_v48 = vsel %vm1700_vm10, %v10772_v42, 0.0  ;;  %v1701_v49 = vsel %vm1700_vm10, %v10773_v41, %v10772_v42 }
 0x16d   : > { %v1708_v50 = vpack.c.bf16 %v1704_v48, %v1704_v48  ;;  %v1762_v51 = vpop.permute.xlu1 %1761  ;;  %10237 = vmatmul.mubr.msk.bf16.vlgmr.msra.gmra.mrb[8].mxu1 %vm1255_vm6, %v10236_v43  ;;  %10239 = vmatmul.mubr.msk.bf16.vlgmr.msra.gmra.mrb[4].mxu0 %vm1255_vm6, %v10238_v44  ;;  %v1707_v56 = vpack.c.bf16 %v1701_v49, %v1701_v49 }
 0x16e   : > { %v1766_v52 = vsel %vm1765_vm8, %v1762_v51, %v1764_v19  ;;  %1587 = vmatpush1.bf16.msra.mxu1 %v1581_v47  ;;  %1653 = vmatprep.subr.bf16.mxu0 %v1651_v46 }
 0x16f   : > { %v1770_v54 = vmul.f32 %v1766_v52, %v11329_v35  ;;  %1654 = vmatpush1.bf16.msra.mxu0 %v1648_v45  ;;  %v1716_v55 = vand.u32 %v1708_v50, %v11333_v40  ;;  %1618 = vmatprep.mubr.bf16.mxu1 %v11050_v1  ;;  %v1713_v61 = vand.u32 %v1707_v56, %v11333_v40 }
 0x170   : > { %1785 = vmatprep.subr.bf16.mxu0 %v1783_v53  ;;  %1685 = vmatprep.mubr.bf16.mxu0 %v11050_v1 }
 0x171   : > { %v1774_v57 = vpack.c.bf16 %v1770_v54, %v1770_v54  ;;  %1718 = vmatprep.subr.bf16.mxu1 %v1716_v55 }
 0x173   : > { %v1780_v60 = vand.u32 %v1774_v57, %v11333_v40 }
 0x174   : > { %v1832_v56 = vpop.permute.xlu0 %1831 }
 0x175   : > { %10241 = vmatmul.mubr.msk.bf16.vlgmr.msra.gmra.mrb[12].mxu1 %vm1255_vm6, %v10240_v58  ;;  %10243 = vmatmul.mubr.msk.bf16.vlgmr.msra.gmra.mrb[8].mxu0 %vm1255_vm6, %v10242_v59 }
 0x176   : > { %1719 = vmatpush1.bf16.msra.mxu1 %v1713_v61  ;;  %1786 = vmatpush1.bf16.msra.mxu0 %v1780_v60  ;;  %v2415_v61 = vld [vmem:[%s13609_s8] sm:$0xff]  ;;  %s13638_s8 = sld [smem:[#allocation24_spill]] }
 0x177   : > { %1750 = vmatprep.mubr.bf16.mxu1 %v11050_v1  ;;  %1817 = vmatprep.mubr.bf16.mxu0 %v11050_v1 }
 0x17d   : > { %10245 = vmatmul.mubr.msk.bf16.vlgmr.msra.gmra.mrb[16].mxu1 %vm1255_vm6, %v10244_v62  ;;  %10247 = vmatmul.mubr.msk.bf16.vlgmr.msra.gmra.mrb[12].mxu0 %vm1255_vm6, %v10246_v63 }
 0x17e   : > { %1906 = vmatprep.mubr.bf16.mxu1 %v11050_v1  ;;  %1956 = vmatprep.mubr.bf16.mxu0 %v11050_v1 }
 0x230   : > { %v1303_v40 = vpop.f32.mrb[0].mxu1 }
 0x231   : > { %v1305_v0 = vpop.f32.mrb[1].mxu1 }
 0x232   : > { %v1307_v2 = vpop.f32.mrb[2].mxu1 }
 0x233   : > { %v1308_v3 = vpop.f32.mrb[3].mxu1 }
 0x238   : > { %v1353_v4 = vpop.f32.mrb[4].mxu1  ;;  %v1429_v5 = vpop.f32.mrb[0].mxu0 }
 0x239   : > { %v1354_v6 = vadd.f32 %v1353_v4, %v1303_v40  ;;  %v1355_v7 = vpop.f32.mrb[5].mxu1  ;;  %v1431_v8 = vpop.f32.mrb[1].mxu0 }
 0x23a   : > { %v1356_v9 = vadd.f32 %v1355_v7, %v1305_v0  ;;  %v1357_v10 = vpop.f32.mrb[6].mxu1  ;;  %v1433_v11 = vpop.f32.mrb[2].mxu0 }
 0x23b   : > { %v1436_v12 = vadd.f32 %v1429_v5, %v1354_v6  ;;  %v1358_v13 = vpop.f32.mrb[7].mxu1  ;;  %v1434_v14 = vpop.f32.mrb[3].mxu0 }
 0x23c   : > { %v1437_v16 = vadd.f32 %v1431_v8, %v1356_v9 }
 0x240   : > { %v1496_v17 = vpop.f32.mrb[8].mxu1  ;;  %v1553_v18 = vpop.f32.mrb[4].mxu0 }
 0x241   : > { %v1503_v19 = vadd.f32 %v1496_v17, %v1436_v12  ;;  %v1498_v15 = vpop.f32.mrb[9].mxu1  ;;  %v1555_v20 = vpop.f32.mrb[5].mxu0 }
 0x242   : > { %v1504_v21 = vadd.f32 %v1498_v15, %v1437_v16  ;;  %v1500_v22 = vpop.f32.mrb[10].mxu1  ;;  %v1557_v23 = vpop.f32.mrb[6].mxu0 }
 0x243   : > { %v1560_v24 = vadd.f32 %v1553_v18, %v1503_v19  ;;  %v1501_v25 = vpop.f32.mrb[11].mxu1  ;;  %v1558_v27 = vpop.f32.mrb[7].mxu0  ;;  %v10248_v19 = vld [vmem:[%s13606_s3 + $0x4] sm:$0xf] }
 0x244   : > { %v1561_v28 = vadd.f32 %v1555_v20, %v1504_v21 }
 0x248   : > { %v1620_v30 = vpop.f32.mrb[12].mxu1  ;;  %v1687_v31 = vpop.f32.mrb[8].mxu0 }
 0x249   : > { %v1627_v32 = vadd.f32 %v1620_v30, %v1560_v24  ;;  %v1622_v33 = vpop.f32.mrb[13].mxu1  ;;  %v1689_v34 = vpop.f32.mrb[9].mxu0 }
 0x24a   : > { %v1628_v37 = vadd.f32 %v1622_v33, %v1561_v28  ;;  %v1624_v38 = vpop.f32.mrb[14].mxu1  ;;  %v1691_v39 = vpop.f32.mrb[10].mxu0  ;;  %v1848_v28 = vld [vmem:[%s13606_s3] sm:$0xf] }
 0x24b   : > { %v1694_v41 = vadd.f32 %v1687_v31, %v1627_v32  ;;  %v1625_v42 = vpop.f32.mrb[15].mxu1  ;;  %v1692_v43 = vpop.f32.mrb[11].mxu0 }
 0x24c   : > { %v1695_v44 = vadd.f32 %v1689_v34, %v1628_v37  ;;  %v10253_v42 = vld [vmem:[%s13606_s3 + $0x8] sm:$0xf] }
 0x250   : > { %v1752_v45 = vpop.f32.mrb[16].mxu1  ;;  %v1819_v46 = vpop.f32.mrb[12].mxu0 }
 0x251   : > { %v1759_v47 = vadd.f32 %v1752_v45, %v1694_v41  ;;  %v1754_v48 = vpop.f32.mrb[17].mxu1  ;;  %v1821_v49 = vpop.f32.mrb[13].mxu0 }
 0x252   : > { %v1760_v50 = vadd.f32 %v1754_v48, %v1695_v44  ;;  %v1756_v51 = vpop.f32.mrb[18].mxu1  ;;  %v1823_v52 = vpop.f32.mrb[14].mxu0 }
 0x253   : > { %v1826_v53 = vadd.f32 %v1819_v46, %v1759_v47  ;;  %v1757_v54 = vpop.f32.mrb[19].mxu1  ;;  %v1824_v55 = vpop.f32.mrb[15].mxu0 }
 0x254   : > { %v1827_v57 = vadd.f32 %v1821_v49, %v1760_v50  ;;  %v10256_v54 = vld [vmem:[%s13606_s3 + $0xc] sm:$0xf] }
 0x255   : > { %v11410_v58 = vadd.f32 %v1832_v56, %v1826_v53 }
 0x256   : > { %v11412_v59 = vadd.f32 %v1832_v56, %v1827_v57 }
 0x257   : > { %1838 = vrot.lane.b32.xlu0 %v11410_v58, %s13567_s28  ;;  %v2099_v34 = vpack.c.bf16 %v11410_v58, %v11410_v58 }
 0x258   : > { %v10774_v60 = vpack.i.bf16 %v11412_v59, %v11410_v58  ;;  %v2100_v41 = vpack.c.bf16 %v11412_v59, %v11412_v59 }
 0x259   : > { %v2105_v48 = vsel %vm1867_vm11, %v2099_v34, 0 }
 0x25a   : > { %10775 = vrot.lane.b32.xlu1 %v10774_v60, %s13565_s1 }
 0x25b   : > { %1965 = vrot.lane.b32.xlu0 %v11410_v58, %s13577_s2 }
 0x25e   : > { %1840 = vrot.lane.b32.xlu1 %v11412_v59, %s13567_s28 }
 0x25f   : > { %2031 = vrot.lane.b32.xlu0 %v11410_v58, %s13575_s7 }
 0x262   : > { %1967 = vrot.lane.b32.xlu1 %v11412_v59, %s13577_s2 }
 0x263   : > { %2153 = vrot.lane.b32.xlu0 %v11410_v58, %s13571_s10 }
 0x266   : > { %2033 = vrot.lane.b32.xlu1 %v11412_v59, %s13575_s7 }
 0x267   : > { %2219 = vrot.lane.b32.xlu0 %v11410_v58, %s13569_s11 }
 0x26a   : > { %2155 = vrot.lane.b32.xlu1 %v11412_v59, %s13571_s10 }
 0x26b   : > { %10780 = vrot.lane.b32.xlu0 %v10774_v60, %s13563_s16 }
 0x26e   : > { %2221 = vrot.lane.b32.xlu1 %v11412_v59, %s13569_s11 }
 0x26f   : > { %2351 = vrot.lane.b32.xlu0 %v11412_v59, %s13561_s15 }
 0x272   : > { %2349 = vrot.lane.b32.xlu1 %v11410_v58, %s13561_s15 }
 0x276   : > { %2418 = vperm.xlu1 %10784, %v2415_v61  }
 0x2c9   : > { %v1839_v62 = vpop.permute.xlu0 %1838 }
 0x2ca   : > { %v1845_v63 = vsel %vm1221_vm2, 0.0, %v1839_v62 }
 0x2cb   : > { %v1846_v4 = vmul.f32 %v1845_v63, %v11323_v26 }
 0x2cc   : > { %v10776_v40 = vpop.permute.xlu1 %10775 }
 0x2cd   : > { %v10778_v0 = vunpack.i.h.bf16 %v10776_v40  ;;  %v10777_v2 = vunpack.i.l.bf16 %v10776_v40  ;;  %v1966_v3 = vpop.permute.xlu0 %1965  ;;  %v1849_v13 = vpack.c.bf16 %v1846_v4, %v1846_v4 }
 0x2ce   : > { %v1972_v6 = vsel %vm1364_vm4, 0.0, %v1966_v3 }
 0x2cf   : > { %v1858_v5 = vsel %vm1246_vm1, 0.0, %v10777_v2  ;;  %v1855_v7 = vsel %vm1246_vm1, %v10777_v2, %v10778_v0  ;;  %v1973_v14 = vmul.f32 %v1972_v6, %v11329_v35  ;;  %v1919_v27 = vsel %vm1867_vm11, %v1849_v13, 0  ;;  %v10259_v6 = vld [vmem:[%s13606_s3 + $0x10] sm:$0xf] }
 0x2d0   : > { %v1841_v8 = vpop.permute.xlu1 %1840  ;;  %v1862_v9 = vpack.c.bf16 %v1855_v7, %v1855_v7  ;;  %v1861_v10 = vpack.c.bf16 %v1858_v5, %v1858_v5 }
 0x2d1   : > { %v1842_v11 = vsel %vm1221_vm2, %v1839_v62, %v1841_v8  ;;  %v2032_v12 = vpop.permute.xlu0 %2031  ;;  %v1977_v23 = vpack.c.bf16 %v1973_v14, %v1973_v14 }
 0x2d2   : > { %v1847_v16 = vmul.f32 %v1842_v11, %v11325_v29  ;;  %10249 = vmatprep.subr.msk.bf16.mxu1 %vm1867_vm11, %v1862_v9  ;;  %v1869_v17 = vsel %vm1867_vm11, %v1861_v10, 0  ;;  %v2038_v18 = vsel %vm1442_vm5, 0.0, %v2032_v12 }
 0x2d3   : > { %1875 = vmatpush1.bf16.msra.mxu1 %v1869_v17  ;;  %v2039_v24 = vmul.f32 %v2038_v18, %v11323_v26  ;;  %v1983_v39 = vsel %vm1867_vm11, %v1977_v23, 0  ;;  %v10262_v17 = vld [vmem:[%s13606_s3 + $0x14] sm:$0xf] }
 0x2d4   : > { %v1850_v15 = vpack.c.bf16 %v1847_v16, %v1847_v16  ;;  %v1968_v20 = vpop.permute.xlu1 %1967 }
 0x2d5   : > { %v1969_v21 = vsel %vm1364_vm4, %v1966_v3, %v1968_v20  ;;  %v2154_v22 = vpop.permute.xlu0 %2153  ;;  %v2043_v37 = vpack.c.bf16 %v2039_v24, %v2039_v24 }
 0x2d6   : > { %v1974_v25 = vmul.f32 %v1969_v21, %v11331_v36  ;;  %10250 = vmatmul.mubr.msk.bf16.vlgmr.msra.gmra.mrb[20].mxu1 %vm1863_vm12, %v10248_v19  ;;  %10251 = vmatprep.subr.msk.bf16.mxu0 %vm1867_vm11, %v1850_v15  ;;  %v10265_v15 = vld [vmem:[%s13606_s3 + $0x18] sm:$0xf]  ;;  %v10268_v21 = vld [vmem:[%s13606_s3 + $0x1c] sm:$0xf] }
 0x2d7   : > { %1925 = vmatpush1.bf16.msra.mxu0 %v1919_v27  ;;  %2020 = vmatprep.mubr.bf16.mxu1 %v11050_v1  ;;  %v2049_v52 = vsel %vm1867_vm11, %v2043_v37, 0 }
 0x2d8   : > { %v1978_v30 = vpack.c.bf16 %v1974_v25, %v1974_v25  ;;  %v2034_v31 = vpop.permute.xlu1 %2033 }
 0x2d9   : > { %v2035_v32 = vsel %vm1442_vm5, %v2032_v12, %v2034_v31  ;;  %v2220_v33 = vpop.permute.xlu0 %2219 }
 0x2da   : > { %v2040_v38 = vmul.f32 %v2035_v32, %v11325_v29  ;;  %10252 = vmatmul.mubr.msk.bf16.vlgmr.msra.gmra.mrb[16].mxu0 %vm1863_vm12, %v1848_v28  ;;  %10254 = vmatprep.subr.msk.bf16.mxu1 %vm1867_vm11, %v1978_v30 }
 0x2db   : > { %1989 = vmatpush1.bf16.msra.mxu1 %v1983_v39  ;;  %2086 = vmatprep.mubr.bf16.mxu0 %v11050_v1 }
 0x2dc   : > { %v2044_v43 = vpack.c.bf16 %v2040_v38, %v2040_v38  ;;  %v2156_v44 = vpop.permute.xlu1 %2155  ;;  %10260 = vmatprep.subr.msk.bf16.mxu1 %vm1867_vm11, %v2100_v41 }
 0x2dd   : > { %v2157_v45 = vsel %vm1566_vm7, %v2154_v22, %v2156_v44  ;;  %v2160_v46 = vsel %vm1566_vm7, %v2156_v44, 0.0  ;;  %v10781_v47 = vpop.permute.xlu0 %10780  ;;  %v10271_v22 = vld [vmem:[%s13606_s3 + $0x20] sm:$0xf]  ;;  %s13631_s3 = smov 113  }
 0x2de   : > { %v2161_v49 = vmul.f32 %v2157_v45, %v11329_v35  ;;  %v2162_v50 = vmul.f32 %v2160_v46, %v11331_v36  ;;  %v10783_v51 = vunpack.i.h.bf16 %v10781_v47  ;;  %10255 = vmatmul.mubr.msk.bf16.vlgmr.msra.gmra.mrb[24].mxu1 %vm1863_vm12, %v10253_v42  ;;  %10257 = vmatprep.subr.msk.bf16.mxu0 %vm1867_vm11, %v2044_v43  ;;  %v10782_v53 = vunpack.i.l.bf16 %v10781_v47 }
 0x2df   : > { %2055 = vmatpush1.bf16.msra.mxu0 %v2049_v52  ;;  %2111 = vmatpush1.bf16.msra.mxu1 %v2105_v48 }
 0x2e0   : > { %v2165_v55 = vpack.c.bf16 %v2161_v49, %v2161_v49  ;;  %v2166_v56 = vpack.c.bf16 %v2162_v50, %v2162_v50  ;;  %v2292_v57 = vsel %vm1700_vm10, %v10783_v51, 0.0  ;;  %v2222_v60 = vpop.permute.xlu1 %2221  ;;  %2142 = vmatprep.mubr.bf16.mxu1 %v11050_v1  ;;  %v2289_v7 = vsel %vm1700_vm10, %v10782_v53, %v10783_v51 }
 0x2e1   : > { %v2296_v61 = vpack.c.bf16 %v2292_v57, %v2292_v57  ;;  %v2223_v62 = vsel %vm1633_vm9, %v2220_v33, %v2222_v60  ;;  %v2226_v63 = vsel %vm1633_vm9, %v2222_v60, 0.0  ;;  %v2352_v40 = vpop.permute.xlu0 %2351  ;;  %v2295_v16 = vpack.c.bf16 %v2289_v7, %v2289_v7 }
 0x2e2   : > { %v2227_v0 = vmul.f32 %v2223_v62, %v11323_v26  ;;  %v2228_v2 = vmul.f32 %v2226_v63, %v11325_v29  ;;  %v2356_v3 = vsel %vm1765_vm8, %v2352_v40, 0.0  ;;  %10258 = vmatmul.mubr.msk.bf16.vlgmr.msra.gmra.mrb[20].mxu0 %vm1863_vm12, %v10256_v54  ;;  %10263 = vmatprep.subr.msk.bf16.mxu0 %vm1867_vm11, %v2166_v56  ;;  %v2171_v4 = vsel %vm1867_vm11, %v2165_v55, 0 }
 0x2e3   : > { %v2358_v5 = vmul.f32 %v2356_v3, %v11331_v36  ;;  %2177 = vmatpush1.bf16.msra.mxu0 %v2171_v4  ;;  %2208 = vmatprep.mubr.bf16.mxu0 %v11050_v1  ;;  %v2301_v19 = vsel %vm1867_vm11, %v2295_v16, 0 }
 0x2e4   : > { %v2231_v8 = vpack.c.bf16 %v2227_v0, %v2227_v0  ;;  %v2232_v9 = vpack.c.bf16 %v2228_v2, %v2228_v2  ;;  %10269 = vmatprep.subr.msk.bf16.mxu0 %vm1867_vm11, %v2296_v61  ;;  %v2350_v10 = vpop.permute.xlu1 %2349 }
 0x2e5   : > { %v2362_v11 = vpack.c.bf16 %v2358_v5, %v2358_v5  ;;  %v2353_v12 = vsel %vm1765_vm8, %v2350_v10, %v2352_v40 }
 0x2e6   : > { %v2357_v13 = vmul.f32 %v2353_v12, %v11329_v35  ;;  %10261 = vmatmul.mubr.msk.bf16.vlgmr.msra.gmra.mrb[28].mxu1 %vm1863_vm12, %v10259_v6  ;;  %10266 = vmatprep.subr.msk.bf16.mxu1 %vm1867_vm11, %v2232_v9  ;;  %v2237_v14 = vsel %vm1867_vm11, %v2231_v8, 0 }
 0x2e7   : > { %2243 = vmatpush1.bf16.msra.mxu1 %v2237_v14  ;;  %2274 = vmatprep.mubr.bf16.mxu1 %v11050_v1 }
 0x2e8   : > { %10272 = vmatprep.subr.msk.bf16.mxu1 %vm1867_vm11, %v2362_v11  ;;  %v2361_v18 = vpack.c.bf16 %v2357_v13, %v2357_v13 }
 0x2ea   : > { %10264 = vmatmul.mubr.msk.bf16.vlgmr.msra.gmra.mrb[24].mxu0 %vm1863_vm12, %v10262_v17  ;;  %v2367_v20 = vsel %vm1867_vm11, %v2361_v18, 0 }
 0x2eb   : > { %2307 = vmatpush1.bf16.msra.mxu0 %v2301_v19  ;;  %2338 = vmatprep.mubr.bf16.mxu0 %v11050_v1 }
 0x2ee   : > { %10267 = vmatmul.mubr.msk.bf16.vlgmr.msra.gmra.mrb[32].mxu1 %vm1863_vm12, %v10265_v15 }
 0x2ef   : > { %2373 = vmatpush1.bf16.msra.mxu1 %v2367_v20  ;;  %2404 = vmatprep.mubr.bf16.mxu1 %v11050_v1 }
 0x2f2   : > { %10270 = vmatmul.mubr.msk.bf16.vlgmr.msra.gmra.mrb[28].mxu0 %vm1863_vm12, %v10268_v21 }
 0x2f3   : > { %2495 = vmatprep.mubr.bf16.mxu0 %v11050_v1 }
 0x2f5   : > { %v2419_v13 = vpop.permute.xlu1 %2418 }
 0x2f6   : > { %10273 = vmatmul.mubr.msk.bf16.vlgmr.msra.gmra.mrb[36].mxu1 %vm1863_vm12, %v10271_v22  ;;  %v3004_v22 = vld [vmem:[%s11119_s19] sm:$0xff] }
 0x2f7   : > { %2545 = vmatprep.mubr.bf16.mxu1 %v11050_v1 }
 0x3a9   : > { %v1908_v23 = vpop.f32.mrb[20].mxu1 }
 0x3aa   : > { %v1910_v24 = vpop.f32.mrb[21].mxu1 }
 0x3ab   : > { %v1912_v25 = vpop.f32.mrb[22].mxu1 }
 0x3ac   : > { %v1913_v27 = vpop.f32.mrb[23].mxu1 }
 0x3ad   : > { %v1958_v28 = vpop.f32.mrb[16].mxu0 }
 0x3ae   : > { %v1959_v30 = vadd.f32 %v1958_v28, %v1908_v23  ;;  %v1960_v31 = vpop.f32.mrb[17].mxu0 }
 0x3af   : > { %v1961_v32 = vadd.f32 %v1960_v31, %v1910_v24  ;;  %v1962_v33 = vpop.f32.mrb[18].mxu0 }
 0x3b0   : > { %v1963_v34 = vpop.f32.mrb[19].mxu0 }
 0x3b1   : > { %v2022_v37 = vpop.f32.mrb[24].mxu1 }
 0x3b2   : > { %v2029_v38 = vadd.f32 %v2022_v37, %v1959_v30  ;;  %v2024_v39 = vpop.f32.mrb[25].mxu1 }
 0x3b3   : > { %v2030_v41 = vadd.f32 %v2024_v39, %v1961_v32  ;;  %v2026_v42 = vpop.f32.mrb[26].mxu1 }
 0x3b4   : > { %v2027_v43 = vpop.f32.mrb[27].mxu1 }
 0x3b5   : > { %v2088_v44 = vpop.f32.mrb[20].mxu0 }
 0x3b6   : > { %v2095_v45 = vadd.f32 %v2088_v44, %v2029_v38  ;;  %v2090_v46 = vpop.f32.mrb[21].mxu0 }
 0x3b7   : > { %v2096_v47 = vadd.f32 %v2090_v46, %v2030_v41  ;;  %v2092_v48 = vpop.f32.mrb[22].mxu0 }
 0x3b8   : > { %v2093_v49 = vpop.f32.mrb[23].mxu0  ;;  %v10274_v48 = vld [vmem:[%s11114_s14 + $0x4] sm:$0xf] }
 0x3b9   : > { %v2144_v50 = vpop.f32.mrb[28].mxu1 }
 0x3ba   : > { %v2151_v51 = vadd.f32 %v2144_v50, %v2095_v45  ;;  %v2146_v52 = vpop.f32.mrb[29].mxu1 }
 0x3bb   : > { %v2152_v53 = vadd.f32 %v2146_v52, %v2096_v47  ;;  %v2148_v54 = vpop.f32.mrb[30].mxu1 }
 0x3bc   : > { %v2149_v55 = vpop.f32.mrb[31].mxu1 }
 0x3bd   : > { %v2210_v56 = vpop.f32.mrb[24].mxu0 }
 0x3be   : > { %v2217_v57 = vadd.f32 %v2210_v56, %v2151_v51  ;;  %v2212_v60 = vpop.f32.mrb[25].mxu0 }
 0x3bf   : > { %v2218_v61 = vadd.f32 %v2212_v60, %v2152_v53  ;;  %v2214_v62 = vpop.f32.mrb[26].mxu0 }
 0x3c0   : > { %v2215_v63 = vpop.f32.mrb[27].mxu0 }
 0x3c1   : > { %v2276_v40 = vpop.f32.mrb[32].mxu1 }
 0x3c2   : > { %v2283_v0 = vadd.f32 %v2276_v40, %v2217_v57  ;;  %v2278_v2 = vpop.f32.mrb[33].mxu1  ;;  %v2439_v57 = vld [vmem:[%s11114_s14] sm:$0xf] }
 0x3c3   : > { %v2284_v3 = vadd.f32 %v2278_v2, %v2218_v61  ;;  %v2280_v4 = vpop.f32.mrb[34].mxu1 }
 0x3c4   : > { %v2281_v5 = vpop.f32.mrb[35].mxu1 }
 0x3c5   : > { %v2340_v6 = vpop.f32.mrb[28].mxu0  ;;  %v10279_v5 = vld [vmem:[%s11114_s14 + $0x8] sm:$0xf] }
 0x3c6   : > { %v2347_v7 = vadd.f32 %v2340_v6, %v2283_v0  ;;  %v2342_v8 = vpop.f32.mrb[29].mxu0 }
 0x3c7   : > { %v2348_v9 = vadd.f32 %v2342_v8, %v2284_v3  ;;  %v2344_v10 = vpop.f32.mrb[30].mxu0 }
 0x3c8   : > { %v2345_v11 = vpop.f32.mrb[31].mxu0 }
 0x3c9   : > { %v2406_v12 = vpop.f32.mrb[36].mxu1 }
 0x3ca   : > { %v2413_v14 = vadd.f32 %v2406_v12, %v2347_v7  ;;  %v2408_v16 = vpop.f32.mrb[37].mxu1 }
 0x3cb   : > { %v2414_v17 = vadd.f32 %v2408_v16, %v2348_v9  ;;  %v2410_v18 = vpop.f32.mrb[38].mxu1 }
 0x3cc   : > { %v11520_v19 = vadd.f32 %v2419_v13, %v2413_v14  ;;  %v2411_v15 = vpop.f32.mrb[39].mxu1  ;;  %v10282_v18 = vld [vmem:[%s11114_s14 + $0xc] sm:$0xf] }
 0x3cd   : > { %v11522_v20 = vadd.f32 %v2419_v13, %v2414_v17 }
 0x3ce   : > { %2429 = vrot.lane.b32.xlu1 %v11520_v19, %s13567_s28  ;;  %v2688_v40 = vpack.c.bf16 %v11520_v19, %v11520_v19 }
 0x3cf   : > { %v11528_v21 = vpack.i.bf16 %v11522_v20, %v11520_v19  ;;  %v2689_v4 = vpack.c.bf16 %v11522_v20, %v11522_v20 }
 0x3d0   : > { %v2694_v11 = vsel %vm1867_vm11, %v2688_v40, 0 }
 0x3d1   : > { %10786 = vrot.lane.b32.xlu0 %v11528_v21, %s13565_s1 }
 0x3d2   : > { %2554 = vrot.lane.b32.xlu1 %v11520_v19, %s13577_s2 }
 0x3d5   : > { %2431 = vrot.lane.b32.xlu0 %v11522_v20, %s13567_s28 }
 0x3d6   : > { %2620 = vrot.lane.b32.xlu1 %v11520_v19, %s13575_s7 }
 0x3d9   : > { %2556 = vrot.lane.b32.xlu0 %v11522_v20, %s13577_s2 }
 0x3da   : > { %2742 = vrot.lane.b32.xlu1 %v11520_v19, %s13571_s10 }
 0x3dd   : > { %2622 = vrot.lane.b32.xlu0 %v11522_v20, %s13575_s7 }
 0x3de   : > { %2808 = vrot.lane.b32.xlu1 %v11520_v19, %s13569_s11 }
 0x3e1   : > { %2744 = vrot.lane.b32.xlu0 %v11522_v20, %s13571_s10 }
 0x3e2   : > { %10791 = vrot.lane.b32.xlu1 %v11528_v21, %s13563_s16 }
 0x3e5   : > { %2810 = vrot.lane.b32.xlu0 %v11522_v20, %s13569_s11 }
 0x3e6   : > { %2940 = vrot.lane.b32.xlu1 %v11522_v20, %s13561_s15 }
 0x3e9   : > { %2938 = vrot.lane.b32.xlu0 %v11520_v19, %s13561_s15 }
 0x3ea   : > { %3024 = vrot.lane.b32.xlu1 %v11520_v19, %s13567_s28 }
 0x3ed   : > { %3007 = vperm.xlu0 %10763, %v3004_v22  }
 0x3ee   : > { %3155 = vrot.lane.b32.xlu1 %v11520_v19, %s13577_s2 }
 0x3f1   : > { %3026 = vrot.lane.b32.xlu0 %v11522_v20, %s13567_s28 }
 0x3f2   : > { %3225 = vrot.lane.b32.xlu1 %v11520_v19, %s13575_s7 }
 0x3f5   : > { %3157 = vrot.lane.b32.xlu0 %v11522_v20, %s13577_s2 }
 0x3f6   : > { %10796 = vrot.lane.b32.xlu1 %v11528_v21, %s13565_s1 }
 0x3f9   : > { %3227 = vrot.lane.b32.xlu0 %v11522_v20, %s13575_s7 }
 0x3fa   : > { %3347 = vrot.lane.b32.xlu1 %v11522_v20, %s13571_s10 }
 0x440   : > { %v2430_v23 = vpop.permute.xlu1 %2429 }
 0x441   : > { %v2436_v24 = vsel %vm1221_vm2, 0.0, %v2430_v23 }
 0x442   : > { %v2437_v31 = vmul.f32 %v2436_v24, %v11323_v26 }
 0x443   : > { %v10787_v25 = vpop.permute.xlu0 %10786 }
 0x444   : > { %v10789_v27 = vunpack.i.h.bf16 %v10787_v25  ;;  %v10788_v28 = vunpack.i.l.bf16 %v10787_v25  ;;  %v2555_v30 = vpop.permute.xlu1 %2554  ;;  %v2440_v43 = vpack.c.bf16 %v2437_v31, %v2437_v31 }
 0x445   : > { %v2561_v33 = vsel %vm1364_vm4, 0.0, %v2555_v30 }
 0x446   : > { %v2449_v32 = vsel %vm1246_vm1, 0.0, %v10788_v28  ;;  %v2446_v34 = vsel %vm1246_vm1, %v10788_v28, %v10789_v27  ;;  %v2562_v44 = vmul.f32 %v2561_v33, %v11329_v35  ;;  %v2508_v56 = vsel %vm1867_vm11, %v2440_v43, 0 }
 0x447   : > { %v2432_v37 = vpop.permute.xlu0 %2431  ;;  %v2453_v38 = vpack.c.bf16 %v2446_v34, %v2446_v34  ;;  %v2452_v39 = vpack.c.bf16 %v2449_v32, %v2449_v32 }
 0x448   : > { %v2433_v41 = vsel %vm1221_vm2, %v2430_v23, %v2432_v37  ;;  %v2621_v42 = vpop.permute.xlu1 %2620  ;;  %v2566_v53 = vpack.c.bf16 %v2562_v44, %v2562_v44 }
 0x449   : > { %v2438_v45 = vmul.f32 %v2433_v41, %v11325_v29  ;;  %10275 = vmatprep.subr.msk.bf16.mxu0 %vm1867_vm11, %v2453_v38  ;;  %v2458_v46 = vsel %vm1867_vm11, %v2452_v39, 0  ;;  %v2627_v47 = vsel %vm1442_vm5, 0.0, %v2621_v42  ;;  %v10285_v38 = vld [vmem:[%s11114_s14 + $0x10] sm:$0xf] }
 0x44a   : > { %2464 = vmatpush1.bf16.msra.mxu0 %v2458_v46  ;;  %v2628_v54 = vmul.f32 %v2627_v47, %v11323_v26  ;;  %v2572_v3 = vsel %vm1867_vm11, %v2566_v53, 0 }
 0x44b   : > { %v2441_v49 = vpack.c.bf16 %v2438_v45, %v2438_v45  ;;  %v2557_v50 = vpop.permute.xlu0 %2556 }
 0x44c   : > { %v2558_v51 = vsel %vm1364_vm4, %v2555_v30, %v2557_v50  ;;  %v2743_v52 = vpop.permute.xlu1 %2742  ;;  %v2632_v0 = vpack.c.bf16 %v2628_v54, %v2628_v54  ;;  %v10294_v54 = vld [vmem:[%s11114_s14 + $0x1c] sm:$0xf] }
 0x44d   : > { %v2563_v55 = vmul.f32 %v2558_v51, %v11331_v36  ;;  %10276 = vmatmul.mubr.msk.bf16.vlgmr.msra.gmra.mrb[32].mxu0 %vm1863_vm12, %v10274_v48  ;;  %10277 = vmatprep.subr.msk.bf16.mxu1 %vm1867_vm11, %v2441_v49  ;;  %v10288_v49 = vld [vmem:[%s11114_s14 + $0x14] sm:$0xf] }
 0x44e   : > { %2514 = vmatpush1.bf16.msra.mxu1 %v2508_v56  ;;  %2609 = vmatprep.mubr.bf16.mxu0 %v11050_v1  ;;  %v2638_v16 = vsel %vm1867_vm11, %v2632_v0, 0 }
 0x44f   : > { %v2567_v60 = vpack.c.bf16 %v2563_v55, %v2563_v55  ;;  %v2623_v61 = vpop.permute.xlu0 %2622  ;;  %v10297_v55 = vld [vmem:[%s11114_s14 + $0x20] sm:$0xf] }
 0x450   : > { %v2624_v62 = vsel %vm1442_vm5, %v2621_v42, %v2623_v61  ;;  %v2809_v63 = vpop.permute.xlu1 %2808 }
 0x451   : > { %v2629_v2 = vmul.f32 %v2624_v62, %v11325_v29  ;;  %10278 = vmatmul.mubr.msk.bf16.vlgmr.msra.gmra.mrb[40].mxu1 %vm1863_vm12, %v2439_v57  ;;  %10280 = vmatprep.subr.msk.bf16.mxu0 %vm1867_vm11, %v2567_v60 }
 0x452   : > { %2578 = vmatpush1.bf16.msra.mxu0 %v2572_v3  ;;  %2675 = vmatprep.mubr.bf16.mxu1 %v11050_v1 }
 0x453   : > { %v2633_v6 = vpack.c.bf16 %v2629_v2, %v2629_v2  ;;  %v2745_v7 = vpop.permute.xlu0 %2744  ;;  %10286 = vmatprep.subr.msk.bf16.mxu0 %vm1867_vm11, %v2689_v4 }
 0x454   : > { %v2746_v8 = vsel %vm1566_vm7, %v2743_v52, %v2745_v7  ;;  %v2749_v9 = vsel %vm1566_vm7, %v2745_v7, 0.0  ;;  %v10792_v10 = vpop.permute.xlu1 %10791  ;;  %v10291_v52 = vld [vmem:[%s11114_s14 + $0x18] sm:$0xf] }
 0x455   : > { %v2750_v12 = vmul.f32 %v2746_v8, %v11329_v35  ;;  %v2751_v13 = vmul.f32 %v2749_v9, %v11331_v36  ;;  %v10794_v14 = vunpack.i.h.bf16 %v10792_v10  ;;  %10281 = vmatmul.mubr.msk.bf16.vlgmr.msra.gmra.mrb[36].mxu0 %vm1863_vm12, %v10279_v5  ;;  %10283 = vmatprep.subr.msk.bf16.mxu1 %vm1867_vm11, %v2633_v6  ;;  %v10793_v17 = vunpack.i.l.bf16 %v10792_v10 }
 0x456   : > { %2644 = vmatpush1.bf16.msra.mxu1 %v2638_v16  ;;  %2700 = vmatpush1.bf16.msra.mxu0 %v2694_v11 }
 0x457   : > { %v2754_v15 = vpack.c.bf16 %v2750_v12, %v2750_v12  ;;  %v2755_v22 = vpack.c.bf16 %v2751_v13, %v2751_v13  ;;  %v2881_v23 = vsel %vm1700_vm10, %v10794_v14, 0.0  ;;  %v2811_v24 = vpop.permute.xlu0 %2810  ;;  %2731 = vmatprep.mubr.bf16.mxu0 %v11050_v1  ;;  %v2878_v39 = vsel %vm1700_vm10, %v10793_v17, %v10794_v14 }
 0x458   : > { %v2885_v25 = vpack.c.bf16 %v2881_v23, %v2881_v23  ;;  %v2812_v27 = vsel %vm1633_vm9, %v2809_v63, %v2811_v24  ;;  %v2815_v28 = vsel %vm1633_vm9, %v2811_v24, 0.0  ;;  %v2941_v30 = vpop.permute.xlu1 %2940  ;;  %v2884_v48 = vpack.c.bf16 %v2878_v39, %v2878_v39 }
 0x459   : > { %v2816_v31 = vmul.f32 %v2812_v27, %v11323_v26  ;;  %v2817_v32 = vmul.f32 %v2815_v28, %v11325_v29  ;;  %v2945_v33 = vsel %vm1765_vm8, %v2941_v30, 0.0  ;;  %10284 = vmatmul.mubr.msk.bf16.vlgmr.msra.gmra.mrb[44].mxu1 %vm1863_vm12, %v10282_v18  ;;  %10289 = vmatprep.subr.msk.bf16.mxu1 %vm1867_vm11, %v2755_v22  ;;  %v2760_v34 = vsel %vm1867_vm11, %v2754_v15, 0 }
 0x45a   : > { %v2947_v37 = vmul.f32 %v2945_v33, %v11331_v36  ;;  %2766 = vmatpush1.bf16.msra.mxu1 %v2760_v34  ;;  %2797 = vmatprep.mubr.bf16.mxu1 %v11050_v1  ;;  %v2890_v51 = vsel %vm1867_vm11, %v2884_v48, 0 }
 0x45b   : > { %v2820_v41 = vpack.c.bf16 %v2816_v31, %v2816_v31  ;;  %v2821_v42 = vpack.c.bf16 %v2817_v32, %v2817_v32  ;;  %v2939_v43 = vpop.permute.xlu0 %2938  ;;  %10295 = vmatprep.subr.msk.bf16.mxu1 %vm1867_vm11, %v2885_v25 }
 0x45c   : > { %v2951_v44 = vpack.c.bf16 %v2947_v37, %v2947_v37  ;;  %v2942_v45 = vsel %vm1765_vm8, %v2939_v43, %v2941_v30 }
 0x45d   : > { %v2946_v46 = vmul.f32 %v2942_v45, %v11329_v35  ;;  %10287 = vmatmul.mubr.msk.bf16.vlgmr.msra.gmra.mrb[40].mxu0 %vm1863_vm12, %v10285_v38  ;;  %10292 = vmatprep.subr.msk.bf16.mxu0 %vm1867_vm11, %v2821_v42  ;;  %v2826_v47 = vsel %vm1867_vm11, %v2820_v41, 0 }
 0x45e   : > { %2832 = vmatpush1.bf16.msra.mxu0 %v2826_v47  ;;  %2863 = vmatprep.mubr.bf16.mxu0 %v11050_v1 }
 0x45f   : > { %10298 = vmatprep.subr.msk.bf16.mxu0 %vm1867_vm11, %v2951_v44  ;;  %v2950_v50 = vpack.c.bf16 %v2946_v46, %v2946_v46 }
 0x461   : > { %10290 = vmatmul.mubr.msk.bf16.vlgmr.msra.gmra.mrb[48].mxu1 %vm1863_vm12, %v10288_v49  ;;  %v2956_v53 = vsel %vm1867_vm11, %v2950_v50, 0 }
 0x462   : > { %2896 = vmatpush1.bf16.msra.mxu1 %v2890_v51  ;;  %2927 = vmatprep.mubr.bf16.mxu1 %v11050_v1 }
 0x465   : > { %10293 = vmatmul.mubr.msk.bf16.vlgmr.msra.gmra.mrb[44].mxu0 %vm1863_vm12, %v10291_v52 }
 0x466   : > { %2962 = vmatpush1.bf16.msra.mxu0 %v2956_v53  ;;  %2993 = vmatprep.mubr.bf16.mxu0 %v11050_v1 }
 0x469   : > { %10296 = vmatmul.mubr.msk.bf16.vlgmr.msra.gmra.mrb[52].mxu1 %vm1863_vm12, %v10294_v54 }
 0x46a   : > { %3102 = vmatprep.mubr.bf16.mxu1 %v11050_v1 }
 0x46c   : > { %v3008_v51 = vpop.permute.xlu0 %3007 }
 0x46d   : > { %10299 = vmatmul.mubr.msk.bf16.vlgmr.msra.gmra.mrb[48].mxu0 %vm1863_vm12, %v10297_v55 }
 0x46e   : > { %3146 = vmatprep.mubr.bf16.mxu0 %v11050_v1 }
 0x520   : > { %v2497_v56 = vpop.f32.mrb[32].mxu0 }
 0x521   : > { %v2499_v57 = vpop.f32.mrb[33].mxu0 }
 0x522   : > { %v2501_v60 = vpop.f32.mrb[34].mxu0 }
 0x523   : > { %v2502_v61 = vpop.f32.mrb[35].mxu0 }
 0x524   : > { %v2547_v62 = vpop.f32.mrb[40].mxu1 }
 0x525   : > { %v2548_v63 = vadd.f32 %v2547_v62, %v2497_v56  ;;  %v2549_v40 = vpop.f32.mrb[41].mxu1  ;;  %v3621_v62 = vld [vmem:[%s11129_s30] sm:$0xff] }
 0x526   : > { %v2550_v0 = vadd.f32 %v2549_v40, %v2499_v57  ;;  %v2551_v2 = vpop.f32.mrb[42].mxu1 }
 0x527   : > { %v2552_v3 = vpop.f32.mrb[43].mxu1  ;;  %v3027_v2 = vpop.permute.xlu0 %3026 }
 0x528   : > { %v2611_v4 = vpop.f32.mrb[36].mxu0 }
 0x529   : > { %v2618_v5 = vadd.f32 %v2611_v4, %v2548_v63  ;;  %v2613_v6 = vpop.f32.mrb[37].mxu0  ;;  %v3025_v63 = vpop.permute.xlu1 %3024 }
 0x52a   : > { %v2619_v7 = vadd.f32 %v2613_v6, %v2550_v0  ;;  %v2615_v8 = vpop.f32.mrb[38].mxu0 }
 0x52b   : > { %v2616_v9 = vpop.f32.mrb[39].mxu0  ;;  %v3158_v3 = vpop.permute.xlu0 %3157 }
 0x52c   : > { %v2677_v10 = vpop.f32.mrb[44].mxu1 }
 0x52d   : > { %v2684_v11 = vadd.f32 %v2677_v10, %v2618_v5  ;;  %v2679_v12 = vpop.f32.mrb[45].mxu1  ;;  %v3156_v40 = vpop.permute.xlu1 %3155 }
 0x52e   : > { %v2685_v13 = vadd.f32 %v2679_v12, %v2619_v7  ;;  %v2681_v14 = vpop.f32.mrb[46].mxu1 }
 0x52f   : > { %v2682_v16 = vpop.f32.mrb[47].mxu1  ;;  %v3228_v5 = vpop.permute.xlu0 %3227 }
 0x530   : > { %v2733_v17 = vpop.f32.mrb[40].mxu0  ;;  %v3032_v16 = vsel %vm1221_vm2, %v3025_v63, %v3027_v2 }
 0x531   : > { %v2740_v18 = vadd.f32 %v2733_v17, %v2684_v11  ;;  %v2735_v15 = vpop.f32.mrb[41].mxu0  ;;  %v3226_v0 = vpop.permute.xlu1 %3225 }
 0x532   : > { %v2741_v22 = vadd.f32 %v2735_v15, %v2685_v13  ;;  %v2737_v23 = vpop.f32.mrb[42].mxu0  ;;  %v3038_v15 = vsel %vm1221_vm2, 0.0, %v3025_v63  ;;  %v10308_v63 = vld [vmem:[%s11124_s24 + $0x8] sm:$0xf] }
 0x533   : > { %v2738_v24 = vpop.f32.mrb[43].mxu0 }
 0x534   : > { %v2799_v25 = vpop.f32.mrb[48].mxu1 }
 0x535   : > { %v2806_v27 = vadd.f32 %v2799_v25, %v2740_v18  ;;  %v2801_v28 = vpop.f32.mrb[49].mxu1 }
 0x536   : > { %v2807_v30 = vadd.f32 %v2801_v28, %v2741_v22  ;;  %v2803_v31 = vpop.f32.mrb[50].mxu1 }
 0x537   : > { %v2804_v32 = vpop.f32.mrb[51].mxu1  ;;  %v3041_v31 = vmul.f32 %v3032_v16, %v11325_v29 }
 0x538   : > { %v2865_v33 = vpop.f32.mrb[44].mxu0 }
 0x539   : > { %v2872_v34 = vadd.f32 %v2865_v33, %v2806_v27  ;;  %v2867_v37 = vpop.f32.mrb[45].mxu0 }
 0x53a   : > { %v2873_v38 = vadd.f32 %v2867_v37, %v2807_v30  ;;  %v2869_v39 = vpop.f32.mrb[46].mxu0  ;;  %v3163_v37 = vsel %vm1364_vm4, %v3156_v40, %v3158_v3 }
 0x53b   : > { %v2870_v41 = vpop.f32.mrb[47].mxu0  ;;  %v3169_v39 = vsel %vm1364_vm4, 0.0, %v3156_v40  ;;  %v3239_v40 = vsel %vm1442_vm5, 0.0, %v3226_v0 }
 0x53c   : > { %v2929_v42 = vpop.f32.mrb[52].mxu1 }
 0x53d   : > { %v2936_v43 = vadd.f32 %v2929_v42, %v2872_v34  ;;  %v2931_v44 = vpop.f32.mrb[53].mxu1  ;;  %v3040_v34 = vmul.f32 %v3038_v15, %v11323_v26 }
 0x53e   : > { %v2937_v45 = vadd.f32 %v2931_v44, %v2873_v38  ;;  %v2933_v46 = vpop.f32.mrb[54].mxu1  ;;  %v10300_v38 = vld [vmem:[%s11124_s24 + $0x4] sm:$0xf] }
 0x53f   : > { %v2934_v47 = vpop.f32.mrb[55].mxu1 }
 0x540   : > { %v2995_v48 = vpop.f32.mrb[48].mxu0  ;;  %v3172_v47 = vmul.f32 %v3163_v37, %v11331_v36 }
 0x541   : > { %v3002_v49 = vadd.f32 %v2995_v48, %v2936_v43  ;;  %v2997_v50 = vpop.f32.mrb[49].mxu0 }
 0x542   : > { %v3003_v52 = vadd.f32 %v2997_v50, %v2937_v45  ;;  %v2999_v53 = vpop.f32.mrb[50].mxu0  ;;  %v3044_v50 = vld [vmem:[%s11124_s24] sm:$0xf] }
 0x543   : > { %v3010_v54 = vadd.f32 %v3008_v51, %v3002_v49  ;;  %v3000_v55 = vpop.f32.mrb[51].mxu0  ;;  %v3171_v49 = vmul.f32 %v3169_v39, %v11329_v35 }
 0x544   : > { %v3011_v56 = vadd.f32 %v3008_v51, %v3003_v52 }
 0x545   : > { %v11650_v57 = vmax.f32 %v3010_v54, 0.0 }
 0x546   : > { %v11652_v60 = vmax.f32 %v3011_v56, 0.0 }
 0x547   : > { %3349 = vrot.lane.b32.xlu0 %v11650_v57, %s13571_s10  ;;  %3028 = vrot.lane.b32.xlu1 %v11650_v57, %s13567_s28 }
 0x548   : > { %v11660_v61 = vpack.i.bf16 %v11652_v60, %v11650_v57  ;;  %v11786_v56 = vpack.c.bf16 %v11652_v60, %v11522_v20 }
 0x54b   : > { %3159 = vrot.lane.b32.xlu1 %v11650_v57, %s13577_s2  ;;  %10801 = vrot.lane.b32.xlu0 %v11660_v61, %s13565_s1 }
 0x54f   : > { %3345 = vrot.lane.b32.xlu1 %v11520_v19, %s13571_s10  ;;  %3030 = vrot.lane.b32.xlu0 %v11652_v60, %s13567_s28 }
 0x553   : > { %3229 = vrot.lane.b32.xlu1 %v11650_v57, %s13575_s7  ;;  %3161 = vrot.lane.b32.xlu0 %v11652_v60, %s13577_s2 }
 0x557   : > { %3417 = vrot.lane.b32.xlu1 %v11522_v20, %s13569_s11  ;;  %3419 = vrot.lane.b32.xlu0 %v11650_v57, %s13569_s11 }
 0x55b   : > { %3415 = vrot.lane.b32.xlu1 %v11520_v19, %s13569_s11  ;;  %3231 = vrot.lane.b32.xlu0 %v11652_v60, %s13575_s7 }
 0x55f   : > { %3553 = vrot.lane.b32.xlu1 %v11522_v20, %s13561_s15  ;;  %3351 = vrot.lane.b32.xlu0 %v11652_v60, %s13571_s10 }
 0x563   : > { %10806 = vrot.lane.b32.xlu1 %v11528_v21, %s13563_s16  ;;  %3421 = vrot.lane.b32.xlu0 %v11652_v60, %s13569_s11 }
 0x567   : > { %3551 = vrot.lane.b32.xlu1 %v11520_v19, %s13561_s15  ;;  %3557 = vrot.lane.b32.xlu0 %v11652_v60, %s13561_s15 }
 0x56b   : > { %3624 = vperm.xlu1 %10784, %v3621_v62   ;;  %10811 = vrot.lane.b32.xlu0 %v11660_v61, %s13563_s16  ;;  %v3233_v62 = vsel %vm1442_vm5, %v3226_v0, %v3228_v5  ;;  %v3241_v0 = vmul.f32 %v3239_v40, %v11323_v26 }
 0x56f   : > { %3647 = vrot.lane.b32.xlu1 %v11522_v20, %s13567_s28  ;;  %3555 = vrot.lane.b32.xlu0 %v11650_v57, %s13561_s15 }
 0x573   : > { %3811 = vrot.lane.b32.xlu1 %v11520_v19, %s13577_s2  ;;  %10816 = vrot.lane.b32.xlu0 %v11528_v21, %s13565_s1 }
 0x577   : > { %3815 = vrot.lane.b32.xlu1 %v11650_v57, %s13577_s2  ;;  %3645 = vrot.lane.b32.xlu0 %v11520_v19, %s13567_s28 }
 0x57b   : > { %3899 = vrot.lane.b32.xlu1 %v11520_v19, %s13575_s7  ;;  %3649 = vrot.lane.b32.xlu0 %v11650_v57, %s13567_s28 }
 0x57f   : > { %3903 = vrot.lane.b32.xlu1 %v11650_v57, %s13575_s7  ;;  %3813 = vrot.lane.b32.xlu0 %v11522_v20, %s13577_s2 }
 0x583   : > { %4047 = vrot.lane.b32.xlu1 %v11522_v20, %s13571_s10  ;;  %3901 = vrot.lane.b32.xlu0 %v11522_v20, %s13575_s7 }
 0x587   : > { %4045 = vrot.lane.b32.xlu1 %v11520_v19, %s13571_s10  ;;  %4049 = vrot.lane.b32.xlu0 %v11650_v57, %s13571_s10 }
 0x58b   : > { %4135 = vrot.lane.b32.xlu1 %v11522_v20, %s13569_s11  ;;  %4137 = vrot.lane.b32.xlu0 %v11650_v57, %s13569_s11 }
 0x58f   : > { %4133 = vrot.lane.b32.xlu1 %v11520_v19, %s13569_s11  ;;  %3817 = vrot.lane.b32.xlu0 %v11652_v60, %s13577_s2 }
 0x593   : > { %4305 = vrot.lane.b32.xlu1 %v11522_v20, %s13561_s15  ;;  %3905 = vrot.lane.b32.xlu0 %v11652_v60, %s13575_s7 }
 0x597   : > { %10821 = vrot.lane.b32.xlu1 %v11528_v21, %s13563_s16  ;;  %4051 = vrot.lane.b32.xlu0 %v11652_v60, %s13571_s10  ;;  %v10797_v21 = vpop.permute.xlu1 %10796 }
 0x598   : > { %v10799_v8 = vunpack.i.h.bf16 %v10797_v21  ;;  %v10798_v9 = vunpack.i.l.bf16 %v10797_v21 }
 0x59a   : > { %v3055_v17 = vsel %vm1246_vm1, %v10798_v9, %v10799_v8  ;;  %v3242_v8 = vmul.f32 %v3233_v62, %v11325_v29 }
 0x59b   : > { %10826 = vrot.lane.b32.xlu1 %v11660_v61, %s13565_s1  ;;  %4139 = vrot.lane.b32.xlu0 %v11652_v60, %s13569_s11  ;;  %v11749_v4 = vpop.permute.xlu1 %3347 }
 0x59c   : > { %v3359_v5 = vsel %vm1566_vm7, %v11749_v4, 0.0 }
 0x59f   : > { %3651 = vrot.lane.b32.xlu1 %v11652_v60, %s13567_s28  ;;  %4309 = vrot.lane.b32.xlu0 %v11652_v60, %s13561_s15  ;;  %v11797_v60 = vpack.c.bf16 %v11650_v57, %v11520_v19 }
 0x5b9   : > { %v11751_v6 = vpop.permute.xlu0 %3349  ;;  %v3029_v7 = vpop.permute.xlu1 %3028 }
 0x5ba   : > { %v3039_v14 = vsel %vm1221_vm2, 0.0, %v3029_v7 }
 0x5bb   : > { %v3042_v27 = vmul.f32 %v3039_v14, %v11323_v26  ;;  %v3362_v14 = vmul.f32 %v3359_v5, %v11331_v36 }
 0x5bd   : > { %v3160_v10 = vpop.permute.xlu1 %3159  ;;  %v10802_v11 = vpop.permute.xlu0 %10801  ;;  %v3045_v44 = vpack.c.bf16 %v3042_v27, %v3040_v34  ;;  %v10310_v27 = vld [vmem:[%s11124_s24 + $0xc] sm:$0xf] }
 0x5be   : > { %v10804_v12 = vunpack.i.h.bf16 %v10802_v11  ;;  %v10803_v13 = vunpack.i.l.bf16 %v10802_v11  ;;  %v3170_v32 = vsel %vm1364_vm4, 0.0, %v3160_v10 }
 0x5bf   : > { %v3173_v45 = vmul.f32 %v3170_v32, %v11329_v35 }
 0x5c0   : > { %v3056_v18 = vsel %vm1246_vm1, %v10803_v13, %v10804_v12  ;;  %v10304_v28 = vpack.c.bf16 %v10803_v13, %v10798_v9 }
 0x5c1   : > { %v3346_v22 = vpop.permute.xlu1 %3345  ;;  %v3031_v23 = vpop.permute.xlu0 %3030  ;;  %v3066_v24 = vpack.c.bf16 %v3056_v18, %v3055_v17  ;;  %v3177_v54 = vpack.c.bf16 %v3173_v45, %v3171_v49 }
 0x5c2   : > { %v3033_v30 = vsel %vm1221_vm2, %v3029_v7, %v3031_v23 }
 0x5c3   : > { %v3043_v33 = vmul.f32 %v3033_v30, %v11325_v29  ;;  %3070 = vmatprep.subr.bf16.mxu1 %v3066_v24 }
 0x5c4   : > { %10305 = vmatpush1.bf16.msk.msra.mxu1 %vm11759_vm14, %v10304_v28  ;;  %v10312_v28 = vld [vmem:[%s11124_s24 + $0x10] sm:$0xf] }
 0x5c5   : > { %v3230_v41 = vpop.permute.xlu1 %3229  ;;  %v3162_v42 = vpop.permute.xlu0 %3161  ;;  %v3046_v43 = vpack.c.bf16 %v3043_v33, %v3041_v31 }
 0x5c6   : > { %v3164_v46 = vsel %vm1364_vm4, %v3160_v10, %v3162_v42  ;;  %v3240_v55 = vsel %vm1442_vm5, 0.0, %v3230_v41  ;;  %v3353_v10 = vsel %vm1566_vm7, %v3346_v22, %v11749_v4 }
 0x5c7   : > { %v3174_v48 = vmul.f32 %v3164_v46, %v11331_v36  ;;  %10306 = vmatmul.mubr.msk.bf16.vlgmr.msra.gmra.mrb[56].mxu1 %vm1246_vm1, %v10300_v38  ;;  %3114 = vmatprep.subr.bf16.mxu0 %v3046_v43  ;;  %v3243_v3 = vmul.f32 %v3240_v55, %v11323_v26  ;;  %v3361_v15 = vmul.f32 %v3353_v10, %v11329_v35 }
 0x5c8   : > { %3115 = vmatpush1.bf16.msra.mxu0 %v3045_v44  ;;  %3214 = vmatprep.mubr.bf16.mxu1 %v11050_v1 }
 0x5c9   : > { %v3418_v51 = vpop.permute.xlu1 %3417  ;;  %v3420_v52 = vpop.permute.xlu0 %3419  ;;  %v3178_v53 = vpack.c.bf16 %v3174_v48, %v3172_v47  ;;  %v3247_v16 = vpack.c.bf16 %v3243_v3, %v3241_v0 }
 0x5ca   : > { %v3429_v4 = vsel %vm1633_vm9, %v3418_v51, 0.0 }
 0x5cb   : > { %10307 = vmatmul.mubr.msk.bf16.vlgmr.msra.gmra.mrb[52].mxu0 %vm1246_vm1, %v3044_v50  ;;  %3182 = vmatprep.subr.bf16.mxu1 %v3178_v53 }
 0x5cc   : > { %3183 = vmatpush1.bf16.msra.mxu1 %v3177_v54  ;;  %3284 = vmatprep.mubr.bf16.mxu0 %v11050_v1 }
 0x5cd   : > { %v3416_v2 = vpop.permute.xlu1 %3415  ;;  %v3232_v21 = vpop.permute.xlu0 %3231  ;;  %3302 = vmatprep.subr.bf16.mxu1 %v11786_v56 }
 0x5ce   : > { %v3234_v7 = vsel %vm1442_vm5, %v3230_v41, %v3232_v21  ;;  %v3423_v24 = vsel %vm1633_vm9, %v3416_v2, %v3418_v51  ;;  %v10314_v51 = vld [vmem:[%s11124_s24 + $0x14] sm:$0xf] }
 0x5cf   : > { %v3244_v9 = vmul.f32 %v3234_v7, %v11325_v29  ;;  %10309 = vmatmul.mubr.msk.bf16.vlgmr.msra.gmra.mrb[60].mxu1 %vm1246_vm1, %v10308_v63  ;;  %v3431_v37 = vmul.f32 %v3423_v24, %v11323_v26 }
 0x5d0   : > { %3303 = vmatpush1.bf16.msra.mxu1 %v11797_v60  ;;  %3334 = vmatprep.mubr.bf16.mxu1 %v11050_v1 }
 0x5d1   : > { %v3554_v11 = vpop.permute.xlu1 %3553  ;;  %v3352_v12 = vpop.permute.xlu0 %3351  ;;  %v3248_v13 = vpack.c.bf16 %v3244_v9, %v3242_v8 }
 0x5d2   : > { %v3354_v17 = vsel %vm1566_vm7, %v11751_v6, %v3352_v12  ;;  %v3360_v18 = vsel %vm1566_vm7, %v3352_v12, 0.0  ;;  %v3432_v6 = vmul.f32 %v3429_v4, %v11325_v29  ;;  %v3565_v42 = vsel %vm1765_vm8, %v3554_v11, 0.0 }
 0x5d3   : > { %v3363_v22 = vmul.f32 %v3354_v17, %v11329_v35  ;;  %v3364_v23 = vmul.f32 %v3360_v18, %v11331_v36  ;;  %3252 = vmatprep.subr.bf16.mxu0 %v3248_v13  ;;  %v3568_v47 = vmul.f32 %v3565_v42, %v11331_v36  ;;  %v10323_v13 = vld [vmem:[%s11124_s24 + $0x20] sm:$0xf] }
 0x5d4   : > { %3253 = vmatpush1.bf16.msra.mxu0 %v3247_v16 }
 0x5d5   : > { %v3367_v30 = vpack.c.bf16 %v3363_v22, %v3361_v15  ;;  %v3422_v31 = vpop.permute.xlu0 %3421  ;;  %v3368_v32 = vpack.c.bf16 %v3364_v23, %v3362_v14  ;;  %v10807_v38 = vpop.permute.xlu1 %10806 }
 0x5d6   : > { %v3424_v33 = vsel %vm1633_vm9, %v3420_v52, %v3422_v31  ;;  %v3430_v34 = vsel %vm1633_vm9, %v3422_v31, 0.0  ;;  %v10809_v48 = vunpack.i.h.bf16 %v10807_v38  ;;  %v10808_v49 = vunpack.i.l.bf16 %v10807_v38  ;;  %v10316_v52 = vld [vmem:[%s11124_s24 + $0x18] sm:$0xf] }
 0x5d7   : > { %v3433_v39 = vmul.f32 %v3424_v33, %v11323_v26  ;;  %v3434_v41 = vmul.f32 %v3430_v34, %v11325_v29  ;;  %10311 = vmatmul.mubr.msk.bf16.vlgmr.msra.gmra.mrb[56].mxu0 %vm1246_vm1, %v10310_v27  ;;  %10313 = vmatmul.mubr.msk.bf16.vlgmr.msra.gmra.mrb[64].mxu1 %vm1246_vm1, %v10312_v28 }
 0x5d8   : > { %3372 = vmatprep.subr.bf16.mxu0 %v3368_v32  ;;  %3404 = vmatprep.mubr.bf16.mxu0 %v11050_v1  ;;  %v3493_v40 = vsel %vm1700_vm10, %v10808_v49, %v10809_v48 }
 0x5d9   : > { %v3437_v43 = vpack.c.bf16 %v3433_v39, %v3431_v37  ;;  %3373 = vmatpush1.bf16.msra.mxu0 %v3367_v30  ;;  %v3558_v44 = vpop.permute.xlu0 %3557  ;;  %v3438_v45 = vpack.c.bf16 %v3434_v41, %v3432_v6  ;;  %3474 = vmatprep.mubr.bf16.mxu1 %v11050_v1  ;;  %v3552_v53 = vpop.permute.xlu1 %3551 }
 0x5da   : > { %v3566_v46 = vsel %vm1765_vm8, %v3558_v44, 0.0  ;;  %v3559_v21 = vsel %vm1765_vm8, %v3552_v53, %v3554_v11  ;;  %v10318_v11 = vld [vmem:[%s11124_s24 + $0x1c] sm:$0xf] }
 0x5db   : > { %v3570_v50 = vmul.f32 %v3566_v46, %v11331_v36  ;;  %3442 = vmatprep.subr.bf16.mxu1 %v3438_v45  ;;  %v3567_v0 = vmul.f32 %v3559_v21, %v11329_v35 }
 0x5dc   : > { %3443 = vmatpush1.bf16.msra.mxu1 %v3437_v43 }
 0x5dd   : > { %v10812_v54 = vpop.permute.xlu0 %10811  ;;  %v3574_v55 = vpack.c.bf16 %v3570_v50, %v3568_v47 }
 0x5de   : > { %v10814_v62 = vunpack.i.h.bf16 %v10812_v54  ;;  %v10813_v63 = vunpack.i.l.bf16 %v10812_v54 }
 0x5df   : > { %10315 = vmatmul.mubr.msk.bf16.vlgmr.msra.gmra.mrb[60].mxu0 %vm1246_vm1, %v10314_v51  ;;  %10317 = vmatmul.mubr.msk.bf16.vlgmr.msra.gmra.mrb[68].mxu1 %vm1246_vm1, %v10316_v52 }
 0x5e0   : > { %v10320_v3 = vpack.c.bf16 %v10814_v62, %v10809_v48  ;;  %v3494_v7 = vsel %vm1700_vm10, %v10813_v63, %v10814_v62  ;;  %3578 = vmatprep.subr.bf16.mxu1 %v3574_v55  ;;  %3540 = vmatprep.mubr.bf16.mxu0 %v11050_v1 }
 0x5e1   : > { %v3556_v5 = vpop.permute.xlu0 %3555  ;;  %v3503_v8 = vpack.c.bf16 %v3494_v7, %v3493_v40  ;;  %3610 = vmatprep.mubr.bf16.mxu1 %v11050_v1 }
 0x5e2   : > { %v3560_v9 = vsel %vm1765_vm8, %v3556_v5, %v3558_v44  ;;  %10321 = vmatprep.subr.msk.bf16.mxu0 %vm11841_vm15, %v10320_v3 }
 0x5e3   : > { %v3569_v10 = vmul.f32 %v3560_v9, %v11329_v35  ;;  %3509 = vmatpush1.bf16.msra.mxu0 %v3503_v8 }
 0x5e5   : > { %v3573_v12 = vpack.c.bf16 %v3569_v10, %v3567_v0  ;;  %v10817_v27 = vpop.permute.xlu0 %10816 }
 0x5e6   : > { %v10819_v6 = vunpack.i.h.bf16 %v10817_v27  ;;  %v10818_v33 = vunpack.i.l.bf16 %v10817_v27 }
 0x5e7   : > { %10322 = vmatmul.mubr.msk.bf16.vlgmr.msra.gmra.mrb[64].mxu0 %vm1246_vm1, %v10318_v11  ;;  %3579 = vmatpush1.bf16.msra.mxu1 %v3573_v12 }
 0x5e8   : > { %3752 = vmatprep.mubr.bf16.mxu0 %v11050_v1  ;;  %v3692_v43 = vsel %vm1246_vm1, %v10818_v33, %v10819_v6 }
 0x5e9   : > { %v3646_v31 = vpop.permute.xlu0 %3645 }
 0x5ea   : > { %v11858_v14 = vpop.permute.xlu1 %3624  ;;  %10324 = vmatmul.mubr.msk.bf16.vlgmr.msra.gmra.mrb[72].mxu1 %vm1246_vm1, %v10323_v13  ;;  %v3666_v45 = vsel %vm1221_vm2, 0.0, %v3646_v31 }
 0x5eb   : > { %3802 = vmatprep.mubr.bf16.mxu1 %v11050_v1  ;;  %v3669_v53 = vmul.f32 %v3666_v45, %v11323_v26 }
 0x5ed   : > { %v3650_v34 = vpop.permute.xlu0 %3649 }
 0x5ee   : > { %v3648_v16 = vpop.permute.xlu1 %3647  ;;  %v3667_v41 = vsel %vm1221_vm2, 0.0, %v3650_v34 }
 0x5ef   : > { %v3657_v42 = vsel %vm1221_vm2, %v3646_v31, %v3648_v16  ;;  %v3671_v48 = vmul.f32 %v3667_v41, %v11323_v26 }
 0x5f0   : > { %v3670_v51 = vmul.f32 %v3657_v42, %v11325_v29 }
 0x5f1   : > { %v3676_v55 = vpack.c.bf16 %v3671_v48, %v3669_v53 }
 0x5f2   : > { %v11862_v17 = vpop.permute.xlu1 %3811 }
 0x5f6   : > { %v11864_v18 = vpop.permute.xlu1 %3815 }
 0x5fa   : > { %v11866_v15 = vpop.permute.xlu1 %3899 }
 0x5fe   : > { %v11868_v4 = vpop.permute.xlu1 %3903 }
 0x602   : > { %v11870_v22 = vpop.permute.xlu1 %4047 }
 0x606   : > { %v11872_v23 = vpop.permute.xlu1 %4045 }
 0x60a   : > { %v11874_v24 = vpop.permute.xlu1 %4135 }
 0x60e   : > { %v11876_v28 = vpop.permute.xlu1 %4133 }
 0x612   : > { %v11878_v30 = vpop.permute.xlu1 %4305 }
 0x616   : > { %v11880_v32 = vpop.permute.xlu1 %10821 }
 0x61a   : > { %v10827_v37 = vpop.permute.xlu1 %10826 }
 0x61b   : > { %v10829_v38 = vunpack.i.h.bf16 %v10827_v37  ;;  %v10828_v39 = vunpack.i.l.bf16 %v10827_v37 }
 0x61d   : > { %v3693_v44 = vsel %vm1246_vm1, %v10828_v39, %v10829_v38  ;;  %v10329_v49 = vpack.c.bf16 %v10828_v39, %v10818_v33 }
 0x61e   : > { %v3652_v46 = vpop.permute.xlu1 %3651  ;;  %v3707_v47 = vpack.c.bf16 %v3693_v44, %v3692_v43 }
 0x61f   : > { %v3658_v50 = vsel %vm1221_vm2, %v3650_v34, %v3652_v46 }
 0x620   : > { %v3672_v52 = vmul.f32 %v3658_v50, %v11325_v29  ;;  %3720 = vmatprep.subr.bf16.mxu0 %v3707_v47 }
 0x621   : > { %10330 = vmatpush1.bf16.msk.msra.mxu0 %vm11759_vm14, %v10329_v49 }
 0x622   : > { %v3677_v54 = vpack.c.bf16 %v3672_v52, %v3670_v51 }
 0x624   : > { %3770 = vmatprep.subr.bf16.mxu1 %v3677_v54 }
 0x625   : > { %3771 = vmatpush1.bf16.msra.mxu1 %v3676_v55 }
 0x69a   : > { %v3104_v62 = vpop.f32.mrb[56].mxu1 }
 0x69b   : > { %v3106_v63 = vpop.f32.mrb[57].mxu1 }
 0x69c   : > { %v3108_v40 = vpop.f32.mrb[58].mxu1 }
 0x69d   : > { %v3109_v21 = vpop.f32.mrb[59].mxu1 }
 0x69e   : > { %v3148_v3 = vpop.f32.mrb[52].mxu0 }
 0x69f   : > { %v3149_v7 = vadd.f32 %v3148_v3, %v3104_v62  ;;  %v3150_v5 = vpop.f32.mrb[53].mxu0 }
 0x6a0   : > { %v3151_v8 = vadd.f32 %v3150_v5, %v3106_v63  ;;  %v3152_v9 = vpop.f32.mrb[54].mxu0 }
 0x6a1   : > { %v3153_v0 = vpop.f32.mrb[55].mxu0 }
 0x6a2   : > { %v3216_v10 = vpop.f32.mrb[60].mxu1 }
 0x6a3   : > { %v3223_v11 = vadd.f32 %v3216_v10, %v3149_v7  ;;  %v3218_v12 = vpop.f32.mrb[61].mxu1 }
 0x6a4   : > { %v3224_v13 = vadd.f32 %v3218_v12, %v3151_v8  ;;  %v3220_v16 = vpop.f32.mrb[62].mxu1 }
 0x6a5   : > { %v3221_v27 = vpop.f32.mrb[63].mxu1 }
 0x6aa   : > { %v3286_v31 = vpop.f32.mrb[56].mxu0  ;;  %v3336_v6 = vpop.f32.mrb[64].mxu1 }
 0x6ab   : > { %v3293_v33 = vadd.f32 %v3286_v31, %v3223_v11  ;;  %v3288_v34 = vpop.f32.mrb[57].mxu0  ;;  %v3338_v37 = vpop.f32.mrb[65].mxu1 }
 0x6ac   : > { %v3294_v38 = vadd.f32 %v3288_v34, %v3224_v13  ;;  %v3290_v39 = vpop.f32.mrb[58].mxu0  ;;  %v3340_v41 = vpop.f32.mrb[66].mxu1 }
 0x6ad   : > { %v3343_v42 = vadd.f32 %v3336_v6, %v3293_v33  ;;  %v3291_v43 = vpop.f32.mrb[59].mxu0  ;;  %v3341_v44 = vpop.f32.mrb[67].mxu1 }
 0x6ae   : > { %v3344_v45 = vadd.f32 %v3338_v37, %v3294_v38  ;;  %v3814_v34 = vpop.permute.xlu0 %3813 }
 0x6b2   : > { %v3406_v46 = vpop.f32.mrb[60].mxu0  ;;  %v3476_v47 = vpop.f32.mrb[68].mxu1 }
 0x6b3   : > { %v3413_v48 = vadd.f32 %v3406_v46, %v3343_v42  ;;  %v3408_v49 = vpop.f32.mrb[61].mxu0  ;;  %v3478_v50 = vpop.f32.mrb[69].mxu1 }
 0x6b4   : > { %v3414_v51 = vadd.f32 %v3408_v49, %v3344_v45  ;;  %v3410_v52 = vpop.f32.mrb[62].mxu0  ;;  %v3480_v53 = vpop.f32.mrb[70].mxu1 }
 0x6b5   : > { %v3483_v54 = vadd.f32 %v3476_v47, %v3413_v48  ;;  %v3411_v55 = vpop.f32.mrb[63].mxu0  ;;  %v3481_v62 = vpop.f32.mrb[71].mxu1  ;;  %v3823_v47 = vsel %vm1364_vm4, %v11862_v17, %v3814_v34  ;;  %v3832_v48 = vsel %vm1364_vm4, 0.0, %v11862_v17 }
 0x6b6   : > { %v3484_v63 = vadd.f32 %v3478_v50, %v3414_v51  ;;  %v3902_v37 = vpop.permute.xlu0 %3901  ;;  %v3833_v50 = vsel %vm1364_vm4, 0.0, %v11864_v18  ;;  %v3835_v62 = vmul.f32 %v3832_v48, %v11329_v35 }
 0x6ba   : > { %v3542_v40 = vpop.f32.mrb[64].mxu0  ;;  %v11936_v38 = vpop.permute.xlu0 %4049 }
 0x6bb   : > { %v3549_v21 = vadd.f32 %v3542_v40, %v3483_v54  ;;  %v3544_v3 = vpop.f32.mrb[65].mxu0 }
 0x6bc   : > { %v3550_v7 = vadd.f32 %v3544_v3, %v3484_v63  ;;  %v3546_v5 = vpop.f32.mrb[66].mxu0  ;;  %v3836_v63 = vmul.f32 %v3823_v47, %v11331_v36 }
 0x6bd   : > { %v3547_v8 = vpop.f32.mrb[67].mxu0  ;;  %v3612_v9 = vpop.f32.mrb[72].mxu1  ;;  %v3911_v5 = vsel %vm1442_vm5, %v11866_v15, %v3902_v37 }
 0x6be   : > { %v3619_v0 = vadd.f32 %v3612_v9, %v3549_v21  ;;  %v3614_v10 = vpop.f32.mrb[73].mxu1  ;;  %v11938_v39 = vpop.permute.xlu0 %4137  ;;  %v3837_v21 = vmul.f32 %v3833_v50, %v11329_v35  ;;  %v3921_v8 = vsel %vm1442_vm5, 0.0, %v11868_v4  ;;  %v3924_v34 = vmul.f32 %v3911_v5, %v11325_v29 }
 0x6bf   : > { %v3620_v11 = vadd.f32 %v3614_v10, %v3550_v7  ;;  %v3616_v12 = vpop.f32.mrb[74].mxu1  ;;  %v3925_v37 = vmul.f32 %v3921_v8, %v11323_v26 }
 0x6c0   : > { %v3627_v13 = vadd.f32 %v11858_v14, %v3619_v0  ;;  %v3617_v16 = vpop.f32.mrb[75].mxu1 }
 0x6c1   : > { %v3628_v27 = vadd.f32 %v11858_v14, %v3620_v11  ;;  %v4416_v14 = vld [vmem:[%s11149_s27] sm:$0xff]  ;;  %v3920_v11 = vsel %vm1442_vm5, 0.0, %v11866_v15 }
 0x6c2   : > { %v11896_v31 = vmax.f32 %v3627_v13, 0.0  ;;  %v3818_v41 = vpop.permute.xlu0 %3817  ;;  %v3923_v47 = vmul.f32 %v3920_v11, %v11323_v26  ;;  %v10335_v11 = vld [vmem:[%s13615_s0 + $0x8] sm:$0xf] }
 0x6c3   : > { %v11898_v6 = vmax.f32 %v3628_v27, 0.0  ;;  %v3824_v46 = vsel %vm1364_vm4, %v11864_v18, %v3818_v41  ;;  %v10325_v41 = vld [vmem:[%s13615_s0 + $0x4] sm:$0xf] }
 0x6c4   : > { %3653 = vrot.lane.b32.xlu1 %v11896_v31, %s13567_s28  ;;  %v3838_v52 = vmul.f32 %v3824_v46, %v11331_v36 }
 0x6c5   : > { %v10830_v33 = vpack.i.bf16 %v11898_v6, %v11896_v31 }
 0x6c6   : > { %v3906_v42 = vpop.permute.xlu0 %3905  ;;  %v3844_v27 = vpack.c.bf16 %v3838_v52, %v3836_v63  ;;  %v3931_v63 = vpack.c.bf16 %v3925_v37, %v3923_v47  ;;  %v3991_v37 = vpack.c.bf16 %v11896_v31, %v11896_v31 }
 0x6c7   : > { %10831 = vrot.lane.b32.xlu0 %v10830_v33, %s13565_s1  ;;  %v3912_v40 = vsel %vm1442_vm5, %v11868_v4, %v3906_v42  ;;  %v3843_v42 = vpack.c.bf16 %v3837_v21, %v3835_v62 }
 0x6c8   : > { %3819 = vrot.lane.b32.xlu1 %v11896_v31, %s13577_s2  ;;  %v3926_v12 = vmul.f32 %v3912_v40, %v11325_v29  ;;  %v4057_v40 = vsel %vm1566_vm7, %v11872_v23, %v11870_v22 }
 0x6ca   : > { %v11940_v43 = vpop.permute.xlu0 %4051 }
 0x6cb   : > { %3655 = vrot.lane.b32.xlu0 %v11898_v6, %s13567_s28  ;;  %v4067_v48 = vsel %vm1566_vm7, %v11940_v43, 0.0  ;;  %v4058_v21 = vsel %vm1566_vm7, %v11936_v38, %v11940_v43 }
 0x6cc   : > { %3907 = vrot.lane.b32.xlu1 %v11896_v31, %s13575_s7  ;;  %v4072_v23 = vmul.f32 %v4067_v48, %v11331_v36 }
 0x6ce   : > { %v11942_v44 = vpop.permute.xlu0 %4139 }
 0x6cf   : > { %3821 = vrot.lane.b32.xlu0 %v11898_v6, %s13577_s2  ;;  %v4155_v5 = vsel %vm1633_vm9, %v11942_v44, 0.0 }
 0x6d0   : > { %4053 = vrot.lane.b32.xlu1 %v11896_v31, %s13571_s10 }
 0x6d2   : > { %v11944_v45 = vpop.permute.xlu0 %4309 }
 0x6d3   : > { %3909 = vrot.lane.b32.xlu0 %v11898_v6, %s13575_s7 }
 0x6d4   : > { %4141 = vrot.lane.b32.xlu1 %v11896_v31, %s13569_s11 }
 0x6d7   : > { %10836 = vrot.lane.b32.xlu0 %v11660_v61, %s13563_s16  ;;  %v4391_v61 = vld [vmem:[%s13614_s18] sm:$0xff]  ;;  %s13617_s18 = sld [smem:[#allocation12_spill]] }
 0x6d8   : > { %4303 = vrot.lane.b32.xlu1 %v11520_v19, %s13561_s15 }
 0x6db   : > { %4055 = vrot.lane.b32.xlu0 %v11898_v6, %s13571_s10 }
 0x6dc   : > { %10841 = vrot.lane.b32.xlu1 %v10830_v33, %s13563_s16 }
 0x6df   : > { %4143 = vrot.lane.b32.xlu0 %v11898_v6, %s13569_s11 }
 0x6e0   : > { %4313 = vrot.lane.b32.xlu1 %v11898_v6, %s13561_s15 }
 0x6e3   : > { %4307 = vrot.lane.b32.xlu0 %v11650_v57, %s13561_s15 }
 0x6e4   : > { %4419 = vperm.xlu1 %10784, %v4416_v14  }
 0x6e7   : > { %4311 = vrot.lane.b32.xlu0 %v11896_v31, %s13561_s15 }
 0x6eb   : > { %4394 = vperm.xlu0 %10763, %v4391_v61  }
 0x736   : > { %v3654_v57 = vpop.permute.xlu1 %3653 }
 0x737   : > { %v3668_v49 = vsel %vm1221_vm2, 0.0, %v3654_v57 }
 0x738   : > { %v3673_v17 = vmul.f32 %v3668_v49, %v11323_v26 }
 0x739   : > { %v10832_v51 = vpop.permute.xlu0 %10831 }
 0x73a   : > { %v10834_v53 = vunpack.i.h.bf16 %v10832_v51  ;;  %v10833_v54 = vunpack.i.l.bf16 %v10832_v51  ;;  %v3820_v55 = vpop.permute.xlu1 %3819  ;;  %v3678_v33 = vpack.c.bf16 %v3673_v17, %v3673_v17  ;;  %v3932_v51 = vpack.c.bf16 %v3926_v12, %v3924_v34 }
 0x73b   : > { %v3834_v18 = vsel %vm1364_vm4, 0.0, %v3820_v55  ;;  %v4066_v17 = vsel %vm1566_vm7, %v11870_v22, 0.0  ;;  %v4145_v22 = vsel %vm1633_vm9, %v11876_v28, %v11874_v24  ;;  %v4071_v28 = vmul.f32 %v4058_v21, %v11329_v35 }
 0x73c   : > { %v3703_v3 = vsel %vm1246_vm1, 0.0, %v10833_v54  ;;  %v3694_v7 = vsel %vm1246_vm1, %v10833_v54, %v10834_v53  ;;  %v3839_v14 = vmul.f32 %v3834_v18, %v11329_v35  ;;  %v3765_v62 = vsel %vm1867_vm11, %v3678_v33, 0 }
 0x73d   : > { %v3656_v9 = vpop.permute.xlu0 %3655  ;;  %v3709_v0 = vpack.c.bf16 %v3694_v7, %v3694_v7  ;;  %v3708_v10 = vpack.c.bf16 %v3703_v3, %v3703_v3  ;;  %v4146_v3 = vsel %vm1633_vm9, %v11938_v39, %v11942_v44  ;;  %v4154_v39 = vsel %vm1633_vm9, %v11874_v24, 0.0 }
 0x73e   : > { %v3659_v13 = vsel %vm1221_vm2, %v3654_v57, %v3656_v9  ;;  %v3908_v16 = vpop.permute.xlu1 %3907  ;;  %v3845_v52 = vpack.c.bf16 %v3839_v14, %v3839_v14  ;;  %v4160_v24 = vmul.f32 %v4155_v5, %v11325_v29  ;;  %v12028_v12 = vmul.f32 %v4145_v22, %v11323_v26 }
 0x73f   : > { %v3674_v61 = vmul.f32 %v3659_v13, %v11325_v29  ;;  %10331 = vmatprep.subr.msk.bf16.mxu0 %vm1867_vm11, %v3709_v0  ;;  %v3715_v4 = vsel %vm1867_vm11, %v3708_v10, 0  ;;  %v3922_v15 = vsel %vm1442_vm5, 0.0, %v3908_v16  ;;  %v4070_v0 = vmul.f32 %v4066_v17, %v11331_v36 }
 0x740   : > { %3723 = vmatpush1.bf16.msra.mxu0 %v3715_v4  ;;  %v3927_v53 = vmul.f32 %v3922_v15, %v11323_v26  ;;  %v3851_v44 = vsel %vm1867_vm11, %v3845_v52, 0  ;;  %v12023_v10 = vmul.f32 %v4146_v3, %v11323_v26  ;;  %v4158_v33 = vmul.f32 %v4154_v39, %v11325_v29 }
 0x741   : > { %v3679_v57 = vpack.c.bf16 %v3674_v61, %v3674_v61  ;;  %v3822_v46 = vpop.permute.xlu0 %3821  ;;  %3856 = vmatprep.subr.bf16.mxu0 %v3844_v27  ;;  %v4069_v27 = vmul.f32 %v4057_v40, %v11329_v35  ;;  %v3992_v4 = vpack.c.bf16 %v11898_v6, %v11898_v6  ;;  %v4078_v34 = vpack.c.bf16 %v4072_v23, %v4070_v0 }
 0x742   : > { %v3825_v49 = vsel %vm1364_vm4, %v3820_v55, %v3822_v46  ;;  %v11985_v50 = vpop.permute.xlu1 %4053  ;;  %v3675_v55 = vld [vmem:[%s13615_s0] sm:$0xf]  ;;  %v3933_v8 = vpack.c.bf16 %v3927_v53, %v3927_v53  ;;  %v4324_v46 = vsel %vm1765_vm8, %v11878_v30, 0.0  ;;  %v4166_v48 = vpack.c.bf16 %v4160_v24, %v4158_v33 }
 0x743   : > { %v3840_v54 = vmul.f32 %v3825_v49, %v11331_v36  ;;  %10332 = vmatmul.mubr.msk.bf16.vlgmr.msra.gmra.mrb[68].mxu0 %vm3710_vm0, %v10325_v41  ;;  %10333 = vmatprep.subr.msk.bf16.mxu1 %vm1867_vm11, %v3679_v57  ;;  %v4077_v15 = vpack.c.bf16 %v4071_v28, %v4069_v27  ;;  %v10338_v41 = vld [vmem:[%s13615_s0 + $0xc] sm:$0xf]  ;;  %v4325_v57 = vsel %vm1765_vm8, %v11944_v45, 0.0  ;;  %v4328_v21 = vmul.f32 %v4324_v46, %v11331_v36 }
 0x744   : > { %3773 = vmatpush1.bf16.msra.mxu1 %v3765_v62  ;;  %3857 = vmatpush1.bf16.msra.mxu0 %v3843_v42  ;;  %v3939_v61 = vsel %vm1867_vm11, %v3933_v8, 0  ;;  %v4165_v42 = vpack.c.bf16 %v12023_v10, %v12028_v12  ;;  %v4330_v17 = vmul.f32 %v4325_v57, %v11331_v36  ;;  %v10347_v57 = vld [vmem:[%s13615_s0 + $0x18] sm:$0xf] }
 0x745   : > { %v3846_v18 = vpack.c.bf16 %v3840_v54, %v3840_v54  ;;  %v3910_v7 = vpop.permute.xlu0 %3909  ;;  %3944 = vmatprep.subr.bf16.mxu1 %v3932_v51  ;;  %3888 = vmatprep.mubr.bf16.mxu0 %v11050_v1 }
 0x746   : > { %v3913_v38 = vsel %vm1442_vm5, %v3908_v16, %v3910_v7  ;;  %v12012_v43 = vpop.permute.xlu1 %4141  ;;  %v10823_v7 = vunpack.i.l.bf16 %v11880_v32  ;;  %v4336_v24 = vpack.c.bf16 %v4330_v17, %v4328_v21 }
 0x747   : > { %v3928_v9 = vmul.f32 %v3913_v38, %v11325_v29  ;;  %10334 = vmatmul.mubr.msk.bf16.vlgmr.msra.gmra.mrb[76].mxu1 %vm3710_vm0, %v3675_v55  ;;  %10336 = vmatprep.subr.msk.bf16.mxu0 %vm1867_vm11, %v3846_v18  ;;  %v3997_v55 = vsel %vm1867_vm11, %v3991_v37, 0  ;;  %v10341_v18 = vld [vmem:[%s13615_s0 + $0x10] sm:$0xf] }
 0x748   : > { %3859 = vmatpush1.bf16.msra.mxu0 %v3851_v44  ;;  %3945 = vmatpush1.bf16.msra.mxu1 %v3931_v63 }
 0x749   : > { %v3934_v13 = vpack.c.bf16 %v3928_v9, %v3928_v9  ;;  %v10837_v16 = vpop.permute.xlu0 %10836  ;;  %4002 = vmatprep.subr.bf16.mxu0 %v11786_v56  ;;  %3976 = vmatprep.mubr.bf16.mxu1 %v11050_v1 }
 0x74a   : > { %v4304_v14 = vpop.permute.xlu1 %4303  ;;  %v10839_v49 = vunpack.i.h.bf16 %v10837_v16  ;;  %v10838_v51 = vunpack.i.l.bf16 %v10837_v16 }
 0x74b   : > { %10337 = vmatmul.mubr.msk.bf16.vlgmr.msra.gmra.mrb[72].mxu0 %vm3710_vm0, %v10335_v11  ;;  %10339 = vmatprep.subr.msk.bf16.mxu1 %vm1867_vm11, %v3934_v13  ;;  %v4315_v23 = vsel %vm1765_vm8, %v4304_v14, %v11878_v30 }
 0x74c   : > { %3947 = vmatpush1.bf16.msra.mxu1 %v3939_v61  ;;  %4003 = vmatpush1.bf16.msra.mxu0 %v11797_v60  ;;  %v4234_v8 = vsel %vm1700_vm10, %v10838_v51, %v10839_v49  ;;  %v4327_v14 = vmul.f32 %v4315_v23, %v11329_v35 }
 0x74d   : > { %v4056_v47 = vpop.permute.xlu0 %4055  ;;  %10342 = vmatprep.subr.msk.bf16.mxu0 %vm1867_vm11, %v3992_v4  ;;  %4090 = vmatprep.subr.bf16.mxu1 %v4078_v34 }
 0x74e   : > { %v4059_v52 = vsel %vm1566_vm7, %v11985_v50, %v4056_v47  ;;  %v4068_v53 = vsel %vm1566_vm7, %v4056_v47, 0.0  ;;  %v10842_v54 = vpop.permute.xlu1 %10841  ;;  %4034 = vmatprep.mubr.bf16.mxu0 %v11050_v1  ;;  %v10824_v50 = vunpack.i.h.bf16 %v11880_v32 }
 0x74f   : > { %v4073_v62 = vmul.f32 %v4059_v52, %v11329_v35  ;;  %v4074_v63 = vmul.f32 %v4068_v53, %v11331_v36  ;;  %v10844_v40 = vunpack.i.h.bf16 %v10842_v54  ;;  %10340 = vmatmul.mubr.msk.bf16.vlgmr.msra.gmra.mrb[80].mxu1 %vm3710_vm0, %v10338_v41  ;;  %v10843_v3 = vunpack.i.l.bf16 %v10842_v54  ;;  %v10350_v52 = vld [vmem:[%s13615_s0 + $0x1c] sm:$0xf] }
 0x750   : > { %4005 = vmatpush1.bf16.msra.mxu0 %v3997_v55  ;;  %4091 = vmatpush1.bf16.msra.mxu1 %v4077_v15  ;;  %v10352_v39 = vpack.c.bf16 %v10839_v49, %v10824_v50  ;;  %v4233_v13 = vsel %vm1700_vm10, %v10823_v7, %v10824_v50 }
 0x751   : > { %v4079_v5 = vpack.c.bf16 %v4073_v62, %v4073_v62  ;;  %v4080_v22 = vpack.c.bf16 %v4074_v63, %v4074_v63  ;;  %v4144_v38 = vpop.permute.xlu0 %4143  ;;  %4178 = vmatprep.subr.bf16.mxu0 %v4166_v48  ;;  %4122 = vmatprep.mubr.bf16.mxu1 %v11050_v1  ;;  %v4244_v32 = vsel %vm1700_vm10, %v10844_v40, 0.0  ;;  %v4235_v12 = vsel %vm1700_vm10, %v10843_v3, %v10844_v40  ;;  %v10356_v62 = vld [vmem:[%s13615_s0 + $0x20] sm:$0xf] }
 0x752   : > { %v4147_v9 = vsel %vm1633_vm9, %v12012_v43, %v4144_v38  ;;  %v4156_v44 = vsel %vm1633_vm9, %v4144_v38, 0.0  ;;  %v4314_v0 = vpop.permute.xlu1 %4313  ;;  %v10344_v43 = vld [vmem:[%s13615_s0 + $0x14] sm:$0xf]  ;;  %v4250_v61 = vpack.c.bf16 %v4244_v32, %v4244_v32  ;;  %v4247_v34 = vpack.c.bf16 %v4234_v8, %v4233_v13  ;;  %s13630_s0 = smov 127  }
 0x753   : > { %v4161_v30 = vmul.f32 %v4147_v9, %v11323_v26  ;;  %v4162_v28 = vmul.f32 %v4156_v44, %v11325_v29  ;;  %10343 = vmatmul.mubr.msk.bf16.vlgmr.msra.gmra.mrb[76].mxu0 %vm3710_vm0, %v10341_v18  ;;  %10345 = vmatprep.subr.msk.bf16.mxu1 %vm1867_vm11, %v4080_v22  ;;  %v4085_v10 = vsel %vm1867_vm11, %v4079_v5, 0  ;;  %v4326_v11 = vsel %vm1765_vm8, %v4314_v0, 0.0 }
 0x754   : > { %4093 = vmatpush1.bf16.msra.mxu1 %v4085_v10  ;;  %4179 = vmatpush1.bf16.msra.mxu0 %v4165_v42  ;;  %v4332_v37 = vmul.f32 %v4326_v11, %v11331_v36  ;;  %v4249_v42 = vpack.c.bf16 %v4235_v12, %v4235_v12 }
 0x755   : > { %v4167_v16 = vpack.c.bf16 %v4161_v30, %v4161_v30  ;;  %v4168_v27 = vpack.c.bf16 %v4162_v28, %v4162_v28  ;;  %v4308_v33 = vpop.permute.xlu0 %4307  ;;  %10353 = vmatprep.subr.msk.bf16.mxu1 %vm11841_vm15, %v10352_v39  ;;  %4210 = vmatprep.mubr.bf16.mxu0 %v11050_v1 }
 0x756   : > { %v4316_v4 = vsel %vm1765_vm8, %v4308_v33, %v11944_v45  ;;  %v4338_v48 = vpack.c.bf16 %v4332_v37, %v4332_v37  ;;  %v4255_v51 = vsel %vm1867_vm11, %v4249_v42, 0 }
 0x757   : > { %v4329_v15 = vmul.f32 %v4316_v4, %v11329_v35  ;;  %10346 = vmatmul.mubr.msk.bf16.vlgmr.msra.gmra.mrb[84].mxu1 %vm3710_vm0, %v10344_v43  ;;  %10348 = vmatprep.subr.msk.bf16.mxu0 %vm1867_vm11, %v4168_v27  ;;  %v4173_v41 = vsel %vm1867_vm11, %v4167_v16, 0 }
 0x758   : > { %4181 = vmatpush1.bf16.msra.mxu0 %v4173_v41  ;;  %4261 = vmatpush1.bf16.msra.mxu1 %v4247_v34 }
 0x759   : > { %v4335_v46 = vpack.c.bf16 %v4329_v15, %v4327_v14  ;;  %v4312_v47 = vpop.permute.xlu0 %4311  ;;  %10354 = vmatprep.subr.msk.bf16.mxu1 %vm1867_vm11, %v4250_v61  ;;  %4348 = vmatprep.subr.bf16.mxu0 %v4336_v24 }
 0x75a   : > { %v4317_v45 = vsel %vm1765_vm8, %v4312_v47, %v4314_v0  ;;  %4292 = vmatprep.mubr.bf16.mxu1 %v11050_v1 }
 0x75b   : > { %v4331_v49 = vmul.f32 %v4317_v45, %v11329_v35  ;;  %10349 = vmatmul.mubr.msk.bf16.vlgmr.msra.gmra.mrb[80].mxu0 %vm3710_vm0, %v10347_v57 }
 0x75c   : > { %4263 = vmatpush1.bf16.msra.mxu1 %v4255_v51  ;;  %4349 = vmatpush1.bf16.msra.mxu0 %v4335_v46 }
 0x75d   : > { %v4337_v53 = vpack.c.bf16 %v4331_v49, %v4331_v49  ;;  %10357 = vmatprep.subr.msk.bf16.mxu0 %vm1867_vm11, %v4338_v48  ;;  %4426 = vmatprep.subr.bf16.mxu1 %v11786_v56 }
 0x75e   : > { %4380 = vmatprep.mubr.bf16.mxu0 %v11050_v1 }
 0x75f   : > { %10355 = vmatmul.mubr.msk.bf16.vlgmr.msra.gmra.mrb[88].mxu1 %vm3710_vm0, %v10350_v52  ;;  %v4343_v54 = vsel %vm1867_vm11, %v4337_v53, 0 }
 0x760   : > { %4351 = vmatpush1.bf16.msra.mxu0 %v4343_v54  ;;  %4427 = vmatpush1.bf16.msra.mxu1 %v11797_v60 }
 0x761   : > { %4458 = vmatprep.mubr.bf16.mxu1 %v11050_v1 }
 0x763   : > { %10358 = vmatmul.mubr.msk.bf16.vlgmr.msra.gmra.mrb[84].mxu0 %vm3710_vm0, %v10356_v62 }
 0x764   : > { %4543 = vmatprep.mubr.bf16.mxu0 %v11050_v1 }
 0x76a   : > { %v4395_v54 = vpop.permute.xlu0 %4394 }
 0x816   : > { %v3754_v63 = vpop.f32.mrb[68].mxu0 }
 0x817   : > { %v3756_v40 = vpop.f32.mrb[69].mxu0 }
 0x818   : > { %v3758_v55 = vpop.f32.mrb[70].mxu0 }
 0x819   : > { %v3759_v56 = vpop.f32.mrb[71].mxu0 }
 0x81a   : > { %v3804_v17 = vpop.f32.mrb[76].mxu1 }
 0x81b   : > { %v3805_v21 = vadd.f32 %v3804_v17, %v3754_v63  ;;  %v3806_v50 = vpop.f32.mrb[77].mxu1 }
 0x81c   : > { %v3807_v3 = vadd.f32 %v3806_v50, %v3756_v40  ;;  %v3808_v18 = vpop.f32.mrb[78].mxu1 }
 0x81d   : > { %v3809_v7 = vpop.f32.mrb[79].mxu1  ;;  %v4411_v18 = vld [vmem:[%s13616_s26] sm:$0xf]  ;;  %s13618_s26 = sld [smem:[#allocation11_spill]] }
 0x81e   : > { %v3890_v23 = vpop.f32.mrb[72].mxu0  ;;  %v4420_v7 = vpop.permute.xlu1 %4419 }
 0x81f   : > { %v3897_v5 = vadd.f32 %v3890_v23, %v3805_v21  ;;  %v3892_v60 = vpop.f32.mrb[73].mxu0 }
 0x820   : > { %v3898_v22 = vadd.f32 %v3892_v60, %v3807_v3  ;;  %v3894_v38 = vpop.f32.mrb[74].mxu0 }
 0x821   : > { %v3895_v39 = vpop.f32.mrb[75].mxu0 }
 0x822   : > { %v3978_v8 = vpop.f32.mrb[80].mxu1 }
 0x823   : > { %v3985_v9 = vadd.f32 %v3978_v8, %v3897_v5  ;;  %v3980_v44 = vpop.f32.mrb[81].mxu1 }
 0x824   : > { %v3986_v0 = vadd.f32 %v3980_v44, %v3898_v22  ;;  %v3982_v32 = vpop.f32.mrb[82].mxu1 }
 0x825   : > { %v3983_v30 = vpop.f32.mrb[83].mxu1 }
 0x826   : > { %v4036_v28 = vpop.f32.mrb[76].mxu0 }
 0x827   : > { %v4043_v10 = vadd.f32 %v4036_v28, %v3985_v9  ;;  %v4038_v11 = vpop.f32.mrb[77].mxu0 }
 0x828   : > { %v4044_v43 = vadd.f32 %v4038_v11, %v3986_v0  ;;  %v4040_v24 = vpop.f32.mrb[78].mxu0 }
 0x829   : > { %v4041_v12 = vpop.f32.mrb[79].mxu0 }
 0x82a   : > { %v4124_v13 = vpop.f32.mrb[84].mxu1 }
 0x82b   : > { %v4131_v16 = vadd.f32 %v4124_v13, %v4043_v10  ;;  %v4126_v27 = vpop.f32.mrb[85].mxu1 }
 0x82c   : > { %v4132_v33 = vadd.f32 %v4126_v27, %v4044_v43  ;;  %v4128_v14 = vpop.f32.mrb[86].mxu1 }
 0x82d   : > { %v4129_v61 = vpop.f32.mrb[87].mxu1 }
 0x82e   : > { %v4212_v4 = vpop.f32.mrb[80].mxu0 }
 0x82f   : > { %v4219_v34 = vadd.f32 %v4212_v4, %v4131_v16  ;;  %v4214_v37 = vpop.f32.mrb[81].mxu0 }
 0x830   : > { %v4220_v15 = vadd.f32 %v4214_v37, %v4132_v33  ;;  %v4216_v41 = vpop.f32.mrb[82].mxu0  ;;  %v10360_v37 = vld [vmem:[%s13618_s26 + $0x4] sm:$0xf] }
 0x831   : > { %v4217_v42 = vpop.f32.mrb[83].mxu0 }
 0x832   : > { %v4294_v57 = vpop.f32.mrb[88].mxu1 }
 0x833   : > { %v4301_v46 = vadd.f32 %v4294_v57, %v4219_v34  ;;  %v4296_v47 = vpop.f32.mrb[89].mxu1 }
 0x834   : > { %v4302_v45 = vadd.f32 %v4296_v47, %v4220_v15  ;;  %v4298_v48 = vpop.f32.mrb[90].mxu1 }
 0x835   : > { %v4299_v49 = vpop.f32.mrb[91].mxu1 }
 0x836   : > { %v4382_v51 = vpop.f32.mrb[84].mxu0  ;;  %v4487_v49 = vld [vmem:[%s13618_s26] sm:$0xf] }
 0x837   : > { %v4389_v52 = vadd.f32 %v4382_v51, %v4301_v46  ;;  %v4384_v53 = vpop.f32.mrb[85].mxu0 }
 0x838   : > { %v4390_v62 = vadd.f32 %v4384_v53, %v4302_v45  ;;  %v4386_v63 = vpop.f32.mrb[86].mxu0 }
 0x839   : > { %v4397_v40 = vadd.f32 %v4395_v54, %v4389_v52  ;;  %v4387_v55 = vpop.f32.mrb[87].mxu0 }
 0x83a   : > { %v4398_v56 = vadd.f32 %v4395_v54, %v4390_v62 }
 0x83b   : > { %v4399_v17 = vmax.f32 %v4397_v40, 0.0 }
 0x83c   : > { %v4400_v21 = vmax.f32 %v4398_v56, 0.0 }
 0x83d   : > { %v4414_v3 = vpack.c.bf16 %v4399_v17, %v11896_v31  ;;  %v10365_v17 = vld [vmem:[%s13618_s26 + $0x8] sm:$0xf] }
 0x83e   : > { %v4415_v50 = vpack.c.bf16 %v4400_v21, %v11898_v6 }
 0x840   : > { %4428 = vmatprep.subr.bf16.mxu1 %v4415_v50 }
 0x841   : > { %4429 = vmatpush1.bf16.msra.mxu1 %v4414_v3 }
 0x844   : > { %10359 = vmatmul.mubr.msk.bf16.vlgmr.msra.gmra.mrb[92].mxu1 %vm4422_vm3, %v4411_v18 }
 0x845   : > { %4593 = vmatprep.mubr.bf16.mxu1 %v11050_v1 }
 0x917   : > { %v4460_v23 = vpop.f32.mrb[92].mxu1 }
 0x918   : > { %v4461_v5 = vadd.f32 %v4460_v23, %v4420_v7  ;;  %v4462_v60 = vpop.f32.mrb[93].mxu1 }
 0x919   : > { %v4463_v22 = vadd.f32 %v4462_v60, %v4420_v7  ;;  %v4464_v38 = vpop.f32.mrb[94].mxu1 }
 0x91a   : > { %v12115_v39 = vadd.f32 %v4461_v5, %v11520_v19  ;;  %v4465_v6 = vpop.f32.mrb[95].mxu1  ;;  %v5052_v19 = vld [vmem:[%s13617_s18] sm:$0xff]  ;;  %s13619_s18 = sld [smem:[#allocation14_spill]] }
 0x91b   : > { %v12118_v31 = vadd.f32 %v4463_v22, %v11522_v20 }
 0x91c   : > { %4477 = vrot.lane.b32.xlu1 %v12115_v39, %s13567_s28  ;;  %v4736_v62 = vpack.c.bf16 %v12115_v39, %v12115_v39 }
 0x91d   : > { %v12124_v8 = vpack.i.bf16 %v12118_v31, %v12115_v39  ;;  %v4737_v56 = vpack.c.bf16 %v12118_v31, %v12118_v31 }
 0x91e   : > { %v4742_v23 = vsel %vm1867_vm11, %v4736_v62, 0 }
 0x91f   : > { %10846 = vrot.lane.b32.xlu0 %v12124_v8, %s13565_s1 }
 0x920   : > { %4602 = vrot.lane.b32.xlu1 %v12115_v39, %s13577_s2 }
 0x923   : > { %4479 = vrot.lane.b32.xlu0 %v12118_v31, %s13567_s28 }
 0x924   : > { %4668 = vrot.lane.b32.xlu1 %v12115_v39, %s13575_s7 }
 0x927   : > { %4604 = vrot.lane.b32.xlu0 %v12118_v31, %s13577_s2 }
 0x928   : > { %4790 = vrot.lane.b32.xlu1 %v12115_v39, %s13571_s10 }
 0x92b   : > { %4670 = vrot.lane.b32.xlu0 %v12118_v31, %s13575_s7 }
 0x92c   : > { %4856 = vrot.lane.b32.xlu1 %v12115_v39, %s13569_s11 }
 0x92f   : > { %4792 = vrot.lane.b32.xlu0 %v12118_v31, %s13571_s10 }
 0x930   : > { %10851 = vrot.lane.b32.xlu1 %v12124_v8, %s13563_s16 }
 0x933   : > { %4858 = vrot.lane.b32.xlu0 %v12118_v31, %s13569_s11 }
 0x934   : > { %4988 = vrot.lane.b32.xlu1 %v12118_v31, %s13561_s15 }
 0x937   : > { %4986 = vrot.lane.b32.xlu0 %v12115_v39, %s13561_s15 }
 0x938   : > { %5072 = vrot.lane.b32.xlu1 %v12115_v39, %s13567_s28 }
 0x93b   : > { %5055 = vperm.xlu0 %10763, %v5052_v19   ;;  %v10368_v19 = vld [vmem:[%s13618_s26 + $0xc] sm:$0xf] }
 0x93c   : > { %5203 = vrot.lane.b32.xlu1 %v12115_v39, %s13577_s2 }
 0x93f   : > { %5074 = vrot.lane.b32.xlu0 %v12118_v31, %s13567_s28 }
 0x940   : > { %5273 = vrot.lane.b32.xlu1 %v12115_v39, %s13575_s7 }
 0x943   : > { %5205 = vrot.lane.b32.xlu0 %v12118_v31, %s13577_s2 }
 0x944   : > { %10856 = vrot.lane.b32.xlu1 %v12124_v8, %s13565_s1 }
 0x947   : > { %5275 = vrot.lane.b32.xlu0 %v12118_v31, %s13575_s7 }
 0x948   : > { %5395 = vrot.lane.b32.xlu1 %v12118_v31, %s13571_s10 }
 0x98e   : > { %v4478_v20 = vpop.permute.xlu1 %4477 }
 0x98f   : > { %v4484_v9 = vsel %vm1221_vm2, 0.0, %v4478_v20 }
 0x990   : > { %v4485_v28 = vmul.f32 %v4484_v9, %v11323_v26 }
 0x991   : > { %v10847_v44 = vpop.permute.xlu0 %10846 }
 0x992   : > { %v10849_v0 = vunpack.i.h.bf16 %v10847_v44  ;;  %v10848_v32 = vunpack.i.l.bf16 %v10847_v44  ;;  %v4603_v30 = vpop.permute.xlu1 %4602  ;;  %v4488_v33 = vpack.c.bf16 %v4485_v28, %v4485_v28 }
 0x993   : > { %v4609_v11 = vsel %vm1364_vm4, 0.0, %v4603_v30 }
 0x994   : > { %v4497_v10 = vsel %vm1246_vm1, 0.0, %v10848_v32  ;;  %v4494_v43 = vsel %vm1246_vm1, %v10848_v32, %v10849_v0  ;;  %v4610_v14 = vmul.f32 %v4609_v11, %v11329_v35  ;;  %v4556_v48 = vsel %vm1867_vm11, %v4488_v33, 0 }
 0x995   : > { %v4480_v24 = vpop.permute.xlu0 %4479  ;;  %v4501_v12 = vpack.c.bf16 %v4494_v43, %v4494_v43  ;;  %v4500_v13 = vpack.c.bf16 %v4497_v10, %v4497_v10 }
 0x996   : > { %v4481_v16 = vsel %vm1221_vm2, %v4478_v20, %v4480_v24  ;;  %v4669_v27 = vpop.permute.xlu1 %4668  ;;  %v4614_v46 = vpack.c.bf16 %v4610_v14, %v4610_v14 }
 0x997   : > { %v4486_v61 = vmul.f32 %v4481_v16, %v11325_v29  ;;  %10361 = vmatprep.subr.msk.bf16.mxu0 %vm1867_vm11, %v4501_v12  ;;  %v4506_v4 = vsel %vm1867_vm11, %v4500_v13, 0  ;;  %v4675_v34 = vsel %vm1442_vm5, 0.0, %v4669_v27  ;;  %v10371_v16 = vld [vmem:[%s13618_s26 + $0x10] sm:$0xf] }
 0x998   : > { %4512 = vmatpush1.bf16.msra.mxu0 %v4506_v4  ;;  %v4676_v47 = vmul.f32 %v4675_v34, %v11323_v26  ;;  %v4620_v55 = vsel %vm1867_vm11, %v4614_v46, 0 }
 0x999   : > { %v4489_v15 = vpack.c.bf16 %v4486_v61, %v4486_v61  ;;  %v4605_v41 = vpop.permute.xlu0 %4604 }
 0x99a   : > { %v4606_v42 = vsel %vm1364_vm4, %v4603_v30, %v4605_v41  ;;  %v4791_v57 = vpop.permute.xlu1 %4790  ;;  %v4680_v63 = vpack.c.bf16 %v4676_v47, %v4676_v47  ;;  %v10377_v47 = vld [vmem:[%s13618_s26 + $0x18] sm:$0xf] }
 0x99b   : > { %v4611_v45 = vmul.f32 %v4606_v42, %v11331_v36  ;;  %10362 = vmatmul.mubr.msk.bf16.vlgmr.msra.gmra.mrb[88].mxu0 %vm1863_vm12, %v10360_v37  ;;  %10363 = vmatprep.subr.msk.bf16.mxu1 %vm1867_vm11, %v4489_v15  ;;  %v10374_v42 = vld [vmem:[%s13618_s26 + $0x14] sm:$0xf] }
 0x99c   : > { %4562 = vmatpush1.bf16.msra.mxu1 %v4556_v48  ;;  %4657 = vmatprep.mubr.bf16.mxu0 %v11050_v1  ;;  %v4686_v38 = vsel %vm1867_vm11, %v4680_v63, 0  ;;  %v10380_v48 = vld [vmem:[%s13618_s26 + $0x1c] sm:$0xf] }
 0x99d   : > { %v4615_v51 = vpack.c.bf16 %v4611_v45, %v4611_v45  ;;  %v4671_v52 = vpop.permute.xlu0 %4670 }
 0x99e   : > { %v4672_v53 = vsel %vm1442_vm5, %v4669_v27, %v4671_v52  ;;  %v4857_v54 = vpop.permute.xlu1 %4856 }
 0x99f   : > { %v4677_v40 = vmul.f32 %v4672_v53, %v11325_v29  ;;  %10364 = vmatmul.mubr.msk.bf16.vlgmr.msra.gmra.mrb[96].mxu1 %vm1863_vm12, %v4487_v49  ;;  %10366 = vmatprep.subr.msk.bf16.mxu0 %vm1867_vm11, %v4615_v51  ;;  %v10383_v49 = vld [vmem:[%s13618_s26 + $0x20] sm:$0xf] }
 0x9a0   : > { %4626 = vmatpush1.bf16.msra.mxu0 %v4620_v55  ;;  %4723 = vmatprep.mubr.bf16.mxu1 %v11050_v1 }
 0x9a1   : > { %v4681_v21 = vpack.c.bf16 %v4677_v40, %v4677_v40  ;;  %v4793_v50 = vpop.permute.xlu0 %4792  ;;  %10372 = vmatprep.subr.msk.bf16.mxu0 %vm1867_vm11, %v4737_v56 }
 0x9a2   : > { %v4794_v3 = vsel %vm1566_vm7, %v4791_v57, %v4793_v50  ;;  %v4797_v18 = vsel %vm1566_vm7, %v4793_v50, 0.0  ;;  %v10852_v7 = vpop.permute.xlu1 %10851 }
 0x9a3   : > { %v4798_v5 = vmul.f32 %v4794_v3, %v11329_v35  ;;  %v4799_v60 = vmul.f32 %v4797_v18, %v11331_v36  ;;  %v10854_v22 = vunpack.i.h.bf16 %v10852_v7  ;;  %10367 = vmatmul.mubr.msk.bf16.vlgmr.msra.gmra.mrb[92].mxu0 %vm1863_vm12, %v10365_v17  ;;  %10369 = vmatprep.subr.msk.bf16.mxu1 %vm1867_vm11, %v4681_v21  ;;  %v10853_v6 = vunpack.i.l.bf16 %v10852_v7 }
 0x9a4   : > { %4692 = vmatpush1.bf16.msra.mxu1 %v4686_v38  ;;  %4748 = vmatpush1.bf16.msra.mxu0 %v4742_v23 }
 0x9a5   : > { %v4802_v20 = vpack.c.bf16 %v4798_v5, %v4798_v5  ;;  %v4803_v9 = vpack.c.bf16 %v4799_v60, %v4799_v60  ;;  %v4929_v44 = vsel %vm1700_vm10, %v10854_v22, 0.0  ;;  %v4859_v0 = vpop.permute.xlu0 %4858  ;;  %4779 = vmatprep.mubr.bf16.mxu0 %v11050_v1  ;;  %v4926_v27 = vsel %vm1700_vm10, %v10853_v6, %v10854_v22 }
 0x9a6   : > { %v4933_v32 = vpack.c.bf16 %v4929_v44, %v4929_v44  ;;  %v4860_v30 = vsel %vm1633_vm9, %v4857_v54, %v4859_v0  ;;  %v4863_v28 = vsel %vm1633_vm9, %v4859_v0, 0.0  ;;  %v4989_v10 = vpop.permute.xlu1 %4988  ;;  %v4932_v41 = vpack.c.bf16 %v4926_v27, %v4926_v27 }
 0x9a7   : > { %v4864_v11 = vmul.f32 %v4860_v30, %v11323_v26  ;;  %v4865_v43 = vmul.f32 %v4863_v28, %v11325_v29  ;;  %v4993_v24 = vsel %vm1765_vm8, %v4989_v10, 0.0  ;;  %10370 = vmatmul.mubr.msk.bf16.vlgmr.msra.gmra.mrb[100].mxu1 %vm1863_vm12, %v10368_v19  ;;  %10375 = vmatprep.subr.msk.bf16.mxu1 %vm1867_vm11, %v4803_v9  ;;  %v4808_v12 = vsel %vm1867_vm11, %v4802_v20, 0 }
 0x9a8   : > { %v4995_v13 = vmul.f32 %v4993_v24, %v11331_v36  ;;  %4814 = vmatpush1.bf16.msra.mxu1 %v4808_v12  ;;  %4845 = vmatprep.mubr.bf16.mxu1 %v11050_v1  ;;  %v4938_v46 = vsel %vm1867_vm11, %v4932_v41, 0 }
 0x9a9   : > { %v4868_v33 = vpack.c.bf16 %v4864_v11, %v4864_v11  ;;  %v4869_v14 = vpack.c.bf16 %v4865_v43, %v4865_v43  ;;  %v4987_v61 = vpop.permute.xlu0 %4986  ;;  %10381 = vmatprep.subr.msk.bf16.mxu1 %vm1867_vm11, %v4933_v32 }
 0x9aa   : > { %v4999_v4 = vpack.c.bf16 %v4995_v13, %v4995_v13  ;;  %v4990_v34 = vsel %vm1765_vm8, %v4987_v61, %v4989_v10 }
 0x9ab   : > { %v4994_v37 = vmul.f32 %v4990_v34, %v11329_v35  ;;  %10373 = vmatmul.mubr.msk.bf16.vlgmr.msra.gmra.mrb[96].mxu0 %vm1863_vm12, %v10371_v16  ;;  %10378 = vmatprep.subr.msk.bf16.mxu0 %vm1867_vm11, %v4869_v14  ;;  %v4874_v15 = vsel %vm1867_vm11, %v4868_v33, 0 }
 0x9ac   : > { %4880 = vmatpush1.bf16.msra.mxu0 %v4874_v15  ;;  %4911 = vmatprep.mubr.bf16.mxu0 %v11050_v1 }
 0x9ad   : > { %10384 = vmatprep.subr.msk.bf16.mxu0 %vm1867_vm11, %v4999_v4  ;;  %v4998_v57 = vpack.c.bf16 %v4994_v37, %v4994_v37 }
 0x9af   : > { %10376 = vmatmul.mubr.msk.bf16.vlgmr.msra.gmra.mrb[104].mxu1 %vm1863_vm12, %v10374_v42  ;;  %v5004_v45 = vsel %vm1867_vm11, %v4998_v57, 0 }
 0x9b0   : > { %4944 = vmatpush1.bf16.msra.mxu1 %v4938_v46  ;;  %4975 = vmatprep.mubr.bf16.mxu1 %v11050_v1 }
 0x9b3   : > { %10379 = vmatmul.mubr.msk.bf16.vlgmr.msra.gmra.mrb[100].mxu0 %vm1863_vm12, %v10377_v47 }
 0x9b4   : > { %5010 = vmatpush1.bf16.msra.mxu0 %v5004_v45  ;;  %5041 = vmatprep.mubr.bf16.mxu0 %v11050_v1 }
 0x9b7   : > { %10382 = vmatmul.mubr.msk.bf16.vlgmr.msra.gmra.mrb[108].mxu1 %vm1863_vm12, %v10380_v48 }
 0x9b8   : > { %5150 = vmatprep.mubr.bf16.mxu1 %v11050_v1 }
 0x9ba   : > { %v5056_v45 = vpop.permute.xlu0 %5055 }
 0x9bb   : > { %10385 = vmatmul.mubr.msk.bf16.vlgmr.msra.gmra.mrb[104].mxu0 %vm1863_vm12, %v10383_v49 }
 0x9bc   : > { %5194 = vmatprep.mubr.bf16.mxu0 %v11050_v1 }
 0xa6e   : > { %v4545_v51 = vpop.f32.mrb[88].mxu0 }
 0xa6f   : > { %v4547_v52 = vpop.f32.mrb[89].mxu0 }
 0xa70   : > { %v4549_v53 = vpop.f32.mrb[90].mxu0 }
 0xa71   : > { %v4550_v54 = vpop.f32.mrb[91].mxu0 }
 0xa72   : > { %v4595_v62 = vpop.f32.mrb[96].mxu1 }
 0xa73   : > { %v4596_v63 = vadd.f32 %v4595_v62, %v4545_v51  ;;  %v4597_v40 = vpop.f32.mrb[97].mxu1 }
 0xa74   : > { %v4598_v55 = vadd.f32 %v4597_v40, %v4547_v52  ;;  %v4599_v56 = vpop.f32.mrb[98].mxu1  ;;  %v5669_v40 = vld [vmem:[%s13619_s18] sm:$0xff]  ;;  %s13620_s18 = sld [smem:[#allocation13_spill]] }
 0xa75   : > { %v4600_v17 = vpop.f32.mrb[99].mxu1 }
 0xa76   : > { %v4659_v21 = vpop.f32.mrb[92].mxu0 }
 0xa77   : > { %v4666_v50 = vadd.f32 %v4659_v21, %v4596_v63  ;;  %v4661_v3 = vpop.f32.mrb[93].mxu0  ;;  %v5075_v21 = vpop.permute.xlu0 %5074 }
 0xa78   : > { %v4667_v18 = vadd.f32 %v4661_v3, %v4598_v55  ;;  %v4663_v7 = vpop.f32.mrb[94].mxu0  ;;  %v5073_v55 = vpop.permute.xlu1 %5072 }
 0xa79   : > { %v4664_v23 = vpop.f32.mrb[95].mxu0 }
 0xa7a   : > { %v4725_v5 = vpop.f32.mrb[100].mxu1 }
 0xa7b   : > { %v4732_v60 = vadd.f32 %v4725_v5, %v4666_v50  ;;  %v4727_v22 = vpop.f32.mrb[101].mxu1  ;;  %v5206_v50 = vpop.permute.xlu0 %5205 }
 0xa7c   : > { %v4733_v38 = vadd.f32 %v4727_v22, %v4667_v18  ;;  %v4729_v6 = vpop.f32.mrb[102].mxu1  ;;  %v5204_v56 = vpop.permute.xlu1 %5203 }
 0xa7d   : > { %v4730_v19 = vpop.f32.mrb[103].mxu1 }
 0xa7e   : > { %v4781_v20 = vpop.f32.mrb[96].mxu0 }
 0xa7f   : > { %v4788_v9 = vadd.f32 %v4781_v20, %v4732_v60  ;;  %v4783_v44 = vpop.f32.mrb[97].mxu0  ;;  %v5276_v18 = vpop.permute.xlu0 %5275 }
 0xa80   : > { %v4789_v0 = vadd.f32 %v4783_v44, %v4733_v38  ;;  %v4785_v32 = vpop.f32.mrb[98].mxu0  ;;  %v5274_v17 = vpop.permute.xlu1 %5273 }
 0xa81   : > { %v4786_v30 = vpop.f32.mrb[99].mxu0  ;;  %v5086_v32 = vsel %vm1221_vm2, 0.0, %v5073_v55 }
 0xa82   : > { %v4847_v28 = vpop.f32.mrb[104].mxu1 }
 0xa83   : > { %v4854_v10 = vadd.f32 %v4847_v28, %v4788_v9  ;;  %v4849_v11 = vpop.f32.mrb[105].mxu1  ;;  %v5080_v9 = vsel %vm1221_vm2, %v5073_v55, %v5075_v21  ;;  %v5281_v55 = vsel %vm1442_vm5, %v5274_v17, %v5276_v18  ;;  %v5287_v21 = vsel %vm1442_vm5, 0.0, %v5274_v17 }
 0xa84   : > { %v4855_v43 = vadd.f32 %v4849_v11, %v4789_v0  ;;  %v4851_v24 = vpop.f32.mrb[106].mxu1  ;;  %v5289_v17 = vmul.f32 %v5287_v21, %v11323_v26 }
 0xa85   : > { %v4852_v12 = vpop.f32.mrb[107].mxu1 }
 0xa86   : > { %v4913_v13 = vpop.f32.mrb[100].mxu0  ;;  %v5089_v12 = vmul.f32 %v5080_v9, %v11325_v29 }
 0xa87   : > { %v4920_v16 = vadd.f32 %v4913_v13, %v4854_v10  ;;  %v4915_v27 = vpop.f32.mrb[101].mxu0 }
 0xa88   : > { %v4921_v33 = vadd.f32 %v4915_v27, %v4855_v43  ;;  %v4917_v14 = vpop.f32.mrb[102].mxu0  ;;  %v5088_v27 = vmul.f32 %v5086_v32, %v11323_v26 }
 0xa89   : > { %v4918_v61 = vpop.f32.mrb[103].mxu0  ;;  %v10386_v14 = vld [vmem:[%s13620_s18 + $0x4] sm:$0xf] }
 0xa8a   : > { %v4977_v4 = vpop.f32.mrb[108].mxu1  ;;  %v5217_v61 = vsel %vm1364_vm4, 0.0, %v5204_v56 }
 0xa8b   : > { %v4984_v34 = vadd.f32 %v4977_v4, %v4920_v16  ;;  %v4979_v37 = vpop.f32.mrb[109].mxu1 }
 0xa8c   : > { %v4985_v15 = vadd.f32 %v4979_v37, %v4921_v33  ;;  %v4981_v41 = vpop.f32.mrb[110].mxu1  ;;  %v5211_v33 = vsel %vm1364_vm4, %v5204_v56, %v5206_v50  ;;  %v10394_v56 = vld [vmem:[%s13620_s18 + $0x8] sm:$0xf] }
 0xa8d   : > { %v4982_v42 = vpop.f32.mrb[111].mxu1 }
 0xa8e   : > { %v5043_v57 = vpop.f32.mrb[104].mxu0 }
 0xa8f   : > { %v5050_v46 = vadd.f32 %v5043_v57, %v4984_v34  ;;  %v5045_v47 = vpop.f32.mrb[105].mxu0  ;;  %v5220_v57 = vmul.f32 %v5211_v33, %v11331_v36 }
 0xa90   : > { %v5051_v48 = vadd.f32 %v5045_v47, %v4985_v15  ;;  %v5047_v49 = vpop.f32.mrb[106].mxu0  ;;  %v5219_v47 = vmul.f32 %v5217_v61, %v11329_v35 }
 0xa91   : > { %v5058_v51 = vadd.f32 %v5056_v45, %v5050_v46  ;;  %v5048_v52 = vpop.f32.mrb[107].mxu0 }
 0xa92   : > { %v5059_v53 = vadd.f32 %v5056_v45, %v5051_v48  ;;  %v5092_v45 = vld [vmem:[%s13620_s18] sm:$0xf] }
 0xa93   : > { %v12246_v54 = vmax.f32 %v5058_v51, 0.0 }
 0xa94   : > { %v12248_v62 = vmax.f32 %v5059_v53, 0.0 }
 0xa95   : > { %5397 = vrot.lane.b32.xlu0 %v12246_v54, %s13571_s10  ;;  %5076 = vrot.lane.b32.xlu1 %v12246_v54, %s13567_s28 }
 0xa96   : > { %v12256_v63 = vpack.i.bf16 %v12248_v62, %v12246_v54 }
 0xa99   : > { %5207 = vrot.lane.b32.xlu1 %v12246_v54, %s13577_s2  ;;  %10861 = vrot.lane.b32.xlu0 %v12256_v63, %s13565_s1 }
 0xa9d   : > { %5393 = vrot.lane.b32.xlu1 %v12115_v39, %s13571_s10  ;;  %5078 = vrot.lane.b32.xlu0 %v12248_v62, %s13567_s28 }
 0xaa1   : > { %5277 = vrot.lane.b32.xlu1 %v12246_v54, %s13575_s7  ;;  %5209 = vrot.lane.b32.xlu0 %v12248_v62, %s13577_s2 }
 0xaa5   : > { %5465 = vrot.lane.b32.xlu1 %v12118_v31, %s13569_s11  ;;  %5467 = vrot.lane.b32.xlu0 %v12246_v54, %s13569_s11 }
 0xaa9   : > { %5463 = vrot.lane.b32.xlu1 %v12115_v39, %s13569_s11  ;;  %5279 = vrot.lane.b32.xlu0 %v12248_v62, %s13575_s7 }
 0xaad   : > { %5601 = vrot.lane.b32.xlu1 %v12118_v31, %s13561_s15  ;;  %5399 = vrot.lane.b32.xlu0 %v12248_v62, %s13571_s10 }
 0xab1   : > { %10866 = vrot.lane.b32.xlu1 %v12124_v8, %s13563_s16  ;;  %5469 = vrot.lane.b32.xlu0 %v12248_v62, %s13569_s11 }
 0xab5   : > { %5599 = vrot.lane.b32.xlu1 %v12115_v39, %s13561_s15  ;;  %5605 = vrot.lane.b32.xlu0 %v12248_v62, %s13561_s15 }
 0xab9   : > { %5672 = vperm.xlu1 %10784, %v5669_v40   ;;  %10871 = vrot.lane.b32.xlu0 %v12256_v63, %s13563_s16  ;;  %v12377_v40 = vpack.c.bf16 %v12248_v62, %v12118_v31 }
 0xabd   : > { %5695 = vrot.lane.b32.xlu1 %v12118_v31, %s13567_s28  ;;  %5603 = vrot.lane.b32.xlu0 %v12246_v54, %s13561_s15 }
 0xac1   : > { %5858 = vrot.lane.b32.xlu1 %v12115_v39, %s13577_s2  ;;  %10876 = vrot.lane.b32.xlu0 %v12124_v8, %s13565_s1 }
 0xac5   : > { %5862 = vrot.lane.b32.xlu1 %v12246_v54, %s13577_s2  ;;  %5693 = vrot.lane.b32.xlu0 %v12115_v39, %s13567_s28 }
 0xac9   : > { %5946 = vrot.lane.b32.xlu1 %v12115_v39, %s13575_s7  ;;  %5697 = vrot.lane.b32.xlu0 %v12246_v54, %s13567_s28 }
 0xacd   : > { %5950 = vrot.lane.b32.xlu1 %v12246_v54, %s13575_s7  ;;  %5860 = vrot.lane.b32.xlu0 %v12118_v31, %s13577_s2 }
 0xad1   : > { %6094 = vrot.lane.b32.xlu1 %v12118_v31, %s13571_s10  ;;  %5948 = vrot.lane.b32.xlu0 %v12118_v31, %s13575_s7 }
 0xad5   : > { %6092 = vrot.lane.b32.xlu1 %v12115_v39, %s13571_s10  ;;  %6096 = vrot.lane.b32.xlu0 %v12246_v54, %s13571_s10 }
 0xad9   : > { %6182 = vrot.lane.b32.xlu1 %v12118_v31, %s13569_s11  ;;  %6184 = vrot.lane.b32.xlu0 %v12246_v54, %s13569_s11 }
 0xadd   : > { %6180 = vrot.lane.b32.xlu1 %v12115_v39, %s13569_s11  ;;  %5864 = vrot.lane.b32.xlu0 %v12248_v62, %s13577_s2 }
 0xae1   : > { %6352 = vrot.lane.b32.xlu1 %v12118_v31, %s13561_s15  ;;  %5952 = vrot.lane.b32.xlu0 %v12248_v62, %s13575_s7 }
 0xae5   : > { %10881 = vrot.lane.b32.xlu1 %v12124_v8, %s13563_s16  ;;  %6098 = vrot.lane.b32.xlu0 %v12248_v62, %s13571_s10  ;;  %v10857_v8 = vpop.permute.xlu1 %10856  ;;  %s13622_s16 = sld [smem:[#allocation16_spill]] }
 0xae6   : > { %v10859_v5 = vunpack.i.h.bf16 %v10857_v8  ;;  %v10858_v60 = vunpack.i.l.bf16 %v10857_v8 }
 0xae8   : > { %v5103_v44 = vsel %vm1246_vm1, %v10858_v60, %v10859_v5 }
 0xae9   : > { %10886 = vrot.lane.b32.xlu1 %v12256_v63, %s13565_s1  ;;  %6186 = vrot.lane.b32.xlu0 %v12248_v62, %s13569_s11  ;;  %v12345_v3 = vpop.permute.xlu1 %5395 }
 0xaea   : > { %v5407_v18 = vsel %vm1566_vm7, %v12345_v3, 0.0 }
 0xaeb   : > { %v5410_v9 = vmul.f32 %v5407_v18, %v11331_v36 }
 0xaed   : > { %5699 = vrot.lane.b32.xlu1 %v12248_v62, %s13567_s28  ;;  %6356 = vrot.lane.b32.xlu0 %v12248_v62, %s13561_s15  ;;  %v12388_v62 = vpack.c.bf16 %v12246_v54, %v12115_v39  ;;  %s13621_s15 = sld [smem:[#allocation18_spill]] }
 0xb07   : > { %v12347_v7 = vpop.permute.xlu0 %5397  ;;  %v5077_v23 = vpop.permute.xlu1 %5076 }
 0xb08   : > { %v5087_v20 = vsel %vm1221_vm2, 0.0, %v5077_v23 }
 0xb09   : > { %v5090_v11 = vmul.f32 %v5087_v20, %v11323_v26 }
 0xb0b   : > { %v5208_v22 = vpop.permute.xlu1 %5207  ;;  %v10862_v38 = vpop.permute.xlu0 %10861  ;;  %v5093_v15 = vpack.c.bf16 %v5090_v11, %v5088_v27 }
 0xb0c   : > { %v10864_v6 = vunpack.i.h.bf16 %v10862_v38  ;;  %v10863_v19 = vunpack.i.l.bf16 %v10862_v38  ;;  %v5218_v13 = vsel %vm1364_vm4, 0.0, %v5208_v22 }
 0xb0d   : > { %v5221_v41 = vmul.f32 %v5218_v13, %v11329_v35 }
 0xb0e   : > { %v5104_v0 = vsel %vm1246_vm1, %v10863_v19, %v10864_v6  ;;  %v10390_v43 = vpack.c.bf16 %v10863_v19, %v10858_v60  ;;  %v5290_v60 = vmul.f32 %v5281_v55, %v11325_v29 }
 0xb0f   : > { %v5394_v30 = vpop.permute.xlu1 %5393  ;;  %v5079_v28 = vpop.permute.xlu0 %5078  ;;  %v5114_v10 = vpack.c.bf16 %v5104_v0, %v5103_v44  ;;  %v5225_v52 = vpack.c.bf16 %v5221_v41, %v5219_v47 }
 0xb10   : > { %v5081_v24 = vsel %vm1221_vm2, %v5077_v23, %v5079_v28  ;;  %v5401_v38 = vsel %vm1566_vm7, %v5394_v30, %v12345_v3 }
 0xb11   : > { %v5091_v16 = vmul.f32 %v5081_v24, %v11325_v29  ;;  %5118 = vmatprep.subr.bf16.mxu1 %v5114_v10  ;;  %v5409_v28 = vmul.f32 %v5401_v38, %v11329_v35  ;;  %v10398_v24 = vld [vmem:[%s13620_s18 + $0x10] sm:$0xf] }
 0xb12   : > { %10391 = vmatpush1.bf16.msk.msra.mxu1 %vm11759_vm14, %v10390_v43  ;;  %v10396_v43 = vld [vmem:[%s13620_s18 + $0xc] sm:$0xf] }
 0xb13   : > { %v5278_v4 = vpop.permute.xlu1 %5277  ;;  %v5210_v34 = vpop.permute.xlu0 %5209  ;;  %v5094_v37 = vpack.c.bf16 %v5091_v16, %v5089_v12 }
 0xb14   : > { %v5212_v42 = vsel %vm1364_vm4, %v5208_v22, %v5210_v34  ;;  %v5288_v53 = vsel %vm1442_vm5, 0.0, %v5278_v4 }
 0xb15   : > { %v5222_v46 = vmul.f32 %v5212_v42, %v11331_v36  ;;  %10392 = vmatmul.mubr.msk.bf16.vlgmr.msra.gmra.mrb[112].mxu1 %vm1246_vm1, %v10386_v14  ;;  %5162 = vmatprep.subr.bf16.mxu0 %v5094_v37  ;;  %v5291_v23 = vmul.f32 %v5288_v53, %v11323_v26 }
 0xb16   : > { %5163 = vmatpush1.bf16.msra.mxu0 %v5093_v15  ;;  %5262 = vmatprep.mubr.bf16.mxu1 %v11050_v1 }
 0xb17   : > { %v5466_v48 = vpop.permute.xlu1 %5465  ;;  %v5468_v49 = vpop.permute.xlu0 %5467  ;;  %v5226_v51 = vpack.c.bf16 %v5222_v46, %v5220_v57  ;;  %v5295_v44 = vpack.c.bf16 %v5291_v23, %v5289_v17 }
 0xb18   : > { %v5477_v3 = vsel %vm1633_vm9, %v5466_v48, 0.0 }
 0xb19   : > { %10393 = vmatmul.mubr.msk.bf16.vlgmr.msra.gmra.mrb[108].mxu0 %vm1246_vm1, %v5092_v45  ;;  %5230 = vmatprep.subr.bf16.mxu1 %v5226_v51  ;;  %v10402_v51 = vld [vmem:[%s13620_s18 + $0x18] sm:$0xf] }
 0xb1a   : > { %5231 = vmatpush1.bf16.msra.mxu1 %v5225_v52  ;;  %5332 = vmatprep.mubr.bf16.mxu0 %v11050_v1 }
 0xb1b   : > { %v5464_v8 = vpop.permute.xlu1 %5463  ;;  %v5280_v50 = vpop.permute.xlu0 %5279  ;;  %5350 = vmatprep.subr.bf16.mxu1 %v12377_v40 }
 0xb1c   : > { %v5282_v5 = vsel %vm1442_vm5, %v5278_v4, %v5280_v50  ;;  %v5471_v11 = vsel %vm1633_vm9, %v5464_v8, %v5466_v48 }
 0xb1d   : > { %v5292_v22 = vmul.f32 %v5282_v5, %v11325_v29  ;;  %10395 = vmatmul.mubr.msk.bf16.vlgmr.msra.gmra.mrb[116].mxu1 %vm1246_vm1, %v10394_v56  ;;  %v5479_v14 = vmul.f32 %v5471_v11, %v11323_v26 }
 0xb1e   : > { %5351 = vmatpush1.bf16.msra.mxu1 %v12388_v62  ;;  %5382 = vmatprep.mubr.bf16.mxu1 %v11050_v1 }
 0xb1f   : > { %v5602_v6 = vpop.permute.xlu1 %5601  ;;  %v5400_v19 = vpop.permute.xlu0 %5399  ;;  %v5296_v20 = vpack.c.bf16 %v5292_v22, %v5290_v60 }
 0xb20   : > { %v5402_v0 = vsel %vm1566_vm7, %v12347_v7, %v5400_v19  ;;  %v5408_v32 = vsel %vm1566_vm7, %v5400_v19, 0.0  ;;  %v5480_v7 = vmul.f32 %v5477_v3, %v11325_v29  ;;  %v5613_v37 = vsel %vm1765_vm8, %v5602_v6, 0.0 }
 0xb21   : > { %v5411_v30 = vmul.f32 %v5402_v0, %v11329_v35  ;;  %v5412_v10 = vmul.f32 %v5408_v32, %v11331_v36  ;;  %5300 = vmatprep.subr.bf16.mxu0 %v5296_v20  ;;  %v5616_v46 = vmul.f32 %v5613_v37, %v11331_v36  ;;  %v10409_v20 = vld [vmem:[%s13620_s18 + $0x20] sm:$0xf] }
 0xb22   : > { %5301 = vmatpush1.bf16.msra.mxu0 %v5295_v44 }
 0xb23   : > { %v5415_v12 = vpack.c.bf16 %v5411_v30, %v5409_v28  ;;  %v5470_v13 = vpop.permute.xlu0 %5469  ;;  %v5416_v16 = vpack.c.bf16 %v5412_v10, %v5410_v9  ;;  %v10867_v61 = vpop.permute.xlu1 %10866 }
 0xb24   : > { %v5472_v27 = vsel %vm1633_vm9, %v5468_v49, %v5470_v13  ;;  %v5478_v33 = vsel %vm1633_vm9, %v5470_v13, 0.0  ;;  %v10869_v47 = vunpack.i.h.bf16 %v10867_v61  ;;  %v10868_v45 = vunpack.i.l.bf16 %v10867_v61  ;;  %v10400_v49 = vld [vmem:[%s13620_s18 + $0x14] sm:$0xf] }
 0xb25   : > { %v5481_v4 = vmul.f32 %v5472_v27, %v11323_v26  ;;  %v5482_v34 = vmul.f32 %v5478_v33, %v11325_v29  ;;  %10397 = vmatmul.mubr.msk.bf16.vlgmr.msra.gmra.mrb[112].mxu0 %vm1246_vm1, %v10396_v43  ;;  %10399 = vmatmul.mubr.msk.bf16.vlgmr.msra.gmra.mrb[120].mxu1 %vm1246_vm1, %v10398_v24 }
 0xb26   : > { %5420 = vmatprep.subr.bf16.mxu0 %v5416_v16  ;;  %5452 = vmatprep.mubr.bf16.mxu0 %v11050_v1  ;;  %v5541_v8 = vsel %vm1700_vm10, %v10868_v45, %v10869_v47 }
 0xb27   : > { %v5485_v15 = vpack.c.bf16 %v5481_v4, %v5479_v14  ;;  %5421 = vmatpush1.bf16.msra.mxu0 %v5415_v12  ;;  %v5606_v41 = vpop.permute.xlu0 %5605  ;;  %v5486_v42 = vpack.c.bf16 %v5482_v34, %v5480_v7  ;;  %5522 = vmatprep.mubr.bf16.mxu1 %v11050_v1  ;;  %v5600_v52 = vpop.permute.xlu1 %5599 }
 0xb28   : > { %v5614_v57 = vsel %vm1765_vm8, %v5606_v41, 0.0  ;;  %v5607_v50 = vsel %vm1765_vm8, %v5600_v52, %v5602_v6  ;;  %v10404_v6 = vld [vmem:[%s13620_s18 + $0x1c] sm:$0xf] }
 0xb29   : > { %v5618_v48 = vmul.f32 %v5614_v57, %v11331_v36  ;;  %5490 = vmatprep.subr.bf16.mxu1 %v5486_v42  ;;  %v5615_v17 = vmul.f32 %v5607_v50, %v11329_v35 }
 0xb2a   : > { %5491 = vmatpush1.bf16.msra.mxu1 %v5485_v15 }
 0xb2b   : > { %v10872_v53 = vpop.permute.xlu0 %10871  ;;  %v5622_v55 = vpack.c.bf16 %v5618_v48, %v5616_v46 }
 0xb2c   : > { %v10874_v56 = vunpack.i.h.bf16 %v10872_v53  ;;  %v10873_v21 = vunpack.i.l.bf16 %v10872_v53 }
 0xb2d   : > { %10401 = vmatmul.mubr.msk.bf16.vlgmr.msra.gmra.mrb[116].mxu0 %vm1246_vm1, %v10400_v49  ;;  %10403 = vmatmul.mubr.msk.bf16.vlgmr.msra.gmra.mrb[124].mxu1 %vm1246_vm1, %v10402_v51 }
 0xb2e   : > { %v10406_v23 = vpack.c.bf16 %v10874_v56, %v10869_v47  ;;  %v5542_v5 = vsel %vm1700_vm10, %v10873_v21, %v10874_v56  ;;  %5626 = vmatprep.subr.bf16.mxu1 %v5622_v55  ;;  %5588 = vmatprep.mubr.bf16.mxu0 %v11050_v1 }
 0xb2f   : > { %v5604_v18 = vpop.permute.xlu0 %5603  ;;  %v5551_v60 = vpack.c.bf16 %v5542_v5, %v5541_v8  ;;  %5658 = vmatprep.mubr.bf16.mxu1 %v11050_v1 }
 0xb30   : > { %v5608_v22 = vsel %vm1765_vm8, %v5604_v18, %v5606_v41  ;;  %10407 = vmatprep.subr.msk.bf16.mxu0 %vm11841_vm15, %v10406_v23 }
 0xb31   : > { %v5617_v38 = vmul.f32 %v5608_v22, %v11329_v35  ;;  %5557 = vmatpush1.bf16.msra.mxu0 %v5551_v60 }
 0xb33   : > { %v5621_v19 = vpack.c.bf16 %v5617_v38, %v5615_v17  ;;  %v10877_v43 = vpop.permute.xlu0 %10876 }
 0xb34   : > { %v10879_v7 = vunpack.i.h.bf16 %v10877_v43  ;;  %v10878_v27 = vunpack.i.l.bf16 %v10877_v43 }
 0xb35   : > { %10408 = vmatmul.mubr.msk.bf16.vlgmr.msra.gmra.mrb[120].mxu0 %vm1246_vm1, %v10404_v6  ;;  %5627 = vmatpush1.bf16.msra.mxu1 %v5621_v19 }
 0xb36   : > { %5799 = vmatprep.mubr.bf16.mxu0 %v11050_v1  ;;  %v5740_v15 = vsel %vm1246_vm1, %v10878_v27, %v10879_v7 }
 0xb37   : > { %v5694_v13 = vpop.permute.xlu0 %5693 }
 0xb38   : > { %v12443_v9 = vpop.permute.xlu1 %5672  ;;  %10410 = vmatmul.mubr.msk.bf16.vlgmr.msra.gmra.mrb[128].mxu1 %vm1246_vm1, %v10409_v20  ;;  %v5714_v42 = vsel %vm1221_vm2, 0.0, %v5694_v13 }
 0xb39   : > { %5849 = vmatprep.mubr.bf16.mxu1 %v11050_v1  ;;  %v5717_v52 = vmul.f32 %v5714_v42, %v11323_v26 }
 0xb3b   : > { %v5698_v33 = vpop.permute.xlu0 %5697 }
 0xb3c   : > { %v5696_v44 = vpop.permute.xlu1 %5695  ;;  %v5715_v34 = vsel %vm1221_vm2, 0.0, %v5698_v33 }
 0xb3d   : > { %v5705_v37 = vsel %vm1221_vm2, %v5694_v13, %v5696_v44  ;;  %v5719_v47 = vmul.f32 %v5715_v34, %v11323_v26 }
 0xb3e   : > { %v5718_v49 = vmul.f32 %v5705_v37, %v11325_v29 }
 0xb3f   : > { %v5724_v55 = vpack.c.bf16 %v5719_v47, %v5717_v52 }
 0xb40   : > { %v12447_v0 = vpop.permute.xlu1 %5858 }
 0xb44   : > { %v12449_v32 = vpop.permute.xlu1 %5862 }
 0xb48   : > { %v12451_v28 = vpop.permute.xlu1 %5946 }
 0xb4c   : > { %v12453_v3 = vpop.permute.xlu1 %5950 }
 0xb50   : > { %v12455_v30 = vpop.permute.xlu1 %6094 }
 0xb54   : > { %v12457_v10 = vpop.permute.xlu1 %6092 }
 0xb58   : > { %v12459_v11 = vpop.permute.xlu1 %6182 }
 0xb5c   : > { %v12461_v24 = vpop.permute.xlu1 %6180 }
 0xb60   : > { %v12463_v12 = vpop.permute.xlu1 %6352 }
 0xb64   : > { %v12465_v16 = vpop.permute.xlu1 %10881 }
 0xb68   : > { %v10887_v14 = vpop.permute.xlu1 %10886 }
 0xb69   : > { %v10889_v61 = vunpack.i.h.bf16 %v10887_v14  ;;  %v10888_v4 = vunpack.i.l.bf16 %v10887_v14 }
 0xb6b   : > { %v5741_v41 = vsel %vm1246_vm1, %v10888_v4, %v10889_v61  ;;  %v10415_v45 = vpack.c.bf16 %v10888_v4, %v10878_v27 }
 0xb6c   : > { %v5700_v57 = vpop.permute.xlu1 %5699  ;;  %v5755_v46 = vpack.c.bf16 %v5741_v41, %v5740_v15 }
 0xb6d   : > { %v5706_v48 = vsel %vm1221_vm2, %v5698_v33, %v5700_v57 }
 0xb6e   : > { %v5720_v51 = vmul.f32 %v5706_v48, %v11325_v29  ;;  %5767 = vmatprep.subr.bf16.mxu0 %v5755_v46 }
 0xb6f   : > { %10416 = vmatpush1.bf16.msk.msra.mxu0 %vm11759_vm14, %v10415_v45 }
 0xb70   : > { %v5725_v53 = vpack.c.bf16 %v5720_v51, %v5718_v49 }
 0xb72   : > { %5817 = vmatprep.subr.bf16.mxu1 %v5725_v53 }
 0xb73   : > { %5818 = vmatpush1.bf16.msra.mxu1 %v5724_v55 }
 0xbe8   : > { %v5152_v56 = vpop.f32.mrb[112].mxu1 }
 0xbe9   : > { %v5154_v21 = vpop.f32.mrb[113].mxu1 }
 0xbea   : > { %v5156_v8 = vpop.f32.mrb[114].mxu1 }
 0xbeb   : > { %v5157_v50 = vpop.f32.mrb[115].mxu1 }
 0xbec   : > { %v5196_v23 = vpop.f32.mrb[108].mxu0 }
 0xbed   : > { %v5197_v5 = vadd.f32 %v5196_v23, %v5152_v56  ;;  %v5198_v18 = vpop.f32.mrb[109].mxu0 }
 0xbee   : > { %v5199_v60 = vadd.f32 %v5198_v18, %v5154_v21  ;;  %v5200_v22 = vpop.f32.mrb[110].mxu0 }
 0xbef   : > { %v5201_v17 = vpop.f32.mrb[111].mxu0 }
 0xbf0   : > { %v5264_v38 = vpop.f32.mrb[116].mxu1 }
 0xbf1   : > { %v5271_v6 = vadd.f32 %v5264_v38, %v5197_v5  ;;  %v5266_v19 = vpop.f32.mrb[117].mxu1 }
 0xbf2   : > { %v5272_v20 = vadd.f32 %v5266_v19, %v5199_v60  ;;  %v5268_v44 = vpop.f32.mrb[118].mxu1 }
 0xbf3   : > { %v5269_v43 = vpop.f32.mrb[119].mxu1 }
 0xbf8   : > { %v5334_v13 = vpop.f32.mrb[112].mxu0  ;;  %v5384_v7 = vpop.f32.mrb[120].mxu1 }
 0xbf9   : > { %v5341_v27 = vadd.f32 %v5334_v13, %v5271_v6  ;;  %v5336_v33 = vpop.f32.mrb[113].mxu0  ;;  %v5386_v14 = vpop.f32.mrb[121].mxu1 }
 0xbfa   : > { %v5342_v61 = vadd.f32 %v5336_v33, %v5272_v20  ;;  %v5338_v4 = vpop.f32.mrb[114].mxu0  ;;  %v5388_v34 = vpop.f32.mrb[122].mxu1 }
 0xbfb   : > { %v5391_v37 = vadd.f32 %v5384_v7, %v5341_v27  ;;  %v5339_v15 = vpop.f32.mrb[115].mxu0  ;;  %v5389_v41 = vpop.f32.mrb[123].mxu1 }
 0xbfc   : > { %v5392_v42 = vadd.f32 %v5386_v14, %v5342_v61  ;;  %v5861_v33 = vpop.permute.xlu0 %5860 }
 0xc00   : > { %v5454_v57 = vpop.f32.mrb[116].mxu0  ;;  %v5524_v46 = vpop.f32.mrb[124].mxu1 }
 0xc01   : > { %v5461_v47 = vadd.f32 %v5454_v57, %v5391_v37  ;;  %v5456_v45 = vpop.f32.mrb[117].mxu0  ;;  %v5526_v48 = vpop.f32.mrb[125].mxu1 }
 0xc02   : > { %v5462_v49 = vadd.f32 %v5456_v45, %v5392_v42  ;;  %v5458_v51 = vpop.f32.mrb[118].mxu0  ;;  %v5528_v52 = vpop.f32.mrb[126].mxu1 }
 0xc03   : > { %v5531_v53 = vadd.f32 %v5524_v46, %v5461_v47  ;;  %v5459_v55 = vpop.f32.mrb[119].mxu0  ;;  %v5529_v56 = vpop.f32.mrb[127].mxu1  ;;  %v5870_v46 = vsel %vm1364_vm4, %v12447_v0, %v5861_v33  ;;  %v5879_v47 = vsel %vm1364_vm4, 0.0, %v12447_v0 }
 0xc04   : > { %v5532_v21 = vadd.f32 %v5526_v48, %v5462_v49  ;;  %v5949_v14 = vpop.permute.xlu0 %5948  ;;  %v5880_v48 = vsel %vm1364_vm4, 0.0, %v12449_v32  ;;  %v5882_v56 = vmul.f32 %v5879_v47, %v11329_v35 }
 0xc08   : > { %v5590_v8 = vpop.f32.mrb[120].mxu0  ;;  %v12521_v61 = vpop.permute.xlu0 %6096 }
 0xc09   : > { %v5597_v50 = vadd.f32 %v5590_v8, %v5531_v53  ;;  %v5592_v23 = vpop.f32.mrb[121].mxu0 }
 0xc0a   : > { %v5598_v5 = vadd.f32 %v5592_v23, %v5532_v21  ;;  %v5594_v18 = vpop.f32.mrb[122].mxu0  ;;  %v5883_v21 = vmul.f32 %v5870_v46, %v11331_v36 }
 0xc0b   : > { %v5595_v60 = vpop.f32.mrb[123].mxu0  ;;  %v5660_v22 = vpop.f32.mrb[128].mxu1  ;;  %v5958_v18 = vsel %vm1442_vm5, %v12451_v28, %v5949_v14 }
 0xc0c   : > { %v5667_v17 = vadd.f32 %v5660_v22, %v5597_v50  ;;  %v5662_v38 = vpop.f32.mrb[129].mxu1  ;;  %v12523_v4 = vpop.permute.xlu0 %6184  ;;  %v5884_v50 = vmul.f32 %v5880_v48, %v11329_v35  ;;  %v5968_v60 = vsel %vm1442_vm5, 0.0, %v12453_v3  ;;  %v5971_v33 = vmul.f32 %v5958_v18, %v11325_v29 }
 0xc0d   : > { %v5668_v6 = vadd.f32 %v5662_v38, %v5598_v5  ;;  %v5664_v19 = vpop.f32.mrb[130].mxu1  ;;  %v5972_v14 = vmul.f32 %v5968_v60, %v11323_v26 }
 0xc0e   : > { %v5675_v20 = vadd.f32 %v12443_v9, %v5667_v17  ;;  %v5665_v44 = vpop.f32.mrb[131].mxu1 }
 0xc0f   : > { %v5676_v43 = vadd.f32 %v12443_v9, %v5668_v6  ;;  %v6463_v9 = vld [vmem:[%s13621_s15] sm:$0xff]  ;;  %s13625_s15 = sld [smem:[#allocation15_spill]]  ;;  %v5967_v6 = vsel %vm1442_vm5, 0.0, %v12451_v28 }
 0xc10   : > { %v12481_v13 = vmax.f32 %v5675_v20, 0.0  ;;  %v5865_v34 = vpop.permute.xlu0 %5864  ;;  %v5970_v46 = vmul.f32 %v5967_v6, %v11323_v26 }
 0xc11   : > { %v12483_v7 = vmax.f32 %v5676_v43, 0.0  ;;  %v5871_v57 = vsel %vm1364_vm4, %v12449_v32, %v5865_v34 }
 0xc12   : > { %5701 = vrot.lane.b32.xlu1 %v12481_v13, %s13567_s28  ;;  %v5885_v51 = vmul.f32 %v5871_v57, %v11331_v36 }
 0xc13   : > { %v10890_v27 = vpack.i.bf16 %v12483_v7, %v12481_v13 }
 0xc14   : > { %v5953_v37 = vpop.permute.xlu0 %5952  ;;  %v5891_v43 = vpack.c.bf16 %v5885_v51, %v5883_v21  ;;  %v5978_v21 = vpack.c.bf16 %v5972_v14, %v5970_v46  ;;  %v6038_v14 = vpack.c.bf16 %v12481_v13, %v12481_v13 }
 0xc15   : > { %10891 = vrot.lane.b32.xlu0 %v10890_v27, %s13565_s1  ;;  %s13623_s1 = smov 112   ;;  %v5959_v8 = vsel %vm1442_vm5, %v12453_v3, %v5953_v37  ;;  %v10411_v34 = vld [vmem:[%s13625_s15 + $0x4] sm:$0xf]  ;;  %v5890_v37 = vpack.c.bf16 %v5884_v50, %v5882_v56  ;;  %v10421_v6 = vld [vmem:[%s13625_s15 + $0x8] sm:$0xf] }
 0xc16   : > { %5866 = vrot.lane.b32.xlu1 %v12481_v13, %s13577_s2  ;;  %v5973_v19 = vmul.f32 %v5959_v8, %v11325_v29  ;;  %v6104_v8 = vsel %vm1566_vm7, %v12457_v10, %v12455_v30 }
 0xc18   : > { %v12525_v15 = vpop.permute.xlu0 %6098 }
 0xc19   : > { %5703 = vrot.lane.b32.xlu0 %v12483_v7, %s13567_s28  ;;  %s13624_s28 = smov 111   ;;  %v6114_v47 = vsel %vm1566_vm7, %v12525_v15, 0.0  ;;  %v6105_v50 = vsel %vm1566_vm7, %v12521_v61, %v12525_v15 }
 0xc1a   : > { %5954 = vrot.lane.b32.xlu1 %v12481_v13, %s13575_s7  ;;  %v6119_v10 = vmul.f32 %v6114_v47, %v11331_v36 }
 0xc1c   : > { %v12527_v41 = vpop.permute.xlu0 %6186 }
 0xc1d   : > { %5868 = vrot.lane.b32.xlu0 %v12483_v7, %s13577_s2  ;;  %v6202_v18 = vsel %vm1633_vm9, %v12527_v41, 0.0 }
 0xc1e   : > { %6100 = vrot.lane.b32.xlu1 %v12481_v13, %s13571_s10 }
 0xc20   : > { %v12529_v42 = vpop.permute.xlu0 %6356 }
 0xc21   : > { %5956 = vrot.lane.b32.xlu0 %v12483_v7, %s13575_s7 }
 0xc22   : > { %6188 = vrot.lane.b32.xlu1 %v12481_v13, %s13569_s11 }
 0xc25   : > { %10896 = vrot.lane.b32.xlu0 %v12256_v63, %s13623_s1  ;;  %v6438_v63 = vld [vmem:[%s13622_s16] sm:$0xff]  ;;  %s13626_s16 = sld [smem:[#allocation17_spill]] }
 0xc26   : > { %6350 = vrot.lane.b32.xlu1 %v12115_v39, %s13624_s28 }
 0xc29   : > { %6102 = vrot.lane.b32.xlu0 %v12483_v7, %s13571_s10  ;;  %s13629_s10 = smov 16  }
 0xc2a   : > { %10901 = vrot.lane.b32.xlu1 %v10890_v27, %s13623_s1 }
 0xc2d   : > { %6190 = vrot.lane.b32.xlu0 %v12483_v7, %s13569_s11  ;;  %s13627_s11 = smov 17  }
 0xc2e   : > { %6360 = vrot.lane.b32.xlu1 %v12483_v7, %s13624_s28 }
 0xc31   : > { %6354 = vrot.lane.b32.xlu0 %v12246_v54, %s13624_s28 }
 0xc32   : > { %6466 = vperm.xlu1 %10784, %v6463_v9  }
 0xc35   : > { %6358 = vrot.lane.b32.xlu0 %v12481_v13, %s13624_s28 }
 0xc39   : > { %6441 = vperm.xlu0 %10763, %v6438_v63  }
 0xc84   : > { %v5702_v54 = vpop.permute.xlu1 %5701 }
 0xc85   : > { %v5716_v45 = vsel %vm1221_vm2, 0.0, %v5702_v54 }
 0xc86   : > { %v5721_v0 = vmul.f32 %v5716_v45, %v11323_v26 }
 0xc87   : > { %v10892_v49 = vpop.permute.xlu0 %10891 }
 0xc88   : > { %v10894_v52 = vunpack.i.h.bf16 %v10892_v49  ;;  %v10893_v53 = vunpack.i.l.bf16 %v10892_v49  ;;  %v5867_v55 = vpop.permute.xlu1 %5866  ;;  %v5726_v27 = vpack.c.bf16 %v5721_v0, %v5721_v0  ;;  %v5979_v49 = vpack.c.bf16 %v5973_v19, %v5971_v33 }
 0xc89   : > { %v5881_v32 = vsel %vm1364_vm4, 0.0, %v5867_v55  ;;  %v6113_v0 = vsel %vm1566_vm7, %v12455_v30, 0.0  ;;  %v6192_v30 = vsel %vm1633_vm9, %v12461_v24, %v12459_v11  ;;  %v6118_v24 = vmul.f32 %v6105_v50, %v11329_v35 }
 0xc8a   : > { %v5751_v23 = vsel %vm1246_vm1, 0.0, %v10893_v53  ;;  %v5742_v5 = vsel %vm1246_vm1, %v10893_v53, %v10894_v52  ;;  %v5886_v9 = vmul.f32 %v5881_v32, %v11329_v35  ;;  %v5812_v56 = vsel %vm1867_vm11, %v5726_v27, 0 }
 0xc8b   : > { %v5704_v22 = vpop.permute.xlu0 %5703  ;;  %v5757_v17 = vpack.c.bf16 %v5742_v5, %v5742_v5  ;;  %v5756_v38 = vpack.c.bf16 %v5751_v23, %v5751_v23  ;;  %v6193_v23 = vsel %vm1633_vm9, %v12523_v4, %v12527_v41  ;;  %v6201_v4 = vsel %vm1633_vm9, %v12459_v11, 0.0 }
 0xc8c   : > { %v5707_v20 = vsel %vm1221_vm2, %v5702_v54, %v5704_v22  ;;  %v5955_v44 = vpop.permute.xlu1 %5954  ;;  %v5892_v51 = vpack.c.bf16 %v5886_v9, %v5886_v9  ;;  %v6207_v11 = vmul.f32 %v6202_v18, %v11325_v29  ;;  %v12613_v19 = vmul.f32 %v6192_v30, %v11323_v26 }
 0xc8d   : > { %v5722_v63 = vmul.f32 %v5707_v20, %v11325_v29  ;;  %10417 = vmatprep.subr.msk.bf16.mxu0 %vm1867_vm11, %v5757_v17  ;;  %v5762_v3 = vsel %vm1867_vm11, %v5756_v38, 0  ;;  %v5969_v28 = vsel %vm1442_vm5, 0.0, %v5955_v44  ;;  %v6117_v17 = vmul.f32 %v6113_v0, %v11331_v36 }
 0xc8e   : > { %5770 = vmatpush1.bf16.msra.mxu0 %v5762_v3  ;;  %v5974_v52 = vmul.f32 %v5969_v28, %v11323_v26  ;;  %v5898_v41 = vsel %vm1867_vm11, %v5892_v51, 0  ;;  %v12608_v38 = vmul.f32 %v6193_v23, %v11323_v26  ;;  %v6205_v27 = vmul.f32 %v6201_v4, %v11325_v29 }
 0xc8f   : > { %v5727_v54 = vpack.c.bf16 %v5722_v63, %v5722_v63  ;;  %v5869_v57 = vpop.permute.xlu0 %5868  ;;  %5903 = vmatprep.subr.bf16.mxu0 %v5891_v43  ;;  %v6116_v43 = vmul.f32 %v6104_v8, %v11329_v35  ;;  %v6039_v3 = vpack.c.bf16 %v12483_v7, %v12483_v7  ;;  %v6125_v33 = vpack.c.bf16 %v6119_v10, %v6117_v17 }
 0xc90   : > { %v5872_v45 = vsel %vm1364_vm4, %v5867_v55, %v5869_v57  ;;  %v12570_v48 = vpop.permute.xlu1 %6100  ;;  %v5723_v55 = vld [vmem:[%s13625_s15] sm:$0xf]  ;;  %v5980_v60 = vpack.c.bf16 %v5974_v52, %v5974_v52  ;;  %v6371_v57 = vsel %vm1765_vm8, %v12463_v12, 0.0  ;;  %v6213_v47 = vpack.c.bf16 %v6207_v11, %v6205_v27 }
 0xc91   : > { %v5887_v53 = vmul.f32 %v5872_v45, %v11331_v36  ;;  %10418 = vmatmul.mubr.msk.bf16.vlgmr.msra.gmra.mrb[124].mxu0 %vm3710_vm0, %v10411_v34  ;;  %10419 = vmatprep.subr.msk.bf16.mxu1 %vm1867_vm11, %v5727_v54  ;;  %v6124_v28 = vpack.c.bf16 %v6118_v24, %v6116_v43  ;;  %v10424_v34 = vld [vmem:[%s13625_s15 + $0xc] sm:$0xf]  ;;  %v6372_v54 = vsel %vm1765_vm8, %v12529_v42, 0.0  ;;  %v6375_v50 = vmul.f32 %v6371_v57, %v11331_v36 }
 0xc92   : > { %5820 = vmatpush1.bf16.msra.mxu1 %v5812_v56  ;;  %5904 = vmatpush1.bf16.msra.mxu0 %v5890_v37  ;;  %v5986_v63 = vsel %vm1867_vm11, %v5980_v60, 0  ;;  %v6212_v37 = vpack.c.bf16 %v12608_v38, %v12613_v19  ;;  %v6377_v0 = vmul.f32 %v6372_v54, %v11331_v36  ;;  %v10433_v54 = vld [vmem:[%s13625_s15 + $0x18] sm:$0xf] }
 0xc93   : > { %v5893_v32 = vpack.c.bf16 %v5887_v53, %v5887_v53  ;;  %v5957_v5 = vpop.permute.xlu0 %5956  ;;  %5991 = vmatprep.subr.bf16.mxu1 %v5979_v49  ;;  %5935 = vmatprep.mubr.bf16.mxu0 %v11050_v1 }
 0xc94   : > { %v5960_v61 = vsel %vm1442_vm5, %v5955_v44, %v5957_v5  ;;  %v12597_v15 = vpop.permute.xlu1 %6188  ;;  %v10883_v5 = vunpack.i.l.bf16 %v12465_v16  ;;  %v6383_v11 = vpack.c.bf16 %v6377_v0, %v6375_v50 }
 0xc95   : > { %v5975_v22 = vmul.f32 %v5960_v61, %v11325_v29  ;;  %10420 = vmatmul.mubr.msk.bf16.vlgmr.msra.gmra.mrb[132].mxu1 %vm3710_vm0, %v5723_v55  ;;  %10422 = vmatprep.subr.msk.bf16.mxu0 %vm1867_vm11, %v5893_v32  ;;  %v6044_v55 = vsel %vm1867_vm11, %v6038_v14, 0  ;;  %v10427_v32 = vld [vmem:[%s13625_s15 + $0x10] sm:$0xf] }
 0xc96   : > { %5906 = vmatpush1.bf16.msra.mxu0 %v5898_v41  ;;  %5992 = vmatpush1.bf16.msra.mxu1 %v5978_v21 }
 0xc97   : > { %v5981_v20 = vpack.c.bf16 %v5975_v22, %v5975_v22  ;;  %v10897_v44 = vpop.permute.xlu0 %10896  ;;  %6049 = vmatprep.subr.bf16.mxu0 %v12377_v40  ;;  %6023 = vmatprep.mubr.bf16.mxu1 %v11050_v1 }
 0xc98   : > { %v6351_v9 = vpop.permute.xlu1 %6350  ;;  %v10899_v45 = vunpack.i.h.bf16 %v10897_v44  ;;  %v10898_v49 = vunpack.i.l.bf16 %v10897_v44 }
 0xc99   : > { %10423 = vmatmul.mubr.msk.bf16.vlgmr.msra.gmra.mrb[128].mxu0 %vm3710_vm0, %v10421_v6  ;;  %10425 = vmatprep.subr.msk.bf16.mxu1 %vm1867_vm11, %v5981_v20  ;;  %v6362_v10 = vsel %vm1765_vm8, %v6351_v9, %v12463_v12 }
 0xc9a   : > { %5994 = vmatpush1.bf16.msra.mxu1 %v5986_v63  ;;  %6050 = vmatpush1.bf16.msra.mxu0 %v12388_v62  ;;  %v6281_v60 = vsel %vm1700_vm10, %v10898_v49, %v10899_v45  ;;  %v6374_v9 = vmul.f32 %v6362_v10, %v11329_v35 }
 0xc9b   : > { %v6103_v46 = vpop.permute.xlu0 %6102  ;;  %10428 = vmatprep.subr.msk.bf16.mxu0 %vm1867_vm11, %v6039_v3  ;;  %6137 = vmatprep.subr.bf16.mxu1 %v6125_v33 }
 0xc9c   : > { %v6106_v51 = vsel %vm1566_vm7, %v12570_v48, %v6103_v46  ;;  %v6115_v52 = vsel %vm1566_vm7, %v6103_v46, 0.0  ;;  %v10902_v53 = vpop.permute.xlu1 %10901  ;;  %6081 = vmatprep.mubr.bf16.mxu0 %v11050_v1  ;;  %v10884_v48 = vunpack.i.h.bf16 %v12465_v16 }
 0xc9d   : > { %v6120_v56 = vmul.f32 %v6106_v51, %v11329_v35  ;;  %v6121_v21 = vmul.f32 %v6115_v52, %v11331_v36  ;;  %v10904_v8 = vunpack.i.h.bf16 %v10902_v53  ;;  %10426 = vmatmul.mubr.msk.bf16.vlgmr.msra.gmra.mrb[136].mxu1 %vm3710_vm0, %v10424_v34  ;;  %v10903_v23 = vunpack.i.l.bf16 %v10902_v53  ;;  %v10436_v51 = vld [vmem:[%s13625_s15 + $0x1c] sm:$0xf] }
 0xc9e   : > { %6052 = vmatpush1.bf16.msra.mxu0 %v6044_v55  ;;  %6138 = vmatpush1.bf16.msra.mxu1 %v6124_v28  ;;  %v10438_v4 = vpack.c.bf16 %v10899_v45, %v10884_v48  ;;  %v6280_v20 = vsel %vm1700_vm10, %v10883_v5, %v10884_v48 }
 0xc9f   : > { %v6126_v18 = vpack.c.bf16 %v6120_v56, %v6120_v56  ;;  %v6127_v30 = vpack.c.bf16 %v6121_v21, %v6121_v21  ;;  %v6191_v61 = vpop.permute.xlu0 %6190  ;;  %6225 = vmatprep.subr.bf16.mxu0 %v6213_v47  ;;  %6169 = vmatprep.mubr.bf16.mxu1 %v11050_v1  ;;  %v6291_v16 = vsel %vm1700_vm10, %v10904_v8, 0.0  ;;  %v6282_v19 = vsel %vm1700_vm10, %v10903_v23, %v10904_v8  ;;  %v10442_v56 = vld [vmem:[%s13625_s15 + $0x20] sm:$0xf] }
 0xca0   : > { %v6194_v22 = vsel %vm1633_vm9, %v12597_v15, %v6191_v61  ;;  %v6203_v41 = vsel %vm1633_vm9, %v6191_v61, 0.0  ;;  %v6361_v17 = vpop.permute.xlu1 %6360  ;;  %v10430_v15 = vld [vmem:[%s13625_s15 + $0x14] sm:$0xf]  ;;  %v6297_v63 = vpack.c.bf16 %v6291_v16, %v6291_v16  ;;  %v6294_v33 = vpack.c.bf16 %v6281_v60, %v6280_v20 }
 0xca1   : > { %v6208_v12 = vmul.f32 %v6194_v22, %v11323_v26  ;;  %v6209_v24 = vmul.f32 %v6203_v41, %v11325_v29  ;;  %10429 = vmatmul.mubr.msk.bf16.vlgmr.msra.gmra.mrb[132].mxu0 %vm3710_vm0, %v10427_v32  ;;  %10431 = vmatprep.subr.msk.bf16.mxu1 %vm1867_vm11, %v6127_v30  ;;  %v6132_v38 = vsel %vm1867_vm11, %v6126_v18, 0  ;;  %v6373_v6 = vsel %vm1765_vm8, %v6361_v17, 0.0 }
 0xca2   : > { %6140 = vmatpush1.bf16.msra.mxu1 %v6132_v38  ;;  %6226 = vmatpush1.bf16.msra.mxu0 %v6212_v37  ;;  %v6379_v14 = vmul.f32 %v6373_v6, %v11331_v36  ;;  %v6296_v37 = vpack.c.bf16 %v6282_v19, %v6282_v19 }
 0xca3   : > { %v6214_v44 = vpack.c.bf16 %v6208_v12, %v6208_v12  ;;  %v6215_v43 = vpack.c.bf16 %v6209_v24, %v6209_v24  ;;  %v6355_v27 = vpop.permute.xlu0 %6354  ;;  %10439 = vmatprep.subr.msk.bf16.mxu1 %vm11841_vm15, %v10438_v4  ;;  %6257 = vmatprep.mubr.bf16.mxu0 %v11050_v1 }
 0xca4   : > { %v6363_v3 = vsel %vm1765_vm8, %v6355_v27, %v12529_v42  ;;  %v6385_v47 = vpack.c.bf16 %v6379_v14, %v6379_v14  ;;  %v6302_v49 = vsel %vm1867_vm11, %v6296_v37, 0 }
 0xca5   : > { %v6376_v28 = vmul.f32 %v6363_v3, %v11329_v35  ;;  %10432 = vmatmul.mubr.msk.bf16.vlgmr.msra.gmra.mrb[140].mxu1 %vm3710_vm0, %v10430_v15  ;;  %10434 = vmatprep.subr.msk.bf16.mxu0 %vm1867_vm11, %v6215_v43  ;;  %v6220_v34 = vsel %vm1867_vm11, %v6214_v44, 0 }
 0xca6   : > { %6228 = vmatpush1.bf16.msra.mxu0 %v6220_v34  ;;  %6308 = vmatpush1.bf16.msra.mxu1 %v6294_v33 }
 0xca7   : > { %v6382_v57 = vpack.c.bf16 %v6376_v28, %v6374_v9  ;;  %v6359_v46 = vpop.permute.xlu0 %6358  ;;  %10440 = vmatprep.subr.msk.bf16.mxu1 %vm1867_vm11, %v6297_v63  ;;  %6395 = vmatprep.subr.bf16.mxu0 %v6383_v11 }
 0xca8   : > { %v6364_v42 = vsel %vm1765_vm8, %v6359_v46, %v6361_v17  ;;  %6339 = vmatprep.mubr.bf16.mxu1 %v11050_v1 }
 0xca9   : > { %v6378_v45 = vmul.f32 %v6364_v42, %v11329_v35  ;;  %10435 = vmatmul.mubr.msk.bf16.vlgmr.msra.gmra.mrb[136].mxu0 %vm3710_vm0, %v10433_v54 }
 0xcaa   : > { %6310 = vmatpush1.bf16.msra.mxu1 %v6302_v49  ;;  %6396 = vmatpush1.bf16.msra.mxu0 %v6382_v57 }
 0xcab   : > { %v6384_v52 = vpack.c.bf16 %v6378_v45, %v6378_v45  ;;  %10443 = vmatprep.subr.msk.bf16.mxu0 %vm1867_vm11, %v6385_v47  ;;  %6472 = vmatprep.subr.bf16.mxu1 %v12377_v40 }
 0xcac   : > { %6427 = vmatprep.mubr.bf16.mxu0 %v11050_v1 }
 0xcad   : > { %10441 = vmatmul.mubr.msk.bf16.vlgmr.msra.gmra.mrb[144].mxu1 %vm3710_vm0, %v10436_v51  ;;  %v6390_v53 = vsel %vm1867_vm11, %v6384_v52, 0 }
 0xcae   : > { %6398 = vmatpush1.bf16.msra.mxu0 %v6390_v53  ;;  %6473 = vmatpush1.bf16.msra.mxu1 %v12388_v62 }
 0xcaf   : > { %6504 = vmatprep.mubr.bf16.mxu1 %v11050_v1 }
 0xcb1   : > { %10444 = vmatmul.mubr.msk.bf16.vlgmr.msra.gmra.mrb[140].mxu0 %vm3710_vm0, %v10442_v56 }
 0xcb2   : > { %6589 = vmatprep.mubr.bf16.mxu0 %v11050_v1 }
 0xcb8   : > { %v6442_v53 = vpop.permute.xlu0 %6441 }
 0xd64   : > { %v5801_v21 = vpop.f32.mrb[124].mxu0 }
 0xd65   : > { %v5803_v8 = vpop.f32.mrb[125].mxu0 }
 0xd66   : > { %v5805_v55 = vpop.f32.mrb[126].mxu0 }
 0xd67   : > { %v5806_v40 = vpop.f32.mrb[127].mxu0 }
 0xd68   : > { %v5851_v0 = vpop.f32.mrb[132].mxu1 }
 0xd69   : > { %v5852_v50 = vadd.f32 %v5851_v0, %v5801_v21  ;;  %v5853_v48 = vpop.f32.mrb[133].mxu1 }
 0xd6a   : > { %v5854_v23 = vadd.f32 %v5853_v48, %v5803_v8  ;;  %v5855_v32 = vpop.f32.mrb[134].mxu1 }
 0xd6b   : > { %v5856_v5 = vpop.f32.mrb[135].mxu1  ;;  %v6458_v32 = vld [vmem:[%s13626_s16] sm:$0xf]  ;;  %s13628_s16 = sld [smem:[#allocation20_spill]] }
 0xd6c   : > { %v5937_v10 = vpop.f32.mrb[128].mxu0  ;;  %v6467_v5 = vpop.permute.xlu1 %6466 }
 0xd6d   : > { %v5944_v18 = vadd.f32 %v5937_v10, %v5852_v50  ;;  %v5939_v62 = vpop.f32.mrb[129].mxu0 }
 0xd6e   : > { %v5945_v30 = vadd.f32 %v5939_v62, %v5854_v23  ;;  %v5941_v61 = vpop.f32.mrb[130].mxu0 }
 0xd6f   : > { %v5942_v4 = vpop.f32.mrb[131].mxu0 }
 0xd70   : > { %v6025_v60 = vpop.f32.mrb[136].mxu1 }
 0xd71   : > { %v6032_v22 = vadd.f32 %v6025_v60, %v5944_v18  ;;  %v6027_v41 = vpop.f32.mrb[137].mxu1 }
 0xd72   : > { %v6033_v17 = vadd.f32 %v6027_v41, %v5945_v30  ;;  %v6029_v16 = vpop.f32.mrb[138].mxu1 }
 0xd73   : > { %v6030_v12 = vpop.f32.mrb[139].mxu1 }
 0xd74   : > { %v6083_v24 = vpop.f32.mrb[132].mxu0 }
 0xd75   : > { %v6090_v38 = vadd.f32 %v6083_v24, %v6032_v22  ;;  %v6085_v6 = vpop.f32.mrb[133].mxu0  ;;  %v7098_v22 = vld [vmem:[%s13628_s16] sm:$0xff]  ;;  %s13632_s16 = sld [smem:[#allocation19_spill]] }
 0xd76   : > { %v6091_v15 = vadd.f32 %v6085_v6, %v6033_v17  ;;  %v6087_v11 = vpop.f32.mrb[134].mxu0 }
 0xd77   : > { %v6088_v19 = vpop.f32.mrb[135].mxu0 }
 0xd78   : > { %v6171_v20 = vpop.f32.mrb[140].mxu1 }
 0xd79   : > { %v6178_v44 = vadd.f32 %v6171_v20, %v6090_v38  ;;  %v6173_v43 = vpop.f32.mrb[141].mxu1 }
 0xd7a   : > { %v6179_v27 = vadd.f32 %v6173_v43, %v6091_v15  ;;  %v6175_v9 = vpop.f32.mrb[142].mxu1 }
 0xd7b   : > { %v6176_v63 = vpop.f32.mrb[143].mxu1 }
 0xd7c   : > { %v6259_v3 = vpop.f32.mrb[136].mxu0 }
 0xd7d   : > { %v6266_v33 = vadd.f32 %v6259_v3, %v6178_v44  ;;  %v6261_v14 = vpop.f32.mrb[137].mxu0 }
 0xd7e   : > { %v6267_v28 = vadd.f32 %v6261_v14, %v6179_v27  ;;  %v6263_v34 = vpop.f32.mrb[138].mxu0 }
 0xd7f   : > { %v6264_v37 = vpop.f32.mrb[139].mxu0  ;;  %v10446_v34 = vld [vmem:[%s13632_s16 + $0x4] sm:$0xf] }
 0xd80   : > { %v6341_v54 = vpop.f32.mrb[144].mxu1 }
 0xd81   : > { %v6348_v57 = vadd.f32 %v6341_v54, %v6266_v33  ;;  %v6343_v46 = vpop.f32.mrb[145].mxu1 }
 0xd82   : > { %v6349_v42 = vadd.f32 %v6343_v46, %v6267_v28  ;;  %v6345_v47 = vpop.f32.mrb[146].mxu1 }
 0xd83   : > { %v6346_v45 = vpop.f32.mrb[147].mxu1 }
 0xd84   : > { %v6429_v49 = vpop.f32.mrb[140].mxu0 }
 0xd85   : > { %v6436_v51 = vadd.f32 %v6429_v49, %v6348_v57  ;;  %v6431_v52 = vpop.f32.mrb[141].mxu0 }
 0xd86   : > { %v6437_v56 = vadd.f32 %v6431_v52, %v6349_v42  ;;  %v6433_v21 = vpop.f32.mrb[142].mxu0 }
 0xd87   : > { %v6444_v8 = vadd.f32 %v6442_v53, %v6436_v51  ;;  %v6434_v55 = vpop.f32.mrb[143].mxu0  ;;  %v6533_v51 = vld [vmem:[%s13632_s16] sm:$0xf] }
 0xd88   : > { %v6445_v40 = vadd.f32 %v6442_v53, %v6437_v56 }
 0xd89   : > { %v6446_v0 = vmax.f32 %v6444_v8, 0.0 }
 0xd8a   : > { %v6447_v50 = vmax.f32 %v6445_v40, 0.0 }
 0xd8b   : > { %v6461_v23 = vpack.c.bf16 %v6446_v0, %v12481_v13 }
 0xd8c   : > { %v6462_v48 = vpack.c.bf16 %v6447_v50, %v12483_v7 }
 0xd8e   : > { %6474 = vmatprep.subr.bf16.mxu1 %v6462_v48  ;;  %v10451_v48 = vld [vmem:[%s13632_s16 + $0x8] sm:$0xf] }
 0xd8f   : > { %6475 = vmatpush1.bf16.msra.mxu1 %v6461_v23 }
 0xd92   : > { %10445 = vmatmul.mubr.msk.bf16.vlgmr.msra.gmra.mrb[148].mxu1 %vm4422_vm3, %v6458_v32 }
 0xd93   : > { %6639 = vmatprep.mubr.bf16.mxu1 %v11050_v1 }
 0xe65   : > { %v6506_v10 = vpop.f32.mrb[148].mxu1 }
 0xe66   : > { %v6507_v18 = vadd.f32 %v6506_v10, %v6467_v5  ;;  %v6508_v62 = vpop.f32.mrb[149].mxu1 }
 0xe67   : > { %v6509_v30 = vadd.f32 %v6508_v62, %v6467_v5  ;;  %v6510_v61 = vpop.f32.mrb[150].mxu1 }
 0xe68   : > { %v12700_v4 = vadd.f32 %v6507_v18, %v12115_v39  ;;  %v6511_v60 = vpop.f32.mrb[151].mxu1 }
 0xe69   : > { %v12703_v7 = vadd.f32 %v6509_v30, %v12118_v31 }
 0xe6a   : > { %6523 = vrot.lane.b32.xlu1 %v12700_v4, %s13627_s11  ;;  %v6782_v8 = vpack.c.bf16 %v12700_v4, %v12700_v4 }
 0xe6b   : > { %v12709_v13 = vpack.i.bf16 %v12703_v7, %v12700_v4  ;;  %v6783_v50 = vpack.c.bf16 %v12703_v7, %v12703_v7 }
 0xe6c   : > { %v6788_v62 = vsel %vm1867_vm11, %v6782_v8, 0 }
 0xe6d   : > { %10906 = vrot.lane.b32.xlu0 %v12709_v13, %s13629_s10 }
 0xe6e   : > { %6648 = vrot.lane.b32.xlu1 %v12700_v4, %s13577_s2 }
 0xe71   : > { %6525 = vrot.lane.b32.xlu0 %v12703_v7, %s13627_s11 }
 0xe72   : > { %6714 = vrot.lane.b32.xlu1 %v12700_v4, %s13575_s7 }
 0xe75   : > { %6650 = vrot.lane.b32.xlu0 %v12703_v7, %s13577_s2 }
 0xe76   : > { %6836 = vrot.lane.b32.xlu1 %v12700_v4, %s13630_s0 }
 0xe79   : > { %6716 = vrot.lane.b32.xlu0 %v12703_v7, %s13575_s7 }
 0xe7a   : > { %6902 = vrot.lane.b32.xlu1 %v12700_v4, %s13631_s3 }
 0xe7d   : > { %6838 = vrot.lane.b32.xlu0 %v12703_v7, %s13630_s0 }
 0xe7e   : > { %10911 = vrot.lane.b32.xlu1 %v12709_v13, %s13623_s1 }
 0xe81   : > { %6904 = vrot.lane.b32.xlu0 %v12703_v7, %s13631_s3 }
 0xe82   : > { %7034 = vrot.lane.b32.xlu1 %v12703_v7, %s13624_s28 }
 0xe85   : > { %7032 = vrot.lane.b32.xlu0 %v12700_v4, %s13624_s28 }
 0xe86   : > { %7118 = vrot.lane.b32.xlu1 %v12700_v4, %s13627_s11 }
 0xe89   : > { %7101 = vperm.xlu0 %10763, %v7098_v22  }
 0xe8a   : > { %7249 = vrot.lane.b32.xlu1 %v12700_v4, %s13577_s2 }
 0xe8d   : > { %7120 = vrot.lane.b32.xlu0 %v12703_v7, %s13627_s11 }
 0xe8e   : > { %7319 = vrot.lane.b32.xlu1 %v12700_v4, %s13575_s7 }
 0xe91   : > { %7251 = vrot.lane.b32.xlu0 %v12703_v7, %s13577_s2 }
 0xe92   : > { %10916 = vrot.lane.b32.xlu1 %v12709_v13, %s13629_s10 }
 0xe95   : > { %7321 = vrot.lane.b32.xlu0 %v12703_v7, %s13575_s7  ;;  %s13633_s7 = sld [smem:[#allocation22_spill]] }
 0xe96   : > { %7441 = vrot.lane.b32.xlu1 %v12703_v7, %s13630_s0 }
 0xedc   : > { %v6524_v41 = vpop.permute.xlu1 %6523 }
 0xedd   : > { %v6530_v17 = vsel %vm1221_vm2, 0.0, %v6524_v41 }
 0xede   : > { %v6531_v6 = vmul.f32 %v6530_v17, %v11323_v26  ;;  %v10454_v17 = vld [vmem:[%s13632_s16 + $0xc] sm:$0xf] }
 0xedf   : > { %v10907_v16 = vpop.permute.xlu0 %10906 }
 0xee0   : > { %v10909_v12 = vunpack.i.h.bf16 %v10907_v16  ;;  %v10908_v24 = vunpack.i.l.bf16 %v10907_v16  ;;  %v6649_v38 = vpop.permute.xlu1 %6648  ;;  %v6534_v63 = vpack.c.bf16 %v6531_v6, %v6531_v6 }
 0xee1   : > { %v6655_v11 = vsel %vm1364_vm4, 0.0, %v6649_v38 }
 0xee2   : > { %v6543_v15 = vsel %vm1246_vm1, 0.0, %v10908_v24  ;;  %v6540_v19 = vsel %vm1246_vm1, %v10908_v24, %v10909_v12  ;;  %v6656_v3 = vmul.f32 %v6655_v11, %v11329_v35  ;;  %v6602_v49 = vsel %vm1867_vm11, %v6534_v63, 0  ;;  %v10457_v63 = vld [vmem:[%s13632_s16 + $0x10] sm:$0xf] }
 0xee3   : > { %v6526_v20 = vpop.permute.xlu0 %6525  ;;  %v6547_v44 = vpack.c.bf16 %v6540_v19, %v6540_v19  ;;  %v6546_v43 = vpack.c.bf16 %v6543_v15, %v6543_v15 }
 0xee4   : > { %v6527_v27 = vsel %vm1221_vm2, %v6524_v41, %v6526_v20  ;;  %v6715_v9 = vpop.permute.xlu1 %6714  ;;  %v6660_v42 = vpack.c.bf16 %v6656_v3, %v6656_v3 }
 0xee5   : > { %v6532_v33 = vmul.f32 %v6527_v27, %v11325_v29  ;;  %10447 = vmatprep.subr.msk.bf16.mxu0 %vm1867_vm11, %v6547_v44  ;;  %v6552_v14 = vsel %vm1867_vm11, %v6546_v43, 0  ;;  %v6721_v28 = vsel %vm1442_vm5, 0.0, %v6715_v9 }
 0xee6   : > { %6558 = vmatpush1.bf16.msra.mxu0 %v6552_v14  ;;  %v6722_v47 = vmul.f32 %v6721_v28, %v11323_v26  ;;  %v6666_v0 = vsel %vm1867_vm11, %v6660_v42, 0  ;;  %v10460_v42 = vld [vmem:[%s13632_s16 + $0x14] sm:$0xf] }
 0xee7   : > { %v6535_v37 = vpack.c.bf16 %v6532_v33, %v6532_v33  ;;  %v6651_v54 = vpop.permute.xlu0 %6650 }
 0xee8   : > { %v6652_v57 = vsel %vm1364_vm4, %v6649_v38, %v6651_v54  ;;  %v6837_v46 = vpop.permute.xlu1 %6836  ;;  %v6726_v55 = vpack.c.bf16 %v6722_v47, %v6722_v47 }
 0xee9   : > { %v6657_v45 = vmul.f32 %v6652_v57, %v11331_v36  ;;  %10448 = vmatmul.mubr.msk.bf16.vlgmr.msra.gmra.mrb[144].mxu0 %vm1863_vm12, %v10446_v34  ;;  %10449 = vmatprep.subr.msk.bf16.mxu1 %vm1867_vm11, %v6535_v37 }
 0xeea   : > { %6608 = vmatpush1.bf16.msra.mxu1 %v6602_v49  ;;  %6703 = vmatprep.mubr.bf16.mxu0 %v11050_v1  ;;  %v6732_v22 = vsel %vm1867_vm11, %v6726_v55, 0  ;;  %v10463_v49 = vld [vmem:[%s13632_s16 + $0x18] sm:$0xf] }
 0xeeb   : > { %v6661_v52 = vpack.c.bf16 %v6657_v45, %v6657_v45  ;;  %v6717_v53 = vpop.permute.xlu0 %6716 }
 0xeec   : > { %v6718_v56 = vsel %vm1442_vm5, %v6715_v9, %v6717_v53  ;;  %v6903_v21 = vpop.permute.xlu1 %6902  ;;  %v10469_v53 = vld [vmem:[%s13632_s16 + $0x20] sm:$0xf] }
 0xeed   : > { %v6723_v40 = vmul.f32 %v6718_v56, %v11325_v29  ;;  %10450 = vmatmul.mubr.msk.bf16.vlgmr.msra.gmra.mrb[152].mxu1 %vm1863_vm12, %v6533_v51  ;;  %10452 = vmatprep.subr.msk.bf16.mxu0 %vm1867_vm11, %v6661_v52  ;;  %v10466_v52 = vld [vmem:[%s13632_s16 + $0x1c] sm:$0xf] }
 0xeee   : > { %6672 = vmatpush1.bf16.msra.mxu0 %v6666_v0  ;;  %6769 = vmatprep.mubr.bf16.mxu1 %v11050_v1 }
 0xeef   : > { %v6727_v23 = vpack.c.bf16 %v6723_v40, %v6723_v40  ;;  %v6839_v32 = vpop.permute.xlu0 %6838  ;;  %10458 = vmatprep.subr.msk.bf16.mxu0 %vm1867_vm11, %v6783_v50 }
 0xef0   : > { %v6840_v5 = vsel %vm1566_vm7, %v6837_v46, %v6839_v32  ;;  %v6843_v10 = vsel %vm1566_vm7, %v6839_v32, 0.0  ;;  %v10912_v18 = vpop.permute.xlu1 %10911 }
 0xef1   : > { %v6844_v30 = vmul.f32 %v6840_v5, %v11329_v35  ;;  %v6845_v61 = vmul.f32 %v6843_v10, %v11331_v36  ;;  %v10914_v60 = vunpack.i.h.bf16 %v10912_v18  ;;  %10453 = vmatmul.mubr.msk.bf16.vlgmr.msra.gmra.mrb[148].mxu0 %vm1863_vm12, %v10451_v48  ;;  %10455 = vmatprep.subr.msk.bf16.mxu1 %vm1867_vm11, %v6727_v23  ;;  %v10913_v41 = vunpack.i.l.bf16 %v10912_v18 }
 0xef2   : > { %6738 = vmatpush1.bf16.msra.mxu1 %v6732_v22  ;;  %6794 = vmatpush1.bf16.msra.mxu0 %v6788_v62 }
 0xef3   : > { %v6848_v16 = vpack.c.bf16 %v6844_v30, %v6844_v30  ;;  %v6849_v12 = vpack.c.bf16 %v6845_v61, %v6845_v61  ;;  %v6975_v24 = vsel %vm1700_vm10, %v10914_v60, 0.0  ;;  %v6905_v38 = vpop.permute.xlu0 %6904  ;;  %6825 = vmatprep.mubr.bf16.mxu0 %v11050_v1  ;;  %v6972_v3 = vsel %vm1700_vm10, %v10913_v41, %v10914_v60 }
 0xef4   : > { %v6979_v6 = vpack.c.bf16 %v6975_v24, %v6975_v24  ;;  %v6906_v15 = vsel %vm1633_vm9, %v6903_v21, %v6905_v38  ;;  %v6909_v11 = vsel %vm1633_vm9, %v6905_v38, 0.0  ;;  %v7035_v19 = vpop.permute.xlu1 %7034  ;;  %v6978_v46 = vpack.c.bf16 %v6972_v3, %v6972_v3 }
 0xef5   : > { %v6910_v20 = vmul.f32 %v6906_v15, %v11323_v26  ;;  %v6911_v44 = vmul.f32 %v6909_v11, %v11325_v29  ;;  %v7039_v43 = vsel %vm1765_vm8, %v7035_v19, 0.0  ;;  %10456 = vmatmul.mubr.msk.bf16.vlgmr.msra.gmra.mrb[156].mxu1 %vm1863_vm12, %v10454_v17  ;;  %10461 = vmatprep.subr.msk.bf16.mxu1 %vm1867_vm11, %v6849_v12  ;;  %v6854_v27 = vsel %vm1867_vm11, %v6848_v16, 0 }
 0xef6   : > { %v7041_v9 = vmul.f32 %v7039_v43, %v11331_v36  ;;  %6860 = vmatpush1.bf16.msra.mxu1 %v6854_v27  ;;  %6891 = vmatprep.mubr.bf16.mxu1 %v11050_v1  ;;  %v6984_v45 = vsel %vm1867_vm11, %v6978_v46, 0 }
 0xef7   : > { %v6914_v33 = vpack.c.bf16 %v6910_v20, %v6910_v20  ;;  %v6915_v14 = vpack.c.bf16 %v6911_v44, %v6911_v44  ;;  %v7033_v28 = vpop.permute.xlu0 %7032  ;;  %10467 = vmatprep.subr.msk.bf16.mxu1 %vm1867_vm11, %v6979_v6 }
 0xef8   : > { %v7045_v34 = vpack.c.bf16 %v7041_v9, %v7041_v9  ;;  %v7036_v37 = vsel %vm1765_vm8, %v7033_v28, %v7035_v19 }
 0xef9   : > { %v7040_v54 = vmul.f32 %v7036_v37, %v11329_v35  ;;  %10459 = vmatmul.mubr.msk.bf16.vlgmr.msra.gmra.mrb[152].mxu0 %vm1863_vm12, %v10457_v63  ;;  %10464 = vmatprep.subr.msk.bf16.mxu0 %vm1867_vm11, %v6915_v14  ;;  %v6920_v57 = vsel %vm1867_vm11, %v6914_v33, 0 }
 0xefa   : > { %6926 = vmatpush1.bf16.msra.mxu0 %v6920_v57  ;;  %6957 = vmatprep.mubr.bf16.mxu0 %v11050_v1 }
 0xefb   : > { %10470 = vmatprep.subr.msk.bf16.mxu0 %vm1867_vm11, %v7045_v34  ;;  %v7044_v47 = vpack.c.bf16 %v7040_v54, %v7040_v54 }
 0xefd   : > { %10462 = vmatmul.mubr.msk.bf16.vlgmr.msra.gmra.mrb[160].mxu1 %vm1863_vm12, %v10460_v42  ;;  %v7050_v51 = vsel %vm1867_vm11, %v7044_v47, 0 }
 0xefe   : > { %6990 = vmatpush1.bf16.msra.mxu1 %v6984_v45  ;;  %7021 = vmatprep.mubr.bf16.mxu1 %v11050_v1 }
 0xf01   : > { %10465 = vmatmul.mubr.msk.bf16.vlgmr.msra.gmra.mrb[156].mxu0 %vm1863_vm12, %v10463_v49 }
 0xf02   : > { %7056 = vmatpush1.bf16.msra.mxu0 %v7050_v51  ;;  %7087 = vmatprep.mubr.bf16.mxu0 %v11050_v1 }
 0xf05   : > { %10468 = vmatmul.mubr.msk.bf16.vlgmr.msra.gmra.mrb[164].mxu1 %vm1863_vm12, %v10466_v52 }
 0xf06   : > { %7196 = vmatprep.mubr.bf16.mxu1 %v11050_v1 }
 0xf09   : > { %10471 = vmatmul.mubr.msk.bf16.vlgmr.msra.gmra.mrb[160].mxu0 %vm1863_vm12, %v10469_v53  ;;  %v7102_v53 = vpop.permute.xlu0 %7101 }
 0xf0a   : > { %7240 = vmatprep.mubr.bf16.mxu0 %v11050_v1 }
 0xfbc   : > { %v6591_v56 = vpop.f32.mrb[144].mxu0 }
 0xfbd   : > { %v6593_v21 = vpop.f32.mrb[145].mxu0 }
 0xfbe   : > { %v6595_v8 = vpop.f32.mrb[146].mxu0 }
 0xfbf   : > { %v6596_v55 = vpop.f32.mrb[147].mxu0 }
 0xfc0   : > { %v6641_v40 = vpop.f32.mrb[152].mxu1 }
 0xfc1   : > { %v6642_v0 = vadd.f32 %v6641_v40, %v6591_v56  ;;  %v6643_v50 = vpop.f32.mrb[153].mxu1 }
 0xfc2   : > { %v6644_v48 = vadd.f32 %v6643_v50, %v6593_v21  ;;  %v6645_v23 = vpop.f32.mrb[154].mxu1 }
 0xfc3   : > { %v6646_v32 = vpop.f32.mrb[155].mxu1  ;;  %v7715_v23 = vld [vmem:[%s13633_s7] sm:$0xff]  ;;  %s13635_s7 = sld [smem:[#allocation21_spill]] }
 0xfc4   : > { %v6705_v5 = vpop.f32.mrb[148].mxu0  ;;  %v7119_v32 = vpop.permute.xlu1 %7118 }
 0xfc5   : > { %v6712_v10 = vadd.f32 %v6705_v5, %v6642_v0  ;;  %v6707_v18 = vpop.f32.mrb[149].mxu0 }
 0xfc6   : > { %v6713_v62 = vadd.f32 %v6707_v18, %v6644_v48  ;;  %v6709_v30 = vpop.f32.mrb[150].mxu0  ;;  %v7121_v18 = vpop.permute.xlu0 %7120 }
 0xfc7   : > { %v6710_v61 = vpop.f32.mrb[151].mxu0 }
 0xfc8   : > { %v6771_v60 = vpop.f32.mrb[156].mxu1  ;;  %v7250_v5 = vpop.permute.xlu1 %7249 }
 0xfc9   : > { %v6778_v22 = vadd.f32 %v6771_v60, %v6712_v10  ;;  %v6773_v41 = vpop.f32.mrb[157].mxu1 }
 0xfca   : > { %v6779_v17 = vadd.f32 %v6773_v41, %v6713_v62  ;;  %v6775_v16 = vpop.f32.mrb[158].mxu1  ;;  %v7252_v62 = vpop.permute.xlu0 %7251 }
 0xfcb   : > { %v6776_v12 = vpop.f32.mrb[159].mxu1 }
 0xfcc   : > { %v6827_v24 = vpop.f32.mrb[152].mxu0  ;;  %v7320_v10 = vpop.permute.xlu1 %7319 }
 0xfcd   : > { %v6834_v38 = vadd.f32 %v6827_v24, %v6778_v22  ;;  %v6829_v6 = vpop.f32.mrb[153].mxu0 }
 0xfce   : > { %v6835_v15 = vadd.f32 %v6829_v6, %v6779_v17  ;;  %v6831_v11 = vpop.f32.mrb[154].mxu0  ;;  %v7322_v61 = vpop.permute.xlu0 %7321 }
 0xfcf   : > { %v6832_v19 = vpop.f32.mrb[155].mxu0 }
 0xfd0   : > { %v6893_v20 = vpop.f32.mrb[160].mxu1 }
 0xfd1   : > { %v6900_v44 = vadd.f32 %v6893_v20, %v6834_v38  ;;  %v6895_v43 = vpop.f32.mrb[161].mxu1  ;;  %v7132_v20 = vsel %vm1221_vm2, 0.0, %v7119_v32 }
 0xfd2   : > { %v6901_v27 = vadd.f32 %v6895_v43, %v6835_v15  ;;  %v6897_v9 = vpop.f32.mrb[162].mxu1  ;;  %v7126_v15 = vsel %vm1221_vm2, %v7119_v32, %v7121_v18  ;;  %v7327_v18 = vsel %vm1442_vm5, %v7320_v10, %v7322_v61 }
 0xfd3   : > { %v6898_v63 = vpop.f32.mrb[163].mxu1 }
 0xfd4   : > { %v6959_v3 = vpop.f32.mrb[156].mxu0 }
 0xfd5   : > { %v6966_v33 = vadd.f32 %v6959_v3, %v6900_v44  ;;  %v6961_v14 = vpop.f32.mrb[157].mxu0 }
 0xfd6   : > { %v6967_v28 = vadd.f32 %v6961_v14, %v6901_v27  ;;  %v6963_v34 = vpop.f32.mrb[158].mxu0 }
 0xfd7   : > { %v6964_v37 = vpop.f32.mrb[159].mxu0  ;;  %v7134_v34 = vmul.f32 %v7132_v20, %v11323_v26 }
 0xfd8   : > { %v7023_v54 = vpop.f32.mrb[164].mxu1  ;;  %v7257_v37 = vsel %vm1364_vm4, %v7250_v5, %v7252_v62  ;;  %v7333_v62 = vsel %vm1442_vm5, 0.0, %v7320_v10 }
 0xfd9   : > { %v7030_v57 = vadd.f32 %v7023_v54, %v6966_v33  ;;  %v7025_v46 = vpop.f32.mrb[165].mxu1  ;;  %v7135_v33 = vmul.f32 %v7126_v15, %v11325_v29  ;;  %v10472_v54 = vld [vmem:[%s13635_s7 + $0x4] sm:$0xf]  ;;  %v7335_v10 = vmul.f32 %v7333_v62, %v11323_v26 }
 0xfda   : > { %v7031_v42 = vadd.f32 %v7025_v46, %v6967_v28  ;;  %v7027_v47 = vpop.f32.mrb[166].mxu1 }
 0xfdb   : > { %v7028_v45 = vpop.f32.mrb[167].mxu1 }
 0xfdc   : > { %v7089_v49 = vpop.f32.mrb[160].mxu0 }
 0xfdd   : > { %v7096_v51 = vadd.f32 %v7089_v49, %v7030_v57  ;;  %v7091_v52 = vpop.f32.mrb[161].mxu0  ;;  %v7263_v57 = vsel %vm1364_vm4, 0.0, %v7250_v5 }
 0xfde   : > { %v7097_v56 = vadd.f32 %v7091_v52, %v7031_v42  ;;  %v7093_v21 = vpop.f32.mrb[162].mxu0  ;;  %v7266_v52 = vmul.f32 %v7257_v37, %v11331_v36 }
 0xfdf   : > { %v7104_v8 = vadd.f32 %v7102_v53, %v7096_v51  ;;  %v7094_v55 = vpop.f32.mrb[163].mxu0  ;;  %v7138_v21 = vld [vmem:[%s13635_s7] sm:$0xf] }
 0xfe0   : > { %v7105_v40 = vadd.f32 %v7102_v53, %v7097_v56  ;;  %v7265_v56 = vmul.f32 %v7263_v57, %v11329_v35 }
 0xfe1   : > { %v12831_v0 = vmax.f32 %v7104_v8, 0.0 }
 0xfe2   : > { %v12833_v50 = vmax.f32 %v7105_v40, 0.0 }
 0xfe3   : > { %7443 = vrot.lane.b32.xlu0 %v12831_v0, %s13630_s0  ;;  %7122 = vrot.lane.b32.xlu1 %v12831_v0, %s13627_s11 }
 0xfe4   : > { %v12841_v48 = vpack.i.bf16 %v12833_v50, %v12831_v0  ;;  %v12962_v5 = vpack.c.bf16 %v12833_v50, %v12703_v7 }
 0xfe7   : > { %7253 = vrot.lane.b32.xlu1 %v12831_v0, %s13577_s2  ;;  %10921 = vrot.lane.b32.xlu0 %v12841_v48, %s13629_s10 }
 0xfeb   : > { %7439 = vrot.lane.b32.xlu1 %v12700_v4, %s13630_s0  ;;  %7124 = vrot.lane.b32.xlu0 %v12833_v50, %s13627_s11 }
 0xfef   : > { %7323 = vrot.lane.b32.xlu1 %v12831_v0, %s13634_s5  ;;  %7255 = vrot.lane.b32.xlu0 %v12833_v50, %s13577_s2 }
 0xff3   : > { %7511 = vrot.lane.b32.xlu1 %v12703_v7, %s13631_s3  ;;  %7513 = vrot.lane.b32.xlu0 %v12831_v0, %s13631_s3 }
 0xff7   : > { %7509 = vrot.lane.b32.xlu1 %v12700_v4, %s13631_s3  ;;  %7325 = vrot.lane.b32.xlu0 %v12833_v50, %s13634_s5 }
 0xffb   : > { %7647 = vrot.lane.b32.xlu1 %v12703_v7, %s13624_s28  ;;  %7445 = vrot.lane.b32.xlu0 %v12833_v50, %s13630_s0 }
 0xfff   : > { %10926 = vrot.lane.b32.xlu1 %v12709_v13, %s13623_s1  ;;  %7515 = vrot.lane.b32.xlu0 %v12833_v50, %s13631_s3 }
0x1003   : > { %7645 = vrot.lane.b32.xlu1 %v12700_v4, %s13624_s28  ;;  %7651 = vrot.lane.b32.xlu0 %v12833_v50, %s13624_s28 }
0x1007   : > { %7718 = vperm.xlu1 %10784, %v7715_v23   ;;  %10931 = vrot.lane.b32.xlu0 %v12841_v48, %s13623_s1 }
0x100b   : > { %7741 = vrot.lane.b32.xlu1 %v12703_v7, %s13627_s11  ;;  %7649 = vrot.lane.b32.xlu0 %v12831_v0, %s13624_s28 }
0x100f   : > { %7904 = vrot.lane.b32.xlu1 %v12700_v4, %s13577_s2  ;;  %10936 = vrot.lane.b32.xlu0 %v12709_v13, %s13629_s10 }
0x1013   : > { %7908 = vrot.lane.b32.xlu1 %v12831_v0, %s13577_s2  ;;  %7739 = vrot.lane.b32.xlu0 %v12700_v4, %s13627_s11 }
0x1017   : > { %7992 = vrot.lane.b32.xlu1 %v12700_v4, %s13634_s5  ;;  %7743 = vrot.lane.b32.xlu0 %v12831_v0, %s13627_s11 }
0x101b   : > { %7996 = vrot.lane.b32.xlu1 %v12831_v0, %s13634_s5  ;;  %7906 = vrot.lane.b32.xlu0 %v12703_v7, %s13577_s2 }
0x101f   : > { %8140 = vrot.lane.b32.xlu1 %v12703_v7, %s13630_s0  ;;  %7994 = vrot.lane.b32.xlu0 %v12703_v7, %s13634_s5 }
0x1023   : > { %8138 = vrot.lane.b32.xlu1 %v12700_v4, %s13630_s0  ;;  %8142 = vrot.lane.b32.xlu0 %v12831_v0, %s13630_s0 }
0x1027   : > { %8228 = vrot.lane.b32.xlu1 %v12703_v7, %s13631_s3  ;;  %8230 = vrot.lane.b32.xlu0 %v12831_v0, %s13631_s3 }
0x102b   : > { %8226 = vrot.lane.b32.xlu1 %v12700_v4, %s13631_s3  ;;  %7910 = vrot.lane.b32.xlu0 %v12833_v50, %s13577_s2  ;;  %s13636_s2 = sld [smem:[#allocation26_spill]] }
0x102f   : > { %8398 = vrot.lane.b32.xlu1 %v12703_v7, %s13624_s28  ;;  %7998 = vrot.lane.b32.xlu0 %v12833_v50, %s13634_s5 }
0x1033   : > { %10941 = vrot.lane.b32.xlu1 %v12709_v13, %s13623_s1  ;;  %8144 = vrot.lane.b32.xlu0 %v12833_v50, %s13630_s0  ;;  %v10917_v13 = vpop.permute.xlu1 %10916 }
0x1034   : > { %v10919_v41 = vunpack.i.h.bf16 %v10917_v13  ;;  %v10918_v17 = vunpack.i.l.bf16 %v10917_v13  ;;  %v10480_v13 = vld [vmem:[%s13635_s7 + $0x8] sm:$0xf] }
0x1036   : > { %v7149_v11 = vsel %vm1246_vm1, %v10918_v17, %v10919_v41 }
0x1037   : > { %10946 = vrot.lane.b32.xlu1 %v12841_v48, %s13629_s10  ;;  %8232 = vrot.lane.b32.xlu0 %v12833_v50, %s13631_s3  ;;  %v12930_v30 = vpop.permute.xlu1 %7441 }
0x1038   : > { %v7453_v61 = vsel %vm1566_vm7, %v12930_v30, 0.0 }
0x103b   : > { %7745 = vrot.lane.b32.xlu1 %v12833_v50, %s13627_s11  ;;  %8402 = vrot.lane.b32.xlu0 %v12833_v50, %s13624_s28  ;;  %v12973_v50 = vpack.c.bf16 %v12831_v0, %v12700_v4 }
0x1055   : > { %v12932_v60 = vpop.permute.xlu0 %7443  ;;  %v7123_v22 = vpop.permute.xlu1 %7122 }
0x1056   : > { %v7133_v6 = vsel %vm1221_vm2, 0.0, %v7123_v22 }
0x1057   : > { %v7136_v9 = vmul.f32 %v7133_v6, %v11323_v26 }
0x1059   : > { %v7254_v16 = vpop.permute.xlu1 %7253  ;;  %v10922_v12 = vpop.permute.xlu0 %10921  ;;  %v7139_v45 = vpack.c.bf16 %v7136_v9, %v7134_v34 }
0x105a   : > { %v10924_v24 = vunpack.i.h.bf16 %v10922_v12  ;;  %v10923_v38 = vunpack.i.l.bf16 %v10922_v12  ;;  %v7264_v14 = vsel %vm1364_vm4, 0.0, %v7254_v16  ;;  %v7336_v12 = vmul.f32 %v7327_v18, %v11325_v29 }
0x105b   : > { %v7267_v49 = vmul.f32 %v7264_v14, %v11329_v35  ;;  %v10484_v14 = vld [vmem:[%s13635_s7 + $0x10] sm:$0xf] }
0x105c   : > { %v7150_v19 = vsel %vm1246_vm1, %v10923_v38, %v10924_v24  ;;  %v10476_v63 = vpack.c.bf16 %v10923_v38, %v10918_v17 }
0x105d   : > { %v7440_v44 = vpop.permute.xlu1 %7439  ;;  %v7125_v43 = vpop.permute.xlu0 %7124  ;;  %v7160_v27 = vpack.c.bf16 %v7150_v19, %v7149_v11  ;;  %v7271_v23 = vpack.c.bf16 %v7267_v49, %v7265_v56  ;;  %v7456_v19 = vmul.f32 %v7453_v61, %v11331_v36 }
0x105e   : > { %v7127_v3 = vsel %vm1221_vm2, %v7123_v22, %v7125_v43  ;;  %v7447_v38 = vsel %vm1566_vm7, %v7440_v44, %v12930_v30 }
0x105f   : > { %v7137_v28 = vmul.f32 %v7127_v3, %v11325_v29  ;;  %7164 = vmatprep.subr.bf16.mxu1 %v7160_v27  ;;  %v7455_v9 = vmul.f32 %v7447_v38, %v11329_v35 }
0x1060   : > { %10477 = vmatpush1.bf16.msk.msra.mxu1 %vm11759_vm14, %v10476_v63 }
0x1061   : > { %v7324_v46 = vpop.permute.xlu1 %7323  ;;  %v7256_v42 = vpop.permute.xlu0 %7255  ;;  %v7140_v47 = vpack.c.bf16 %v7137_v28, %v7135_v33  ;;  %v10482_v33 = vld [vmem:[%s13635_s7 + $0xc] sm:$0xf] }
0x1062   : > { %v7258_v51 = vsel %vm1364_vm4, %v7254_v16, %v7256_v42  ;;  %v7334_v32 = vsel %vm1442_vm5, 0.0, %v7324_v46 }
0x1063   : > { %v7268_v53 = vmul.f32 %v7258_v51, %v11331_v36  ;;  %10478 = vmatmul.mubr.msk.bf16.vlgmr.msra.gmra.mrb[168].mxu1 %vm1246_vm1, %v10472_v54  ;;  %7208 = vmatprep.subr.bf16.mxu0 %v7140_v47  ;;  %v7337_v17 = vmul.f32 %v7334_v32, %v11323_v26  ;;  %v10488_v32 = vld [vmem:[%s13635_s7 + $0x18] sm:$0xf] }
0x1064   : > { %7209 = vmatpush1.bf16.msra.mxu0 %v7139_v45  ;;  %7308 = vmatprep.mubr.bf16.mxu1 %v11050_v1 }
0x1065   : > { %v7512_v8 = vpop.permute.xlu1 %7511  ;;  %v7514_v55 = vpop.permute.xlu0 %7513  ;;  %v7272_v40 = vpack.c.bf16 %v7268_v53, %v7266_v52  ;;  %v7341_v20 = vpack.c.bf16 %v7337_v17, %v7335_v10 }
0x1066   : > { %v7523_v30 = vsel %vm1633_vm9, %v7512_v8, 0.0 }
0x1067   : > { %10479 = vmatmul.mubr.msk.bf16.vlgmr.msra.gmra.mrb[164].mxu0 %vm1246_vm1, %v7138_v21  ;;  %7276 = vmatprep.subr.bf16.mxu1 %v7272_v40 }
0x1068   : > { %7277 = vmatpush1.bf16.msra.mxu1 %v7271_v23  ;;  %7378 = vmatprep.mubr.bf16.mxu0 %v11050_v1  ;;  %v10486_v23 = vld [vmem:[%s13635_s7 + $0x14] sm:$0xf] }
0x1069   : > { %v7510_v22 = vpop.permute.xlu1 %7509  ;;  %v7326_v41 = vpop.permute.xlu0 %7325  ;;  %7396 = vmatprep.subr.bf16.mxu1 %v12962_v5 }
0x106a   : > { %v7328_v16 = vsel %vm1442_vm5, %v7324_v46, %v7326_v41  ;;  %v7517_v3 = vsel %vm1633_vm9, %v7510_v22, %v7512_v8 }
0x106b   : > { %v7338_v24 = vmul.f32 %v7328_v16, %v11325_v29  ;;  %10481 = vmatmul.mubr.msk.bf16.vlgmr.msra.gmra.mrb[172].mxu1 %vm1246_vm1, %v10480_v13  ;;  %v7525_v46 = vmul.f32 %v7517_v3, %v11323_v26 }
0x106c   : > { %7397 = vmatpush1.bf16.msra.mxu1 %v12973_v50  ;;  %7428 = vmatprep.mubr.bf16.mxu1 %v11050_v1 }
0x106d   : > { %v7648_v6 = vpop.permute.xlu1 %7647  ;;  %v7446_v15 = vpop.permute.xlu0 %7445  ;;  %v7342_v11 = vpack.c.bf16 %v7338_v24, %v7336_v12 }
0x106e   : > { %v7448_v43 = vsel %vm1566_vm7, %v12932_v60, %v7446_v15  ;;  %v7454_v27 = vsel %vm1566_vm7, %v7446_v15, 0.0  ;;  %v7526_v60 = vmul.f32 %v7523_v30, %v11325_v29  ;;  %v7659_v49 = vsel %vm1765_vm8, %v7648_v6, 0.0 }
0x106f   : > { %v7457_v44 = vmul.f32 %v7448_v43, %v11329_v35  ;;  %v7458_v63 = vmul.f32 %v7454_v27, %v11331_v36  ;;  %7346 = vmatprep.subr.bf16.mxu0 %v7342_v11  ;;  %v7662_v21 = vmul.f32 %v7659_v49, %v11331_v36  ;;  %v10490_v11 = vld [vmem:[%s13635_s7 + $0x1c] sm:$0xf]  ;;  %v10495_v43 = vld [vmem:[%s13635_s7 + $0x20] sm:$0xf]  ;;  %s13637_s7 = smov 15  }
0x1070   : > { %7347 = vmatpush1.bf16.msra.mxu0 %v7341_v20 }
0x1071   : > { %v7461_v28 = vpack.c.bf16 %v7457_v44, %v7455_v9  ;;  %v7516_v34 = vpop.permute.xlu0 %7515  ;;  %v7462_v37 = vpack.c.bf16 %v7458_v63, %v7456_v19  ;;  %v10927_v42 = vpop.permute.xlu1 %10926 }
0x1072   : > { %v7518_v54 = vsel %vm1633_vm9, %v7514_v55, %v7516_v34  ;;  %v7524_v57 = vsel %vm1633_vm9, %v7516_v34, 0.0  ;;  %v10929_v8 = vunpack.i.h.bf16 %v10927_v42  ;;  %v10928_v55 = vunpack.i.l.bf16 %v10927_v42 }
0x1073   : > { %v7527_v47 = vmul.f32 %v7518_v54, %v11323_v26  ;;  %v7528_v45 = vmul.f32 %v7524_v57, %v11325_v29  ;;  %10483 = vmatmul.mubr.msk.bf16.vlgmr.msra.gmra.mrb[168].mxu0 %vm1246_vm1, %v10482_v33  ;;  %10485 = vmatmul.mubr.msk.bf16.vlgmr.msra.gmra.mrb[176].mxu1 %vm1246_vm1, %v10484_v14 }
0x1074   : > { %7466 = vmatprep.subr.bf16.mxu0 %v7462_v37  ;;  %7498 = vmatprep.mubr.bf16.mxu0 %v11050_v1  ;;  %v7587_v17 = vsel %vm1700_vm10, %v10928_v55, %v10929_v8 }
0x1075   : > { %v7531_v51 = vpack.c.bf16 %v7527_v47, %v7525_v46  ;;  %7467 = vmatpush1.bf16.msra.mxu0 %v7461_v28  ;;  %v7652_v52 = vpop.permute.xlu0 %7651  ;;  %v7532_v53 = vpack.c.bf16 %v7528_v45, %v7526_v60  ;;  %7568 = vmatprep.mubr.bf16.mxu1 %v11050_v1  ;;  %v7646_v18 = vpop.permute.xlu1 %7645 }
0x1076   : > { %v7660_v56 = vsel %vm1765_vm8, %v7652_v52, 0.0  ;;  %v7653_v16 = vsel %vm1765_vm8, %v7646_v18, %v7648_v6 }
0x1077   : > { %v7664_v40 = vmul.f32 %v7660_v56, %v11331_v36  ;;  %7536 = vmatprep.subr.bf16.mxu1 %v7532_v53  ;;  %v7661_v15 = vmul.f32 %v7653_v16, %v11329_v35 }
0x1078   : > { %7537 = vmatpush1.bf16.msra.mxu1 %v7531_v51 }
0x1079   : > { %v10932_v13 = vpop.permute.xlu0 %10931  ;;  %v7668_v62 = vpack.c.bf16 %v7664_v40, %v7662_v21 }
0x107a   : > { %v10934_v22 = vunpack.i.h.bf16 %v10932_v13  ;;  %v10933_v41 = vunpack.i.l.bf16 %v10932_v13 }
0x107b   : > { %10487 = vmatmul.mubr.msk.bf16.vlgmr.msra.gmra.mrb[172].mxu0 %vm1246_vm1, %v10486_v23  ;;  %10489 = vmatmul.mubr.msk.bf16.vlgmr.msra.gmra.mrb[180].mxu1 %vm1246_vm1, %v10488_v32 }
0x107c   : > { %v10492_v61 = vpack.c.bf16 %v10934_v22, %v10929_v8  ;;  %v7588_v12 = vsel %vm1700_vm10, %v10933_v41, %v10934_v22  ;;  %7672 = vmatprep.subr.bf16.mxu1 %v7668_v62  ;;  %7634 = vmatprep.mubr.bf16.mxu0 %v11050_v1 }
0x107d   : > { %v7597_v24 = vpack.c.bf16 %v7588_v12, %v7587_v17  ;;  %v7650_v10 = vpop.permute.xlu0 %7649  ;;  %7704 = vmatprep.mubr.bf16.mxu1 %v11050_v1 }
0x107e   : > { %v7654_v38 = vsel %vm1765_vm8, %v7650_v10, %v7652_v52  ;;  %10493 = vmatprep.subr.msk.bf16.mxu0 %vm11841_vm15, %v10492_v61 }
0x107f   : > { %v7663_v6 = vmul.f32 %v7654_v38, %v11329_v35  ;;  %7603 = vmatpush1.bf16.msra.mxu0 %v7597_v24 }
0x1081   : > { %v7667_v19 = vpack.c.bf16 %v7663_v6, %v7661_v15  ;;  %v13025_v20 = vpop.permute.xlu0 %10936 }
0x1082   : > { %v10939_v6 = vunpack.i.h.bf16 %v13025_v20 }
0x1083   : > { %10494 = vmatmul.mubr.msk.bf16.vlgmr.msra.gmra.mrb[176].mxu0 %vm1246_vm1, %v10490_v11  ;;  %7673 = vmatpush1.bf16.msra.mxu1 %v7667_v19  ;;  %v10938_v11 = vunpack.i.l.bf16 %v13025_v20 }
0x1084   : > { %7845 = vmatprep.mubr.bf16.mxu0 %v11050_v1 }
0x1085   : > { %v7740_v27 = vpop.permute.xlu0 %7739 }
0x1086   : > { %v13030_v9 = vpop.permute.xlu1 %7718  ;;  %10496 = vmatmul.mubr.msk.bf16.vlgmr.msra.gmra.mrb[184].mxu1 %vm1246_vm1, %v10495_v43 }
0x1087   : > { %7895 = vmatprep.mubr.bf16.mxu1 %v11050_v1 }
0x1089   : > { %v7744_v30 = vpop.permute.xlu0 %7743 }
0x108a   : > { %v7742_v44 = vpop.permute.xlu1 %7741 }
0x108d   : > { %v7907_v63 = vpop.permute.xlu0 %7906 }
0x108e   : > { %v7905_v3 = vpop.permute.xlu1 %7904 }
0x108f   : > { %v7925_v33 = vsel %vm1364_vm4, 0.0, %v7905_v3  ;;  %v7916_v51 = vsel %vm1364_vm4, %v7905_v3, %v7907_v63  ;;  %v7761_v3 = vsel %vm1221_vm2, 0.0, %v7744_v30 }
0x1090   : > { %v13037_v37 = vmul.f32 %v7925_v33, %v11329_v35  ;;  %v13063_v40 = vmul.f32 %v7916_v51, %v11331_v36  ;;  %v7751_v33 = vsel %vm1221_vm2, %v7740_v27, %v7742_v44 }
0x1091   : > { %v7995_v14 = vpop.permute.xlu0 %7994  ;;  %v7764_v51 = vmul.f32 %v7751_v33, %v11325_v29 }
0x1092   : > { %v7909_v28 = vpop.permute.xlu1 %7908 }
0x1093   : > { %v7926_v34 = vsel %vm1364_vm4, 0.0, %v7909_v28 }
0x1094   : > { %v13040_v60 = vmul.f32 %v7926_v34, %v11329_v35  ;;  %v7760_v34 = vsel %vm1221_vm2, 0.0, %v7740_v27 }
0x1095   : > { %v13042_v54 = vpop.permute.xlu0 %8142  ;;  %v7763_v44 = vmul.f32 %v7760_v34, %v11323_v26 }
0x1096   : > { %v7936_v57 = vpack.c.bf16 %v13040_v60, %v13037_v37  ;;  %v7993_v46 = vpop.permute.xlu1 %7992 }
0x1097   : > { %v8013_v42 = vsel %vm1442_vm5, 0.0, %v7993_v46  ;;  %v8004_v32 = vsel %vm1442_vm5, %v7993_v46, %v7995_v14  ;;  %v7786_v14 = vsel %vm1246_vm1, %v10938_v11, %v10939_v6 }
0x1098   : > { %v13052_v52 = vmul.f32 %v8013_v42, %v11323_v26  ;;  %v13073_v41 = vmul.f32 %v8004_v32, %v11325_v29 }
0x1099   : > { %v13047_v47 = vpop.permute.xlu0 %8230 }
0x109a   : > { %v7997_v45 = vpop.permute.xlu1 %7996 }
0x109b   : > { %v8014_v49 = vsel %vm1442_vm5, 0.0, %v7997_v45 }
0x109c   : > { %v13055_v53 = vmul.f32 %v8014_v49, %v11323_v26 }
0x109d   : > { %v7911_v56 = vpop.permute.xlu0 %7910 }
0x109e   : > { %v8024_v21 = vpack.c.bf16 %v13055_v53, %v13052_v52  ;;  %v7917_v8 = vsel %vm1364_vm4, %v7909_v28, %v7911_v56  ;;  %v13060_v55 = vpop.permute.xlu1 %8140 }
0x109f   : > { %v13066_v23 = vmul.f32 %v7917_v8, %v11331_v36 }
0x10a1   : > { %v7999_v18 = vpop.permute.xlu0 %7998  ;;  %v7937_v13 = vpack.c.bf16 %v13066_v23, %v13063_v40  ;;  %v8159_v23 = vsel %vm1566_vm7, %v13060_v55, 0.0 }
0x10a2   : > { %v8005_v62 = vsel %vm1442_vm5, %v7997_v45, %v7999_v18  ;;  %v8139_v22 = vpop.permute.xlu1 %8138  ;;  %v7765_v45 = vmul.f32 %v7761_v3, %v11323_v26 }
0x10a3   : > { %v13076_v17 = vmul.f32 %v8005_v62, %v11325_v29  ;;  %v13080_v16 = vsel %vm1566_vm7, %v8139_v22, %v13060_v55 }
0x10a4   : > { %v7770_v32 = vpack.c.bf16 %v7765_v45, %v7763_v44 }
0x10a5   : > { %v8025_v61 = vpack.c.bf16 %v13076_v17, %v13073_v41  ;;  %v8163_v17 = vmul.f32 %v8159_v23, %v11331_v36 }
0x10a6   : > { %v13084_v12 = vpop.permute.xlu1 %8228 }
0x10aa   : > { %v8227_v24 = vpop.permute.xlu1 %8226 }
0x10ab   : > { %v13088_v10 = vsel %vm1633_vm9, %v8227_v24, %v13084_v12 }
0x10ae   : > { %v13090_v38 = vpop.permute.xlu1 %8398 }
0x10b2   : > { %v13092_v15 = vpop.permute.xlu1 %10941 }
0x10b6   : > { %v10947_v19 = vpop.permute.xlu1 %10946 }
0x10b7   : > { %v10949_v43 = vunpack.i.h.bf16 %v10947_v19  ;;  %v10948_v63 = vunpack.i.l.bf16 %v10947_v19 }
0x10b9   : > { %v7787_v28 = vsel %vm1246_vm1, %v10948_v63, %v10949_v43  ;;  %v10501_v49 = vpack.c.bf16 %v10948_v63, %v10938_v11 }
0x10ba   : > { %v7746_v46 = vpop.permute.xlu1 %7745  ;;  %v7801_v42 = vpack.c.bf16 %v7787_v28, %v7786_v14 }
0x10bb   : > { %v7752_v20 = vsel %vm1221_vm2, %v7744_v30, %v7746_v46 }
0x10bc   : > { %v7766_v56 = vmul.f32 %v7752_v20, %v11325_v29  ;;  %7813 = vmatprep.subr.bf16.mxu0 %v7801_v42 }
0x10bd   : > { %10502 = vmatpush1.bf16.msk.msra.mxu0 %vm11759_vm14, %v10501_v49 }
0x10be   : > { %v7771_v8 = vpack.c.bf16 %v7766_v56, %v7764_v51 }
0x10c0   : > { %7863 = vmatprep.subr.bf16.mxu1 %v7771_v8 }
0x10c1   : > { %7864 = vmatpush1.bf16.msra.mxu1 %v7770_v32 }
0x1136   : > { %v7198_v27 = vpop.f32.mrb[168].mxu1 }
0x1137   : > { %v7200_v18 = vpop.f32.mrb[169].mxu1 }
0x1138   : > { %v7202_v62 = vpop.f32.mrb[170].mxu1 }
0x1139   : > { %v7203_v22 = vpop.f32.mrb[171].mxu1 }
0x113a   : > { %v7242_v24 = vpop.f32.mrb[164].mxu0 }
0x113b   : > { %v7243_v30 = vadd.f32 %v7242_v24, %v7198_v27  ;;  %v7244_v6 = vpop.f32.mrb[165].mxu0 }
0x113c   : > { %v7245_v11 = vadd.f32 %v7244_v6, %v7200_v18  ;;  %v7246_v19 = vpop.f32.mrb[166].mxu0 }
0x113d   : > { %v7247_v43 = vpop.f32.mrb[167].mxu0 }
0x113e   : > { %v7310_v63 = vpop.f32.mrb[172].mxu1 }
0x113f   : > { %v7317_v3 = vadd.f32 %v7310_v63, %v7243_v30  ;;  %v7312_v33 = vpop.f32.mrb[173].mxu1 }
0x1140   : > { %v7318_v14 = vadd.f32 %v7312_v33, %v7245_v11  ;;  %v7314_v25 = vpop.f32.mrb[174].mxu1 }
0x1141   : > { %v7315_v28 = vpop.f32.mrb[175].mxu1 }
0x1146   : > { %v7380_v34 = vpop.f32.mrb[168].mxu0  ;;  %v7430_v46 = vpop.f32.mrb[176].mxu1 }
0x1147   : > { %v7387_v42 = vadd.f32 %v7380_v34, %v7317_v3  ;;  %v7382_v45 = vpop.f32.mrb[169].mxu0  ;;  %v7432_v49 = vpop.f32.mrb[177].mxu1 }
0x1148   : > { %v7388_v20 = vadd.f32 %v7382_v45, %v7318_v14  ;;  %v7384_v51 = vpop.f32.mrb[170].mxu0  ;;  %v7434_v56 = vpop.f32.mrb[178].mxu1 }
0x1149   : > { %v7437_v44 = vadd.f32 %v7430_v46, %v7387_v42  ;;  %v7385_v8 = vpop.f32.mrb[171].mxu0  ;;  %v7435_v32 = vpop.f32.mrb[179].mxu1 }
0x114a   : > { %v7438_v27 = vadd.f32 %v7432_v49, %v7388_v20 }
0x114e   : > { %v7500_v18 = vpop.f32.mrb[172].mxu0  ;;  %v7570_v62 = vpop.f32.mrb[180].mxu1 }
0x114f   : > { %v7507_v22 = vadd.f32 %v7500_v18, %v7437_v44  ;;  %v7502_v24 = vpop.f32.mrb[173].mxu0  ;;  %v7572_v30 = vpop.f32.mrb[181].mxu1 }
0x1150   : > { %v7508_v6 = vadd.f32 %v7502_v24, %v7438_v27  ;;  %v7504_v11 = vpop.f32.mrb[174].mxu0  ;;  %v7574_v19 = vpop.f32.mrb[182].mxu1 }
0x1151   : > { %v7577_v43 = vadd.f32 %v7570_v62, %v7507_v22  ;;  %v7505_v63 = vpop.f32.mrb[175].mxu0  ;;  %v7575_v3 = vpop.f32.mrb[183].mxu1  ;;  %v8574_v22 = vld [vmem:[%s13639_s9] sm:$0xff]  ;;  %s13641_s9 = sld [smem:[#allocation25_spill]] }
0x1152   : > { %v7578_v33 = vadd.f32 %v7572_v30, %v7508_v6  ;;  %v8145_v24 = vpop.permute.xlu0 %8144 }
0x1156   : > { %v7636_v25 = vpop.f32.mrb[176].mxu0  ;;  %v8233_v30 = vpop.permute.xlu0 %8232 }
0x1157   : > { %v7643_v14 = vadd.f32 %v7636_v25, %v7577_v43  ;;  %v7638_v28 = vpop.f32.mrb[177].mxu0  ;;  %v8248_v60 = vsel %vm1633_vm9, %v8233_v30, 0.0 }
0x1158   : > { %v7644_v34 = vadd.f32 %v7638_v28, %v7578_v33  ;;  %v7640_v46 = vpop.f32.mrb[178].mxu0 }
0x1159   : > { %v7641_v42 = vpop.f32.mrb[179].mxu0  ;;  %v7706_v45 = vpop.f32.mrb[184].mxu1 }
0x115a   : > { %v7713_v49 = vadd.f32 %v7706_v45, %v7643_v14  ;;  %v7708_v20 = vpop.f32.mrb[185].mxu1  ;;  %v13151_v6 = vpop.permute.xlu0 %8402 }
0x115b   : > { %v7714_v51 = vadd.f32 %v7708_v20, %v7644_v34  ;;  %v7710_v56 = vpop.f32.mrb[186].mxu1 }
0x115c   : > { %v7721_v44 = vadd.f32 %v13030_v9, %v7713_v49  ;;  %v7711_v8 = vpop.f32.mrb[187].mxu1 }
0x115d   : > { %v7722_v32 = vadd.f32 %v13030_v9, %v7714_v51  ;;  %v8509_v9 = vld [vmem:[%s13636_s2] sm:$0xff]  ;;  %s13640_s2 = sld [smem:[#allocation23_spill]] }
0x115e   : > { %v13110_v27 = vmax.f32 %v7721_v44, 0.0 }
0x115f   : > { %v13112_v18 = vmax.f32 %v7722_v32, 0.0 }
0x1160   : > { %7747 = vrot.lane.b32.xlu1 %v13110_v27, %s13627_s11 }
0x1161   : > { %v10950_v62 = vpack.i.bf16 %v13112_v18, %v13110_v27 }
0x1163   : > { %10951 = vrot.lane.b32.xlu0 %v10950_v62, %s13629_s10  ;;  %v10497_v32 = vld [vmem:[%s13640_s2 + $0x4] sm:$0xf]  ;;  %v7769_v40 = vld [vmem:[%s13640_s2] sm:$0xf] }
0x1164   : > { %7912 = vrot.lane.b32.xlu1 %v13110_v27, %s13637_s7 }
0x1167   : > { %7749 = vrot.lane.b32.xlu0 %v13112_v18, %s13627_s11 }
0x1168   : > { %8000 = vrot.lane.b32.xlu1 %v13110_v27, %s13634_s5 }
0x116b   : > { %7914 = vrot.lane.b32.xlu0 %v13112_v18, %s13637_s7 }
0x116c   : > { %8146 = vrot.lane.b32.xlu1 %v13110_v27, %s13630_s0 }
0x116f   : > { %8002 = vrot.lane.b32.xlu0 %v13112_v18, %s13634_s5 }
0x1170   : > { %8234 = vrot.lane.b32.xlu1 %v13110_v27, %s13631_s3 }
0x1173   : > { %10956 = vrot.lane.b32.xlu0 %v12841_v48, %s13623_s1  ;;  %v8484_v48 = vld [vmem:[%s13638_s8] sm:$0xff]  ;;  %s13642_s8 = sld [smem:[#allocation27_spill]] }
0x1174   : > { %8396 = vrot.lane.b32.xlu1 %v12700_v4, %s13624_s28 }
0x1177   : > { %8148 = vrot.lane.b32.xlu0 %v13112_v18, %s13630_s0 }
0x1178   : > { %10961 = vrot.lane.b32.xlu1 %v10950_v62, %s13623_s1 }
0x117b   : > { %8236 = vrot.lane.b32.xlu0 %v13112_v18, %s13631_s3 }
0x117c   : > { %8406 = vrot.lane.b32.xlu1 %v13112_v18, %s13624_s28 }
0x117f   : > { %8400 = vrot.lane.b32.xlu0 %v12831_v0, %s13624_s28 }
0x1180   : > { %8512 = vperm.xlu1 %10784, %v8509_v9  }
0x1183   : > { %8404 = vrot.lane.b32.xlu0 %v13110_v27, %s13624_s28 }
0x1187   : > { %8487 = vperm.xlu0 %10763, %v8484_v48   ;;  %v8160_v48 = vsel %vm1566_vm7, %v8145_v24, 0.0 }
0x1188   : > { %v8165_v37 = vmul.f32 %v8160_v48, %v11331_v36 }
0x118b   : > { %8577 = vperm.xlu0 %10763, %v8574_v22  }
0x11d2   : > { %v7748_v11 = vpop.permute.xlu1 %7747 }
0x11d3   : > { %v7762_v19 = vsel %vm1221_vm2, 0.0, %v7748_v11 }
0x11d4   : > { %v7767_v0 = vmul.f32 %v7762_v19, %v11323_v26 }
0x11d5   : > { %v10952_v43 = vpop.permute.xlu0 %10951 }
0x11d6   : > { %v10954_v63 = vunpack.i.h.bf16 %v10952_v43  ;;  %v10953_v3 = vunpack.i.l.bf16 %v10952_v43  ;;  %v7913_v33 = vpop.permute.xlu1 %7912  ;;  %v7772_v20 = vpack.c.bf16 %v7767_v0, %v7767_v0 }
0x11d7   : > { %v7927_v28 = vsel %vm1364_vm4, 0.0, %v7913_v33 }
0x11d8   : > { %v7788_v25 = vsel %vm1246_vm1, %v10953_v3, %v10954_v63  ;;  %v7797_v14 = vsel %vm1246_vm1, 0.0, %v10953_v3  ;;  %v7932_v51 = vmul.f32 %v7927_v28, %v11329_v35  ;;  %v7858_v3 = vsel %vm1867_vm11, %v7772_v20, 0 }
0x11d9   : > { %v7802_v34 = vpack.c.bf16 %v7797_v14, %v7797_v14  ;;  %v7803_v46 = vpack.c.bf16 %v7788_v25, %v7788_v25  ;;  %v7750_v42 = vpop.permute.xlu0 %7749  ;;  %v8253_v14 = vmul.f32 %v8248_v60, %v11325_v29  ;;  %v13212_v28 = vmul.f32 %v13088_v10, %v11323_v26 }
0x11da   : > { %v7753_v45 = vsel %vm1221_vm2, %v7748_v11, %v7750_v42  ;;  %v8001_v49 = vpop.permute.xlu1 %8000  ;;  %v7938_v19 = vpack.c.bf16 %v7932_v51, %v7932_v51  ;;  %v8162_v42 = vmul.f32 %v13080_v16, %v11329_v35  ;;  %v8085_v10 = vpack.c.bf16 %v13112_v18, %v13112_v18  ;;  %v10510_v16 = vld [vmem:[%s13640_s2 + $0xc] sm:$0xf] }
0x11db   : > { %v7768_v56 = vmul.f32 %v7753_v45, %v11325_v29  ;;  %10503 = vmatprep.subr.msk.bf16.mxu0 %vm1867_vm11, %v7803_v46  ;;  %v7808_v44 = vsel %vm1867_vm11, %v7802_v34, 0  ;;  %v8015_v8 = vsel %vm1442_vm5, 0.0, %v8001_v49  ;;  %v8171_v45 = vpack.c.bf16 %v8165_v37, %v8163_v17 }
0x11dc   : > { %7816 = vmatpush1.bf16.msra.mxu0 %v7808_v44  ;;  %v8020_v43 = vmul.f32 %v8015_v8, %v11323_v26  ;;  %v7944_v41 = vsel %vm1867_vm11, %v7938_v19, 0  ;;  %v8417_v44 = vsel %vm1765_vm8, %v13090_v38, 0.0 }
0x11dd   : > { %v7773_v62 = vpack.c.bf16 %v7768_v56, %v7768_v56  ;;  %v7915_v9 = vpop.permute.xlu0 %7914  ;;  %7949 = vmatprep.subr.bf16.mxu0 %v7937_v13  ;;  %v8151_v13 = vsel %vm1566_vm7, %v13042_v54, %v8145_v24  ;;  %v8247_v54 = vsel %vm1633_vm9, %v13084_v12, 0.0  ;;  %v10507_v12 = vld [vmem:[%s13640_s2 + $0x8] sm:$0xf]  ;;  %v8418_v56 = vsel %vm1765_vm8, %v13151_v6, 0.0 }
0x11de   : > { %v7918_v22 = vsel %vm1364_vm4, %v7913_v33, %v7915_v9  ;;  %v8147_v11 = vpop.permute.xlu1 %8146  ;;  %v8239_v33 = vsel %vm1633_vm9, %v13047_v47, %v8233_v30  ;;  %v8026_v47 = vpack.c.bf16 %v8020_v43, %v8020_v43  ;;  %v8251_v52 = vmul.f32 %v8247_v54, %v11325_v29 }
0x11df   : > { %v7933_v63 = vmul.f32 %v7918_v22, %v11331_v36  ;;  %10504 = vmatmul.mubr.msk.bf16.vlgmr.msra.gmra.mrb[180].mxu0 %vm3710_vm0, %v10497_v32  ;;  %10505 = vmatprep.subr.msk.bf16.mxu1 %vm1867_vm11, %v7773_v62  ;;  %v13203_v30 = vmul.f32 %v8239_v33, %v11323_v26  ;;  %v8423_v23 = vmul.f32 %v8418_v56, %v11331_v36  ;;  %v10519_v56 = vld [vmem:[%s13640_s2 + $0x18] sm:$0xf] }
0x11e0   : > { %7866 = vmatpush1.bf16.msra.mxu1 %v7858_v3  ;;  %7950 = vmatpush1.bf16.msra.mxu0 %v7936_v57  ;;  %v8259_v32 = vpack.c.bf16 %v8253_v14, %v8251_v52 }
0x11e1   : > { %v7939_v0 = vpack.c.bf16 %v7933_v63, %v7933_v63  ;;  %v8003_v25 = vpop.permute.xlu0 %8002  ;;  %8037 = vmatprep.subr.bf16.mxu1 %v8025_v61  ;;  %7981 = vmatprep.mubr.bf16.mxu0 %v11050_v1  ;;  %v8164_v61 = vmul.f32 %v8151_v13, %v11329_v35  ;;  %v8258_v51 = vpack.c.bf16 %v13203_v30, %v13212_v28 }
0x11e2   : > { %v8006_v57 = vsel %vm1442_vm5, %v8001_v49, %v8003_v25  ;;  %v13192_v55 = vpop.permute.xlu1 %8234  ;;  %v8084_v49 = vpack.c.bf16 %v13110_v27, %v13110_v27  ;;  %v8421_v13 = vmul.f32 %v8417_v44, %v11331_v36  ;;  %v10943_v25 = vunpack.i.l.bf16 %v13092_v15 }
0x11e3   : > { %v8021_v24 = vmul.f32 %v8006_v57, %v11325_v29  ;;  %10506 = vmatmul.mubr.msk.bf16.vlgmr.msra.gmra.mrb[188].mxu1 %vm3710_vm0, %v7769_v40  ;;  %10508 = vmatprep.subr.msk.bf16.mxu0 %vm1867_vm11, %v7939_v0  ;;  %v8170_v20 = vpack.c.bf16 %v8164_v61, %v8162_v42  ;;  %v10513_v0 = vld [vmem:[%s13640_s2 + $0x10] sm:$0xf] }
0x11e4   : > { %7952 = vmatpush1.bf16.msra.mxu0 %v7944_v41  ;;  %8038 = vmatpush1.bf16.msra.mxu1 %v8024_v21  ;;  %v8032_v21 = vsel %vm1867_vm11, %v8026_v47, 0  ;;  %v8090_v40 = vsel %vm1867_vm11, %v8084_v49, 0  ;;  %v8429_v28 = vpack.c.bf16 %v8423_v23, %v8421_v13 }
0x11e5   : > { %v8027_v34 = vpack.c.bf16 %v8021_v24, %v8021_v24  ;;  %v10957_v46 = vpop.permute.xlu0 %10956  ;;  %8095 = vmatprep.subr.bf16.mxu0 %v12962_v5  ;;  %8069 = vmatprep.mubr.bf16.mxu1 %v11050_v1 }
0x11e6   : > { %v8397_v53 = vpop.permute.xlu1 %8396  ;;  %v10959_v62 = vunpack.i.h.bf16 %v10957_v46  ;;  %v10958_v9 = vunpack.i.l.bf16 %v10957_v46 }
0x11e7   : > { %10509 = vmatmul.mubr.msk.bf16.vlgmr.msra.gmra.mrb[184].mxu0 %vm3710_vm0, %v10507_v12  ;;  %10511 = vmatprep.subr.msk.bf16.mxu1 %vm1867_vm11, %v8027_v34  ;;  %v8408_v37 = vsel %vm1765_vm8, %v8397_v53, %v13090_v38 }
0x11e8   : > { %8040 = vmatpush1.bf16.msra.mxu1 %v8032_v21  ;;  %8096 = vmatpush1.bf16.msra.mxu0 %v12973_v50  ;;  %v8327_v24 = vsel %vm1700_vm10, %v10958_v9, %v10959_v62 }
0x11e9   : > { %v8149_v8 = vpop.permute.xlu0 %8148  ;;  %10514 = vmatprep.subr.msk.bf16.mxu0 %vm1867_vm11, %v8085_v10  ;;  %8183 = vmatprep.subr.bf16.mxu1 %v8171_v45  ;;  %v8420_v10 = vmul.f32 %v8408_v37, %v11329_v35 }
0x11ea   : > { %v8152_v48 = vsel %vm1566_vm7, %v8147_v11, %v8149_v8  ;;  %v8161_v22 = vsel %vm1566_vm7, %v8149_v8, 0.0  ;;  %v10962_v19 = vpop.permute.xlu1 %10961  ;;  %8127 = vmatprep.mubr.bf16.mxu0 %v11050_v1  ;;  %v10944_v11 = vunpack.i.h.bf16 %v13092_v15 }
0x11eb   : > { %v8166_v43 = vmul.f32 %v8152_v48, %v11329_v35  ;;  %v8167_v63 = vmul.f32 %v8161_v22, %v11331_v36  ;;  %v10964_v3 = vunpack.i.h.bf16 %v10962_v19  ;;  %10512 = vmatmul.mubr.msk.bf16.vlgmr.msra.gmra.mrb[192].mxu1 %vm3710_vm0, %v10510_v16  ;;  %v10963_v33 = vunpack.i.l.bf16 %v10962_v19  ;;  %v10522_v48 = vld [vmem:[%s13640_s2 + $0x1c] sm:$0xf] }
0x11ec   : > { %8098 = vmatpush1.bf16.msra.mxu0 %v8090_v40  ;;  %8184 = vmatpush1.bf16.msra.mxu1 %v8170_v20  ;;  %v10524_v47 = vpack.c.bf16 %v10959_v62, %v10944_v11  ;;  %v8326_v46 = vsel %vm1700_vm10, %v10943_v25, %v10944_v11 }
0x11ed   : > { %v8172_v60 = vpack.c.bf16 %v8166_v43, %v8166_v43  ;;  %v8173_v57 = vpack.c.bf16 %v8167_v63, %v8167_v63  ;;  %v8237_v54 = vpop.permute.xlu0 %8236  ;;  %8271 = vmatprep.subr.bf16.mxu0 %v8259_v32  ;;  %8215 = vmatprep.mubr.bf16.mxu1 %v11050_v1  ;;  %v8337_v15 = vsel %vm1700_vm10, %v10964_v3, 0.0  ;;  %v8328_v34 = vsel %vm1700_vm10, %v10963_v33, %v10964_v3  ;;  %v10528_v63 = vld [vmem:[%s13640_s2 + $0x20] sm:$0xf] }
0x11ee   : > { %v8240_v41 = vsel %vm1633_vm9, %v13192_v55, %v8237_v54  ;;  %v8249_v17 = vsel %vm1633_vm9, %v8237_v54, 0.0  ;;  %v8407_v61 = vpop.permute.xlu1 %8406  ;;  %v10516_v55 = vld [vmem:[%s13640_s2 + $0x14] sm:$0xf]  ;;  %v8340_v21 = vpack.c.bf16 %v8327_v24, %v8326_v46  ;;  %v8343_v45 = vpack.c.bf16 %v8337_v15, %v8337_v15 }
0x11ef   : > { %v8254_v38 = vmul.f32 %v8240_v41, %v11323_v26  ;;  %v8255_v30 = vmul.f32 %v8249_v17, %v11325_v29  ;;  %10515 = vmatmul.mubr.msk.bf16.vlgmr.msra.gmra.mrb[188].mxu0 %vm3710_vm0, %v10513_v0  ;;  %10517 = vmatprep.subr.msk.bf16.mxu1 %vm1867_vm11, %v8173_v57  ;;  %v8178_v12 = vsel %vm1867_vm11, %v8172_v60, 0  ;;  %v8419_v14 = vsel %vm1765_vm8, %v8407_v61, 0.0 }
0x11f0   : > { %8186 = vmatpush1.bf16.msra.mxu1 %v8178_v12  ;;  %8272 = vmatpush1.bf16.msra.mxu0 %v8258_v51  ;;  %v8425_v20 = vmul.f32 %v8419_v14, %v11331_v36  ;;  %v8342_v51 = vpack.c.bf16 %v8328_v34, %v8328_v34  ;;  %v8571_v43 = vpack.c.bf16 %v12703_v7, %v12118_v31 }
0x11f1   : > { %v8260_v42 = vpack.c.bf16 %v8254_v38, %v8254_v38  ;;  %v8261_v52 = vpack.c.bf16 %v8255_v30, %v8255_v30  ;;  %v8401_v53 = vpop.permute.xlu0 %8400  ;;  %10525 = vmatprep.subr.msk.bf16.mxu1 %vm11841_vm15, %v10524_v47  ;;  %8303 = vmatprep.mubr.bf16.mxu0 %v11050_v1  ;;  %v8570_v3 = vpack.c.bf16 %v12700_v4, %v12115_v39 }
0x11f2   : > { %v8409_v49 = vsel %vm1765_vm8, %v8401_v53, %v13151_v6  ;;  %v8431_v32 = vpack.c.bf16 %v8425_v20, %v8425_v20  ;;  %v8348_v9 = vsel %vm1867_vm11, %v8342_v51, 0 }
0x11f3   : > { %v8422_v16 = vmul.f32 %v8409_v49, %v11329_v35  ;;  %10518 = vmatmul.mubr.msk.bf16.vlgmr.msra.gmra.mrb[196].mxu1 %vm3710_vm0, %v10516_v55  ;;  %10520 = vmatprep.subr.msk.bf16.mxu0 %vm1867_vm11, %v8261_v52  ;;  %v8266_v2 = vsel %vm1867_vm11, %v8260_v42, 0 }
0x11f4   : > { %8274 = vmatpush1.bf16.msra.mxu0 %v8266_v2  ;;  %8354 = vmatpush1.bf16.msra.mxu1 %v8340_v21 }
0x11f5   : > { %v8428_v44 = vpack.c.bf16 %v8422_v16, %v8420_v10  ;;  %v8405_v8 = vpop.permute.xlu0 %8404  ;;  %10526 = vmatprep.subr.msk.bf16.mxu1 %vm1867_vm11, %v8343_v45  ;;  %8441 = vmatprep.subr.bf16.mxu0 %v8429_v28 }
0x11f6   : > { %v8410_v6 = vsel %vm1765_vm8, %v8405_v8, %v8407_v61  ;;  %8385 = vmatprep.mubr.bf16.mxu1 %v11050_v1 }
0x11f7   : > { %v8424_v62 = vmul.f32 %v8410_v6, %v11329_v35  ;;  %10521 = vmatmul.mubr.msk.bf16.vlgmr.msra.gmra.mrb[192].mxu0 %vm3710_vm0, %v10519_v56 }
0x11f8   : > { %8356 = vmatpush1.bf16.msra.mxu1 %v8348_v9  ;;  %8442 = vmatpush1.bf16.msra.mxu0 %v8428_v44 }
0x11f9   : > { %v8430_v22 = vpack.c.bf16 %v8424_v62, %v8424_v62  ;;  %10529 = vmatprep.subr.msk.bf16.mxu0 %vm1867_vm11, %v8431_v32  ;;  %8518 = vmatprep.subr.bf16.mxu1 %v12962_v5 }
0x11fa   : > { %8473 = vmatprep.mubr.bf16.mxu0 %v11050_v1 }
0x11fb   : > { %10527 = vmatmul.mubr.msk.bf16.vlgmr.msra.gmra.mrb[200].mxu1 %vm3710_vm0, %v10522_v48  ;;  %v8436_v19 = vsel %vm1867_vm11, %v8430_v22, 0 }
0x11fc   : > { %8444 = vmatpush1.bf16.msra.mxu0 %v8436_v19  ;;  %8519 = vmatpush1.bf16.msra.mxu1 %v12973_v50 }
0x11fd   : > { %8589 = vmatprep.subr.bf16.mxu0 %v8571_v43  ;;  %8550 = vmatprep.mubr.bf16.mxu1 %v11050_v1 }
0x11ff   : > { %10530 = vmatmul.mubr.msk.bf16.vlgmr.msra.gmra.mrb[196].mxu0 %vm3710_vm0, %v10528_v63 }
0x1200   : > { %8590 = vmatpush1.bf16.msra.mxu0 %v8570_v3  ;;  %8621 = vmatprep.mubr.bf16.mxu0 %v11050_v1 }
0x1206   : > { %v8488_v19 = vpop.permute.xlu0 %8487 }
0x12b2   : > { %v7847_v5 = vpop.f32.mrb[180].mxu0 }
0x12b3   : > { %v7849_v40 = vpop.f32.mrb[181].mxu0 }
0x12b4   : > { %v7851_v23 = vpop.f32.mrb[182].mxu0 }
0x12b5   : > { %v7852_v13 = vpop.f32.mrb[183].mxu0 }
0x12b6   : > { %v7897_v31 = vpop.f32.mrb[188].mxu1 }
0x12b7   : > { %v7898_v11 = vadd.f32 %v7897_v31, %v7847_v5  ;;  %v7899_v33 = vpop.f32.mrb[189].mxu1 }
0x12b8   : > { %v7900_v50 = vadd.f32 %v7899_v33, %v7849_v40  ;;  %v7901_v0 = vpop.f32.mrb[190].mxu1  ;;  %v8504_v33 = vld [vmem:[%s13641_s9] sm:$0xf]  ;;  %s13643_s9 = sld [smem:[#allocation29_spill]] }
0x12b9   : > { %v7902_v25 = vpop.f32.mrb[191].mxu1 }
0x12ba   : > { %v7983_v37 = vpop.f32.mrb[184].mxu0 }
0x12bb   : > { %v7990_v60 = vadd.f32 %v7983_v37, %v7898_v11  ;;  %v7985_v57 = vpop.f32.mrb[185].mxu0 }
0x12bc   : > { %v7991_v54 = vadd.f32 %v7985_v57, %v7900_v50  ;;  %v7987_v39 = vpop.f32.mrb[186].mxu0  ;;  %v8513_v50 = vpop.permute.xlu1 %8512 }
0x12bd   : > { %v7988_v47 = vpop.f32.mrb[187].mxu0 }
0x12be   : > { %v8071_v24 = vpop.f32.mrb[192].mxu1 }
0x12bf   : > { %v8078_v41 = vadd.f32 %v8071_v24, %v7990_v60  ;;  %v8073_v17 = vpop.f32.mrb[193].mxu1 }
0x12c0   : > { %v8079_v61 = vadd.f32 %v8073_v17, %v7991_v54  ;;  %v8075_v15 = vpop.f32.mrb[194].mxu1  ;;  %v8578_v17 = vpop.permute.xlu0 %8577 }
0x12c1   : > { %v8076_v38 = vpop.f32.mrb[195].mxu1 }
0x12c2   : > { %v8129_v30 = vpop.f32.mrb[188].mxu0 }
0x12c3   : > { %v8136_v12 = vadd.f32 %v8129_v30, %v8078_v41  ;;  %v8131_v14 = vpop.f32.mrb[189].mxu0  ;;  %v8569_v41 = vld [vmem:[%s13642_s8] sm:$0xf] }
0x12c4   : > { %v8137_v55 = vadd.f32 %v8131_v14, %v8079_v61  ;;  %v8133_v28 = vpop.f32.mrb[190].mxu0  ;;  %v9207_v14 = vld [vmem:[%s11249_s12] sm:$0xff] }
0x12c5   : > { %v8134_v34 = vpop.f32.mrb[191].mxu0 }
0x12c6   : > { %v8217_v46 = vpop.f32.mrb[196].mxu1 }
0x12c7   : > { %v8224_v42 = vadd.f32 %v8217_v46, %v8136_v12  ;;  %v8219_v52 = vpop.f32.mrb[197].mxu1 }
0x12c8   : > { %v8225_v53 = vadd.f32 %v8219_v52, %v8137_v55  ;;  %v8221_v21 = vpop.f32.mrb[198].mxu1 }
0x12c9   : > { %v8222_v10 = vpop.f32.mrb[199].mxu1 }
0x12ca   : > { %v8305_v45 = vpop.f32.mrb[192].mxu0 }
0x12cb   : > { %v8312_v49 = vadd.f32 %v8305_v45, %v8224_v42  ;;  %v8307_v20 = vpop.f32.mrb[193].mxu0 }
0x12cc   : > { %v8313_v16 = vadd.f32 %v8307_v20, %v8225_v53  ;;  %v8309_v2 = vpop.f32.mrb[194].mxu0 }
0x12cd   : > { %v8310_v51 = vpop.f32.mrb[195].mxu0 }
0x12ce   : > { %v8387_v56 = vpop.f32.mrb[200].mxu1 }
0x12cf   : > { %v8394_v44 = vadd.f32 %v8387_v56, %v8312_v49  ;;  %v8389_v8 = vpop.f32.mrb[201].mxu1 }
0x12d0   : > { %v8395_v6 = vadd.f32 %v8389_v8, %v8313_v16  ;;  %v8391_v32 = vpop.f32.mrb[202].mxu1 }
0x12d1   : > { %v8392_v62 = vpop.f32.mrb[203].mxu1 }
0x12d2   : > { %v8475_v9 = vpop.f32.mrb[196].mxu0  ;;  %v10534_v62 = vld [vmem:[%s13643_s9 + $0x4] sm:$0xf] }
0x12d3   : > { %v8482_v48 = vadd.f32 %v8475_v9, %v8394_v44  ;;  %v8477_v22 = vpop.f32.mrb[197].mxu0 }
0x12d4   : > { %v8483_v43 = vadd.f32 %v8477_v22, %v8395_v6  ;;  %v8479_v63 = vpop.f32.mrb[198].mxu0 }
0x12d5   : > { %v8490_v3 = vadd.f32 %v8488_v19, %v8482_v48  ;;  %v8480_v5 = vpop.f32.mrb[199].mxu0 }
0x12d6   : > { %v8491_v40 = vadd.f32 %v8488_v19, %v8483_v43 }
0x12d7   : > { %v8492_v23 = vmax.f32 %v8490_v3, 0.0 }
0x12d8   : > { %v8493_v13 = vmax.f32 %v8491_v40, 0.0  ;;  %v8642_v40 = vld [vmem:[%s13643_s9] sm:$0xf] }
0x12d9   : > { %v8507_v11 = vpack.c.bf16 %v8492_v23, %v13110_v27 }
0x12da   : > { %v8508_v31 = vpack.c.bf16 %v8493_v13, %v13112_v18 }
0x12dc   : > { %8520 = vmatprep.subr.bf16.mxu1 %v8508_v31 }
0x12dd   : > { %8521 = vmatpush1.bf16.msra.mxu1 %v8507_v11 }
0x12e0   : > { %10531 = vmatmul.mubr.msk.bf16.vlgmr.msra.gmra.mrb[204].mxu1 %vm4422_vm3, %v8504_v33 }
0x12e1   : > { %8698 = vmatprep.mubr.bf16.mxu1 %v11050_v1 }
0x13b3   : > { %v8552_v0 = vpop.f32.mrb[204].mxu1 }
0x13b4   : > { %v8553_v25 = vadd.f32 %v8552_v0, %v8513_v50  ;;  %v8554_v37 = vpop.f32.mrb[205].mxu1 }
0x13b5   : > { %v8555_v60 = vadd.f32 %v8554_v37, %v8513_v50  ;;  %v8556_v57 = vpop.f32.mrb[206].mxu1 }
0x13b6   : > { %v8559_v54 = vadd.f32 %v8553_v25, %v12700_v4  ;;  %v8557_v39 = vpop.f32.mrb[207].mxu1 }
0x13b7   : > { %v8560_v18 = vadd.f32 %v8555_v60, %v12703_v7  ;;  %v10539_v60 = vld [vmem:[%s13643_s9 + $0x8] sm:$0xf] }
0x13b8   : > { %v8572_v27 = vpack.c.bf16 %v8559_v54, %v8559_v54 }
0x13b9   : > { %v8573_v47 = vpack.c.bf16 %v8560_v18, %v8560_v18 }
0x13ba   : > { %v8584_v24 = vsel %vm1867_vm11, %v8572_v27, 0 }
0x13bb   : > { %10532 = vmatprep.subr.msk.bf16.mxu0 %vm1867_vm11, %v8573_v47 }
0x13bc   : > { %8592 = vmatpush1.bf16.msra.mxu0 %v8584_v24 }
0x13bf   : > { %10533 = vmatmul.mubr.msk.bf16.vlgmr.msra.gmra.mrb[200].mxu0 %vm3710_vm0, %v8569_v41 }
0x13c0   : > { %8748 = vmatprep.mubr.bf16.mxu0 %v11050_v1 }
0x1492   : > { %v8623_v61 = vpop.f32.mrb[200].mxu0 }
0x1493   : > { %v13309_v15 = vadd.f32 %v8623_v61, %v8578_v17  ;;  %v8625_v4 = vpop.f32.mrb[201].mxu0 }
0x1494   : > { %v13311_v38 = vadd.f32 %v8625_v4, %v8578_v17  ;;  %v8627_v7 = vpop.f32.mrb[202].mxu0  ;;  %v10542_v4 = vld [vmem:[%s13643_s9 + $0xc] sm:$0xf] }
0x1495   : > { %v8628_v30 = vpop.f32.mrb[203].mxu0  ;;  %8632 = vrot.lane.b32.xlu0 %v13309_v15, %s13627_s11  ;;  %v8891_v33 = vpack.c.bf16 %v13309_v15, %v13309_v15 }
0x1496   : > { %v10965_v12 = vpack.i.bf16 %v13311_v38, %v13309_v15  ;;  %v8892_v37 = vpack.c.bf16 %v13311_v38, %v13311_v38 }
0x1497   : > { %v8897_v47 = vsel %vm1867_vm11, %v8891_v33, 0 }
0x1498   : > { %10966 = vrot.lane.b32.xlu1 %v10965_v12, %s13629_s10 }
0x1499   : > { %8757 = vrot.lane.b32.xlu0 %v13309_v15, %s13637_s7 }
0x149c   : > { %8634 = vrot.lane.b32.xlu1 %v13311_v38, %s13627_s11 }
0x149d   : > { %8823 = vrot.lane.b32.xlu0 %v13309_v15, %s13634_s5 }
0x14a0   : > { %8759 = vrot.lane.b32.xlu1 %v13311_v38, %s13637_s7 }
0x14a1   : > { %8945 = vrot.lane.b32.xlu0 %v13309_v15, %s13630_s0 }
0x14a4   : > { %8825 = vrot.lane.b32.xlu1 %v13311_v38, %s13634_s5 }
0x14a5   : > { %9011 = vrot.lane.b32.xlu0 %v13309_v15, %s13631_s3 }
0x14a8   : > { %8947 = vrot.lane.b32.xlu1 %v13311_v38, %s13630_s0 }
0x14a9   : > { %10971 = vrot.lane.b32.xlu0 %v10965_v12, %s13623_s1 }
0x14ac   : > { %9013 = vrot.lane.b32.xlu1 %v13311_v38, %s13631_s3 }
0x14ad   : > { %9143 = vrot.lane.b32.xlu0 %v13311_v38, %s13624_s28 }
0x14b0   : > { %9141 = vrot.lane.b32.xlu1 %v13309_v15, %s13624_s28 }
0x14b4   : > { %9210 = vperm.xlu1 %10784, %v9207_v14  }
0x1507   : > { %v8633_v55 = vpop.permute.xlu0 %8632 }
0x1508   : > { %v8639_v28 = vsel %vm1221_vm2, 0.0, %v8633_v55 }
0x1509   : > { %v8640_v53 = vmul.f32 %v8639_v28, %v11323_v26 }
0x150a   : > { %v10967_v34 = vpop.permute.xlu1 %10966 }
0x150b   : > { %v10969_v46 = vunpack.i.h.bf16 %v10967_v34  ;;  %v10968_v42 = vunpack.i.l.bf16 %v10967_v34  ;;  %v8758_v52 = vpop.permute.xlu0 %8757  ;;  %v8643_v56 = vpack.c.bf16 %v8640_v53, %v8640_v53 }
0x150c   : > { %v8764_v45 = vsel %vm1364_vm4, 0.0, %v8758_v52 }
0x150d   : > { %v8649_v21 = vsel %vm1246_vm1, %v10968_v42, %v10969_v46  ;;  %v8652_v10 = vsel %vm1246_vm1, 0.0, %v10968_v42  ;;  %v8765_v44 = vmul.f32 %v8764_v45, %v11329_v35  ;;  %v8711_v5 = vsel %vm1867_vm11, %v8643_v56, 0 }
0x150e   : > { %v8655_v49 = vpack.c.bf16 %v8652_v10, %v8652_v10  ;;  %v8656_v20 = vpack.c.bf16 %v8649_v21, %v8649_v21  ;;  %v8635_v16 = vpop.permute.xlu1 %8634  ;;  %v10545_v10 = vld [vmem:[%s13643_s9 + $0x10] sm:$0xf] }
0x150f   : > { %v8636_v2 = vsel %vm1221_vm2, %v8633_v55, %v8635_v16  ;;  %v8824_v51 = vpop.permute.xlu0 %8823  ;;  %v8769_v43 = vpack.c.bf16 %v8765_v44, %v8765_v44 }
0x1510   : > { %v8641_v8 = vmul.f32 %v8636_v2, %v11325_v29  ;;  %10535 = vmatprep.subr.msk.bf16.mxu1 %vm1867_vm11, %v8656_v20  ;;  %v8661_v6 = vsel %vm1867_vm11, %v8655_v49, 0  ;;  %v8830_v32 = vsel %vm1442_vm5, 0.0, %v8824_v51 }
0x1511   : > { %8667 = vmatpush1.bf16.msra.mxu1 %v8661_v6  ;;  %v8831_v63 = vmul.f32 %v8830_v32, %v11323_v26  ;;  %v8775_v25 = vsel %vm1867_vm11, %v8769_v43, 0  ;;  %v10548_v6 = vld [vmem:[%s13643_s9 + $0x14] sm:$0xf] }
0x1512   : > { %v8644_v9 = vpack.c.bf16 %v8641_v8, %v8641_v8  ;;  %v8760_v48 = vpop.permute.xlu1 %8759 }
0x1513   : > { %v8761_v22 = vsel %vm1364_vm4, %v8758_v52, %v8760_v48  ;;  %v8946_v19 = vpop.permute.xlu0 %8945  ;;  %v8835_v50 = vpack.c.bf16 %v8831_v63, %v8831_v63 }
0x1514   : > { %v8766_v3 = vmul.f32 %v8761_v22, %v11331_v36  ;;  %10536 = vmatmul.mubr.msk.bf16.vlgmr.msra.gmra.mrb[208].mxu1 %vm1863_vm12, %v10534_v62  ;;  %10537 = vmatprep.subr.msk.bf16.mxu0 %vm1867_vm11, %v8644_v9  ;;  %v10551_v9 = vld [vmem:[%s13643_s9 + $0x18] sm:$0xf]  ;;  %v10554_v22 = vld [vmem:[%s13643_s9 + $0x1c] sm:$0xf] }
0x1515   : > { %8717 = vmatpush1.bf16.msra.mxu0 %v8711_v5  ;;  %8812 = vmatprep.mubr.bf16.mxu1 %v11050_v1  ;;  %v8841_v61 = vsel %vm1867_vm11, %v8835_v50, 0 }
0x1516   : > { %v8770_v23 = vpack.c.bf16 %v8766_v3, %v8766_v3  ;;  %v8826_v13 = vpop.permute.xlu1 %8825 }
0x1517   : > { %v8827_v31 = vsel %vm1442_vm5, %v8824_v51, %v8826_v13  ;;  %v9012_v11 = vpop.permute.xlu0 %9011 }
0x1518   : > { %v8832_v0 = vmul.f32 %v8827_v31, %v11325_v29  ;;  %10538 = vmatmul.mubr.msk.bf16.vlgmr.msra.gmra.mrb[204].mxu0 %vm1863_vm12, %v8642_v40  ;;  %10540 = vmatprep.subr.msk.bf16.mxu1 %vm1867_vm11, %v8770_v23 }
0x1519   : > { %8781 = vmatpush1.bf16.msra.mxu1 %v8775_v25  ;;  %8878 = vmatprep.mubr.bf16.mxu0 %v11050_v1 }
0x151a   : > { %v8836_v57 = vpack.c.bf16 %v8832_v0, %v8832_v0  ;;  %v8948_v54 = vpop.permute.xlu1 %8947  ;;  %10546 = vmatprep.subr.msk.bf16.mxu1 %vm1867_vm11, %v8892_v37 }
0x151b   : > { %v8949_v39 = vsel %vm1566_vm7, %v8946_v19, %v8948_v54  ;;  %v8952_v18 = vsel %vm1566_vm7, %v8948_v54, 0.0  ;;  %v10972_v27 = vpop.permute.xlu0 %10971  ;;  %v10557_v19 = vld [vmem:[%s13643_s9 + $0x20] sm:$0xf] }
0x151c   : > { %v8953_v24 = vmul.f32 %v8949_v39, %v11329_v35  ;;  %v8954_v41 = vmul.f32 %v8952_v18, %v11331_v36  ;;  %v10974_v17 = vunpack.i.h.bf16 %v10972_v27  ;;  %10541 = vmatmul.mubr.msk.bf16.vlgmr.msra.gmra.mrb[212].mxu1 %vm1863_vm12, %v10539_v60  ;;  %10543 = vmatprep.subr.msk.bf16.mxu0 %vm1867_vm11, %v8836_v57  ;;  %v10973_v15 = vunpack.i.l.bf16 %v10972_v27 }
0x151d   : > { %8847 = vmatpush1.bf16.msra.mxu0 %v8841_v61  ;;  %8903 = vmatpush1.bf16.msra.mxu1 %v8897_v47 }
0x151e   : > { %v8957_v38 = vpack.c.bf16 %v8953_v24, %v8953_v24  ;;  %v8958_v7 = vpack.c.bf16 %v8954_v41, %v8954_v41  ;;  %v9084_v30 = vsel %vm1700_vm10, %v10974_v17, 0.0  ;;  %v9014_v12 = vpop.permute.xlu1 %9013  ;;  %8934 = vmatprep.mubr.bf16.mxu1 %v11050_v1  ;;  %v9081_v45 = vsel %vm1700_vm10, %v10973_v15, %v10974_v17 }
0x151f   : > { %v9088_v14 = vpack.c.bf16 %v9084_v30, %v9084_v30  ;;  %v9015_v55 = vsel %vm1633_vm9, %v9012_v11, %v9014_v12  ;;  %v9018_v28 = vsel %vm1633_vm9, %v9014_v12, 0.0  ;;  %v9144_v34 = vpop.permute.xlu0 %9143  ;;  %v9087_v8 = vpack.c.bf16 %v9081_v45, %v9081_v45 }
0x1520   : > { %v9019_v46 = vmul.f32 %v9015_v55, %v11323_v26  ;;  %v9020_v42 = vmul.f32 %v9018_v28, %v11325_v29  ;;  %v9148_v52 = vsel %vm1765_vm8, %v9144_v34, 0.0  ;;  %10544 = vmatmul.mubr.msk.bf16.vlgmr.msra.gmra.mrb[208].mxu0 %vm1863_vm12, %v10542_v4  ;;  %10549 = vmatprep.subr.msk.bf16.mxu0 %vm1867_vm11, %v8958_v7  ;;  %v8963_v53 = vsel %vm1867_vm11, %v8957_v38, 0 }
0x1521   : > { %v9150_v21 = vmul.f32 %v9148_v52, %v11331_v36  ;;  %8969 = vmatpush1.bf16.msra.mxu0 %v8963_v53  ;;  %9000 = vmatprep.mubr.bf16.mxu0 %v11050_v1  ;;  %v9093_v62 = vsel %vm1867_vm11, %v9087_v8, 0 }
0x1522   : > { %v9023_v49 = vpack.c.bf16 %v9019_v46, %v9019_v46  ;;  %v9024_v20 = vpack.c.bf16 %v9020_v42, %v9020_v42  ;;  %v9142_v16 = vpop.permute.xlu1 %9141  ;;  %10555 = vmatprep.subr.msk.bf16.mxu0 %vm1867_vm11, %v9088_v14 }
0x1523   : > { %v9154_v2 = vpack.c.bf16 %v9150_v21, %v9150_v21  ;;  %v9145_v51 = vsel %vm1765_vm8, %v9142_v16, %v9144_v34 }
0x1524   : > { %v9149_v56 = vmul.f32 %v9145_v51, %v11329_v35  ;;  %10547 = vmatmul.mubr.msk.bf16.vlgmr.msra.gmra.mrb[216].mxu1 %vm1863_vm12, %v10545_v10  ;;  %10552 = vmatprep.subr.msk.bf16.mxu1 %vm1867_vm11, %v9024_v20  ;;  %v9029_v44 = vsel %vm1867_vm11, %v9023_v49, 0 }
0x1525   : > { %9035 = vmatpush1.bf16.msra.mxu1 %v9029_v44  ;;  %9066 = vmatprep.mubr.bf16.mxu1 %v11050_v1 }
0x1526   : > { %10558 = vmatprep.subr.msk.bf16.mxu1 %vm1867_vm11, %v9154_v2  ;;  %v9153_v32 = vpack.c.bf16 %v9149_v56, %v9149_v56 }
0x1528   : > { %10550 = vmatmul.mubr.msk.bf16.vlgmr.msra.gmra.mrb[212].mxu0 %vm1863_vm12, %v10548_v6  ;;  %v9159_v48 = vsel %vm1867_vm11, %v9153_v32, 0 }
0x1529   : > { %9099 = vmatpush1.bf16.msra.mxu0 %v9093_v62  ;;  %9130 = vmatprep.mubr.bf16.mxu0 %v11050_v1 }
0x152c   : > { %10553 = vmatmul.mubr.msk.bf16.vlgmr.msra.gmra.mrb[220].mxu1 %vm1863_vm12, %v10551_v9 }
0x152d   : > { %9165 = vmatpush1.bf16.msra.mxu1 %v9159_v48  ;;  %9196 = vmatprep.mubr.bf16.mxu1 %v11050_v1 }
0x1530   : > { %10556 = vmatmul.mubr.msk.bf16.vlgmr.msra.gmra.mrb[216].mxu0 %vm1863_vm12, %v10554_v22 }
0x1531   : > { %9661 = vmatprep.mubr.bf16.mxu0 %v11050_v1 }
0x1533   : > { %v9211_v8 = vpop.permute.xlu1 %9210 }
0x1534   : > { %10559 = vmatmul.mubr.msk.bf16.vlgmr.msra.gmra.mrb[224].mxu1 %vm1863_vm12, %v10557_v19 }
0x1535   : > { %9304 = vmatprep.mubr.bf16.mxu1 %v11050_v1 }
0x15e7   : > { %v8700_v43 = vpop.f32.mrb[208].mxu1 }
0x15e8   : > { %v8702_v63 = vpop.f32.mrb[209].mxu1 }
0x15e9   : > { %v8704_v3 = vpop.f32.mrb[210].mxu1 }
0x15ea   : > { %v8705_v5 = vpop.f32.mrb[211].mxu1 }
0x15eb   : > { %v8750_v40 = vpop.f32.mrb[204].mxu0 }
0x15ec   : > { %v8751_v23 = vadd.f32 %v8750_v40, %v8700_v43  ;;  %v8752_v13 = vpop.f32.mrb[205].mxu0  ;;  %v10985_v40 = vld [vmem:[%s11254_s4 + $0x40] sm:$0xff]  }
0x15ed   : > { %v8753_v31 = vadd.f32 %v8752_v13, %v8702_v63  ;;  %v8754_v11 = vpop.f32.mrb[206].mxu0  ;;  %v10090_v13 = vld [vmem:[%s11259_s6 + $0x10] sm:$0xff] }
0x15ee   : > { %v8755_v33 = vpop.f32.mrb[207].mxu0 }
0x15ef   : > { %v8814_v50 = vpop.f32.mrb[212].mxu1 }
0x15f0   : > { %v8821_v0 = vadd.f32 %v8814_v50, %v8751_v23  ;;  %v8816_v25 = vpop.f32.mrb[213].mxu1  ;;  %v10089_v23 = vld [vmem:[%s11259_s6 + $0x8] sm:$0xff] }
0x15f1   : > { %v8822_v37 = vadd.f32 %v8816_v25, %v8753_v31  ;;  %v8818_v60 = vpop.f32.mrb[214].mxu1  ;;  %v10091_v31 = vld [vmem:[%s11259_s6 + $0x18] sm:$0xff] }
0x15f2   : > { %v8819_v57 = vpop.f32.mrb[215].mxu1 }
0x15f3   : > { %v8880_v54 = vpop.f32.mrb[208].mxu0 }
0x15f4   : > { %v8887_v39 = vadd.f32 %v8880_v54, %v8821_v0  ;;  %v8882_v18 = vpop.f32.mrb[209].mxu0 }
0x15f5   : > { %v8888_v27 = vadd.f32 %v8882_v18, %v8822_v37  ;;  %v8884_v47 = vpop.f32.mrb[210].mxu0 }
0x15f6   : > { %v8885_v24 = vpop.f32.mrb[211].mxu0 }
0x15f7   : > { %v8936_v41 = vpop.f32.mrb[216].mxu1 }
0x15f8   : > { %v8943_v17 = vadd.f32 %v8936_v41, %v8887_v39  ;;  %v8938_v61 = vpop.f32.mrb[217].mxu1 }
0x15f9   : > { %v8944_v15 = vadd.f32 %v8938_v61, %v8888_v27  ;;  %v8940_v4 = vpop.f32.mrb[218].mxu1 }
0x15fa   : > { %v8941_v38 = vpop.f32.mrb[219].mxu1 }
0x15fb   : > { %v9002_v7 = vpop.f32.mrb[212].mxu0 }
0x15fc   : > { %v9009_v30 = vadd.f32 %v9002_v7, %v8943_v17  ;;  %v9004_v12 = vpop.f32.mrb[213].mxu0 }
0x15fd   : > { %v9010_v14 = vadd.f32 %v9004_v12, %v8944_v15  ;;  %v9006_v55 = vpop.f32.mrb[214].mxu0  ;;  %v10987_v15 = vld [vmem:[%s11254_s4 + $0x50] sm:$0xff]  }
0x15fe   : > { %v9007_v28 = vpop.f32.mrb[215].mxu0 }
0x15ff   : > { %v9068_v34 = vpop.f32.mrb[220].mxu1 }
0x1600   : > { %v9075_v46 = vadd.f32 %v9068_v34, %v9009_v30  ;;  %v9070_v42 = vpop.f32.mrb[221].mxu1  ;;  %v10988_v34 = vld [vmem:[%s11254_s4 + $0x10] sm:$0xff]  }
0x1601   : > { %v9076_v52 = vadd.f32 %v9070_v42, %v9010_v14  ;;  %v9072_v53 = vpop.f32.mrb[222].mxu1 }
0x1602   : > { %v9073_v21 = vpop.f32.mrb[223].mxu1 }
0x1603   : > { %v9132_v10 = vpop.f32.mrb[216].mxu0 }
0x1604   : > { %v9139_v45 = vadd.f32 %v9132_v10, %v9075_v46  ;;  %v9134_v49 = vpop.f32.mrb[217].mxu0 }
0x1605   : > { %v9140_v20 = vadd.f32 %v9134_v49, %v9076_v52  ;;  %v9136_v16 = vpop.f32.mrb[218].mxu0 }
0x1606   : > { %v9137_v2 = vpop.f32.mrb[219].mxu0 }
0x1607   : > { %v9198_v51 = vpop.f32.mrb[224].mxu1 }
0x1608   : > { %v9205_v56 = vadd.f32 %v9198_v51, %v9139_v45  ;;  %v9200_v44 = vpop.f32.mrb[225].mxu1 }
0x1609   : > { %v9206_v6 = vadd.f32 %v9200_v44, %v9140_v20  ;;  %v9202_v32 = vpop.f32.mrb[226].mxu1  ;;  %v10989_v20 = vld [vmem:[%s11254_s4 + $0x58] sm:$0xff]  }
0x160a   : > { %v9213_v62 = vadd.f32 %v9211_v8, %v9205_v56  ;;  %v9203_v9 = vpop.f32.mrb[227].mxu1 }
0x160b   : > { %v9214_v48 = vadd.f32 %v9211_v8, %v9206_v6  ;;  %v10990_v9 = vld [vmem:[%s11254_s4 + $0x18] sm:$0xff]  }
0x160c   : > { %v9215_v22 = vadd.f32 %v9213_v62, %v11410_v58  ;;  %v10986_v58 = vld [vmem:[%s11254_s4 + $0x48] sm:$0xff]  }
0x160d   : > { %v9216_v19 = vadd.f32 %v9214_v48, %v11412_v59  ;;  %v10088_v59 = vld [vmem:[%s11259_s6] sm:$0xff] }
0x160e   : > { %9690 = vrot.lane.b32.xlu0 %v9215_v22, %s13630_s0  ;;  %v9605_v43 = vpack.c.bf16 %v9215_v22, %v9215_v22 }
0x160f   : > { %9692 = vrot.lane.b32.xlu1 %v9216_v19, %s13630_s0  ;;  %v9606_v63 = vpack.c.bf16 %v9216_v19, %v9216_v19  ;;  %v10975_v3 = vpack.i.bf16 %v9216_v19, %v9215_v22 }
0x1610   : > { %v9624_v5 = vsel %vm1867_vm11, %v9605_v43, 0 }
0x1611   : > { %10598 = vmatprep.subr.msk.bf16.mxu0 %vm1867_vm11, %v9606_v63 }
0x1612   : > { %10976 = vrot.lane.b32.xlu0 %v10975_v3, %s13629_s10  ;;  %9630 = vmatpush1.bf16.msra.mxu0 %v9624_v5 }
0x1613   : > { %9219 = vrot.lane.b32.xlu1 %v9215_v22, %s13627_s11 }
0x1615   : > { %10599 = vmatmul.mubr.msk.bf16.vlgmr.msra.gmra.mrb[220].mxu0 %vm1863_vm12, %v10985_v40 }
0x1616   : > { %9221 = vrot.lane.b32.xlu0 %v9216_v19, %s13627_s11  ;;  %9671 = vmatprep.mubr.bf16.mxu0 %v11050_v1 }
0x1617   : > { %9790 = vrot.lane.b32.xlu1 %v9215_v22, %s13631_s3 }
0x161a   : > { %9792 = vrot.lane.b32.xlu0 %v9216_v19, %s13631_s3 }
0x161b   : > { %9400 = vrot.lane.b32.xlu1 %v9215_v22, %s13637_s7 }
0x161d   : > { %10600 = vmatmul.mubr.msk.bf16.gmra.mrb[224].mxu0 %vm1863_vm12, %v10986_v58 }
0x161e   : > { %9402 = vrot.lane.b32.xlu0 %v9216_v19, %s13637_s7  ;;  %9761 = vmatprep.mubr.bf16.mxu0 %v11050_v1 }
0x161f   : > { %10981 = vrot.lane.b32.xlu1 %v10975_v3, %s13623_s1 }
0x1622   : > { %9500 = vrot.lane.b32.xlu0 %v9215_v22, %s13634_s5 }
0x1623   : > { %9502 = vrot.lane.b32.xlu1 %v9216_v19, %s13634_s5  ;;  %s10640_s5 = sshll.u32 %s13645_s23, 6 }
0x1624   : > { %s13539_s3 = scalar_lea.vmem %s11264_s20, %s10640_s5 }
0x1626   : > { %9988 = vrot.lane.b32.xlu0 %v9215_v22, %s13624_s28 }
0x1627   : > { %9990 = vrot.lane.b32.xlu1 %v9216_v19, %s13624_s28 }
0x162a   : > { %10094 = vperm.xlu0 %10763, %v10088_v59   ;;  %v10991_v59 = vld [vmem:[%s11254_s4 + $0x60] sm:$0xff]  }
0x162b   : > { %10099 = vperm.xlu1 %10784, %v10089_v23  }
0x162e   : > { %10104 = vperm.xlu0 %10763, %v10090_v13  }
0x162f   : > { %10109 = vperm.xlu1 %10784, %v10091_v31  }
0x1680   : > { %v9691_v11 = vpop.permute.xlu0 %9690 }
0x1681   : > { %v9693_v33 = vpop.permute.xlu1 %9692 }
0x1682   : > { %v9694_v50 = vsel %vm1566_vm7, %v9691_v11, %v9693_v33  ;;  %v9697_v0 = vsel %vm1566_vm7, %v9693_v33, 0.0 }
0x1683   : > { %v9698_v25 = vmul.f32 %v9694_v50, %v11329_v35  ;;  %v9699_v37 = vmul.f32 %v9697_v0, %v11331_v36  ;;  %v10992_v50 = vld [vmem:[%s11254_s4] sm:$0xff]  }
0x1684   : > { %v10977_v60 = vpop.permute.xlu0 %10976 }
0x1685   : > { %v9705_v57 = vpack.c.bf16 %v9698_v25, %v9698_v25  ;;  %v9706_v54 = vpack.c.bf16 %v9699_v37, %v9699_v37  ;;  %v10979_v39 = vunpack.i.h.bf16 %v10977_v60  ;;  %v10978_v18 = vunpack.i.l.bf16 %v10977_v60  ;;  %v9220_v27 = vpop.permute.xlu1 %9219 }
0x1686   : > { %v9226_v47 = vsel %vm1221_vm2, 0.0, %v9220_v27 }
0x1687   : > { %v9239_v24 = vsel %vm1246_vm1, %v10978_v18, %v10979_v39  ;;  %v9242_v41 = vsel %vm1246_vm1, 0.0, %v10978_v18  ;;  %v9227_v17 = vmul.f32 %v9226_v47, %v11323_v26  ;;  %10607 = vmatprep.subr.msk.bf16.mxu0 %vm1867_vm11, %v9706_v54  ;;  %v9724_v61 = vsel %vm1867_vm11, %v9705_v57, 0  ;;  %v10994_v39 = vld [vmem:[%s11254_s4 + $0x8] sm:$0xff]  }
0x1688   : > { %v9248_v4 = vpack.c.bf16 %v9242_v41, %v9242_v41  ;;  %v9249_v38 = vpack.c.bf16 %v9239_v24, %v9239_v24  ;;  %v9222_v7 = vpop.permute.xlu0 %9221  ;;  %9730 = vmatpush1.bf16.msra.mxu0 %v9724_v61  ;;  %v10995_v41 = vld [vmem:[%s11254_s4 + $0x70] sm:$0xff]   ;;  %v10996_v61 = vld [vmem:[%s11254_s4 + $0x20] sm:$0xff]  }
0x1689   : > { %v9223_v30 = vsel %vm1221_vm2, %v9220_v27, %v9222_v7  ;;  %v9791_v12 = vpop.permute.xlu1 %9790  ;;  %v9233_v14 = vpack.c.bf16 %v9227_v17, %v9227_v17  ;;  %v11000_v7 = vld [vmem:[%s11254_s4 + $0x30] sm:$0xff]  }
0x168a   : > { %v9228_v55 = vmul.f32 %v9223_v30, %v11325_v29  ;;  %10566 = vmatprep.subr.msk.bf16.mxu1 %vm1867_vm11, %v9249_v38  ;;  %v9267_v28 = vsel %vm1867_vm11, %v9248_v4, 0  ;;  %v10998_v4 = vld [vmem:[%s11254_s4 + $0x28] sm:$0xff]   ;;  %v10999_v38 = vld [vmem:[%s11254_s4 + $0x80] sm:$0xff]  }
0x168b   : > { %9273 = vmatpush1.bf16.msra.mxu1 %v9267_v28  ;;  %10608 = vmatmul.mubr.msk.bf16.vlgmr.msra.gmra.mrb[220].mxu0 %vm1863_vm12, %v10987_v15  ;;  %v9342_v49 = vsel %vm1867_vm11, %v9233_v14, 0  ;;  %v10997_v15 = vld [vmem:[%s11254_s4 + $0x78] sm:$0xff]   ;;  %v11001_v30 = vld [vmem:[%s11254_s4 + $0x88] sm:$0xff]  }
0x168c   : > { %v9234_v46 = vpack.c.bf16 %v9228_v55, %v9228_v55  ;;  %v9793_v42 = vpop.permute.xlu0 %9792  ;;  %9771 = vmatprep.mubr.bf16.mxu0 %v11050_v1 }
0x168d   : > { %v9794_v52 = vsel %vm1633_vm9, %v9791_v12, %v9793_v42  ;;  %v9797_v53 = vsel %vm1633_vm9, %v9793_v42, 0.0  ;;  %v9401_v21 = vpop.permute.xlu1 %9400  ;;  %v11002_v12 = vld [vmem:[%s11254_s4 + $0x38] sm:$0xff]  }
0x168e   : > { %v9798_v10 = vmul.f32 %v9794_v52, %v11323_v26  ;;  %v9799_v45 = vmul.f32 %v9797_v53, %v11325_v29  ;;  %10567 = vmatmul.mubr.msk.bf16.vlgmr.msra.gmra.mrb[228].mxu1 %vm1863_vm12, %v10988_v34  ;;  %10571 = vmatprep.subr.msk.bf16.mxu1 %vm1867_vm11, %v9234_v46  ;;  %v9407_v48 = vsel %vm1364_vm4, 0.0, %v9401_v21 }
0x168f   : > { %9348 = vmatpush1.bf16.msra.mxu1 %v9342_v49  ;;  %9314 = vmatprep.mubr.bf16.mxu1 %v11050_v1  ;;  %v9408_v40 = vmul.f32 %v9407_v48, %v11329_v35 }
0x1690   : > { %v9805_v16 = vpack.c.bf16 %v9798_v10, %v9798_v10  ;;  %v9806_v2 = vpack.c.bf16 %v9799_v45, %v9799_v45  ;;  %v9403_v51 = vpop.permute.xlu0 %9402 }
0x1691   : > { %v9404_v56 = vsel %vm1364_vm4, %v9401_v21, %v9403_v51  ;;  %v10982_v44 = vpop.permute.xlu1 %10981  ;;  %v9415_v31 = vpack.c.bf16 %v9408_v40, %v9408_v40 }
0x1692   : > { %v9409_v8 = vmul.f32 %v9404_v56, %v11331_v36  ;;  %v10984_v6 = vunpack.i.h.bf16 %v10982_v44  ;;  %v10983_v32 = vunpack.i.l.bf16 %v10982_v44  ;;  %10616 = vmatprep.subr.msk.bf16.mxu0 %vm1867_vm11, %v9806_v2  ;;  %v9824_v62 = vsel %vm1867_vm11, %v9805_v16, 0 }
0x1693   : > { %10609 = vmatmul.mubr.msk.bf16.gmra.mrb[224].mxu0 %vm1863_vm12, %v10989_v20 }
0x1694   : > { %v9416_v22 = vpack.c.bf16 %v9409_v8, %v9409_v8  ;;  %v9897_v19 = vsel %vm1700_vm10, %v10984_v6, 0.0  ;;  %9830 = vmatpush1.bf16.msra.mxu0 %v9824_v62  ;;  %v9501_v43 = vpop.permute.xlu0 %9500  ;;  %9861 = vmatprep.mubr.bf16.mxu0 %v11050_v1  ;;  %v9894_v63 = vsel %vm1700_vm10, %v10983_v32, %v10984_v6 }
0x1695   : > { %v9904_v3 = vpack.c.bf16 %v9897_v19, %v9897_v19  ;;  %v9503_v5 = vpop.permute.xlu1 %9502  ;;  %v9903_v23 = vpack.c.bf16 %v9894_v63, %v9894_v63  ;;  %v9507_v18 = vsel %vm1442_vm5, 0.0, %v9501_v43 }
0x1696   : > { %10568 = vmatmul.mubr.msk.bf16.gmra.mrb[232].mxu1 %vm1863_vm12, %v10990_v9  ;;  %10580 = vmatprep.subr.msk.bf16.mxu1 %vm1867_vm11, %v9416_v22  ;;  %v9504_v58 = vsel %vm1442_vm5, %v9501_v43, %v9503_v5  ;;  %v9508_v47 = vmul.f32 %v9507_v18, %v11323_v26 }
0x1697   : > { %10625 = vmatprep.subr.msk.bf16.mxu0 %vm1867_vm11, %v9904_v3  ;;  %9379 = vmatprep.mubr.bf16.mxu1 %v11050_v1  ;;  %v9509_v11 = vmul.f32 %v9504_v58, %v11325_v29  ;;  %v9922_v25 = vsel %vm1867_vm11, %v9903_v23, 0  ;;  %v9434_v29 = vsel %vm1867_vm11, %v9415_v31, 0 }
0x1698   : > { %v9989_v37 = vpop.permute.xlu0 %9988  ;;  %v9515_v17 = vpack.c.bf16 %v9508_v47, %v9508_v47 }
0x1699   : > { %v9991_v13 = vpop.permute.xlu1 %9990  ;;  %v9516_v57 = vpack.c.bf16 %v9509_v11, %v9509_v11 }
0x169a   : > { %v9995_v33 = vsel %vm1765_vm8, %v9991_v13, 0.0  ;;  %v9992_v54 = vsel %vm1765_vm8, %v9989_v37, %v9991_v13  ;;  %v9534_v26 = vsel %vm1867_vm11, %v9515_v17, 0 }
0x169b   : > { %v9997_v0 = vmul.f32 %v9995_v33, %v11331_v36  ;;  %10617 = vmatmul.mubr.msk.bf16.vlgmr.msra.gmra.mrb[220].mxu0 %vm1863_vm12, %v10991_v59  ;;  %v10993_v36 = vld [vmem:[%s11254_s4 + $0x68] sm:$0xff]   ;;  %v9996_v27 = vmul.f32 %v9992_v54, %v11329_v35 }
0x169c   : > { %9928 = vmatpush1.bf16.msra.mxu0 %v9922_v25  ;;  %9871 = vmatprep.mubr.bf16.mxu0 %v11050_v1 }
0x169d   : > { %v10004_v60 = vpack.c.bf16 %v9997_v0, %v9997_v0  ;;  %v10003_v24 = vpack.c.bf16 %v9996_v27, %v9996_v27 }
0x169e   : > { %10572 = vmatmul.mubr.msk.bf16.vlgmr.msra.gmra.mrb[228].mxu1 %vm1863_vm12, %v10992_v50 }
0x169f   : > { %9440 = vmatpush1.bf16.msra.mxu1 %v9434_v29  ;;  %10634 = vmatprep.subr.msk.bf16.mxu0 %vm1867_vm11, %v10004_v60  ;;  %v10022_v35 = vsel %vm1867_vm11, %v10003_v24, 0 }
0x16a0   : > { %10589 = vmatprep.subr.msk.bf16.mxu1 %vm1867_vm11, %v9516_v57  ;;  %9389 = vmatprep.mubr.bf16.mxu1 %v11050_v1 }
0x16a3   : > { %10618 = vmatmul.mubr.msk.bf16.gmra.mrb[224].mxu0 %vm1863_vm12, %v10993_v36 }
0x16a4   : > { %9959 = vmatprep.mubr.bf16.mxu0 %v11050_v1 }
0x16a6   : > { %10573 = vmatmul.mubr.msk.bf16.gmra.mrb[232].mxu1 %vm1863_vm12, %v10994_v39 }
0x16a7   : > { %9471 = vmatprep.mubr.bf16.mxu1 %v11050_v1 }
0x16a9   : > { %v10095_v53 = vpop.permute.xlu0 %10094 }
0x16aa   : > { %v10100_v20 = vpop.permute.xlu1 %10099 }
0x16ab   : > { %10626 = vmatmul.mubr.msk.bf16.vlgmr.msra.gmra.mrb[220].mxu0 %vm1863_vm12, %v10995_v41 }
0x16ac   : > { %10028 = vmatpush1.bf16.msra.mxu0 %v10022_v35  ;;  %9969 = vmatprep.mubr.bf16.mxu0 %v11050_v1 }
0x16ad   : > { %v10105_v22 = vpop.permute.xlu0 %10104 }
0x16ae   : > { %10581 = vmatmul.mubr.msk.bf16.vlgmr.msra.gmra.mrb[228].mxu1 %vm1863_vm12, %v10996_v61  ;;  %v10110_v40 = vpop.permute.xlu1 %10109 }
0x16af   : > { %9540 = vmatpush1.bf16.msra.mxu1 %v9534_v26  ;;  %9481 = vmatprep.mubr.bf16.mxu1 %v11050_v1 }
0x16b3   : > { %10627 = vmatmul.mubr.msk.bf16.gmra.mrb[224].mxu0 %vm1863_vm12, %v10997_v15 }
0x16b4   : > { %10059 = vmatprep.mubr.bf16.mxu0 %v11050_v1 }
0x16b6   : > { %10582 = vmatmul.mubr.msk.bf16.gmra.mrb[232].mxu1 %vm1863_vm12, %v10998_v4 }
0x16b7   : > { %9571 = vmatprep.mubr.bf16.mxu1 %v11050_v1 }
0x16bb   : > { %10635 = vmatmul.mubr.msk.bf16.vlgmr.msra.gmra.mrb[220].mxu0 %vm1863_vm12, %v10999_v38 }
0x16bc   : > { %10069 = vmatprep.mubr.bf16.mxu0 %v11050_v1 }
0x16be   : > { %10590 = vmatmul.mubr.msk.bf16.vlgmr.msra.gmra.mrb[228].mxu1 %vm1863_vm12, %v11000_v7 }
0x16bf   : > { %9581 = vmatprep.mubr.bf16.mxu1 %v11050_v1 }
0x16c3   : > { %10636 = vmatmul.mubr.msk.bf16.gmra.mrb[224].mxu0 %vm1863_vm12, %v11001_v30 }
0x16c6   : > { %10591 = vmatmul.mubr.msk.bf16.gmra.mrb[232].mxu1 %vm1863_vm12, %v11002_v12 }
0x178e   : > { %v10061_v14 = vpop.f32.mrb[220].mxu0 }
0x178f   : > { %v10063_v55 = vpop.f32.mrb[221].mxu0 }
0x1790   : > { %v10065_v28 = vpop.f32.mrb[222].mxu0 }
0x1791   : > { %v9573_v34 = vpop.f32.mrb[228].mxu1  ;;  %v10067_v46 = vpop.f32.mrb[223].mxu0 }
0x1792   : > { %v10641_v42 = vadd.f32 %v10061_v14, %v9573_v34  ;;  %v9575_v52 = vpop.f32.mrb[229].mxu1 }
0x1793   : > { %v10642_v1 = vadd.f32 %v10063_v55, %v9575_v52  ;;  %v9577_v21 = vpop.f32.mrb[230].mxu1 }
0x1794   : > { %v10112_v10 = vadd.f32 %v10641_v42, %v10095_v53  ;;  %v10643_v45 = vadd.f32 %v10065_v28, %v9577_v21  ;;  %v9579_v49 = vpop.f32.mrb[231].mxu1 }
0x1795   : > { %v10113_v16 = vadd.f32 %v10642_v1, %v10095_v53  ;;  %v10644_v2 = vadd.f32 %v10067_v46, %v9579_v49 }
0x1796   : > { %10120 = vst [vmem:[%s13539_s3] sm:$0xff] %v10112_v10  ;;  %v10114_v51 = vadd.f32 %v10643_v45, %v10100_v20  ;;  %v10071_v56 = vpop.f32.mrb[224].mxu0 }
0x1797   : > { %10121 = vst [vmem:[%s13539_s3 + $0x8] sm:$0xff] %v10113_v16  ;;  %v10115_v44 = vadd.f32 %v10644_v2, %v10100_v20  ;;  %v10073_v8 = vpop.f32.mrb[225].mxu0 }
0x1798   : > { %10122 = vst [vmem:[%s13539_s3 + $0x10] sm:$0xff] %v10114_v51  ;;  %v10075_v6 = vpop.f32.mrb[226].mxu0 }
0x1799   : > { %10123 = vst [vmem:[%s13539_s3 + $0x18] sm:$0xff] %v10115_v44  ;;  %v9583_v32 = vpop.f32.mrb[232].mxu1  ;;  %v10077_v62 = vpop.f32.mrb[227].mxu0 }
0x179a   : > { %v10645_v9 = vadd.f32 %v10071_v56, %v9583_v32  ;;  %v9585_v48 = vpop.f32.mrb[233].mxu1 }
0x179b   : > { %v10646_v19 = vadd.f32 %v10073_v8, %v9585_v48  ;;  %v9587_v43 = vpop.f32.mrb[234].mxu1 }
0x179c   : > { %v10116_v63 = vadd.f32 %v10645_v9, %v10105_v22  ;;  %v10647_v3 = vadd.f32 %v10075_v6, %v9587_v43  ;;  %v9589_v5 = vpop.f32.mrb[235].mxu1 }
0x179d   : > { %v10117_v58 = vadd.f32 %v10646_v19, %v10105_v22  ;;  %v10648_v59 = vadd.f32 %v10077_v62, %v9589_v5 }
0x179e   : > { %10124 = vst [vmem:[%s13539_s3 + $0x20] sm:$0xff] %v10116_v63  ;;  %v10118_v23 = vadd.f32 %v10647_v3, %v10110_v40 }
0x179f   : > { %10125 = vst [vmem:[%s13539_s3 + $0x28] sm:$0xff] %v10117_v58  ;;  %v10119_v13 = vadd.f32 %v10648_v59, %v10110_v40 }
0x17a0   : > { %10126 = vst [vmem:[%s13539_s3 + $0x30] sm:$0xff] %v10118_v23 }
0x17a1   : > { %10127 = vst [vmem:[%s13539_s3 + $0x38] sm:$0xff] %v10119_v13 }
0x17a2 PF: > { %s89_s22 = sadd.s32 1, %s11009_s22  }
0x17a3   : > { %p86_p4 = scmp.ge.s32.totalorder %s89_s22, 4  }
0x17a5   :  { %88 = sbr.rel (!%p86_p4) target bundleno = 72 (0x48), region = 349 }

</bundles_post_ra>
